<compile_context>
chip_gen: v7x
topology: tpu7x:2x2x1
jax: 0.10.0
libtpu: 0.0.40
codegen_flags: <defaults>
</compile_context>

<pallas_src>
import jax
import jax.numpy as jnp
from jax.experimental import pallas as pl
from jax.experimental.pallas import tpu as pltpu


# ----------------------------------------------------------------------------
# Kernel 1: per-tile partial sums of the conv0 output (for the per-batch std)
# ----------------------------------------------------------------------------
def _lpfa_stats_kernel(g_ref, c_ref, w0_ref, s_ref):
    # g_ref:  (tm, K*C)    f32   gathered neighbor features (lane-dense 2D)
    # c_ref:  (tm, C)      f32   center-point features
    # w0_ref: (C, D0)      bf16  conv0 weight^T
    # s_ref:  (1, 8, 128)  f32   partial sums: [0,0,0] = sum(t), [0,0,1] = sum(t*t)
    tm = g_ref.shape[0]
    C = c_ref.shape[1]
    K = g_ref.shape[1] // C

    res = g_ref[...].reshape(tm, K, C) - c_ref[...][:, None, :]          # (tm, K, C)
    t = jnp.dot(res.reshape(tm * K, C).astype(w0_ref.dtype), w0_ref[...],
                preferred_element_type=jnp.float32)                      # (tm*K, D0) f32

    s = jnp.sum(t)                         # f32 accumulation of the sums
    ss = jnp.sum(t * t)
    lane = jax.lax.broadcasted_iota(jnp.int32, s_ref.shape, len(s_ref.shape) - 1)
    # lane 0 carries sum(t), every other lane carries sum(t*t); host reads [...,0/1].
    s_ref[...] = jnp.where(lane == 0, s, ss)


# ----------------------------------------------------------------------------
# Kernel 2: fused conv0 + normalize + conv1 + BN1 + LeakyReLU
#           + conv2 + BN2 + LeakyReLU + max over k
# ----------------------------------------------------------------------------
def _lpfa_fused_kernel(g_ref, c_ref, w0_ref, w1g_ref, w1p_ref, b1_ref,
                       w2_ref, b2_ref, o_ref):
    # g_ref:   (tm, K*C)   f32   gathered neighbor features (lane-dense 2D)
    # c_ref:   (tm, C)     f32   center-point features
    # w0_ref:  (C, D0)     bf16  conv0 weight^T
    # w1g_ref: (1, D0, Co) bf16  per-tile conv1 weights, grouped half
    #                            (1/(std+eps), affine_alpha and BN1 scale folded in)
    # w1p_ref: (C, Co)     bf16  conv1 weights, points half (BN1 scale folded)
    # b1_ref:  (1, Co)     f32   folded shift  (W1g @ beta) * s1 + b1
    # w2_ref:  (Co, Co)    bf16  conv2 weights (BN2 scale folded)
    # b2_ref:  (1, Co)     f32   BN2 shift
    # o_ref:   (tm, Co)
    tm = g_ref.shape[0]
    C = c_ref.shape[1]
    K = g_ref.shape[1] // C
    Co = o_ref.shape[-1]

    # conv0, recomputed in-tile (never round-trips HBM)
    res = g_ref[...].reshape(tm, K, C) - c_ref[...][:, None, :]          # (tm, K, C)
    t = jnp.dot(res.reshape(tm * K, C).astype(w0_ref.dtype), w0_ref[...],
                preferred_element_type=jnp.float32)                      # (tm*K, D0)

    # conv1, grouped half: 1/(std+eps), affine_alpha, BN1 scale live in w1g_ref
    gp = jnp.dot(t.astype(w1g_ref.dtype), w1g_ref[0],
                 preferred_element_type=jnp.float32) + b1_ref[...]       # (tm*K, Co)
    # conv1, points half -- identical across the K neighbors: computed once/row
    pp = jnp.dot(c_ref[...].astype(w1p_ref.dtype), w1p_ref[...],
                 preferred_element_type=jnp.float32)                     # (tm, Co)

    h1 = (gp.reshape(tm, K, Co) + pp[:, None, :]).reshape(tm * K, Co)
    h1 = jnp.maximum(h1, 0.2 * h1)                                       # LeakyReLU(0.2)

    # conv2 + folded BN2 + LeakyReLU
    h2 = jnp.dot(h1.astype(w2_ref.dtype), w2_ref[...],
                 preferred_element_type=jnp.float32) + b2_ref[...]       # (tm*K, Co)
    h2 = jnp.maximum(h2, 0.2 * h2)

    # max over the K neighbors
    o_ref[...] = jnp.max(h2.reshape(tm, K, Co), axis=1).astype(o_ref.dtype)


# ----------------------------------------------------------------------------
# Host-side helpers / wrapper
# ----------------------------------------------------------------------------
def _knn_idx(xyz, k):
    """Matches knn() in the PyTorch module (k+1 nearest, then keep first k)."""
    inner = -2.0 * jnp.einsum('bdi,bdj->bij', xyz, xyz)
    xx = jnp.sum(xyz * xyz, axis=1)                                      # (B, N)
    pdist = -xx[:, None, :] - inner - xx[:, :, None]                     # -||xi - xj||^2
    _, idx = jax.lax.top_k(pdist, k + 1)
    return idx[:, :, :k]                                                 # (B, N, k)


def lpfa_forward(x, xyz, w0, alpha, beta, w1, bn1_scale, bn1_shift,
                 w2, bn2_scale, bn2_shift, *, k, idx=None, tm=512,
                 mxu_dtype=jnp.bfloat16):
    """x: (B, C, N), xyz: (B, 3, N). Returns (B, out_channel, N).

    tm: row tile (multiple of 128).  512 is a good default on v6e/v7x;
    prefer 256 on v5e (16 MiB default scoped VMEM).
    """
    B, C, N = x.shape
    D0 = w0.shape[0]                       # neighbor_normal out channels (32)
    Co = w1.shape[0]                       # LPFA out_channel
    assert w1.shape[1] == D0 + C

    # ---- grouping (XLA): knn indices + neighbor gather ----
    if idx is None:
        idx = _knn_idx(xyz, k)                                           # (B, N, k)
    K = idx.shape[-1]
    x_t = jnp.transpose(x, (0, 2, 1))                                    # (B, N, C)
    grouped = jax.vmap(lambda feat, ind: feat[ind, :])(x_t, idx)         # (B, N, K, C)

    # ---- per-batch row tiling: tm multiple of 128 (lane-dense blocks),
    #      N padded per batch so no tile straddles a batch boundary ----
    tm = max(128, (min(tm, pl.cdiv(N, 128) * 128) // 128) * 128)
    n_pad = pl.cdiv(N, tm) * tm
    tiles_per_batch = n_pad // tm
    n_tiles = B * tiles_per_batch          # even when B is even -> both v7x TCs busy
    rows_p = B * n_pad

    # Lane-dense 2D presentation of the gathered features: last dim K*C (=256 here).
    g2 = grouped.reshape(B, N, K * C)
    c2 = x_t
    if n_pad != N:
        g2 = jnp.pad(g2, ((0, 0), (0, n_pad - N), (0, 0)))
        c2 = jnp.pad(c2, ((0, 0), (0, n_pad - N), (0, 0)))
    g2 = g2.reshape(rows_p, K * C)
    c2 = c2.reshape(rows_p, C)

    w0_t = w0.T.astype(mxu_dtype)                                        # (C, D0)

    # ---- kernel 1: per-tile (sum, sum^2) of the conv0 output ----
    cost1 = pl.CostEstimate(
        flops=2 * rows_p * K * C * D0 + 4 * rows_p * K * D0,
        transcendentals=0,
        bytes_accessed=4 * (g2.size + c2.size) + 2 * w0_t.size
                       + 4 * n_tiles * 8 * 128)
    stats = pl.pallas_call(
        _lpfa_stats_kernel,
        out_shape=jax.ShapeDtypeStruct((n_tiles, 8, 128), jnp.float32),
        grid_spec=pltpu.PrefetchScalarGridSpec(
            num_scalar_prefetch=0,
            grid=(n_tiles,),
            in_specs=[
                pl.BlockSpec((tm, K * C), lambda i: (i, 0)),             # neighbors
                pl.BlockSpec((tm, C), lambda i: (i, 0)),                 # centers
                pl.BlockSpec((C, D0), lambda i: (0, 0)),                 # W0^T
            ],
            out_specs=pl.BlockSpec((1, 8, 128), lambda i: (i, 0, 0)),
        ),
        compiler_params=pltpu.CompilerParams(
            dimension_semantics=("parallel",)),
        cost_estimate=cost1,
    )(g2, c2, w0_t)

    # ---- per-batch unbiased std from the partial sums (tiny, XLA) ----
    # Zero-padded rows contribute 0 to both sums, so use the true element count.
    t_sum = jnp.sum(stats[:, 0, 0].reshape(B, tiles_per_batch), axis=1)  # (B,)
    t_sqs = jnp.sum(stats[:, 0, 1].reshape(B, tiles_per_batch), axis=1)  # (B,)
    cnt = float(N * K * D0)
    mean = t_sum / cnt
    var = jnp.maximum((t_sqs - cnt * mean * mean) / (cnt - 1.0), 0.0)
    inv = 1.0 / (jnp.sqrt(var) + 1e-5)                                   # (B,) f32
    inv_tiles = jnp.repeat(inv, tiles_per_batch)                         # (n_tiles,)

    # ---- fold 1/(std+eps), affine_alpha and the BN scales into the weights ----
    w1g = w1[:, :D0]                                                     # (Co, D0)
    w1p = w1[:, D0:]                                                     # (Co, C)
    w1g_base = (w1g * alpha[None, :]).T * bn1_scale[None, :]             # (D0, Co) f32
    # per-tile (== per-batch) conv1 grouped weights with 1/(std+eps) folded in
    w1g_tiles = (inv_tiles[:, None, None] * w1g_base[None]).astype(mxu_dtype)
    w1p_fold = (w1p.T * bn1_scale[None, :]).astype(mxu_dtype)
    shift1 = ((w1g @ beta) * bn1_scale + bn1_shift).reshape(1, Co).astype(jnp.float32)
    w2_fold = (w2.T * bn2_scale[None, :]).astype(mxu_dtype)
    shift2 = bn2_shift.reshape(1, Co).astype(jnp.float32)

    # ---- kernel 2: fused conv0 + normalize + MLP + max over k ----
    cost2 = pl.CostEstimate(
        flops=(2 * rows_p * K * C * D0 + 2 * rows_p * K * D0 * Co
               + 2 * rows_p * C * Co + 2 * rows_p * K * Co * Co),
        transcendentals=0,
        bytes_accessed=(4 * (g2.size + c2.size + rows_p * Co + 2 * Co)
                        + 2 * (w0_t.size + w1g_tiles.size + w1p_fold.size
                               + w2_fold.size)))
    out2d = pl.pallas_call(
        _lpfa_fused_kernel,
        out_shape=jax.ShapeDtypeStruct((rows_p, Co), x.dtype),
        grid_spec=pltpu.PrefetchScalarGridSpec(
            num_scalar_prefetch=0,
            grid=(n_tiles,),
            in_specs=[
                pl.BlockSpec((tm, K * C), lambda i: (i, 0)),             # neighbors
                pl.BlockSpec((tm, C), lambda i: (i, 0)),                 # centers
                pl.BlockSpec((C, D0), lambda i: (0, 0)),                 # W0^T
                pl.BlockSpec((1, D0, Co), lambda i: (i, 0, 0)),          # per-tile W1g
                pl.BlockSpec((C, Co), lambda i: (0, 0)),                 # W1 points half
                pl.BlockSpec((1, Co), lambda i: (0, 0)),                 # shift1
                pl.BlockSpec((Co, Co), lambda i: (0, 0)),                # W2
                pl.BlockSpec((1, Co), lambda i: (0, 0)),                 # shift2
            ],
            out_specs=pl.BlockSpec((tm, Co), lambda i: (i, 0)),
        ),
        compiler_params=pltpu.CompilerParams(
            dimension_semantics=("parallel",)),
        cost_estimate=cost2,
    )(g2, c2, w0_t, w1g_tiles, w1p_fold, shift1, w2_fold, shift2)

    out = out2d.reshape(B, n_pad, Co)[:, :N, :]
    return jnp.transpose(out, (0, 2, 1))                                 # (B, Co, N)


# ----------------------------------------------------------------------------
# Pure-JAX reference of the original module's forward (inference-mode BN)
# ----------------------------------------------------------------------------
def _reference(x, xyz, k, w0, alpha, beta, w1, bn1_scale, bn1_shift,
               w2, bn2_scale, bn2_shift, idx=None):
    B, C, N = x.shape
    if idx is None:
        idx = _knn_idx(xyz, k)
    x_t = jnp.transpose(x, (0, 2, 1))
    grouped = jax.vmap(lambda feat, ind: feat[ind, :])(x_t, idx)         # (B, N, k, C)
    points = jnp.broadcast_to(x_t[:, :, None, :], grouped.shape)
    res = jnp.einsum('bnkc,dc->bnkd', grouped - points, w0)              # conv0
    std = jnp.std(res.reshape(B, -1), axis=-1, ddof=1)
    g = alpha * (res / (std[:, None, None, None] + 1e-5)) + beta
    feat = jnp.concatenate([g, points], axis=-1)
    h = jnp.einsum('bnkc,oc->bnko', feat, w1) * bn1_scale + bn1_shift
    h = jnp.maximum(h, 0.2 * h)
    h = jnp.einsum('bnko,po->bnkp', h, w2) * bn2_scale + bn2_shift
    h = jnp.maximum(h, 0.2 * h)
    return jnp.transpose(jnp.max(h, axis=2), (0, 2, 1))                  # (B, Co, N)


if __name__ == "__main__":
    # Small but channel-consistent shapes: the module requires in_channels == 32
    # (neighbor_normal outputs 32 channels and the MLP expects 2*in_channels).
    B, C, N, K = 2, 32, 128, 8
    D0 = 32          # neighbor_normal.conv0 out channels (hard-coded 32 in the module)
    Co = 64          # LPFA out_channel
    eps = 1e-5

    key = jax.random.PRNGKey(0)
    ks = jax.random.split(key, 16)

    x = jax.random.normal(ks[0], (B, C, N), jnp.float32)
    xyz = jax.random.normal(ks[1], (B, 3, N), jnp.float32)

    # Conv weights (kernel_size=1, bias=False): PyTorch (out, in, 1[,1]) -> (out, in)
    w0 = 0.1 * jax.random.normal(ks[2], (D0, C), jnp.float32)
    w1 = 0.1 * jax.random.normal(ks[3], (Co, D0 + C), jnp.float32)
    w2 = 0.1 * jax.random.normal(ks[4], (Co, Co), jnp.float32)

    # neighbor_normal affine parameters
    alpha = 1.0 + 0.1 * jax.random.normal(ks[5], (D0,), jnp.float32)
    beta = 0.1 * jax.random.normal(ks[6], (D0,), jnp.float32)

    # Inference-mode BatchNorm2d, folded to per-channel scale/shift
    def bn_fold(kg, kb, km, kv, ch):
        gamma = 1.0 + 0.1 * jax.random.normal(kg, (ch,), jnp.float32)
        bbeta = 0.1 * jax.random.normal(kb, (ch,), jnp.float32)
        rmean = 0.05 * jax.random.normal(km, (ch,), jnp.float32)
        rvar = jnp.abs(1.0 + 0.1 * jax.random.normal(kv, (ch,), jnp.float32))
        scale = gamma / jnp.sqrt(rvar + eps)
        return scale, bbeta - rmean * scale

    bn1_scale, bn1_shift = bn_fold(ks[7], ks[8], ks[9], ks[10], Co)
    bn2_scale, bn2_shift = bn_fold(ks[11], ks[12], ks[13], ks[14], Co)

    # Shared knn indices (the module also accepts a precomputed idx).
    idx = _knn_idx(xyz, K)

    # tm=512 (default) clips to the per-batch row count (128 here) -> 2 grid
    # steps, one per batch; the even tile count keeps both v7x TensorCores busy.
    fwd = jax.jit(lpfa_forward, static_argnames=("k", "tm"))
    out = fwd(x, xyz, w0, alpha, beta, w1, bn1_scale, bn1_shift,
              w2, bn2_scale, bn2_shift, k=K, idx=idx)
    out = jax.block_until_ready(out)

    ref = _reference(x, xyz, K, w0, alpha, beta, w1, bn1_scale, bn1_shift,
                     w2, bn2_scale, bn2_shift, idx=idx)

    assert out.shape == (B, Co, N)
    max_err = float(jnp.max(jnp.abs(out - ref)))
    # bf16 MXU operands with f32 accumulation/elementwise -> loosened tolerance.
    assert jnp.allclose(out, ref, atol=5e-2, rtol=5e-2), f"max abs err = {max_err}"

    print("KERNEL_OK")
</pallas_src>

<mosaic_0001>
module attributes {stable_mosaic.version = 11 : i64} {
  func.func @_lpfa_stats_kernel(%arg0: i32, %arg1: memref<128x256xf32, #tpu.memory_space<vmem>>, %arg2: memref<128x32xf32, #tpu.memory_space<vmem>>, %arg3: memref<32x32xbf16, #tpu.memory_space<vmem>>, %arg4: memref<1x8x128xf32, #tpu.memory_space<vmem>>) attributes {dimension_semantics = [#tpu.dimension_semantics<parallel>], iteration_bounds = array<i64: 2>, scalar_prefetch = 0 : i64, scratch_operands = 0 : i64, tpu.core_type = #tpu.core_type<tc>, window_params = [{transform_indices = @transform_0, window_bounds = array<i64: 128, 256>}, {transform_indices = @transform_1, window_bounds = array<i64: 128, 32>}, {pipeline_mode = #tpu.pipeline_mode<synchronous>, transform_indices = @transform_2, window_bounds = array<i64: 32, 32>}, {transform_indices = @transform_3, window_bounds = array<i64: 1, 8, 128>}]} {
    %c0 = arith.constant 0 : index
    %c0_0 = arith.constant 0 : index
    %0 = vector.load %arg1[%c0, %c0_0] : memref<128x256xf32, #tpu.memory_space<vmem>>, vector<128x256xf32>
    %1 = vector.shape_cast %0 : vector<128x256xf32> to vector<128x8x32xf32>
    %c0_1 = arith.constant 0 : index
    %c0_2 = arith.constant 0 : index
    %2 = vector.load %arg2[%c0_1, %c0_2] : memref<128x32xf32, #tpu.memory_space<vmem>>, vector<128x32xf32>
    %3 = vector.shape_cast %2 : vector<128x32xf32> to vector<128x1x32xf32>
    %4 = vector.broadcast %3 : vector<128x1x32xf32> to vector<128x8x32xf32>
    %5 = arith.subf %1, %4 : vector<128x8x32xf32>
    %6 = vector.shape_cast %5 : vector<128x8x32xf32> to vector<1024x32xf32>
    %7 = arith.truncf %6 : vector<1024x32xf32> to vector<1024x32xbf16>
    %c0_3 = arith.constant 0 : index
    %c0_4 = arith.constant 0 : index
    %8 = vector.load %arg3[%c0_3, %c0_4] : memref<32x32xbf16, #tpu.memory_space<vmem>>, vector<32x32xbf16>
    %cst = arith.constant dense<0.000000e+00> : vector<1024x32xf32>
    %9 = tpu.matmul %7, %8, %cst {dimension_numbers = #tpu.dot_dimension_numbers<[1], [0], [0], [1], [0, 0, 1, 1], [], []>} : vector<1024x32xbf16>, vector<32x32xbf16>, vector<1024x32xf32> -> vector<1024x32xf32>
    %10 = vector.shape_cast %9 : vector<1024x32xf32> to vector<1x1024x32xf32>
    %cst_5 = arith.constant dense<0.000000e+00> : vector<1xf32>
    %11 = vector.multi_reduction <add>, %10, %cst_5 [1, 2] : vector<1x1024x32xf32> to vector<1xf32>
    %12 = vector.shape_cast %11 : vector<1xf32> to vector<1x1x1xf32>
    %13 = vector.extract %12[0, 0, 0] : f32 from vector<1x1x1xf32>
    %14 = arith.mulf %9, %9 : vector<1024x32xf32>
    %15 = vector.shape_cast %14 : vector<1024x32xf32> to vector<1x1024x32xf32>
    %cst_6 = arith.constant dense<0.000000e+00> : vector<1xf32>
    %16 = vector.multi_reduction <add>, %15, %cst_6 [1, 2] : vector<1x1024x32xf32> to vector<1xf32>
    %17 = vector.shape_cast %16 : vector<1xf32> to vector<1x1x1xf32>
    %18 = vector.extract %17[0, 0, 0] : f32 from vector<1x1x1xf32>
    %19 = tpu.iota {dimensions = array<i32: 2>} : vector<1x8x128xi32>
    %c0_i32 = arith.constant 0 : i32
    %20 = vector.broadcast %c0_i32 : i32 to vector<1x8x128xi32>
    %21 = arith.cmpi eq, %19, %20 : vector<1x8x128xi32>
    %22 = vector.broadcast %13 : f32 to vector<1x8x128xf32>
    %23 = vector.broadcast %18 : f32 to vector<1x8x128xf32>
    %24 = arith.select %21, %22, %23 : vector<1x8x128xi1>, vector<1x8x128xf32>
    %c0_7 = arith.constant 0 : index
    %c0_8 = arith.constant 0 : index
    %c0_9 = arith.constant 0 : index
    %25 = vector.load %arg4[%c0_7, %c0_8, %c0_9] : memref<1x8x128xf32, #tpu.memory_space<vmem>>, vector<1x8x128xf32>
    tpu.vector_store %arg4[%c0_7, %c0_8, %c0_9], %24 {strides = array<i32>} : memref<1x8x128xf32, #tpu.memory_space<vmem>>, vector<1x8x128xf32>,
    return
  }
  func.func @transform_0(%arg0: i32) -> (i32, i32) {
    %c0_i32 = arith.constant 0 : i32
    %c0_i32_0 = arith.constant 0 : i32
    return %arg0, %c0_i32 : i32, i32
  }
  func.func @transform_1(%arg0: i32) -> (i32, i32) {
    %c0_i32 = arith.constant 0 : i32
    %c0_i32_0 = arith.constant 0 : i32
    return %arg0, %c0_i32 : i32, i32
  }
  func.func @transform_2(%arg0: i32) -> (i32, i32) {
    %c0_i32 = arith.constant 0 : i32
    %c0_i32_0 = arith.constant 0 : i32
    %c0_i32_1 = arith.constant 0 : i32
    return %c0_i32, %c0_i32_0 : i32, i32
  }
  func.func @transform_3(%arg0: i32) -> (i32, i32, i32) {
    %c0_i32 = arith.constant 0 : i32
    %c0_i32_0 = arith.constant 0 : i32
    %c0_i32_1 = arith.constant 0 : i32
    return %arg0, %c0_i32, %c0_i32_0 : i32, i32, i32
  }
}

module attributes {stable_mosaic.version = 11 : i64} {
  func.func @_lpfa_fused_kernel(%arg0: i32, %arg1: memref<128x256xf32, #tpu.memory_space<vmem>>, %arg2: memref<128x32xf32, #tpu.memory_space<vmem>>, %arg3: memref<32x32xbf16, #tpu.memory_space<vmem>>, %arg4: memref<1x32x64xbf16, #tpu.memory_space<vmem>>, %arg5: memref<32x64xbf16, #tpu.memory_space<vmem>>, %arg6: memref<1x64xf32, #tpu.memory_space<vmem>>, %arg7: memref<64x64xbf16, #tpu.memory_space<vmem>>, %arg8: memref<1x64xf32, #tpu.memory_space<vmem>>, %arg9: memref<128x64xf32, #tpu.memory_space<vmem>>) attributes {dimension_semantics = [#tpu.dimension_semantics<parallel>], iteration_bounds = array<i64: 2>, scalar_prefetch = 0 : i64, scratch_operands = 0 : i64, tpu.core_type = #tpu.core_type<tc>, window_params = [{transform_indices = @transform_0, window_bounds = array<i64: 128, 256>}, {transform_indices = @transform_1, window_bounds = array<i64: 128, 32>}, {pipeline_mode = #tpu.pipeline_mode<synchronous>, transform_indices = @transform_2, window_bounds = array<i64: 32, 32>}, {transform_indices = @transform_3, window_bounds = array<i64: 1, 32, 64>}, {pipeline_mode = #tpu.pipeline_mode<synchronous>, transform_indices = @transform_4, window_bounds = array<i64: 32, 64>}, {pipeline_mode = #tpu.pipeline_mode<synchronous>, transform_indices = @transform_5, window_bounds = array<i64: 1, 64>}, {pipeline_mode = #tpu.pipeline_mode<synchronous>, transform_indices = @transform_6, window_bounds = array<i64: 64, 64>}, {pipeline_mode = #tpu.pipeline_mode<synchronous>, transform_indices = @transform_7, window_bounds = array<i64: 1, 64>}, {transform_indices = @transform_8, window_bounds = array<i64: 128, 64>}]} {
    %c0 = arith.constant 0 : index
    %c0_0 = arith.constant 0 : index
    %0 = vector.load %arg1[%c0, %c0_0] : memref<128x256xf32, #tpu.memory_space<vmem>>, vector<128x256xf32>
    %1 = vector.shape_cast %0 : vector<128x256xf32> to vector<128x8x32xf32>
    %c0_1 = arith.constant 0 : index
    %c0_2 = arith.constant 0 : index
    %2 = vector.load %arg2[%c0_1, %c0_2] : memref<128x32xf32, #tpu.memory_space<vmem>>, vector<128x32xf32>
    %3 = vector.shape_cast %2 : vector<128x32xf32> to vector<128x1x32xf32>
    %4 = vector.broadcast %3 : vector<128x1x32xf32> to vector<128x8x32xf32>
    %5 = arith.subf %1, %4 : vector<128x8x32xf32>
    %6 = vector.shape_cast %5 : vector<128x8x32xf32> to vector<1024x32xf32>
    %7 = arith.truncf %6 : vector<1024x32xf32> to vector<1024x32xbf16>
    %c0_3 = arith.constant 0 : index
    %c0_4 = arith.constant 0 : index
    %8 = vector.load %arg3[%c0_3, %c0_4] : memref<32x32xbf16, #tpu.memory_space<vmem>>, vector<32x32xbf16>
    %cst = arith.constant dense<0.000000e+00> : vector<1024x32xf32>
    %9 = tpu.matmul %7, %8, %cst {dimension_numbers = #tpu.dot_dimension_numbers<[1], [0], [0], [1], [0, 0, 1, 1], [], []>} : vector<1024x32xbf16>, vector<32x32xbf16>, vector<1024x32xf32> -> vector<1024x32xf32>
    %10 = arith.truncf %9 : vector<1024x32xf32> to vector<1024x32xbf16>
    %c0_5 = arith.constant 0 : index
    %c0_6 = arith.constant 0 : index
    %c0_7 = arith.constant 0 : index
    %11 = vector.load %arg4[%c0_5, %c0_6, %c0_7] : memref<1x32x64xbf16, #tpu.memory_space<vmem>>, vector<1x32x64xbf16>
    %12 = vector.shape_cast %11 : vector<1x32x64xbf16> to vector<32x64xbf16>
    %cst_8 = arith.constant dense<0.000000e+00> : vector<1024x64xf32>
    %13 = tpu.matmul %10, %12, %cst_8 {dimension_numbers = #tpu.dot_dimension_numbers<[1], [0], [0], [1], [0, 0, 1, 1], [], []>} : vector<1024x32xbf16>, vector<32x64xbf16>, vector<1024x64xf32> -> vector<1024x64xf32>
    %c0_9 = arith.constant 0 : index
    %c0_10 = arith.constant 0 : index
    %14 = vector.load %arg6[%c0_9, %c0_10] : memref<1x64xf32, #tpu.memory_space<vmem>>, vector<1x64xf32>
    %15 = vector.broadcast %14 : vector<1x64xf32> to vector<1024x64xf32>
    %16 = arith.addf %13, %15 : vector<1024x64xf32>
    %c0_11 = arith.constant 0 : index
    %c0_12 = arith.constant 0 : index
    %17 = vector.load %arg2[%c0_11, %c0_12] : memref<128x32xf32, #tpu.memory_space<vmem>>, vector<128x32xf32>
    %18 = arith.truncf %17 : vector<128x32xf32> to vector<128x32xbf16>
    %c0_13 = arith.constant 0 : index
    %c0_14 = arith.constant 0 : index
    %19 = vector.load %arg5[%c0_13, %c0_14] : memref<32x64xbf16, #tpu.memory_space<vmem>>, vector<32x64xbf16>
    %cst_15 = arith.constant dense<0.000000e+00> : vector<128x64xf32>
    %20 = tpu.matmul %18, %19, %cst_15 {dimension_numbers = #tpu.dot_dimension_numbers<[1], [0], [0], [1], [0, 0, 1, 1], [], []>} : vector<128x32xbf16>, vector<32x64xbf16>, vector<128x64xf32> -> vector<128x64xf32>
    %21 = vector.shape_cast %16 : vector<1024x64xf32> to vector<128x8x64xf32>
    %22 = vector.shape_cast %20 : vector<128x64xf32> to vector<128x1x64xf32>
    %23 = vector.broadcast %22 : vector<128x1x64xf32> to vector<128x8x64xf32>
    %24 = arith.addf %21, %23 : vector<128x8x64xf32>
    %25 = vector.shape_cast %24 : vector<128x8x64xf32> to vector<1024x64xf32>
    %cst_16 = arith.constant 2.000000e-01 : f32
    %26 = vector.broadcast %cst_16 : f32 to vector<1024x64xf32>
    %27 = arith.mulf %26, %25 : vector<1024x64xf32>
    %28 = arith.maximumf %25, %27 : vector<1024x64xf32>
    %29 = arith.truncf %28 : vector<1024x64xf32> to vector<1024x64xbf16>
    %c0_17 = arith.constant 0 : index
    %c0_18 = arith.constant 0 : index
    %30 = vector.load %arg7[%c0_17, %c0_18] : memref<64x64xbf16, #tpu.memory_space<vmem>>, vector<64x64xbf16>
    %cst_19 = arith.constant dense<0.000000e+00> : vector<1024x64xf32>
    %31 = tpu.matmul %29, %30, %cst_19 {dimension_numbers = #tpu.dot_dimension_numbers<[1], [0], [0], [1], [0, 0, 1, 1], [], []>} : vector<1024x64xbf16>, vector<64x64xbf16>, vector<1024x64xf32> -> vector<1024x64xf32>
    %c0_20 = arith.constant 0 : index
    %c0_21 = arith.constant 0 : index
    %32 = vector.load %arg8[%c0_20, %c0_21] : memref<1x64xf32, #tpu.memory_space<vmem>>, vector<1x64xf32>
    %33 = vector.broadcast %32 : vector<1x64xf32> to vector<1024x64xf32>
    %34 = arith.addf %31, %33 : vector<1024x64xf32>
    %cst_22 = arith.constant 2.000000e-01 : f32
    %35 = vector.broadcast %cst_22 : f32 to vector<1024x64xf32>
    %36 = arith.mulf %35, %34 : vector<1024x64xf32>
    %37 = arith.maximumf %34, %36 : vector<1024x64xf32>
    %38 = vector.shape_cast %37 : vector<1024x64xf32> to vector<128x8x64xf32>
    %cst_23 = arith.constant dense<0xFF800000> : vector<128x64xf32>
    %39 = vector.multi_reduction <maximumf>, %38, %cst_23 [1] : vector<128x8x64xf32> to vector<128x64xf32>
    %c0_24 = arith.constant 0 : index
    %c0_25 = arith.constant 0 : index
    %40 = vector.load %arg9[%c0_24, %c0_25] : memref<128x64xf32, #tpu.memory_space<vmem>>, vector<128x64xf32>
    tpu.vector_store %arg9[%c0_24, %c0_25], %39 {strides = array<i32>} : memref<128x64xf32, #tpu.memory_space<vmem>>, vector<128x64xf32>,
    return
  }
  func.func @transform_0(%arg0: i32) -> (i32, i32) {
    %c0_i32 = arith.constant 0 : i32
    %c0_i32_0 = arith.constant 0 : i32
    return %arg0, %c0_i32 : i32, i32
  }
  func.func @transform_1(%arg0: i32) -> (i32, i32) {
    %c0_i32 = arith.constant 0 : i32
    %c0_i32_0 = arith.constant 0 : i32
    return %arg0, %c0_i32 : i32, i32
  }
  func.func @transform_2(%arg0: i32) -> (i32, i32) {
    %c0_i32 = arith.constant 0 : i32
    %c0_i32_0 = arith.constant 0 : i32
    %c0_i32_1 = arith.constant 0 : i32
    return %c0_i32, %c0_i32_0 : i32, i32
  }
  func.func @transform_3(%arg0: i32) -> (i32, i32, i32) {
    %c0_i32 = arith.constant 0 : i32
    %c0_i32_0 = arith.constant 0 : i32
    %c0_i32_1 = arith.constant 0 : i32
    return %arg0, %c0_i32, %c0_i32_0 : i32, i32, i32
  }
  func.func @transform_4(%arg0: i32) -> (i32, i32) {
    %c0_i32 = arith.constant 0 : i32
    %c0_i32_0 = arith.constant 0 : i32
    %c0_i32_1 = arith.constant 0 : i32
    return %c0_i32, %c0_i32_0 : i32, i32
  }
  func.func @transform_5(%arg0: i32) -> (i32, i32) {
    %c0_i32 = arith.constant 0 : i32
    %c0_i32_0 = arith.constant 0 : i32
    %c0_i32_1 = arith.constant 0 : i32
    return %c0_i32, %c0_i32_0 : i32, i32
  }
  func.func @transform_6(%arg0: i32) -> (i32, i32) {
    %c0_i32 = arith.constant 0 : i32
    %c0_i32_0 = arith.constant 0 : i32
    %c0_i32_1 = arith.constant 0 : i32
    return %c0_i32, %c0_i32_0 : i32, i32
  }
  func.func @transform_7(%arg0: i32) -> (i32, i32) {
    %c0_i32 = arith.constant 0 : i32
    %c0_i32_0 = arith.constant 0 : i32
    %c0_i32_1 = arith.constant 0 : i32
    return %c0_i32, %c0_i32_0 : i32, i32
  }
  func.func @transform_8(%arg0: i32) -> (i32, i32) {
    %c0_i32 = arith.constant 0 : i32
    %c0_i32_0 = arith.constant 0 : i32
    return %arg0, %c0_i32 : i32, i32
  }
}

</mosaic_0001>

<bundles_post_ra>
// kernel: lpfa_forward.2
= control target key start
LH: loop header
LB: loop body
LE: loop exit
PB: predicated region body
PF: predicated region fallthrough
CT: control target
= control target key end

     0   :  { %s6230_s12 = smov 0   ;;  %s8590_s0 = inlined_call_operand.vmem [shape: f32[256,256], index: 0, kind: input, shape index: {}]   ;;  %s8591_s1 = inlined_call_operand.vmem [shape: f32[256,32], index: 1, kind: input, shape index: {}]   ;;  %s8592_s2 = inlined_call_operand.vmem [shape: bf16[32,32], index: 2, kind: input, shape index: {}]   ;;  %s8593_s3 = inlined_call_operand.vmem [shape: f32[2,8,128], index: 3, kind: output, shape index: {}]  }
   0x1 LB: > { %s6236_s13 = sadd.s32 4294967295, %s6202_s12   ;;  %p5859_p0 = scmp.ge.s32.totalorder %s6202_s12, 1  ;;  %s6202_s12 = sphi %s6230_s12, %s13_s12  }
   0x2   : > { %p150_p1 = scmp.lt.s32.totalorder %s6202_s12, 3 }
   0x4   : > { %p151_p2 = pnand %p5859_p0, %p150_p1 }
   0x6   : > { %154 = sbr.rel (%p151_p2) target bundleno = 858 (0x35a), region = 32 }
   0xd   : > { %s5860_s14 = sshll.u32 %s6236_s13, 4  ;;  %s6204_s19 = smov 32   ;;  %v6155_v2 = vld [vmem:[%s8592_s2] sm:$0xff]   ;;  %v6156_v3 = vld [vmem:[%s8592_s2 + $0x8] sm:$0xff]   ;;  %v6207_v13 = vmov 1966171168   ;;  %v8594_v16 = vlaneseq }
   0xe   : > { %p180_p3 = scmp.lt.s32.totalorder %s5860_s14, 31  ;;  %s6205_s20 = smov 96   ;;  %6001 = vmatprep.subr.bf16.mxu0 %v6155_v2  ;;  %6133 = vmatprep.subr.bf16.mxu1 %v6155_v2  ;;  %v2759_v14 = vunpack.c.l.s4 %v6207_v13  ;;  %v6208_v28 = vmov 1983009808   ;;  %v6209_v30 = vmov 1934713408  }
   0xf   : > { %s6206_s21 = smov 64   ;;  %6002 = vmatpush3.bf16.msra.mxu0 %v6155_v2  ;;  %6135 = vmatpush3.bf16.msra.mxu1 %v6155_v2  ;;  %v555_v18 = vshrl.u32 %v8594_v16, 7  ;;  %v552_v29 = vunpack.c.l.s4 %v6208_v28  ;;  %v616_v31 = vunpack.c.l.s4 %v6209_v30  ;;  %vm4389_vm0 = vcmask 261120   ;;  %p192_p4 = scmp.lt.s32.totalorder %s6236_s13, 1 }
  0x10   : > { %s8734_s14 = smov (!%p180_p3, %s5860_s14), 31  ;;  %6003 = vmatprep.subr.bf16.mxu0 %v6156_v3  ;;  %6134 = vmatprep.subr.bf16.mxu1 %v6156_v3  ;;  %v2760_v17 = vunpack.c.0.s8 %v2759_v14 }
  0x11   : > { %s5934_s15 = sshll.u32 %s8734_s14, 4  ;;  %s5864_s26 = sshll.u32 %s8734_s14, 3  ;;  %v553_v38 = vunpack.c.0.s8 %v552_v29  ;;  %v617_v39 = vunpack.c.0.s8 %v616_v31  ;;  %v6378_v42 = vsub.s32 0, %v555_v18 }
  0x12   : > { %s6247_s18 = scalar_lea.vmem %s8590_s0, %s5934_s15  ;;  %s6348_s29 = scalar_lea.vmem %s8591_s1, %s5864_s26  ;;  %v6354_v20 = vsub.s32 %v2760_v17, %v555_v18 }
  0x13   : > { %v6250_v0 = vld [vmem:[%s6247_s18] sm:$0xff]  ;;  %v6257_v1 = vld [vmem:[%s6247_s18 + $0x8] sm:$0xff]  ;;  %v6274_v4 = vld [vmem:[%s6247_s18 + $0x10] sm:$0xff]  ;;  %6004 = vmatpush3.bf16.msra.mxu0 %v6156_v3  ;;  %6136 = vmatpush3.bf16.msra.mxu1 %v6156_v3  ;;  %v6390_v50 = vsub.s32 %v553_v38, %v555_v18  ;;  %v6392_v51 = vsub.s32 %v617_v39, %v555_v18  ;;  %s8736_s13 = smov (!%p192_p4, %s6236_s13), 1 }
  0x14   : > { %341 = vrot.lane.b32.xlu1 %v6250_v0, %s6204_s19  ;;  %245 = vrot.lane.b32.xlu0 %v6250_v0, %s6205_s20  ;;  %v6281_v5 = vld [vmem:[%s6247_s18 + $0x18] sm:$0xff]  ;;  %v6292_v6 = vld [vmem:[%s6247_s18 + $0x20] sm:$0xff]  ;;  %8621 = vst [vmem:[#allocation2_spill] sm:$0xff] %v6354_v20  ;;  %s5865_s30 = sshll.u32 %s8736_s13, 3 }
  0x15   : > { %v6299_v7 = vld [vmem:[%s6247_s18 + $0x28] sm:$0xff]  ;;  %v6310_v8 = vld [vmem:[%s6247_s18 + $0x30] sm:$0xff]  ;;  %v6317_v9 = vld [vmem:[%s6247_s18 + $0x38] sm:$0xff]  ;;  %s195_s7 = scalar_lea.vmem %s8593_s3, %s5865_s30 }
  0x16   : > { %v6328_v10 = vld [vmem:[%s6247_s18 + $0x40] sm:$0xff]  ;;  %v206_v11 = vld [vmem:[%s6247_s18 + $0x48] sm:$0xff]  ;;  %v207_v12 = vld [vmem:[%s6247_s18 + $0x50] sm:$0xff] }
  0x17   : > { %v208_v15 = vld [vmem:[%s6247_s18 + $0x58] sm:$0xff]  ;;  %v2725_v19 = vld [vmem:[%s6348_s29] sm:$0xff]  ;;  %v2726_v24 = vld [vmem:[%s6348_s29 + $0x8] sm:$0xff] }
  0x18   : > { %405 = vrot.lane.b32.xlu1 %v6257_v1, %s6205_s20  ;;  %293 = vrot.lane.b32.xlu0 %v6250_v0, %s6206_s21  ;;  %v209_v21 = vld [vmem:[%s6247_s18 + $0x60] sm:$0xff]  ;;  %v2757_v22 = vcombine.high %v2725_v19, %v2725_v19  ;;  %v2764_v23 = vrot.slane %v2725_v19, %v6354_v20  ;;  %v210_v25 = vld [vmem:[%s6247_s18 + $0x68] sm:$0xff]  ;;  %v2806_v27 = vcombine.high %v2726_v24, %v2726_v24 }
  0x19   : > { %v2813_v33 = vrot.slane %v2726_v24, %v6354_v20  ;;  %v2727_v34 = vld [vmem:[%s6348_s29 + $0x10] sm:$0xff]  ;;  %v2728_v57 = vld [vmem:[%s6348_s29 + $0x18] sm:$0xff]  ;;  %v213_v38 = vld [vmem:[%s6247_s18 + $0x80] sm:$0xff] }
  0x1a   : > { %v2771_v26 = vrot.slane %v2757_v22, %v6354_v20  ;;  %v2772_v32 = vcombine.high %v2764_v23, %v2764_v23  ;;  %v6370_v36 = vrot.slane %v2764_v23, %v6354_v20  ;;  %v2820_v37 = vrot.slane %v2806_v27, %v6354_v20  ;;  %v211_v44 = vld [vmem:[%s6247_s18 + $0x70] sm:$0xff]  ;;  %v212_v58 = vld [vmem:[%s6247_s18 + $0x78] sm:$0xff] }
  0x1b   : > { %v2855_v41 = vcombine.high %v2727_v34, %v2727_v34  ;;  %v2821_v43 = vcombine.high %v2813_v33, %v2813_v33  ;;  %v2862_v47 = vrot.slane %v2727_v34, %v6354_v20  ;;  %v6402_v55 = vrot.slane %v2813_v33, %v6354_v20  ;;  %v215_v13 = vld [vmem:[%s6247_s18 + $0x90] sm:$0xff] }
  0x1c   : > { %501 = vrot.lane.b32.xlu1 %v6257_v1, %s6204_s19  ;;  %453 = vrot.lane.b32.xlu0 %v6257_v1, %s6206_s21  ;;  %v2773_v35 = vcombine.high %v2771_v26, %v2771_v26  ;;  %v6374_v40 = vrot.slane %v2772_v32, %v6354_v20  ;;  %v6382_v45 = vrot.slane %v2771_v26, %v6354_v20 }
  0x1d   : > { %v2802_v48 = vcombine.high %v6370_v36, %v6370_v36  ;;  %v2822_v49 = vcombine.high %v2820_v37, %v2820_v37  ;;  %v2869_v53 = vrot.slane %v2855_v41, %v6354_v20  ;;  %v6405_v56 = vrot.slane %v2821_v43, %v6354_v20 }
  0x1e   : > { %v6385_v46 = vrot.slane %v2773_v35, %v6354_v20  ;;  %v2804_v52 = vcombine.high %v6374_v40, %v6374_v40  ;;  %v2803_v60 = vcombine.high %v6382_v45, %v6382_v45  ;;  %v2870_v62 = vcombine.high %v2862_v47, %v2862_v47 }
  0x1f   : > { %v6416_v63 = vrot.slane %v2802_v48, %v6378_v42  ;;  %v6421_v3 = vrot.slane %v2820_v37, %v6354_v20  ;;  %v2871_v14 = vcombine.high %v2869_v53, %v2869_v53  ;;  %v2851_v17 = vcombine.high %v6402_v55, %v6402_v55 }
  0x20   : > { %295 = vrot.lane.b32.xlu1 %v6274_v4, %s6206_s21  ;;  %247 = vrot.lane.b32.xlu0 %v6274_v4, %s6205_s20  ;;  %v2805_v61 = vcombine.high %v6385_v46, %v6385_v46  ;;  %v2853_v18 = vcombine.high %v6405_v56, %v6405_v56  ;;  %v2911_v19 = vrot.slane %v2728_v57, %v6354_v20 }
  0x21   : > { %v6440_v22 = vrot.slane %v2803_v60, %v6378_v42  ;;  %v6446_v24 = vrot.slane %v2862_v47, %v6354_v20  ;;  %v2852_v27 = vcombine.high %v6421_v3, %v6421_v3  ;;  %v6458_v29 = vrot.slane %v2869_v53, %v6354_v20  ;;  %v2730_v47 = vld [vmem:[%s6348_s29 + $0x28] sm:$0xff] }
  0x22   : > { %v6443_v23 = vrot.slane %v2805_v61, %v6378_v42  ;;  %v6463_v31 = vrot.slane %v2871_v14, %v6354_v20  ;;  %v6469_v34 = vrot.slane %v2851_v17, %v6378_v42  ;;  %v6472_v35 = vrot.slane %v2853_v18, %v6378_v42  ;;  %v214_v17 = vld [vmem:[%s6247_s18 + $0x88] sm:$0xff] }
  0x23   : > { %v2919_v37 = vcombine.high %v2911_v19, %v2911_v19  ;;  %v2900_v41 = vcombine.high %v6446_v24, %v6446_v24  ;;  %v2901_v53 = vcombine.high %v6458_v29, %v6458_v29 }
  0x24   : > { %407 = vrot.lane.b32.xlu1 %v6281_v5, %s6205_s20  ;;  %343 = vrot.lane.b32.xlu0 %v6274_v4, %s6204_s19 }
  0x25   : > { %v6504_v14 = vrot.slane %v2919_v37, %v6354_v20  ;;  %v6525_v18 = vrot.slane %v2901_v53, %v6378_v42 }
  0x27   : > { %8622 = vst [vmem:[#allocation3_spill] sm:$0xff] %v6504_v14 }
  0x28   : > { %503 = vrot.lane.b32.xlu1 %v6281_v5, %s6204_s19  ;;  %455 = vrot.lane.b32.xlu0 %v6281_v5, %s6206_s21 }
  0x2c   : > { %297 = vrot.lane.b32.xlu1 %v6292_v6, %s6206_s21  ;;  %249 = vrot.lane.b32.xlu0 %v6292_v6, %s6205_s20 }
  0x30   : > { %409 = vrot.lane.b32.xlu1 %v6299_v7, %s6205_s20  ;;  %345 = vrot.lane.b32.xlu0 %v6292_v6, %s6204_s19 }
  0x34   : > { %505 = vrot.lane.b32.xlu1 %v6299_v7, %s6204_s19  ;;  %457 = vrot.lane.b32.xlu0 %v6299_v7, %s6206_s21 }
  0x38   : > { %299 = vrot.lane.b32.xlu1 %v6310_v8, %s6206_s21  ;;  %251 = vrot.lane.b32.xlu0 %v6310_v8, %s6205_s20 }
  0x3c   : > { %411 = vrot.lane.b32.xlu1 %v6317_v9, %s6205_s20  ;;  %347 = vrot.lane.b32.xlu0 %v6310_v8, %s6204_s19 }
  0x40   : > { %507 = vrot.lane.b32.xlu1 %v6317_v9, %s6204_s19  ;;  %459 = vrot.lane.b32.xlu0 %v6317_v9, %s6206_s21 }
  0x44   : > { %301 = vrot.lane.b32.xlu1 %v6328_v10, %s6206_s21  ;;  %253 = vrot.lane.b32.xlu0 %v6328_v10, %s6205_s20 }
  0x48   : > { %413 = vrot.lane.b32.xlu1 %v206_v11, %s6205_s20  ;;  %349 = vrot.lane.b32.xlu0 %v6328_v10, %s6204_s19 }
  0x4c   : > { %509 = vrot.lane.b32.xlu1 %v206_v11, %s6204_s19  ;;  %461 = vrot.lane.b32.xlu0 %v206_v11, %s6206_s21  ;;  %v6424_v11 = vrot.slane %v2822_v49, %v6354_v20  ;;  %v6486_v49 = vrot.slane %v2852_v27, %v6378_v42 }
  0x4e   : > { %v2854_v28 = vcombine.high %v6424_v11, %v6424_v11 }
  0x50   : > { %303 = vrot.lane.b32.xlu1 %v207_v12, %s6206_s21  ;;  %255 = vrot.lane.b32.xlu0 %v207_v12, %s6205_s20 }
  0x54   : > { %415 = vrot.lane.b32.xlu1 %v208_v15, %s6205_s20  ;;  %351 = vrot.lane.b32.xlu0 %v207_v12, %s6204_s19  ;;  %v6427_v12 = vrot.slane %v2804_v52, %v6378_v42  ;;  %v6489_v52 = vrot.slane %v2854_v28, %v6378_v42  ;;  %v2731_v28 = vld [vmem:[%s6348_s29 + $0x30] sm:$0xff] }
  0x58   : > { %511 = vrot.lane.b32.xlu1 %v208_v15, %s6204_s19  ;;  %463 = vrot.lane.b32.xlu0 %v208_v15, %s6206_s21  ;;  %v2904_v15 = vcombine.high %v2728_v57, %v2728_v57  ;;  %v2903_v57 = vcombine.high %v6463_v31, %v6463_v31 }
  0x5a   : > { %v2918_v32 = vrot.slane %v2904_v15, %v6354_v20  ;;  %v3002_v15 = vcombine.high %v2730_v47, %v2730_v47  ;;  %v6538_v53 = vrot.slane %v2903_v57, %v6378_v42  ;;  %v3058_v57 = vrot.slane %v2731_v28, %v6354_v20 }
  0x5c   : > { %305 = vrot.lane.b32.xlu1 %v209_v21, %s6206_s21  ;;  %257 = vrot.lane.b32.xlu0 %v209_v21, %s6205_s20  ;;  %v2920_v60 = vcombine.high %v2918_v32, %v2918_v32  ;;  %v6521_v16 = vrot.slane %v2918_v32, %v6354_v20  ;;  %v2951_v32 = vcombine.high %v6504_v14, %v6504_v14 }
  0x5d   : > { %v3016_v37 = vrot.slane %v3002_v15, %v6354_v20  ;;  %v3066_v2 = vcombine.high %v3058_v57, %v3058_v57 }
  0x5e   : > { %8623 = vst [vmem:[#allocation4_spill] sm:$0xff] %v6521_v16  ;;  %v2950_v15 = vcombine.high %v6521_v16, %v6521_v16 }
  0x5f   : > { %v6596_v16 = vrot.slane %v3016_v37, %v6354_v20 }
  0x60   : > { %417 = vrot.lane.b32.xlu1 %v210_v25, %s6205_s20  ;;  %353 = vrot.lane.b32.xlu0 %v209_v21, %s6204_s19  ;;  %v2729_v21 = vld [vmem:[%s6348_s29 + $0x20] sm:$0xff] }
  0x61   : > { %v2953_v33 = vcombine.high %v2729_v21, %v2729_v21  ;;  %8635 = vst [vmem:[#allocation16_spill] sm:$0xff] %v6596_v16 }
  0x63   : > { %v2967_v61 = vrot.slane %v2953_v33, %v6354_v20 }
  0x64   : > { %513 = vrot.lane.b32.xlu1 %v210_v25, %s6204_s19  ;;  %465 = vrot.lane.b32.xlu0 %v210_v25, %s6206_s21  ;;  %v6449_v25 = vrot.slane %v2870_v62, %v6354_v20  ;;  %v3009_v62 = vrot.slane %v2730_v47, %v6354_v20  ;;  %v3051_v47 = vcombine.high %v2731_v28, %v2731_v28 }
  0x65   : > { %v2969_v48 = vcombine.high %v2967_v61, %v2967_v61  ;;  %v3018_v28 = vcombine.high %v3016_v37, %v3016_v37 }
  0x66   : > { %v2902_v43 = vcombine.high %v6449_v25, %v6449_v25  ;;  %v3017_v30 = vcombine.high %v3009_v62, %v3009_v62  ;;  %v6583_v59 = vrot.slane %v3009_v62, %v6354_v20 }
  0x67   : > { %v6603_v62 = vrot.slane %v3018_v28, %v6354_v20 }
  0x68   : > { %307 = vrot.lane.b32.xlu1 %v211_v44, %s6206_s21  ;;  %259 = vrot.lane.b32.xlu0 %v211_v44, %s6205_s20  ;;  %8632 = vst [vmem:[#allocation13_spill] sm:$0xff] %v6583_v59  ;;  %v3047_v28 = vcombine.high %v6583_v59, %v6583_v59 }
  0x69   : > { %8636 = vst [vmem:[#allocation17_spill] sm:$0xff] %v6603_v62 }
  0x6c   : > { %419 = vrot.lane.b32.xlu1 %v212_v58, %s6205_s20  ;;  %355 = vrot.lane.b32.xlu0 %v211_v44, %s6204_s19  ;;  %v2960_v44 = vrot.slane %v2729_v21, %v6354_v20  ;;  %v6513_v21 = vrot.slane %v2902_v43, %v6378_v42  ;;  %v6530_v43 = vrot.slane %v2920_v60, %v6354_v20 }
  0x6e   : > { %v2968_v27 = vcombine.high %v2960_v44, %v2960_v44  ;;  %8624 = vst [vmem:[#allocation5_spill] sm:$0xff] %v6530_v43  ;;  %v6543_v60 = vrot.slane %v2960_v44, %v6354_v20  ;;  %v2952_v33 = vcombine.high %v6530_v43, %v6530_v43  ;;  %v6559_v44 = vrot.slane %v2967_v61, %v6354_v20 }
  0x70   : > { %515 = vrot.lane.b32.xlu1 %v212_v58, %s6204_s19  ;;  %467 = vrot.lane.b32.xlu0 %v212_v58, %s6206_s21  ;;  %v6496_v58 = vrot.slane %v2911_v19, %v6354_v20  ;;  %v6510_v19 = vrot.slane %v2900_v41, %v6378_v42  ;;  %8625 = vst [vmem:[#allocation6_spill] sm:$0xff] %v6543_v60  ;;  %8628 = vst [vmem:[#allocation9_spill] sm:$0xff] %v6559_v44 }
  0x71   : > { %v6546_v39 = vrot.slane %v2968_v27, %v6354_v20  ;;  %v6562_v27 = vrot.slane %v2969_v48, %v6354_v20  ;;  %v2998_v48 = vcombine.high %v6543_v60, %v6543_v60  ;;  %v6589_v54 = vrot.slane %v2952_v33, %v6378_v42 }
  0x72   : > { %v2949_v41 = vcombine.high %v6496_v58, %v6496_v58  ;;  %v2999_v61 = vcombine.high %v6559_v44, %v6559_v44 }
  0x73   : > { %8626 = vst [vmem:[#allocation7_spill] sm:$0xff] %v6546_v39  ;;  %8629 = vst [vmem:[#allocation10_spill] sm:$0xff] %v6562_v27  ;;  %v3001_v43 = vcombine.high %v6562_v27, %v6562_v27 }
  0x74   : > { %309 = vrot.lane.b32.xlu1 %v213_v38, %s6206_s21  ;;  %261 = vrot.lane.b32.xlu0 %v213_v38, %s6205_s20  ;;  %v6554_v26 = vrot.slane %v2949_v41, %v6378_v42  ;;  %v3065_v41 = vrot.slane %v3051_v47, %v6354_v20  ;;  %v6586_v47 = vrot.slane %v3017_v30, %v6354_v20 }
  0x75   : > { %8634 = vst [vmem:[#allocation15_spill] sm:$0xff] %v6589_v54  ;;  %v6624_v54 = vrot.slane %v3066_v2, %v6354_v20  ;;  %v3048_v30 = vcombine.high %v6596_v16, %v6596_v16  ;;  %v3050_v2 = vcombine.high %v6603_v62, %v6603_v62 }
  0x76   : > { %8627 = vst [vmem:[#allocation8_spill] sm:$0xff] %v6554_v26  ;;  %8633 = vst [vmem:[#allocation14_spill] sm:$0xff] %v6586_v47  ;;  %v3067_v33 = vcombine.high %v3065_v41, %v3065_v41  ;;  %v3049_v60 = vcombine.high %v6586_v47, %v6586_v47  ;;  %v6641_v44 = vrot.slane %v3065_v41, %v6354_v20 }
  0x77   : > { %8640 = vst [vmem:[#allocation21_spill] sm:$0xff] %v6624_v54  ;;  %v6654_v41 = vrot.slane %v3047_v28, %v6378_v42  ;;  %v6666_v47 = vrot.slane %v3048_v30, %v6378_v42  ;;  %v217_v30 = vld [vmem:[%s6247_s18 + $0xa0] sm:$0xff] }
  0x78   : > { %421 = vrot.lane.b32.xlu1 %v214_v17, %s6205_s20  ;;  %357 = vrot.lane.b32.xlu0 %v213_v38, %s6204_s19  ;;  %v6567_v38 = vrot.slane %v2951_v32, %v6378_v42  ;;  %v6580_v32 = vrot.slane %v2950_v15, %v6378_v42  ;;  %v216_v15 = vld [vmem:[%s6247_s18 + $0x98] sm:$0xff]  ;;  %8643 = vst [vmem:[#allocation24_spill] sm:$0xff] %v6641_v44 }
  0x79   : > { %8645 = vst [vmem:[#allocation26_spill] sm:$0xff] %v6654_v41  ;;  %8647 = vst [vmem:[#allocation28_spill] sm:$0xff] %v6666_v47 }
  0x7a   : > { %8630 = vst [vmem:[#allocation11_spill] sm:$0xff] %v6567_v38  ;;  %8631 = vst [vmem:[#allocation12_spill] sm:$0xff] %v6580_v32  ;;  %v6609_v32 = vrot.slane %v2998_v48, %v6378_v42  ;;  %v6615_v38 = vrot.slane %v3058_v57, %v6354_v20  ;;  %v6632_v57 = vrot.slane %v3001_v43, %v6378_v42 }
  0x7b   : > { %v6644_v48 = vrot.slane %v3067_v33, %v6354_v20  ;;  %v6657_v33 = vrot.slane %v3049_v60, %v6378_v42  ;;  %v3098_v43 = vcombine.high %v6624_v54, %v6624_v54  ;;  %v6673_v60 = vrot.slane %v3050_v2, %v6378_v42 }
  0x7c   : > { %517 = vrot.lane.b32.xlu1 %v214_v17, %s6204_s19  ;;  %469 = vrot.lane.b32.xlu0 %v214_v17, %s6206_s21  ;;  %v3000_v17 = vcombine.high %v6546_v39, %v6546_v39  ;;  %8637 = vst [vmem:[#allocation18_spill] sm:$0xff] %v6609_v32  ;;  %8639 = vst [vmem:[#allocation20_spill] sm:$0xff] %v6615_v38  ;;  %v3097_v32 = vcombine.high %v6641_v44, %v6641_v44 }
  0x7d   : > { %8642 = vst [vmem:[#allocation23_spill] sm:$0xff] %v6632_v57  ;;  %8644 = vst [vmem:[#allocation25_spill] sm:$0xff] %v6644_v48  ;;  %v3099_v57 = vcombine.high %v6644_v48, %v6644_v48 }
  0x7e   : > { %v6612_v37 = vrot.slane %v3000_v17, %v6378_v42  ;;  %v6629_v17 = vrot.slane %v2999_v61, %v6378_v42  ;;  %v2732_v61 = vld [vmem:[%s6348_s29 + $0x38] sm:$0xff]  ;;  %8646 = vst [vmem:[#allocation27_spill] sm:$0xff] %v6657_v33  ;;  %8648 = vst [vmem:[#allocation29_spill] sm:$0xff] %v6673_v60  ;;  %v6688_v33 = vrot.slane %v3098_v43, %v6378_v42 }
  0x7f   : > { %v3107_v59 = vrot.slane %v2732_v61, %v6354_v20 }
  0x80   : > { %311 = vrot.lane.b32.xlu1 %v215_v13, %s6206_s21  ;;  %263 = vrot.lane.b32.xlu0 %v215_v13, %s6205_s20  ;;  %8638 = vst [vmem:[#allocation19_spill] sm:$0xff] %v6612_v37  ;;  %8641 = vst [vmem:[#allocation22_spill] sm:$0xff] %v6629_v17  ;;  %v3096_v17 = vcombine.high %v6615_v38, %v6615_v38 }
  0x81   : > { %8650 = vst [vmem:[#allocation31_spill] sm:$0xff] %v6688_v33 }
  0x82   : > { %v6685_v47 = vrot.slane %v3096_v17, %v6378_v42  ;;  %v6710_v17 = vrot.slane %v3107_v59, %v6354_v20 }
  0x84   : > { %423 = vrot.lane.b32.xlu1 %v216_v15, %s6205_s20  ;;  %359 = vrot.lane.b32.xlu0 %v215_v13, %s6204_s19  ;;  %v3100_v13 = vcombine.high %v2732_v61, %v2732_v61  ;;  %8649 = vst [vmem:[#allocation30_spill] sm:$0xff] %v6685_v47  ;;  %v2733_v47 = vld [vmem:[%s6348_s29 + $0x40] sm:$0xff]  ;;  %8653 = vst [vmem:[#allocation34_spill] sm:$0xff] %v6710_v17 }
  0x85   : > { %v3156_v43 = vrot.slane %v2733_v47, %v6354_v20 }
  0x86   : > { %v342_v27 = vpop.permute.xlu1 %341  ;;  %v246_v37 = vpop.permute.xlu0 %245  ;;  %v3114_v28 = vrot.slane %v3100_v13, %v6354_v20  ;;  %v218_v13 = vld [vmem:[%s6247_s18 + $0xa8] sm:$0xff] }
  0x87   : > { %v565_v2 = vcombine.low %v246_v37, %v342_v27  ;;  %v566_v60 = vcombine.high %v246_v37, %v342_v27  ;;  %v6700_v27 = vrot.slane %v3097_v32, %v6378_v42  ;;  %v6703_v37 = vrot.slane %v3099_v57, %v6378_v42 }
  0x88   : > { %519 = vrot.lane.b32.xlu1 %v216_v15, %s6204_s19  ;;  %471 = vrot.lane.b32.xlu0 %v216_v15, %s6206_s21  ;;  %v3115_v15 = vcombine.high %v3107_v59, %v3107_v59  ;;  %v3116_v41 = vcombine.high %v3114_v28, %v3114_v28  ;;  %v3164_v33 = vcombine.high %v3156_v43, %v3156_v43 }
  0x89   : > { %8651 = vst [vmem:[#allocation32_spill] sm:$0xff] %v6700_v27  ;;  %8652 = vst [vmem:[#allocation33_spill] sm:$0xff] %v6703_v37  ;;  %v573_v44 = vrot.slane %v565_v2, %v6390_v50  ;;  %v580_v32 = vrot.slane %v566_v60, %v6390_v50  ;;  %v6718_v37 = vrot.slane %v3114_v28, %v6354_v20 }
  0x8a   : > { %v406_v62 = vpop.permute.xlu1 %405  ;;  %v294_v16 = vpop.permute.xlu0 %293  ;;  %v6713_v48 = vrot.slane %v3115_v15, %v6354_v20  ;;  %v3149_v15 = vcombine.high %v2733_v47, %v2733_v47 }
  0x8b   : > { %v549_v39 = vcombine.low %v6250_v0, %v294_v16  ;;  %v550_v61 = vcombine.high %v6250_v0, %v294_v16  ;;  %8655 = vst [vmem:[#allocation36_spill] sm:$0xff] %v6718_v37 }
  0x8c   : > { %313 = vrot.lane.b32.xlu1 %v217_v30, %s6206_s21  ;;  %265 = vrot.lane.b32.xlu0 %v217_v30, %s6205_s20  ;;  %8654 = vst [vmem:[#allocation35_spill] sm:$0xff] %v6713_v48 }
  0x8d   : > { %v557_v0 = vrot.slane %v549_v39, %v6390_v50  ;;  %v564_v16 = vrot.slane %v550_v61, %v6390_v50  ;;  %v6721_v39 = vrot.slane %v3116_v41, %v6354_v20 }
  0x8e   : > { %v502_v27 = vpop.permute.xlu1 %501  ;;  %v454_v57 = vpop.permute.xlu0 %453 }
  0x8f   : > { %8656 = vst [vmem:[#allocation37_spill] sm:$0xff] %v6721_v39  ;;  %v597_v54 = vcombine.low %v406_v62, %v502_v27  ;;  %v598_v2 = vcombine.high %v406_v62, %v502_v27  ;;  %v581_v60 = vcombine.low %v6257_v1, %v454_v57  ;;  %v582_v38 = vcombine.high %v6257_v1, %v454_v57 }
  0x90   : > { %425 = vrot.lane.b32.xlu1 %v218_v13, %s6205_s20  ;;  %v613_v28 = vcombine.low %v557_v0, %v573_v44  ;;  %v614_v37 = vcombine.high %v557_v0, %v573_v44  ;;  %v629_v41 = vcombine.low %v564_v16, %v580_v32  ;;  %v630_v39 = vcombine.high %v564_v16, %v580_v32 }
  0x91   : > { %361 = vrot.lane.b32.xlu0 %v217_v30, %s6204_s19  ;;  %v605_v61 = vrot.slane %v597_v54, %v6390_v50  ;;  %v612_v59 = vrot.slane %v598_v2, %v6390_v50  ;;  %v589_v47 = vrot.slane %v581_v60, %v6390_v50  ;;  %v596_v62 = vrot.slane %v582_v38, %v6390_v50 }
  0x92   : > { %v296_v27 = vpop.permute.xlu1 %295  ;;  %v248_v48 = vpop.permute.xlu0 %247  ;;  %v6738_v44 = vrot.slane %v3156_v43, %v6354_v20  ;;  %v628_v38 = vrot.slane %v614_v37, %v6392_v51  ;;  %v6745_v2 = vrot.slane %v629_v41, %v6392_v51  ;;  %v6748_v60 = vrot.slane %v630_v39, %v6392_v51 }
  0x93   : > { %v685_v1 = vcombine.low %v6274_v4, %v296_v27  ;;  %v686_v57 = vcombine.high %v6274_v4, %v296_v27  ;;  %v645_v54 = vcombine.low %v589_v47, %v605_v61  ;;  %v646_v0 = vcombine.high %v589_v47, %v605_v61  ;;  %v219_v4 = vld [vmem:[%s6247_s18 + $0xb0] sm:$0xff] }
  0x94   : > { %8657 = vst [vmem:[#allocation38_spill] sm:$0xff] %v6738_v44  ;;  %v661_v16 = vcombine.low %v596_v62, %v612_v59  ;;  %v662_v32 = vcombine.high %v596_v62, %v612_v59  ;;  %521 = vrot.lane.b32.xlu1 %v218_v13, %s6204_s19  ;;  %v6753_v43 = vrot.slane %v3164_v33, %v6354_v20 }
  0x95   : > { %473 = vrot.lane.b32.xlu0 %v218_v13, %s6206_s21  ;;  %v660_v61 = vrot.slane %v646_v0, %v6392_v51  ;;  %v621_v37 = vrot.slane %v613_v28, %v6392_v51  ;;  %v6761_v41 = vrot.slane %v3149_v15, %v6354_v20  ;;  %v653_v33 = vrot.slane %v645_v54, %v6392_v51 }
  0x96   : > { %v6757_v59 = vrot.slane %v661_v16, %v6392_v51  ;;  %v408_v47 = vpop.permute.xlu1 %407  ;;  %v344_v62 = vpop.permute.xlu0 %343  ;;  %v6764_v39 = vrot.slane %v662_v32, %v6392_v51  ;;  %v693_v0 = vrot.slane %v685_v1, %v6390_v50  ;;  %v6769_v16 = vrot.slane %v686_v57, %v6390_v50 }
  0x97   : > { %8658 = vst [vmem:[#allocation39_spill] sm:$0xff] %v6761_v41  ;;  %v701_v13 = vcombine.low %v248_v48, %v344_v62  ;;  %v702_v27 = vcombine.high %v248_v48, %v344_v62  ;;  %v679_v30 = vcombine.low %v628_v38, %v660_v61  ;;  %v680_v28 = vcombine.high %v628_v38, %v660_v61  ;;  %v220_v48 = vld [vmem:[%s6247_s18 + $0xb8] sm:$0xff] }
  0x98   : > { %315 = vrot.lane.b32.xlu1 %v219_v4, %s6206_s21  ;;  %v681_v57 = vcombine.low %v6745_v2, %v6757_v59  ;;  %v682_v54 = vcombine.high %v6745_v2, %v6757_v59  ;;  %v678_v15 = vcombine.high %v621_v37, %v653_v33 }
  0x99   : > { %v709_v32 = vrot.slane %v701_v13, %v6390_v50  ;;  %v716_v20 = vrot.slane %v702_v27, %v6390_v50  ;;  %267 = vrot.lane.b32.xlu0 %v219_v4, %s6205_s20  ;;  %v683_v13 = vcombine.low %v6748_v60, %v6764_v39  ;;  %v677_v27 = vcombine.low %v621_v37, %v653_v33 }
  0x9a   : > { %v504_v62 = vpop.permute.xlu1 %503  ;;  %v456_v41 = vpop.permute.xlu0 %455  ;;  %v4183_v1 = vsub.f32 %v679_v30, %v6416_v63  ;;  %v4184_v61 = vsub.f32 %v680_v28, %v6427_v12  ;;  %v8659_v12 = vrot.slane %v6370_v36, %v6378_v42 }
  0x9b   : > { %v733_v17 = vcombine.low %v408_v47, %v504_v62  ;;  %v734_v26 = vcombine.high %v408_v47, %v504_v62  ;;  %v717_v14 = vcombine.low %v6281_v5, %v456_v41  ;;  %v718_v2 = vcombine.high %v6281_v5, %v456_v41 }
  0x9c   : > { %427 = vrot.lane.b32.xlu1 %v220_v48, %s6205_s20  ;;  %v749_v59 = vcombine.low %v693_v0, %v709_v32  ;;  %v750_v38 = vcombine.high %v693_v0, %v709_v32  ;;  %v765_v44 = vcombine.low %v6769_v16, %v716_v20  ;;  %v684_v41 = vcombine.high %v6748_v60, %v6764_v39 }
  0x9d   : > { %363 = vrot.lane.b32.xlu0 %v219_v4, %s6204_s19  ;;  %v741_v37 = vrot.slane %v733_v17, %v6390_v50  ;;  %v748_v63 = vrot.slane %v734_v26, %v6390_v50  ;;  %v725_v30 = vrot.slane %v717_v14, %v6390_v50  ;;  %v732_v47 = vrot.slane %v718_v2, %v6390_v50 }
  0x9e   : > { %v298_v33 = vpop.permute.xlu1 %297  ;;  %v250_v5 = vpop.permute.xlu0 %249  ;;  %v766_v0 = vcombine.high %v6769_v16, %v716_v20  ;;  %v4181_v28 = vsub.f32 %v677_v27, %v8659_v12  ;;  %v8660_v17 = vrot.slane %v6374_v40, %v6378_v42  ;;  %v4310_v39 = vpack.c.bf16 %v4184_v61, %v4183_v1 }
  0x9f   : > { %v781_v26 = vcombine.low %v725_v30, %v741_v37  ;;  %v782_v14 = vcombine.high %v725_v30, %v741_v37  ;;  %v797_v32 = vcombine.low %v732_v47, %v748_v63  ;;  %v821_v62 = vcombine.low %v6292_v6, %v298_v33  ;;  %v221_v30 = vld [vmem:[%s6247_s18 + $0xc0] sm:$0xff] }
  0xa0   : > { %v4182_v4 = vsub.f32 %v678_v15, %v8660_v17  ;;  %523 = vrot.lane.b32.xlu1 %v220_v48, %s6204_s19  ;;  %v798_v2 = vcombine.high %v732_v47, %v748_v63  ;;  %v822_v20 = vcombine.high %v6292_v6, %v298_v33  ;;  %v757_v36 = vrot.slane %v749_v59, %v6392_v51 }
  0xa1   : > { %475 = vrot.lane.b32.xlu0 %v220_v48, %s6206_s21  ;;  %v6816_v40 = vrot.slane %v750_v38, %v6392_v51  ;;  %v6819_v16 = vrot.slane %v765_v44, %v6392_v51  ;;  %v789_v15 = vrot.slane %v781_v26, %v6392_v51  ;;  %v8661_v6 = vrot.slane %v6382_v45, %v6378_v42  ;;  %v222_v26 = vld [vmem:[%s6247_s18 + $0xc8] sm:$0xff] }
  0xa2   : > { %v4309_v60 = vpack.c.bf16 %v4182_v4, %v4181_v28  ;;  %v410_v27 = vpop.permute.xlu1 %409  ;;  %v346_v37 = vpop.permute.xlu0 %345  ;;  %v8662_v48 = vrot.slane %v6385_v46, %v6378_v42  ;;  %v6831_v44 = vrot.slane %v766_v0, %v6392_v51  ;;  %v796_v63 = vrot.slane %v782_v14, %v6392_v51 }
  0xa3   : > { %v4185_v1 = vsub.f32 %v681_v57, %v8661_v6  ;;  %v837_v38 = vcombine.low %v250_v5, %v346_v37  ;;  %v838_v59 = vcombine.high %v250_v5, %v346_v37  ;;  %v6835_v47 = vrot.slane %v797_v32, %v6392_v51 }
  0xa4   : > { %6005 = vmatprep.mubr.msk.bf16.mxu0 %vm4389_vm0, %v4309_v60  ;;  %v4186_v61 = vsub.f32 %v682_v54, %v8662_v48  ;;  %v829_v33 = vrot.slane %v821_v62, %v6390_v50  ;;  %v6840_v45 = vrot.slane %v798_v2, %v6392_v51  ;;  %v813_v46 = vcombine.low %v757_v36, %v789_v15 }
  0xa5   : > { %6006 = vmatmul.mubr.msk.bf16.vlgmr.msra.gmra.mrb[0].mxu0 %vm4389_vm0, %v4310_v39  ;;  %v814_v57 = vcombine.high %v757_v36, %v789_v15  ;;  %v836_v54 = vrot.slane %v822_v20, %v6390_v50  ;;  %317 = vrot.lane.b32.xlu1 %v221_v30, %s6206_s21  ;;  %v845_v0 = vrot.slane %v837_v38, %v6390_v50 }
  0xa6   : > { %v4311_v5 = vpack.c.bf16 %v4186_v61, %v4185_v1  ;;  %v852_v12 = vrot.slane %v838_v59, %v6390_v50  ;;  %v506_v28 = vpop.permute.xlu1 %505  ;;  %v4187_v17 = vsub.f32 %v683_v13, %v6440_v22  ;;  %v458_v4 = vpop.permute.xlu0 %457  ;;  %269 = vrot.lane.b32.xlu0 %v221_v30, %s6205_s20  ;;  %v4188_v62 = vsub.f32 %v684_v41, %v6443_v23 }
  0xa7   : > { %v869_v14 = vcombine.low %v410_v27, %v506_v28  ;;  %v870_v32 = vcombine.high %v410_v27, %v506_v28  ;;  %v853_v2 = vcombine.low %v6299_v7, %v458_v4  ;;  %v815_v60 = vcombine.low %v6816_v40, %v796_v63  ;;  %v223_v28 = vld [vmem:[%s6247_s18 + $0xd0] sm:$0xff] }
  0xa8   : > { %v816_v20 = vcombine.high %v6816_v40, %v796_v63  ;;  %v817_v39 = vcombine.low %v6819_v16, %v6835_v47  ;;  %6009 = vmatprep.mubr.msk.bf16.mxu0 %vm4389_vm0, %v4311_v5  ;;  %v885_v22 = vcombine.low %v829_v33, %v845_v0  ;;  %v818_v13 = vcombine.high %v6819_v16, %v6835_v47 }
  0xa9   : > { %v877_v36 = vrot.slane %v869_v14, %v6390_v50  ;;  %v884_v15 = vrot.slane %v870_v32, %v6390_v50  ;;  %v854_v23 = vcombine.high %v6299_v7, %v458_v4  ;;  %429 = vrot.lane.b32.xlu1 %v222_v26, %s6205_s20  ;;  %v886_v41 = vcombine.high %v829_v33, %v845_v0 }
  0xaa   : > { %v901_v27 = vcombine.low %v836_v54, %v852_v12  ;;  %v902_v40 = vcombine.high %v836_v54, %v852_v12  ;;  %v4312_v37 = vpack.c.bf16 %v4188_v62, %v4187_v17  ;;  %v300_v6 = vpop.permute.xlu1 %299  ;;  %v252_v1 = vpop.permute.xlu0 %251  ;;  %365 = vrot.lane.b32.xlu0 %v221_v30, %s6204_s19  ;;  %v861_v48 = vrot.slane %v853_v2, %v6390_v50 }
  0xab   : > { %v868_v16 = vrot.slane %v854_v23, %v6390_v50  ;;  %v8663_v61 = vrot.slane %v6402_v55, %v6378_v42  ;;  %v8664_v7 = vrot.slane %v6405_v56, %v6378_v42  ;;  %v819_v63 = vcombine.low %v6831_v44, %v6840_v45 }
  0xac   : > { %v820_v47 = vcombine.high %v6831_v44, %v6840_v45  ;;  %v6876_v30 = vrot.slane %v885_v22, %v6392_v51  ;;  %v957_v33 = vcombine.low %v6310_v8, %v300_v6  ;;  %v917_v55 = vcombine.low %v861_v48, %v877_v36 }
  0xad   : > { %v4189_v38 = vsub.f32 %v813_v46, %v8663_v61  ;;  %v4190_v59 = vsub.f32 %v814_v57, %v8664_v7  ;;  %6010 = vmatmul.mubr.msk.bf16.gmra.mrb[4].mxu0 %vm4389_vm0, %v4312_v37  ;;  %v918_v46 = vcombine.high %v861_v48, %v877_v36  ;;  %v933_v54 = vcombine.low %v868_v16, %v884_v15 }
  0xae   : > { %v958_v56 = vcombine.high %v6310_v8, %v300_v6  ;;  %525 = vrot.lane.b32.xlu1 %v222_v26, %s6204_s19  ;;  %v934_v57 = vcombine.high %v868_v16, %v884_v15  ;;  %v4191_v0 = vsub.f32 %v815_v60, %v6469_v34  ;;  %v4192_v44 = vsub.f32 %v816_v20, %v6472_v35  ;;  %v412_v45 = vpop.permute.xlu1 %411  ;;  %v348_v12 = vpop.permute.xlu0 %347  ;;  %v224_v6 = vld [vmem:[%s6247_s18 + $0xd8] sm:$0xff] }
  0xaf   : > { %v4313_v5 = vpack.c.bf16 %v4190_v59, %v4189_v38  ;;  %477 = vrot.lane.b32.xlu0 %v222_v26, %s6206_s21  ;;  %v900_v17 = vrot.slane %v886_v41, %v6392_v51  ;;  %v6888_v4 = vrot.slane %v901_v27, %v6392_v51  ;;  %v6891_v8 = vrot.slane %v902_v40, %v6392_v51 }
  0xb0   : > { %v925_v14 = vrot.slane %v917_v55, %v6392_v51  ;;  %v8665_v34 = vrot.slane %v6421_v3, %v6378_v42  ;;  %v8666_v26 = vrot.slane %v6424_v11, %v6378_v42  ;;  %v973_v62 = vcombine.low %v252_v1, %v348_v12 }
  0xb1   : > { %6013 = vmatprep.mubr.msk.bf16.mxu0 %vm4389_vm0, %v4313_v5  ;;  %v974_v2 = vcombine.high %v252_v1, %v348_v12  ;;  %v932_v60 = vrot.slane %v918_v46, %v6392_v51  ;;  %v6903_v20 = vrot.slane %v933_v54, %v6392_v51  ;;  %v965_v22 = vrot.slane %v957_v33, %v6390_v50 }
  0xb2   : > { %v4193_v35 = vsub.f32 %v817_v39, %v8665_v34  ;;  %v4194_v32 = vsub.f32 %v818_v13, %v8666_v26  ;;  %v6907_v36 = vrot.slane %v958_v56, %v6390_v50  ;;  %319 = vrot.lane.b32.xlu1 %v223_v28, %s6206_s21  ;;  %v6911_v3 = vrot.slane %v934_v57, %v6392_v51  ;;  %v508_v15 = vpop.permute.xlu1 %507  ;;  %v460_v23 = vpop.permute.xlu0 %459 }
  0xb3   : > { %v949_v11 = vcombine.low %v6876_v30, %v925_v14  ;;  %v950_v39 = vcombine.high %v6876_v30, %v925_v14  ;;  %v4314_v13 = vpack.c.bf16 %v4192_v44, %v4191_v0  ;;  %271 = vrot.lane.b32.xlu0 %v223_v28, %s6205_s20  ;;  %v981_v27 = vrot.slane %v973_v62, %v6390_v50 }
  0xb4   : > { %v4315_v41 = vpack.c.bf16 %v4194_v32, %v4193_v35  ;;  %v988_v40 = vrot.slane %v974_v2, %v6390_v50  ;;  %v1005_v37 = vcombine.low %v412_v45, %v508_v15  ;;  %v1006_v1 = vcombine.high %v412_v45, %v508_v15 }
  0xb5   : > { %6014 = vmatmul.mubr.msk.bf16.gmra.mrb[8].mxu0 %vm4389_vm0, %v4314_v13  ;;  %v4195_v48 = vsub.f32 %v819_v63, %v6486_v49  ;;  %v4196_v16 = vsub.f32 %v820_v47, %v6489_v52  ;;  %v989_v61 = vcombine.low %v6317_v9, %v460_v23  ;;  %v951_v38 = vcombine.low %v900_v17, %v932_v60 }
  0xb6   : > { %v952_v7 = vcombine.high %v900_v17, %v932_v60  ;;  %v953_v59 = vcombine.low %v6888_v4, %v6903_v20  ;;  %v954_v30 = vcombine.high %v6888_v4, %v6903_v20  ;;  %6017 = vmatprep.mubr.msk.bf16.mxu0 %vm4389_vm0, %v4315_v41  ;;  %v1021_v33 = vcombine.low %v965_v22, %v981_v27  ;;  %v302_v52 = vpop.permute.xlu1 %301  ;;  %v254_v63 = vpop.permute.xlu0 %253 }
  0xb7   : > { %v1013_v55 = vrot.slane %v1005_v37, %v6390_v50  ;;  %v1020_v46 = vrot.slane %v1006_v1, %v6390_v50  ;;  %v990_v49 = vcombine.high %v6317_v9, %v460_v23  ;;  %431 = vrot.lane.b32.xlu1 %v224_v6, %s6205_s20  ;;  %v1022_v47 = vcombine.high %v965_v22, %v981_v27 }
  0xb8   : > { %v1037_v54 = vcombine.low %v6907_v36, %v988_v40  ;;  %v1038_v56 = vcombine.high %v6907_v36, %v988_v40  ;;  %v4316_v57 = vpack.c.bf16 %v4196_v16, %v4195_v48  ;;  %367 = vrot.lane.b32.xlu0 %v223_v28, %s6204_s19  ;;  %v997_v5 = vrot.slane %v989_v61, %v6390_v50 }
  0xb9   : > { %v1004_v0 = vrot.slane %v990_v49, %v6390_v50  ;;  %v8667_v44 = vrot.slane %v6446_v24, %v6378_v42  ;;  %v8668_v45 = vrot.slane %v6449_v25, %v6378_v42  ;;  %v1093_v17 = vcombine.low %v6328_v10, %v302_v52 }
  0xba   : > { %v1094_v4 = vcombine.high %v6328_v10, %v302_v52  ;;  %v4199_v14 = vsub.f32 %v951_v38, %v6510_v19  ;;  %v4200_v28 = vsub.f32 %v952_v7, %v6513_v21  ;;  %v1053_v34 = vcombine.low %v997_v5, %v1013_v55  ;;  %v414_v62 = vpop.permute.xlu1 %413  ;;  %v350_v24 = vpop.permute.xlu0 %349  ;;  %v225_v19 = vld [vmem:[%s6247_s18 + $0xe0] sm:$0xff]  ;;  %v226_v38 = vld [vmem:[%s6247_s18 + $0xe8] sm:$0xff] }
  0xbb   : > { %v4197_v9 = vsub.f32 %v949_v11, %v8667_v44  ;;  %v4198_v12 = vsub.f32 %v950_v39, %v8668_v45  ;;  %v1054_v35 = vcombine.high %v997_v5, %v1013_v55  ;;  %v1069_v26 = vcombine.low %v1004_v0, %v1020_v46  ;;  %527 = vrot.lane.b32.xlu1 %v224_v6, %s6204_s19 }
  0xbc   : > { %v1070_v32 = vcombine.high %v1004_v0, %v1020_v46  ;;  %v955_v25 = vcombine.low %v6891_v8, %v6911_v3  ;;  %v956_v2 = vcombine.high %v6891_v8, %v6911_v3  ;;  %v1029_v10 = vrot.slane %v1021_v33, %v6392_v51  ;;  %479 = vrot.lane.b32.xlu0 %v224_v6, %s6206_s21 }
  0xbd   : > { %v4317_v60 = vpack.c.bf16 %v4198_v12, %v4197_v9  ;;  %v6956_v21 = vrot.slane %v1022_v47, %v6392_v51  ;;  %v6959_v20 = vrot.slane %v1037_v54, %v6392_v51  ;;  %6018 = vmatmul.mubr.msk.bf16.gmra.mrb[12].mxu0 %vm4389_vm0, %v4316_v57  ;;  %v1061_v22 = vrot.slane %v1053_v34, %v6392_v51 }
  0xbe   : > { %v6964_v36 = vrot.slane %v1054_v35, %v6392_v51  ;;  %v6967_v8 = vrot.slane %v1038_v56, %v6392_v51  ;;  %v1101_v3 = vrot.slane %v1093_v17, %v6390_v50  ;;  %v1109_v11 = vcombine.low %v254_v63, %v350_v24  ;;  %v510_v27 = vpop.permute.xlu1 %509  ;;  %v462_v40 = vpop.permute.xlu0 %461 }
  0xbf   : > { %6021 = vmatprep.mubr.msk.bf16.mxu0 %vm4389_vm0, %v4317_v60  ;;  %v1110_v39 = vcombine.high %v254_v63, %v350_v24  ;;  %v6972_v13 = vrot.slane %v1069_v26, %v6392_v51  ;;  %v6975_v15 = vrot.slane %v1070_v32, %v6392_v51  ;;  %v1108_v23 = vrot.slane %v1094_v4, %v6390_v50  ;;  %v8672_v32 = vld [vmem:[#allocation3_spill] sm:$0xff] }
  0xc0   : > { %v4318_v41 = vpack.c.bf16 %v4200_v28, %v4199_v14  ;;  %321 = vrot.lane.b32.xlu1 %v225_v19, %s6206_s21  ;;  %v1085_v37 = vcombine.low %v1029_v10, %v1061_v22  ;;  %v1086_v6 = vcombine.high %v1029_v10, %v1061_v22  ;;  %v8669_v1 = vrot.slane %v6458_v29, %v6378_v42 }
  0xc1   : > { %v8670_v16 = vrot.slane %v6463_v31, %v6378_v42  ;;  %273 = vrot.lane.b32.xlu0 %v225_v19, %s6205_s20  ;;  %v1087_v7 = vcombine.low %v6956_v21, %v6964_v36  ;;  %v1117_v33 = vrot.slane %v1109_v11, %v6390_v50  ;;  %v1124_v55 = vrot.slane %v1110_v39, %v6390_v50  ;;  %v8674_v11 = vld [vmem:[#allocation8_spill] sm:$0xff] }
  0xc2   : > { %v4201_v48 = vsub.f32 %v953_v59, %v8669_v1  ;;  %v1141_v46 = vcombine.low %v414_v62, %v510_v27  ;;  %v1142_v49 = vcombine.high %v414_v62, %v510_v27  ;;  %v4203_v52 = vsub.f32 %v955_v25, %v6525_v18  ;;  %v6173_v59 = vld [vmem:[%s6247_s18 + $0x48] sm:$0xff]  ;;  %v304_v56 = vpop.permute.xlu1 %303  ;;  %v256_v57 = vpop.permute.xlu0 %255  ;;  %v6174_v25 = vld [vmem:[%s6247_s18 + $0x50] sm:$0xff] }
  0xc3   : > { %v4202_v61 = vsub.f32 %v954_v30, %v8670_v16  ;;  %v4204_v29 = vsub.f32 %v956_v2, %v6538_v53  ;;  %v1125_v63 = vcombine.low %v6173_v59, %v462_v40  ;;  %v1088_v31 = vcombine.high %v6956_v21, %v6964_v36  ;;  %v227_v36 = vld [vmem:[%s6247_s18 + $0xf0] sm:$0xff] }
  0xc4   : > { %v1089_v30 = vcombine.low %v6959_v20, %v6972_v13  ;;  %v1090_v47 = vcombine.high %v6959_v20, %v6972_v13  ;;  %v1157_v54 = vcombine.low %v1101_v3, %v1117_v33  ;;  %433 = vrot.lane.b32.xlu1 %v226_v38, %s6205_s20  ;;  %v1149_v18 = vrot.slane %v1141_v46, %v6390_v50  ;;  %v8675_v13 = vld [vmem:[#allocation11_spill] sm:$0xff] }
  0xc5   : > { %v4319_v5 = vpack.c.bf16 %v4202_v61, %v4201_v48  ;;  %v1156_v53 = vrot.slane %v1142_v49, %v6390_v50  ;;  %v1126_v0 = vcombine.high %v6173_v59, %v462_v40  ;;  %369 = vrot.lane.b32.xlu0 %v225_v19, %s6204_s19  ;;  %v1091_v44 = vcombine.low %v6967_v8, %v6975_v15 }
  0xc6   : > { %v1092_v9 = vcombine.high %v6967_v8, %v6975_v15  ;;  %6022 = vmatmul.mubr.msk.bf16.gmra.mrb[16].mxu0 %vm4389_vm0, %v4318_v41  ;;  %v1158_v45 = vcombine.high %v1101_v3, %v1117_v33  ;;  %v1173_v12 = vcombine.low %v1108_v23, %v1124_v55  ;;  %v1174_v17 = vcombine.high %v1108_v23, %v1124_v55  ;;  %v416_v10 = vpop.permute.xlu1 %415  ;;  %v352_v60 = vpop.permute.xlu0 %351  ;;  %v8676_v55 = vld [vmem:[#allocation4_spill] sm:$0xff]  ;;  %v6176_v15 = vld [vmem:[%s6247_s18 + $0x60] sm:$0xff] }
  0xc7   : > { %6025 = vmatprep.mubr.msk.bf16.mxu0 %vm4389_vm0, %v4319_v5  ;;  %v4320_v4 = vpack.c.bf16 %v4204_v29, %v4203_v52  ;;  %v1133_v14 = vrot.slane %v1125_v63, %v6390_v50  ;;  %v1140_v28 = vrot.slane %v1126_v0, %v6390_v50  ;;  %v7013_v34 = vrot.slane %v1157_v54, %v6392_v51  ;;  %v8678_v52 = vld [vmem:[#allocation5_spill] sm:$0xff] }
  0xc8   : > { %v8671_v35 = vrot.slane %v6496_v58, %v6378_v42  ;;  %v8673_v62 = vrot.slane %v8672_v32, %v6378_v42  ;;  %v1229_v2 = vcombine.low %v6174_v25, %v304_v56  ;;  %529 = vrot.lane.b32.xlu1 %v226_v38, %s6204_s19  ;;  %v7026_v58 = vrot.slane %v1158_v45, %v6392_v51  ;;  %v228_v63 = vld [vmem:[%s6247_s18 + $0xf8] sm:$0xff] }
  0xc9   : > { %v1189_v19 = vcombine.low %v1133_v14, %v1149_v18  ;;  %v1190_v21 = vcombine.high %v1133_v14, %v1149_v18  ;;  %v1205_v20 = vcombine.low %v1140_v28, %v1156_v53  ;;  %v1206_v22 = vcombine.high %v1140_v28, %v1156_v53  ;;  %481 = vrot.lane.b32.xlu0 %v226_v38, %s6206_s21 }
  0xca   : > { %v4205_v26 = vsub.f32 %v1085_v37, %v8671_v35  ;;  %v4206_v24 = vsub.f32 %v1086_v6, %v8673_v62  ;;  %v1230_v3 = vcombine.high %v6174_v25, %v304_v56  ;;  %v7029_v39 = vsub.f32 %v1087_v7, %v8674_v11  ;;  %v512_v61 = vpop.permute.xlu1 %511  ;;  %v464_v38 = vpop.permute.xlu0 %463  ;;  %v8681_v25 = vld [vmem:[#allocation15_spill] sm:$0xff] }
  0xcb   : > { %v7032_v23 = vsub.f32 %v1088_v31, %v8675_v13  ;;  %v7035_v41 = vrot.slane %v1173_v12, %v6392_v51  ;;  %v7038_v27 = vrot.slane %v1174_v17, %v6392_v51  ;;  %v1197_v40 = vrot.slane %v1189_v19, %v6392_v51  ;;  %v6175_v12 = vld [vmem:[%s6247_s18 + $0x58] sm:$0xff]  ;;  %v8684_v11 = vld [vmem:[#allocation7_spill] sm:$0xff] }
  0xcc   : > { %v1204_v37 = vrot.slane %v1190_v21, %v6392_v51  ;;  %v7043_v6 = vrot.slane %v1205_v20, %v6392_v51  ;;  %v4321_v1 = vpack.c.bf16 %v4206_v24, %v4205_v26  ;;  %v1245_v48 = vcombine.low %v256_v57, %v352_v60  ;;  %323 = vrot.lane.b32.xlu1 %v227_v36, %s6206_s21  ;;  %v8680_v26 = vld [vmem:[#allocation12_spill] sm:$0xff] }
  0xcd   : > { %v1246_v16 = vcombine.high %v256_v57, %v352_v60  ;;  %v7047_v7 = vrot.slane %v1206_v22, %v6392_v51  ;;  %v1237_v33 = vrot.slane %v1229_v2, %v6390_v50  ;;  %v8677_v46 = vrot.slane %v8676_v55, %v6378_v42  ;;  %275 = vrot.lane.b32.xlu0 %v227_v36, %s6205_s20 }
  0xce   : > { %v8679_v29 = vrot.slane %v8678_v52, %v6378_v42  ;;  %6026 = vmatmul.mubr.msk.bf16.gmra.mrb[20].mxu0 %vm4389_vm0, %v4320_v4  ;;  %v1221_v31 = vcombine.low %v7013_v34, %v1197_v40  ;;  %v1222_v54 = vcombine.high %v7013_v34, %v1197_v40  ;;  %v1244_v56 = vrot.slane %v1230_v3, %v6390_v50  ;;  %v306_v4 = vpop.permute.xlu1 %305  ;;  %v258_v14 = vpop.permute.xlu0 %257  ;;  %v8686_v40 = vld [vmem:[#allocation18_spill] sm:$0xff] }
  0xcf   : > { %v4209_v49 = vsub.f32 %v1089_v30, %v8677_v46  ;;  %v4322_v57 = vpack.c.bf16 %v7032_v23, %v7029_v39  ;;  %v1223_v30 = vcombine.low %v7026_v58, %v1204_v37  ;;  %6029 = vmatprep.mubr.msk.bf16.mxu0 %vm4389_vm0, %v4321_v1  ;;  %v1260_v5 = vrot.slane %v1246_v16, %v6390_v50 }
  0xd0   : > { %v4210_v59 = vsub.f32 %v1090_v47, %v8679_v29  ;;  %v1253_v47 = vrot.slane %v1245_v48, %v6390_v50  ;;  %v1277_v18 = vcombine.low %v416_v10, %v512_v61  ;;  %v1224_v53 = vcombine.high %v7026_v58, %v1204_v37  ;;  %435 = vrot.lane.b32.xlu1 %v228_v63, %s6205_s20 }
  0xd1   : > { %v1225_v0 = vcombine.low %v7035_v41, %v7043_v6  ;;  %v1278_v45 = vcombine.high %v416_v10, %v512_v61  ;;  %v1261_v17 = vcombine.low %v6175_v12, %v464_v38  ;;  %v1226_v28 = vcombine.high %v7035_v41, %v7043_v6  ;;  %371 = vrot.lane.b32.xlu0 %v227_v36, %s6204_s19  ;;  %v8682_v36 = vld [vmem:[#allocation6_spill] sm:$0xff]  ;;  %v8687_v6 = vld [vmem:[#allocation19_spill] sm:$0xff] }
  0xd2   : > { %v1227_v34 = vcombine.low %v7038_v27, %v7047_v7  ;;  %v4323_v35 = vpack.c.bf16 %v4210_v59, %v4209_v49  ;;  %v7081_v32 = vsub.f32 %v1091_v44, %v8680_v26  ;;  %v1285_v62 = vrot.slane %v1277_v18, %v6390_v50  ;;  %v418_v23 = vpop.permute.xlu1 %417  ;;  %v354_v8 = vpop.permute.xlu0 %353  ;;  %v8690_v26 = vld [vmem:[#allocation10_spill] sm:$0xff] }
  0xd3   : > { %v1292_v24 = vrot.slane %v1278_v45, %v6390_v50  ;;  %v4212_v2 = vsub.f32 %v1092_v9, %v8681_v25  ;;  %v1262_v10 = vcombine.high %v6175_v12, %v464_v38  ;;  %v1293_v60 = vcombine.low %v1237_v33, %v1253_v47 }
  0xd4   : > { %v1294_v19 = vcombine.high %v1237_v33, %v1253_v47  ;;  %v1309_v21 = vcombine.low %v1244_v56, %v1260_v5  ;;  %v1310_v20 = vcombine.high %v1244_v56, %v1260_v5  ;;  %v1269_v44 = vrot.slane %v1261_v17, %v6390_v50  ;;  %531 = vrot.lane.b32.xlu1 %v228_v63, %s6204_s19 }
  0xd5   : > { %v1276_v22 = vrot.slane %v1262_v10, %v6390_v50  ;;  %v8683_v58 = vrot.slane %v8682_v36, %v6378_v42  ;;  %v8685_v39 = vrot.slane %v8684_v11, %v6378_v42  ;;  %v1365_v9 = vcombine.low %v6176_v15, %v306_v4  ;;  %483 = vrot.lane.b32.xlu0 %v228_v63, %s6206_s21 }
  0xd6   : > { %v1366_v41 = vcombine.high %v6176_v15, %v306_v4  ;;  %v7101_v37 = vsub.f32 %v1223_v30, %v8686_v40  ;;  %v7104_v1 = vsub.f32 %v1224_v53, %v8687_v6  ;;  %6030 = vmatmul.mubr.msk.bf16.gmra.mrb[24].mxu0 %vm4389_vm0, %v4322_v57  ;;  %v1325_v48 = vcombine.low %v1269_v44, %v1285_v62  ;;  %v8688_v4 = vld [vmem:[#allocation9_spill] sm:$0xff] }
  0xd7   : > { %v4213_v3 = vsub.f32 %v1221_v31, %v8683_v58  ;;  %v4214_v13 = vsub.f32 %v1222_v54, %v8685_v39  ;;  %v1326_v16 = vcombine.high %v1269_v44, %v1285_v62  ;;  %v1341_v61 = vcombine.low %v1276_v22, %v1292_v24  ;;  %6033 = vmatprep.mubr.msk.bf16.mxu0 %vm4389_vm0, %v4323_v35  ;;  %v514_v31 = vpop.permute.xlu1 %513  ;;  %v466_v54 = vpop.permute.xlu0 %465 }
  0xd8   : > { %v1342_v38 = vcombine.high %v1276_v22, %v1292_v24  ;;  %v1228_v33 = vcombine.high %v7038_v27, %v7047_v7  ;;  %v7112_v55 = vrot.slane %v1293_v60, %v6392_v51  ;;  %v7115_v46 = vrot.slane %v1294_v19, %v6392_v51 }
  0xd9   : > { %v4324_v49 = vpack.c.bf16 %v4212_v2, %v7081_v32  ;;  %v7119_v52 = vrot.slane %v1309_v21, %v6392_v51  ;;  %v7122_v29 = vrot.slane %v1310_v20, %v6392_v51  ;;  %v7125_v59 = vrot.slane %v1325_v48, %v6392_v51 }
  0xda   : > { %v7128_v63 = vrot.slane %v1326_v16, %v6392_v51  ;;  %v4325_v56 = vpack.c.bf16 %v4214_v13, %v4213_v3  ;;  %v1373_v57 = vrot.slane %v1365_v9, %v6390_v50  ;;  %v1381_v30 = vcombine.low %v258_v14, %v354_v8 }
  0xdb   : > { %v1382_v47 = vcombine.high %v258_v14, %v354_v8  ;;  %v7132_v5 = vrot.slane %v1341_v61, %v6392_v51  ;;  %v7135_v18 = vrot.slane %v1342_v38, %v6392_v51  ;;  %v1380_v53 = vrot.slane %v1366_v41, %v6390_v50  ;;  %v308_v60 = vpop.permute.xlu1 %307  ;;  %v7154_v19 = vpop.permute.xlu0 %259  ;;  %v6178_v41 = vld [vmem:[%s6247_s18 + $0x70] sm:$0xff] }
  0xdc   : > { %v4326_v45 = vpack.c.bf16 %v7104_v1, %v7101_v37  ;;  %v1357_v12 = vcombine.low %v7112_v55, %v7125_v59  ;;  %v1358_v17 = vcombine.high %v7112_v55, %v7125_v59  ;;  %v8689_v14 = vrot.slane %v8688_v4, %v6378_v42 }
  0xdd   : > { %v8691_v32 = vrot.slane %v8690_v26, %v6378_v42  ;;  %v1359_v24 = vcombine.low %v7115_v46, %v7128_v63  ;;  %v1389_v25 = vrot.slane %v1381_v30, %v6390_v50  ;;  %v1396_v2 = vrot.slane %v1382_v47, %v6390_v50 }
  0xde   : > { %v4217_v35 = vsub.f32 %v1225_v0, %v8689_v14  ;;  %v1413_v10 = vcombine.low %v418_v23, %v514_v31  ;;  %v1360_v21 = vcombine.high %v7115_v46, %v7128_v63  ;;  %v1414_v20 = vcombine.high %v418_v23, %v514_v31  ;;  %v6177_v0 = vld [vmem:[%s6247_s18 + $0x68] sm:$0xff]  ;;  %6034 = vmatmul.mubr.msk.bf16.gmra.mrb[28].mxu0 %vm4389_vm0, %v4324_v49  ;;  %v8692_v49 = vld [vmem:[#allocation22_spill] sm:$0xff] }
  0xdf   : > { %v4218_v62 = vsub.f32 %v1226_v28, %v8691_v32  ;;  %v1397_v44 = vcombine.low %v6177_v0, %v466_v54  ;;  %v1398_v22 = vcombine.high %v6177_v0, %v466_v54  ;;  %v1361_v28 = vcombine.low %v7119_v52, %v7132_v5  ;;  %6037 = vmatprep.mubr.msk.bf16.mxu0 %vm4389_vm0, %v4325_v56  ;;  %v420_v37 = vpop.permute.xlu1 %419  ;;  %v356_v6 = vpop.permute.xlu0 %355  ;;  %v8693_v31 = vld [vmem:[#allocation23_spill] sm:$0xff] }
  0xe0   : > { %v1362_v36 = vcombine.high %v7119_v52, %v7132_v5  ;;  %v1429_v58 = vcombine.low %v1373_v57, %v1389_v25  ;;  %v1430_v3 = vcombine.high %v1373_v57, %v1389_v25  ;;  %v1421_v11 = vrot.slane %v1413_v10, %v6390_v50  ;;  %v6180_v52 = vld [vmem:[%s6247_s18 + $0x80] sm:$0xff] }
  0xe1   : > { %v1428_v39 = vrot.slane %v1414_v20, %v6390_v50  ;;  %v1405_v13 = vrot.slane %v1397_v44, %v6390_v50  ;;  %v1412_v23 = vrot.slane %v1398_v22, %v6390_v50  ;;  %v1363_v8 = vcombine.low %v7122_v29, %v7135_v18  ;;  %v8696_v20 = vld [vmem:[#allocation14_spill] sm:$0xff] }
  0xe2   : > { %v1445_v15 = vcombine.low %v1380_v53, %v1396_v2  ;;  %v1446_v9 = vcombine.high %v1380_v53, %v1396_v2  ;;  %v1501_v40 = vcombine.low %v6178_v41, %v308_v60  ;;  %v7173_v38 = vrot.slane %v1429_v58, %v6392_v51 }
  0xe3   : > { %v1461_v1 = vcombine.low %v1405_v13, %v1421_v11  ;;  %v1462_v48 = vcombine.high %v1405_v13, %v1421_v11  ;;  %v1477_v16 = vcombine.low %v1412_v23, %v1428_v39  ;;  %v1478_v61 = vcombine.high %v1412_v23, %v1428_v39  ;;  %v468_v4 = vpop.permute.xlu0 %467  ;;  %v6179_v13 = vld [vmem:[%s6247_s18 + $0x78] sm:$0xff] }
  0xe4   : > { %v1502_v55 = vcombine.high %v6178_v41, %v308_v60  ;;  %v4219_v59 = vsub.f32 %v1227_v34, %v8692_v49  ;;  %v4220_v54 = vsub.f32 %v1228_v33, %v8693_v31  ;;  %v1364_v56 = vcombine.high %v7122_v29, %v7135_v18  ;;  %v516_v33 = vpop.permute.xlu1 %515  ;;  %v8699_v49 = vld [vmem:[#allocation27_spill] sm:$0xff]  ;;  %v8700_v31 = vld [vmem:[#allocation16_spill] sm:$0xff] }
  0xe5   : > { %v7183_v57 = vrot.slane %v1430_v3, %v6392_v51  ;;  %v7186_v30 = vrot.slane %v1461_v1, %v6392_v51  ;;  %v7189_v47 = vrot.slane %v1462_v48, %v6392_v51  ;;  %v7192_v53 = vrot.slane %v1445_v15, %v6392_v51  ;;  %v8698_v48 = vld [vmem:[#allocation26_spill] sm:$0xff] }
  0xe6   : > { %v7195_v27 = vrot.slane %v1446_v9, %v6392_v51  ;;  %v4327_v7 = vpack.c.bf16 %v4218_v62, %v4217_v35  ;;  %v7198_v34 = vrot.slane %v1477_v16, %v6392_v51  ;;  %v7201_v14 = vrot.slane %v1478_v61, %v6392_v51  ;;  %6038 = vmatmul.mubr.msk.bf16.gmra.mrb[32].mxu0 %vm4389_vm0, %v4326_v45  ;;  %v8694_v62 = vld [vmem:[#allocation13_spill] sm:$0xff] }
  0xe7   : > { %v1509_v26 = vrot.slane %v1501_v40, %v6390_v50  ;;  %v1516_v32 = vrot.slane %v1502_v55, %v6390_v50  ;;  %v4328_v25 = vpack.c.bf16 %v4220_v54, %v4219_v59  ;;  %v1493_v2 = vcombine.low %v7173_v38, %v7186_v30  ;;  %v262_v15 = vpop.permute.xlu0 %261 }
  0xe8   : > { %v1494_v35 = vcombine.high %v7173_v38, %v7186_v30  ;;  %v8695_v10 = vrot.slane %v8694_v62, %v6378_v42  ;;  %v8697_v0 = vrot.slane %v8696_v20, %v6378_v42  ;;  %6041 = vmatprep.mubr.msk.bf16.mxu0 %vm4389_vm0, %v4327_v7  ;;  %v1495_v22 = vcombine.low %v7183_v57, %v7189_v47  ;;  %v8711_v30 = vld [vmem:[#allocation31_spill] sm:$0xff] }
  0xe9   : > { %v1517_v45 = vcombine.low %v7154_v19, %v356_v6  ;;  %v1518_v58 = vcombine.high %v7154_v19, %v356_v6  ;;  %v1549_v3 = vcombine.low %v420_v37, %v516_v33  ;;  %v1496_v11 = vcombine.high %v7183_v57, %v7189_v47  ;;  %v6182_v57 = vld [vmem:[%s6247_s18 + $0x90] sm:$0xff] }
  0xea   : > { %v4221_v60 = vsub.f32 %v1357_v12, %v8695_v10  ;;  %v4222_v44 = vsub.f32 %v1358_v17, %v8697_v0  ;;  %v1497_v12 = vcombine.low %v7192_v53, %v7198_v34  ;;  %v1550_v39 = vcombine.high %v420_v37, %v516_v33  ;;  %v310_v17 = vpop.permute.xlu1 %309 }
  0xeb   : > { %v1533_v23 = vcombine.low %v6179_v13, %v468_v4  ;;  %v1525_v9 = vrot.slane %v1517_v45, %v6390_v50  ;;  %v1532_v41 = vrot.slane %v1518_v58, %v6390_v50  ;;  %v1557_v40 = vrot.slane %v1549_v3, %v6390_v50 }
  0xec   : > { %v1534_v1 = vcombine.high %v6179_v13, %v468_v4  ;;  %v4329_v19 = vpack.c.bf16 %v4222_v44, %v4221_v60  ;;  %v1564_v6 = vrot.slane %v1550_v39, %v6390_v50  ;;  %v4223_v16 = vsub.f32 %v1359_v24, %v8698_v48 }
  0xed   : > { %v1541_v37 = vrot.slane %v1533_v23, %v6390_v50  ;;  %v1565_v61 = vcombine.low %v1509_v26, %v1525_v9  ;;  %v1566_v55 = vcombine.high %v1509_v26, %v1525_v9  ;;  %v4224_v59 = vsub.f32 %v1360_v21, %v8699_v49  ;;  %v358_v26 = vpop.permute.xlu0 %357  ;;  %v8702_v21 = vld [vmem:[#allocation17_spill] sm:$0xff] }
  0xee   : > { %v8701_v54 = vrot.slane %v8700_v31, %v6378_v42  ;;  %v1581_v33 = vcombine.low %v1516_v32, %v1532_v41  ;;  %v1548_v4 = vrot.slane %v1534_v1, %v6390_v50  ;;  %v422_v10 = vpop.permute.xlu1 %421  ;;  %v1582_v63 = vcombine.high %v1516_v32, %v1532_v41  ;;  %6042 = vmatmul.mubr.msk.bf16.gmra.mrb[36].mxu0 %vm4389_vm0, %v4328_v25 }
  0xef   : > { %v1597_v24 = vcombine.low %v1541_v37, %v1557_v40  ;;  %v1598_v62 = vcombine.high %v1541_v37, %v1557_v40  ;;  %v7247_v60 = vrot.slane %v1565_v61, %v6392_v51  ;;  %v7250_v46 = vrot.slane %v1566_v55, %v6392_v51  ;;  %6045 = vmatprep.mubr.msk.bf16.mxu0 %vm4389_vm0, %v4329_v19 }
  0xf0   : > { %v4225_v7 = vsub.f32 %v1361_v28, %v8701_v54  ;;  %v8703_v20 = vrot.slane %v8702_v21, %v6378_v42  ;;  %v1613_v45 = vcombine.low %v1548_v4, %v1564_v6  ;;  %v1614_v58 = vcombine.high %v1548_v4, %v1564_v6 }
  0xf1   : > { %v7260_v0 = vrot.slane %v1597_v24, %v6392_v51  ;;  %v7263_v44 = vrot.slane %v1598_v62, %v6392_v51  ;;  %v1498_v32 = vcombine.high %v7192_v53, %v7198_v34  ;;  %v1499_v3 = vcombine.low %v7195_v27, %v7201_v14  ;;  %v470_v6 = vpop.permute.xlu0 %469 }
  0xf2   : > { %v4226_v28 = vsub.f32 %v1362_v36, %v8703_v20  ;;  %v1637_v5 = vcombine.low %v6180_v52, %v310_v17  ;;  %v1638_v36 = vcombine.high %v6180_v52, %v310_v17  ;;  %v1500_v25 = vcombine.high %v7195_v27, %v7201_v14  ;;  %v518_v9 = vpop.permute.xlu1 %517  ;;  %v8704_v17 = vld [vmem:[#allocation28_spill] sm:$0xff] }
  0xf3   : > { %v7274_v39 = vrot.slane %v1581_v33, %v6392_v51  ;;  %v4330_v13 = vpack.c.bf16 %v4224_v59, %v4223_v16  ;;  %v7277_v23 = vrot.slane %v1613_v45, %v6392_v51  ;;  %v7280_v41 = vrot.slane %v1582_v63, %v6392_v51  ;;  %v6181_v33 = vld [vmem:[%s6247_s18 + $0x88] sm:$0xff]  ;;  %v8705_v45 = vld [vmem:[#allocation29_spill] sm:$0xff] }
  0xf4   : > { %v7283_v40 = vrot.slane %v1614_v58, %v6392_v51  ;;  %v4331_v1 = vpack.c.bf16 %v4226_v28, %v4225_v7  ;;  %v4227_v19 = vsub.f32 %v1363_v8, %v8704_v17  ;;  %v1629_v48 = vcombine.low %v7247_v60, %v7260_v0 }
  0xf5   : > { %v1630_v16 = vcombine.high %v7247_v60, %v7260_v0  ;;  %v1631_v37 = vcombine.low %v7250_v46, %v7263_v44  ;;  %v1632_v61 = vcombine.high %v7250_v46, %v7263_v44  ;;  %v7298_v55 = vrot.slane %v1637_v5, %v6390_v50  ;;  %v8706_v5 = vld [vmem:[#allocation20_spill] sm:$0xff] }
  0xf6   : > { %v1652_v49 = vrot.slane %v1638_v36, %v6390_v50  ;;  %v1653_v59 = vcombine.low %v262_v15, %v358_v26  ;;  %v1654_v8 = vcombine.high %v262_v15, %v358_v26  ;;  %v1633_v31 = vcombine.low %v7274_v39, %v7277_v23  ;;  %v312_v24 = vpop.permute.xlu1 %311  ;;  %6046 = vmatmul.mubr.msk.bf16.gmra.mrb[40].mxu0 %vm4389_vm0, %v4330_v13 }
  0xf7   : > { %v1685_v54 = vcombine.low %v422_v10, %v518_v9  ;;  %v1686_v7 = vcombine.high %v422_v10, %v518_v9  ;;  %v1669_v4 = vcombine.low %v6181_v33, %v470_v6  ;;  %v1634_v62 = vcombine.high %v7274_v39, %v7277_v23  ;;  %6049 = vmatprep.mubr.msk.bf16.mxu0 %vm4389_vm0, %v4331_v1  ;;  %v8708_v9 = vld [vmem:[#allocation21_spill] sm:$0xff] }
  0xf8   : > { %v1661_v63 = vrot.slane %v1653_v59, %v6390_v50  ;;  %v1668_v21 = vrot.slane %v1654_v8, %v6390_v50  ;;  %v1670_v20 = vcombine.high %v6181_v33, %v470_v6  ;;  %v1635_v15 = vcombine.low %v7280_v41, %v7283_v40  ;;  %v264_v6 = vpop.permute.xlu0 %263 }
  0xf9   : > { %v1693_v26 = vrot.slane %v1685_v54, %v6390_v50  ;;  %v1700_v10 = vrot.slane %v1686_v7, %v6390_v50  ;;  %v1677_v28 = vrot.slane %v1669_v4, %v6390_v50  ;;  %v4228_v58 = vsub.f32 %v1364_v56, %v8705_v45  ;;  %v8710_v7 = vld [vmem:[#allocation30_spill] sm:$0xff]  ;;  %v8712_v45 = vld [vmem:[#allocation24_spill] sm:$0xff] }
  0xfa   : > { %v1702_v52 = vcombine.high %v7298_v55, %v1661_v63  ;;  %v8707_v36 = vrot.slane %v8706_v5, %v6378_v42  ;;  %v8709_v17 = vrot.slane %v8708_v9, %v6378_v42  ;;  %v1636_v29 = vcombine.high %v7280_v41, %v7283_v40  ;;  %v424_v8 = vpop.permute.xlu1 %423 }
  0xfb   : > { %v1717_v18 = vcombine.low %v1652_v49, %v1668_v21  ;;  %v1684_v56 = vrot.slane %v1670_v20, %v6390_v50  ;;  %v1734_v59 = vcombine.high %v1677_v28, %v1693_v26  ;;  %v4231_v38 = vsub.f32 %v1495_v22, %v8710_v7  ;;  %v8714_v22 = vld [vmem:[#allocation25_spill] sm:$0xff] }
  0xfc   : > { %v4229_v13 = vsub.f32 %v1493_v2, %v8707_v36  ;;  %v4230_v1 = vsub.f32 %v1494_v35, %v8709_v17  ;;  %v7336_v54 = vrot.slane %v1702_v52, %v6392_v51  ;;  %v1718_v2 = vcombine.high %v1652_v49, %v1668_v21 }
  0xfd   : > { %v4232_v35 = vsub.f32 %v1496_v11, %v8711_v30  ;;  %v7347_v33 = vrot.slane %v1734_v59, %v6392_v51  ;;  %v1749_v4 = vcombine.low %v1684_v56, %v1700_v10  ;;  %v1750_v20 = vcombine.high %v1684_v56, %v1700_v10 }
  0xfe   : > { %v8713_v52 = vrot.slane %v8712_v45, %v6378_v42  ;;  %v4332_v21 = vpack.c.bf16 %v4228_v58, %v4227_v19  ;;  %v4333_v5 = vpack.c.bf16 %v4230_v1, %v4229_v13  ;;  %v8715_v36 = vrot.slane %v8714_v22, %v6378_v42  ;;  %v520_v19 = vpop.permute.xlu1 %519  ;;  %v8717_v13 = vld [vmem:[#allocation33_spill] sm:$0xff] }
  0xff   : > { %v1773_v47 = vcombine.low %v6182_v57, %v312_v24  ;;  %v1701_v11 = vcombine.low %v7298_v55, %v1661_v63  ;;  %v7361_v17 = vrot.slane %v1717_v18, %v6392_v51  ;;  %v1733_v10 = vcombine.low %v1677_v28, %v1693_v26  ;;  %v8716_v28 = vld [vmem:[#allocation32_spill] sm:$0xff] }
 0x100   : > { %v4233_v49 = vsub.f32 %v1497_v12, %v8713_v52  ;;  %v4234_v9 = vsub.f32 %v1498_v32, %v8715_v36  ;;  %v1774_v56 = vcombine.high %v6182_v57, %v312_v24  ;;  %v7364_v59 = vrot.slane %v1718_v2, %v6392_v51  ;;  %v360_v32 = vpop.permute.xlu0 %359  ;;  %6050 = vmatmul.mubr.msk.bf16.gmra.mrb[44].mxu0 %vm4389_vm0, %v4332_v21  ;;  %v8720_v21 = vld [vmem:[#allocation35_spill] sm:$0xff]  ;;  %v8722_v57 = vld [vmem:[#allocation38_spill] sm:$0xff] }
 0x101   : > { %v7367_v53 = vrot.slane %v1749_v4, %v6392_v51  ;;  %v7370_v34 = vrot.slane %v1750_v20, %v6392_v51  ;;  %v4334_v12 = vpack.c.bf16 %v4232_v35, %v4231_v38  ;;  %v1767_v55 = vcombine.low %v7336_v54, %v7347_v33  ;;  %6053 = vmatprep.mubr.msk.bf16.mxu0 %vm4389_vm0, %v4333_v5 }
 0x102   : > { %v1768_v24 = vcombine.high %v7336_v54, %v7347_v33  ;;  %v4335_v63 = vpack.c.bf16 %v4234_v9, %v4233_v49  ;;  %v1781_v26 = vrot.slane %v1773_v47, %v6390_v50  ;;  %v7383_v58 = vsub.f32 %v1499_v3, %v8716_v28 }
 0x103   : > { %v7389_v1 = vsub.f32 %v1500_v25, %v8717_v13  ;;  %v1789_v18 = vcombine.low %v264_v6, %v360_v32  ;;  %v1790_v2 = vcombine.high %v264_v6, %v360_v32  ;;  %v7392_v54 = vrot.slane %v1774_v56, %v6390_v50  ;;  %v8718_v25 = vld [vmem:[#allocation34_spill] sm:$0xff] }
 0x104   : > { %v1709_v7 = vrot.slane %v1701_v11, %v6392_v51  ;;  %v1741_v38 = vrot.slane %v1733_v10, %v6392_v51  ;;  %v1821_v30 = vcombine.low %v424_v8, %v520_v19  ;;  %v1769_v3 = vcombine.low %v7361_v17, %v7367_v53  ;;  %v472_v36 = vpop.permute.xlu0 %471 }
 0x105   : > { %v1797_v35 = vrot.slane %v1789_v18, %v6390_v50  ;;  %v1804_v33 = vrot.slane %v1790_v2, %v6390_v50  ;;  %v1822_v27 = vcombine.high %v424_v8, %v520_v19  ;;  %v1770_v14 = vcombine.high %v7361_v17, %v7367_v53 }
 0x106   : > { %v8719_v6 = vrot.slane %v8718_v25, %v6378_v42  ;;  %v1765_v20 = vcombine.low %v1709_v7, %v1741_v38  ;;  %v1766_v45 = vcombine.high %v1709_v7, %v1741_v38  ;;  %v4336_v52 = vpack.c.bf16 %v7389_v1, %v7383_v58  ;;  %v6183_v1 = vld [vmem:[%s6247_s18 + $0x98] sm:$0xff]  ;;  %v8728_v38 = vld [vmem:[#allocation36_spill] sm:$0xff] }
 0x107   : > { %v1837_v49 = vcombine.low %v1781_v26, %v1797_v35  ;;  %v8721_v5 = vrot.slane %v8720_v21, %v6378_v42  ;;  %v1829_v22 = vrot.slane %v1821_v30, %v6390_v50  ;;  %v1838_v9 = vcombine.high %v1781_v26, %v1797_v35  ;;  %v8729_v35 = vld [vmem:[#allocation37_spill] sm:$0xff] }
 0x108   : > { %v4237_v4 = vsub.f32 %v1629_v48, %v8719_v6  ;;  %v8723_v48 = vrot.slane %v8722_v57, %v6378_v42  ;;  %v8724_v11 = vrot.slane %v6753_v43, %v6378_v42  ;;  %v8725_v56 = vcombine.high %v8722_v57, %v8722_v57  ;;  %6054 = vmatmul.mubr.msk.bf16.gmra.mrb[48].mxu0 %vm4389_vm0, %v4334_v12 }
 0x109   : > { %v4238_v8 = vsub.f32 %v1630_v16, %v8721_v5  ;;  %v7428_v60 = vrot.slane %v1837_v49, %v6392_v51  ;;  %v1853_v0 = vcombine.low %v7392_v54, %v1804_v33  ;;  %v1854_v16 = vcombine.high %v7392_v54, %v1804_v33  ;;  %6057 = vmatprep.mubr.msk.bf16.mxu0 %vm4389_vm0, %v4335_v63  ;;  %v8730_v33 = vld [vmem:[#allocation39_spill] sm:$0xff] }
 0x10a   : > { %v4245_v47 = vsub.f32 %v1765_v20, %v8723_v48  ;;  %v4246_v10 = vsub.f32 %v1766_v45, %v8724_v11  ;;  %v3808_v32 = vrot.slane %v8725_v56, %v6378_v42  ;;  %v1836_v19 = vrot.slane %v1822_v27, %v6390_v50 }
 0x10b   : > { %v8726_v28 = vcombine.high %v6753_v43, %v6753_v43  ;;  %v1805_v18 = vcombine.low %v6183_v1, %v472_v36  ;;  %v1806_v2 = vcombine.high %v6183_v1, %v472_v36  ;;  %v3147_v7 = vcombine.high %v8720_v21, %v8720_v21  ;;  %v314_v36 = vpop.permute.xlu1 %313 }
 0x10c   : > { %v4341_v26 = vpack.c.bf16 %v4246_v10, %v4245_v47  ;;  %v4247_v13 = vsub.f32 %v1767_v55, %v3808_v32  ;;  %v8727_v54 = vcombine.high %v8718_v25, %v8718_v25  ;;  %v3784_v30 = vrot.slane %v8728_v38, %v6378_v42  ;;  %v266_v10 = vpop.permute.xlu0 %265 }
 0x10d   : > { %v3812_v58 = vrot.slane %v8726_v28, %v6378_v42  ;;  %v1813_v55 = vrot.slane %v1805_v18, %v6390_v50  ;;  %v3788_v63 = vrot.slane %v8729_v35, %v6378_v42  ;;  %v3165_v27 = vcombine.high %v8730_v33, %v8730_v33 }
 0x10e   : > { %v3776_v12 = vrot.slane %v8727_v54, %v6378_v42  ;;  %6069 = vmatprep.mubr.msk.bf16.mxu1 %vm4389_vm0, %v4341_v26  ;;  %v1820_v6 = vrot.slane %v1806_v2, %v6390_v50  ;;  %v3780_v20 = vrot.slane %v3147_v7, %v6378_v42  ;;  %v1771_v46 = vcombine.low %v7364_v59, %v7370_v34  ;;  %v6184_v26 = vld [vmem:[%s6247_s18 + $0xa0] sm:$0xff]  ;;  %v7519_v54 = vld [vmem:[%s6348_s29 + $0x48] sm:$0xff] }
 0x10f   : > { %v4248_v43 = vsub.f32 %v1768_v24, %v3812_v58  ;;  %v7462_v24 = vsub.f32 %v1633_v31, %v3784_v30  ;;  %v1869_v49 = vcombine.low %v1813_v55, %v1829_v22  ;;  %v1870_v21 = vcombine.high %v1813_v55, %v1829_v22  ;;  %v426_v58 = vpop.permute.xlu1 %425 }
 0x110   : > { %v4239_v25 = vsub.f32 %v1631_v37, %v3776_v12  ;;  %v4242_v5 = vsub.f32 %v1634_v62, %v3788_v63  ;;  %v1885_v57 = vcombine.low %v1820_v6, %v1836_v19  ;;  %v1886_v48 = vcombine.high %v1820_v6, %v1836_v19  ;;  %v8731_v37 = vld [vmem:[#allocation2_spill] sm:$0xff]  ;;  %6058 = vmatmul.mubr.msk.bf16.gmra.mrb[52].mxu0 %vm4389_vm0, %v4336_v52  ;;  %v362_v7 = vpop.permute.xlu0 %361 }
 0x111   : > { %v4342_v45 = vpack.c.bf16 %v4248_v43, %v4247_v13  ;;  %v4240_v47 = vsub.f32 %v1632_v61, %v3780_v20  ;;  %v3179_v11 = vrot.slane %v8730_v33, %v8731_v37  ;;  %v7473_v31 = vrot.slane %v1838_v9, %v6392_v51 }
 0x112   : > { %v7477_v22 = vrot.slane %v1869_v49, %v6392_v51  ;;  %v7480_v39 = vrot.slane %v1870_v21, %v6392_v51  ;;  %v3193_v23 = vrot.slane %v3165_v27, %v8731_v37  ;;  %v1772_v44 = vcombine.high %v7364_v59, %v7370_v34 }
 0x113   : > { %6070 = vmatmul.mubr.msk.bf16.vlgmr.msra.gmra.mrb[0].mxu1 %vm4389_vm0, %v4342_v45  ;;  %v4337_v61 = vpack.c.bf16 %v4238_v8, %v4237_v4  ;;  %v3816_v62 = vrot.slane %v3179_v11, %v6378_v42  ;;  %v7490_v9 = vrot.slane %v1853_v0, %v6392_v51  ;;  %v7493_v56 = vrot.slane %v1854_v16, %v6392_v51  ;;  %v522_v21 = vpop.permute.xlu1 %521 }
 0x114   : > { %v7496_v32 = vrot.slane %v1885_v57, %v6392_v51  ;;  %v4339_v19 = vpack.c.bf16 %v4242_v5, %v7462_v24  ;;  %v7501_v59 = vrot.slane %v1886_v48, %v6392_v51  ;;  %v1901_v34 = vcombine.low %v7428_v60, %v7477_v22  ;;  %v474_v5 = vpop.permute.xlu0 %473 }
 0x115   : > { %6061 = vmatprep.mubr.msk.bf16.mxu0 %vm4389_vm0, %v4337_v61  ;;  %v1902_v4 = vcombine.high %v7428_v60, %v7477_v22  ;;  %v4338_v52 = vpack.c.bf16 %v4240_v47, %v4239_v25  ;;  %v1903_v8 = vcombine.low %v7473_v31, %v7480_v39  ;;  %v3820_v0 = vrot.slane %v3193_v23, %v6378_v42 }
 0x116   : > { %v4249_v16 = vsub.f32 %v1769_v3, %v3816_v62  ;;  %v1909_v28 = vcombine.low %v6184_v26, %v314_v36  ;;  %v3195_v13 = vcombine.high %v3179_v11, %v3179_v11  ;;  %v3197_v1 = vcombine.high %v3193_v23, %v3193_v23 }
 0x117   : > { %v3146_v18 = vcombine.high %v8728_v38, %v8728_v38  ;;  %v3148_v2 = vcombine.high %v8729_v35, %v8729_v35  ;;  %v4250_v12 = vsub.f32 %v1770_v14, %v3820_v0  ;;  %v1910_v30 = vcombine.high %v6184_v26, %v314_v36  ;;  %v316_v0 = vpop.permute.xlu1 %315 }
 0x118   : > { %v7525_v3 = vrot.slane %v1909_v28, %v6390_v50  ;;  %v1925_v43 = vcombine.low %v266_v10, %v362_v7  ;;  %v3824_v55 = vrot.slane %v3195_v13, %v6378_v42  ;;  %v3828_v63 = vrot.slane %v3197_v1, %v6378_v42  ;;  %6062 = vmatmul.mubr.msk.bf16.gmra.mrb[56].mxu0 %vm4389_vm0, %v4338_v52 }
 0x119   : > { %v3792_v38 = vrot.slane %v3146_v18, %v6378_v42  ;;  %v3796_v35 = vrot.slane %v3148_v2, %v6378_v42  ;;  %v4343_v33 = vpack.c.bf16 %v4250_v12, %v4249_v16  ;;  %v1926_v27 = vcombine.high %v266_v10, %v362_v7  ;;  %6065 = vmatprep.mubr.msk.bf16.mxu0 %vm4389_vm0, %v4339_v19  ;;  %v6185_v19 = vld [vmem:[%s6247_s18 + $0xa8] sm:$0xff] }
 0x11a   : > { %v7532_v6 = vrot.slane %v1925_v43, %v6390_v50  ;;  %v3205_v17 = vrot.slane %v7519_v54, %v8731_v37  ;;  %v4251_v53 = vsub.f32 %v1771_v46, %v3824_v55  ;;  %v4252_v14 = vsub.f32 %v1772_v44, %v3828_v63 }
 0x11b   : > { %v4243_v20 = vsub.f32 %v1635_v15, %v3792_v38  ;;  %v4244_v25 = vsub.f32 %v1636_v29, %v3796_v35  ;;  %6073 = vmatprep.mubr.msk.bf16.mxu1 %vm4389_vm0, %v4343_v33  ;;  %v7545_v24 = vrot.slane %v1910_v30, %v6390_v50  ;;  %v1940_v45 = vrot.slane %v1926_v27, %v6390_v50  ;;  %v268_v35 = vpop.permute.xlu0 %267 }
 0x11c   : > { %v1973_v49 = vcombine.low %v7525_v3, %v7532_v6  ;;  %v1904_v15 = vcombine.high %v7473_v31, %v7480_v39  ;;  %v4344_v41 = vpack.c.bf16 %v4252_v14, %v4251_v53  ;;  %v3213_v40 = vcombine.high %v3205_v17, %v3205_v17  ;;  %v7590_v53 = vpop.permute.xlu1 %427 }
 0x11d   : > { %v3221_v29 = vrot.slane %v3205_v17, %v8731_v37  ;;  %v1905_v36 = vcombine.low %v7490_v9, %v7496_v32  ;;  %v1906_v57 = vcombine.high %v7490_v9, %v7496_v32  ;;  %v4340_v48 = vpack.c.bf16 %v4244_v25, %v4243_v20 }
 0x11e   : > { %v1974_v47 = vcombine.high %v7525_v3, %v7532_v6  ;;  %6074 = vmatmul.mubr.msk.bf16.gmra.mrb[4].mxu1 %vm4389_vm0, %v4344_v41  ;;  %v3235_v11 = vrot.slane %v3213_v40, %v8731_v37  ;;  %v1957_v23 = vcombine.low %v426_v58, %v522_v21  ;;  %v1958_v46 = vcombine.high %v426_v58, %v522_v21 }
 0x11f   : > { %v3832_v10 = vrot.slane %v3221_v29, %v6378_v42  ;;  %v7564_v44 = vrot.slane %v1973_v49, %v6392_v51  ;;  %v1989_v61 = vcombine.low %v7545_v24, %v1940_v45  ;;  %v3243_v62 = vcombine.high %v3221_v29, %v3221_v29 }
 0x120   : > { %v1941_v52 = vcombine.low %v6185_v19, %v474_v5  ;;  %v3836_v16 = vrot.slane %v3235_v11, %v6378_v42  ;;  %v1965_v28 = vrot.slane %v1957_v23, %v6390_v50  ;;  %v1972_v13 = vrot.slane %v1958_v46, %v6390_v50  ;;  %6066 = vmatmul.mubr.msk.bf16.gmra.mrb[60].mxu0 %vm4389_vm0, %v4340_v48  ;;  %v364_v48 = vpop.permute.xlu0 %363 }
 0x121   : > { %v4253_v26 = vsub.f32 %v1901_v34, %v3832_v10  ;;  %v3245_v1 = vcombine.high %v3235_v11, %v3235_v11  ;;  %v3840_v58 = vrot.slane %v3243_v62, %v6378_v42  ;;  %v1942_v18 = vcombine.high %v6185_v19, %v474_v5  ;;  %v6186_v34 = vld [vmem:[%s6247_s18 + $0xb0] sm:$0xff] }
 0x122   : > { %v1949_v2 = vrot.slane %v1941_v52, %v6390_v50  ;;  %v1990_v7 = vcombine.high %v7545_v24, %v1940_v45  ;;  %v4254_v12 = vsub.f32 %v1902_v4, %v3836_v16  ;;  %v3198_v30 = vcombine.high %v7519_v54, %v7519_v54  ;;  %v524_v52 = vpop.permute.xlu1 %523 }
 0x123   : > { %v2045_v3 = vcombine.low %v6186_v34, %v316_v0  ;;  %v3844_v43 = vrot.slane %v3245_v1, %v6378_v42  ;;  %v4255_v55 = vsub.f32 %v1903_v8, %v3840_v58  ;;  %v1956_v63 = vrot.slane %v1942_v18, %v6390_v50 }
 0x124   : > { %v2005_v38 = vcombine.low %v1949_v2, %v1965_v28  ;;  %v4345_v33 = vpack.c.bf16 %v4254_v12, %v4253_v26  ;;  %v2006_v60 = vcombine.high %v1949_v2, %v1965_v28  ;;  %v3212_v22 = vrot.slane %v3198_v30, %v8731_v37  ;;  %v476_v30 = vpop.permute.xlu0 %475 }
 0x125   : > { %v2046_v4 = vcombine.high %v6186_v34, %v316_v0  ;;  %v4256_v54 = vsub.f32 %v1904_v15, %v3844_v43  ;;  %v2021_v6 = vcombine.low %v1956_v63, %v1972_v13  ;;  %v2022_v17 = vcombine.high %v1956_v63, %v1972_v13  ;;  %v2735_v15 = vld [vmem:[%s6348_s29 + $0x50] sm:$0xff] }
 0x126   : > { %v7588_v27 = vrot.slane %v2005_v38, %v6392_v51  ;;  %v1907_v31 = vcombine.low %v7493_v56, %v7501_v59  ;;  %v1908_v39 = vcombine.high %v7493_v56, %v7501_v59  ;;  %6077 = vmatprep.mubr.msk.bf16.mxu1 %vm4389_vm0, %v4345_v33  ;;  %v3214_v8 = vcombine.high %v3212_v22, %v3212_v22  ;;  %v318_v34 = vpop.permute.xlu1 %317 }
 0x127   : > { %v3228_v14 = vrot.slane %v3212_v22, %v8731_v37  ;;  %v7599_v20 = vrot.slane %v1974_v47, %v6392_v51  ;;  %v7602_v25 = vrot.slane %v1989_v61, %v6392_v51  ;;  %v4346_v24 = vpack.c.bf16 %v4256_v54, %v4255_v55 }
 0x128   : > { %v7605_v45 = vrot.slane %v2006_v60, %v6392_v51  ;;  %v7608_v49 = vrot.slane %v1990_v7, %v6392_v51  ;;  %v3242_v56 = vrot.slane %v3214_v8, %v8731_v37  ;;  %v7612_v59 = vrot.slane %v2045_v3, %v6390_v50  ;;  %v270_v8 = vpop.permute.xlu0 %269 }
 0x129   : > { %v7615_v21 = vrot.slane %v2046_v4, %v6390_v50  ;;  %6078 = vmatmul.mubr.msk.bf16.gmra.mrb[8].mxu1 %vm4389_vm0, %v4346_v24  ;;  %v7620_v41 = vrot.slane %v2021_v6, %v6392_v51  ;;  %v7623_v40 = vrot.slane %v2022_v17, %v6392_v51  ;;  %v2037_v29 = vcombine.low %v7564_v44, %v7588_v27  ;;  %v6187_v17 = vld [vmem:[%s6247_s18 + $0xb8] sm:$0xff] }
 0x12a   : > { %v2038_v5 = vcombine.high %v7564_v44, %v7588_v27  ;;  %v3848_v47 = vrot.slane %v3228_v14, %v6378_v42  ;;  %v3852_v11 = vrot.slane %v3242_v56, %v6378_v42  ;;  %v3244_v10 = vcombine.high %v3228_v14, %v3228_v14 }
 0x12b   : > { %v3246_v23 = vcombine.high %v3242_v56, %v3242_v56  ;;  %v2039_v46 = vcombine.low %v7599_v20, %v7605_v45  ;;  %v2061_v61 = vcombine.low %v268_v35, %v364_v48  ;;  %v2062_v62 = vcombine.high %v268_v35, %v364_v48 }
 0x12c   : > { %v3254_v19 = vrot.slane %v2735_v15, %v8731_v37  ;;  %v4257_v0 = vsub.f32 %v1905_v36, %v3848_v47  ;;  %v4258_v44 = vsub.f32 %v1906_v57, %v3852_v11  ;;  %v3856_v16 = vrot.slane %v3244_v10, %v6378_v42  ;;  %v7678_v47 = vpop.permute.xlu1 %429 }
 0x12d   : > { %v3860_v26 = vrot.slane %v3246_v23, %v6378_v42  ;;  %v2069_v28 = vrot.slane %v2061_v61, %v6390_v50  ;;  %v7644_v13 = vrot.slane %v2062_v62, %v6390_v50  ;;  %v2093_v36 = vcombine.low %v7590_v53, %v524_v52 }
 0x12e   : > { %v3262_v1 = vcombine.high %v3254_v19, %v3254_v19  ;;  %v3270_v58 = vrot.slane %v3254_v19, %v8731_v37  ;;  %v4347_v18 = vpack.c.bf16 %v4258_v44, %v4257_v0  ;;  %v4259_v2 = vsub.f32 %v1907_v31, %v3856_v16 }
 0x12f   : > { %v4260_v7 = vsub.f32 %v1908_v39, %v3860_v26  ;;  %v2040_v9 = vcombine.high %v7599_v20, %v7605_v45  ;;  %v2041_v32 = vcombine.low %v7602_v25, %v7620_v41  ;;  %v2042_v57 = vcombine.high %v7602_v25, %v7620_v41 }
 0x130   : > { %v2043_v12 = vcombine.low %v7608_v49, %v7623_v40  ;;  %6081 = vmatprep.mubr.msk.bf16.mxu1 %vm4389_vm0, %v4347_v18  ;;  %v3284_v43 = vrot.slane %v3262_v1, %v8731_v37  ;;  %v3864_v55 = vrot.slane %v3270_v58, %v6378_v42  ;;  %v2094_v63 = vcombine.high %v7590_v53, %v524_v52  ;;  %v366_v1 = vpop.permute.xlu0 %365 }
 0x131   : > { %v4348_v3 = vpack.c.bf16 %v4260_v7, %v4259_v2  ;;  %v2044_v38 = vcombine.high %v7608_v49, %v7623_v40  ;;  %v2109_v35 = vcombine.low %v7612_v59, %v2069_v28  ;;  %v2110_v33 = vcombine.high %v7612_v59, %v2069_v28 }
 0x132   : > { %v2125_v60 = vcombine.low %v7615_v21, %v7644_v13  ;;  %v3868_v22 = vrot.slane %v3284_v43, %v6378_v42  ;;  %v4261_v4 = vsub.f32 %v2037_v29, %v3864_v55  ;;  %v2101_v54 = vrot.slane %v2093_v36, %v6390_v50 }
 0x133   : > { %6082 = vmatmul.mubr.msk.bf16.gmra.mrb[12].mxu1 %vm4389_vm0, %v4348_v3  ;;  %v3292_v27 = vcombine.high %v3270_v58, %v3270_v58  ;;  %v3294_v6 = vcombine.high %v3284_v43, %v3284_v43  ;;  %v2077_v53 = vcombine.low %v6187_v17, %v476_v30  ;;  %v2078_v31 = vcombine.high %v6187_v17, %v476_v30  ;;  %v2736_v3 = vld [vmem:[%s6348_s29 + $0x58] sm:$0xff]  ;;  %v526_v43 = vpop.permute.xlu1 %525 }
 0x134   : > { %v3247_v39 = vcombine.high %v2735_v15, %v2735_v15  ;;  %v2126_v14 = vcombine.high %v7615_v21, %v7644_v13  ;;  %v4262_v20 = vsub.f32 %v2038_v5, %v3868_v22  ;;  %v2108_v24 = vrot.slane %v2094_v63, %v6390_v50  ;;  %v6188_v5 = vld [vmem:[%s6247_s18 + $0xc0] sm:$0xff] }
 0x135   : > { %v3872_v45 = vrot.slane %v3292_v27, %v6378_v42  ;;  %v3876_v56 = vrot.slane %v3294_v6, %v6378_v42  ;;  %v2085_v59 = vrot.slane %v2077_v53, %v6390_v50  ;;  %v2092_v29 = vrot.slane %v2078_v31, %v6390_v50 }
 0x136   : > { %v3261_v48 = vrot.slane %v3247_v39, %v8731_v37  ;;  %v7681_v15 = vrot.slane %v2109_v35, %v6392_v51  ;;  %v4349_v11 = vpack.c.bf16 %v4262_v20, %v4261_v4  ;;  %v2181_v10 = vcombine.low %v6188_v5, %v318_v34 }
 0x137   : > { %v4263_v21 = vsub.f32 %v2039_v46, %v3872_v45  ;;  %v4264_v23 = vsub.f32 %v2040_v9, %v3876_v56  ;;  %v2141_v61 = vcombine.low %v2085_v59, %v2101_v54  ;;  %v2142_v62 = vcombine.high %v2085_v59, %v2101_v54 }
 0x138   : > { %v2182_v19 = vcombine.high %v6188_v5, %v318_v34  ;;  %6085 = vmatprep.mubr.msk.bf16.mxu1 %vm4389_vm0, %v4349_v11  ;;  %v2157_v52 = vcombine.low %v2092_v29, %v2108_v24  ;;  %v2158_v0 = vcombine.high %v2092_v29, %v2108_v24  ;;  %v3263_v44 = vcombine.high %v3261_v48, %v3261_v48 }
 0x139   : > { %v3277_v16 = vrot.slane %v3261_v48, %v8731_v37  ;;  %v7687_v26 = vrot.slane %v2110_v33, %v6392_v51  ;;  %v7690_v28 = vrot.slane %v2125_v60, %v6392_v51  ;;  %v4350_v46 = vpack.c.bf16 %v4264_v23, %v4263_v21 }
 0x13a   : > { %v7693_v13 = vrot.slane %v2141_v61, %v6392_v51  ;;  %v3291_v58 = vrot.slane %v3263_v44, %v8731_v37  ;;  %v2197_v7 = vcombine.low %v270_v8, %v366_v1  ;;  %v7698_v36 = vrot.slane %v2126_v14, %v6392_v51  ;;  %v320_v61 = vpop.permute.xlu1 %319 }
 0x13b   : > { %v3880_v18 = vrot.slane %v3277_v16, %v6378_v42  ;;  %v3293_v2 = vcombine.high %v3277_v16, %v3277_v16  ;;  %6086 = vmatmul.mubr.msk.bf16.gmra.mrb[16].mxu1 %vm4389_vm0, %v4350_v46  ;;  %v7702_v9 = vrot.slane %v2142_v62, %v6392_v51  ;;  %v2189_v30 = vrot.slane %v2181_v10, %v6390_v50  ;;  %v6189_v10 = vld [vmem:[%s6247_s18 + $0xc8] sm:$0xff] }
 0x13c   : > { %v7706_v34 = vrot.slane %v2182_v19, %v6390_v50  ;;  %v7710_v55 = vrot.slane %v2157_v52, %v6392_v51  ;;  %v7713_v63 = vrot.slane %v2158_v0, %v6392_v51  ;;  %v2173_v35 = vcombine.low %v7681_v15, %v7693_v13 }
 0x13d   : > { %v2174_v33 = vcombine.high %v7681_v15, %v7693_v13  ;;  %v3884_v60 = vrot.slane %v3291_v58, %v6378_v42  ;;  %v4265_v22 = vsub.f32 %v2041_v32, %v3880_v18  ;;  %v3295_v4 = vcombine.high %v3291_v58, %v3291_v58  ;;  %v6190_v18 = vld [vmem:[%s6247_s18 + $0xd0] sm:$0xff] }
 0x13e   : > { %v3888_v54 = vrot.slane %v3293_v2, %v6378_v42  ;;  %v2198_v27 = vcombine.high %v270_v8, %v366_v1  ;;  %v2205_v6 = vrot.slane %v2197_v7, %v6390_v50  ;;  %v3303_v17 = vrot.slane %v2736_v3, %v8731_v37 }
 0x13f   : > { %v2229_v53 = vcombine.low %v7678_v47, %v526_v43  ;;  %v4266_v31 = vsub.f32 %v2042_v57, %v3884_v60  ;;  %v3892_v39 = vrot.slane %v3295_v4, %v6378_v42  ;;  %v2230_v14 = vcombine.high %v7678_v47, %v526_v43  ;;  %v478_v57 = vpop.permute.xlu0 %477 }
 0x140   : > { %v4267_v32 = vsub.f32 %v2043_v12, %v3888_v54  ;;  %v2212_v8 = vrot.slane %v2198_v27, %v6390_v50  ;;  %v2245_v20 = vcombine.low %v2189_v30, %v2205_v6  ;;  %v2246_v24 = vcombine.high %v2189_v30, %v2205_v6  ;;  %v7775_v6 = vpop.permute.xlu1 %431 }
 0x141   : > { %v3311_v45 = vcombine.high %v3303_v17, %v3303_v17  ;;  %v2175_v56 = vcombine.low %v7687_v26, %v7702_v9  ;;  %v4351_v59 = vpack.c.bf16 %v4266_v31, %v4265_v22  ;;  %v4268_v25 = vsub.f32 %v2044_v38, %v3892_v39 }
 0x142   : > { %v3319_v41 = vrot.slane %v3303_v17, %v8731_v37  ;;  %v2176_v12 = vcombine.high %v7687_v26, %v7702_v9  ;;  %v2177_v29 = vcombine.low %v7690_v28, %v7710_v55  ;;  %v7747_v48 = vrot.slane %v2245_v20, %v6392_v51 }
 0x143   : > { %v2237_v47 = vrot.slane %v2229_v53, %v6390_v50  ;;  %6089 = vmatprep.mubr.msk.bf16.mxu1 %vm4389_vm0, %v4351_v59  ;;  %v4352_v15 = vpack.c.bf16 %v4268_v25, %v4267_v32  ;;  %v7752_v49 = vrot.slane %v2246_v24, %v6392_v51  ;;  %v3333_v40 = vrot.slane %v3311_v45, %v8731_v37  ;;  %v7794_v24 = vld [vmem:[%s6348_s29 + $0x60] sm:$0xff] }
 0x144   : > { %v3896_v38 = vrot.slane %v3319_v41, %v6378_v42  ;;  %v2261_v11 = vcombine.low %v7706_v34, %v2212_v8  ;;  %v2244_v21 = vrot.slane %v2230_v14, %v6390_v50  ;;  %v3341_v5 = vcombine.high %v3319_v41, %v3319_v41 }
 0x145   : > { %v2213_v23 = vcombine.low %v6189_v10, %v478_v57  ;;  %6090 = vmatmul.mubr.msk.bf16.gmra.mrb[20].mxu1 %vm4389_vm0, %v4352_v15  ;;  %v3900_v62 = vrot.slane %v3333_v40, %v6378_v42  ;;  %v3343_v52 = vcombine.high %v3333_v40, %v3333_v40  ;;  %v2214_v0 = vcombine.high %v6189_v10, %v478_v57  ;;  %v528_v10 = vpop.permute.xlu1 %527 }
 0x146   : > { %v4269_v19 = vsub.f32 %v2173_v35, %v3896_v38  ;;  %v2262_v44 = vcombine.high %v7706_v34, %v2212_v8  ;;  %v3904_v16 = vrot.slane %v3341_v5, %v6378_v42  ;;  %v3296_v46 = vcombine.high %v2736_v3, %v2736_v3  ;;  %v272_v35 = vpop.permute.xlu0 %271 }
 0x147   : > { %v2221_v26 = vrot.slane %v2213_v23, %v6390_v50  ;;  %v4270_v13 = vsub.f32 %v2174_v33, %v3900_v62  ;;  %v3908_v1 = vrot.slane %v3343_v52, %v6378_v42  ;;  %v2228_v58 = vrot.slane %v2214_v0, %v6390_v50 }
 0x148   : > { %v2317_v2 = vcombine.low %v6190_v18, %v320_v61  ;;  %v4271_v7 = vsub.f32 %v2175_v56, %v3904_v16  ;;  %v3310_v43 = vrot.slane %v3296_v46, %v8731_v37  ;;  %v2178_v17 = vcombine.high %v7690_v28, %v7710_v55 }
 0x149   : > { %v2277_v9 = vcombine.low %v2221_v26, %v2237_v47  ;;  %v2278_v30 = vcombine.high %v2221_v26, %v2237_v47  ;;  %v4353_v60 = vpack.c.bf16 %v4270_v13, %v4269_v19  ;;  %v4272_v34 = vsub.f32 %v2176_v12, %v3908_v1 }
 0x14a   : > { %v2293_v22 = vcombine.low %v2228_v58, %v2244_v21  ;;  %v2294_v4 = vcombine.high %v2228_v58, %v2244_v21  ;;  %v3312_v54 = vcombine.high %v3310_v43, %v3310_v43  ;;  %v3326_v27 = vrot.slane %v3310_v43, %v8731_v37  ;;  %v368_v12 = vpop.permute.xlu0 %367 }
 0x14b   : > { %v7769_v3 = vrot.slane %v2277_v9, %v6392_v51  ;;  %v7772_v33 = vrot.slane %v2278_v30, %v6392_v51  ;;  %v2179_v53 = vcombine.low %v7698_v36, %v7713_v63  ;;  %6093 = vmatprep.mubr.msk.bf16.mxu1 %vm4389_vm0, %v4353_v60  ;;  %v4354_v31 = vpack.c.bf16 %v4272_v34, %v4271_v7 }
 0x14c   : > { %v2318_v39 = vcombine.high %v6190_v18, %v320_v61  ;;  %v2180_v32 = vcombine.high %v7698_v36, %v7713_v63  ;;  %v7785_v14 = vrot.slane %v2261_v11, %v6392_v51  ;;  %v7788_v8 = vrot.slane %v2262_v44, %v6392_v51  ;;  %v322_v18 = vpop.permute.xlu1 %321 }
 0x14d   : > { %v7791_v20 = vrot.slane %v2293_v22, %v6392_v51  ;;  %6094 = vmatmul.mubr.msk.bf16.gmra.mrb[24].mxu1 %vm4389_vm0, %v4354_v31  ;;  %v7798_v45 = vrot.slane %v2294_v4, %v6392_v51  ;;  %v2309_v56 = vcombine.low %v7747_v48, %v7769_v3  ;;  %v2310_v36 = vcombine.high %v7747_v48, %v7769_v3 }
 0x14e   : > { %v7805_v63 = vrot.slane %v2317_v2, %v6390_v50  ;;  %v2311_v59 = vcombine.low %v7752_v49, %v7772_v33  ;;  %v3340_v25 = vrot.slane %v3312_v54, %v8731_v37  ;;  %v3912_v41 = vrot.slane %v3326_v27, %v6378_v42  ;;  %v480_v58 = vpop.permute.xlu0 %479 }
 0x14f   : > { %v3342_v57 = vcombine.high %v3326_v27, %v3326_v27  ;;  %v7812_v47 = vrot.slane %v2318_v39, %v6390_v50  ;;  %v2333_v15 = vcombine.low %v272_v35, %v368_v12  ;;  %v2334_v40 = vcombine.high %v272_v35, %v368_v12 }
 0x150   : > { %v3352_v48 = vrot.slane %v7794_v24, %v8731_v37  ;;  %v3916_v38 = vrot.slane %v3340_v25, %v6378_v42  ;;  %v4273_v11 = vsub.f32 %v2177_v29, %v3912_v41  ;;  %v3344_v21 = vcombine.high %v3340_v25, %v3340_v25 }
 0x151   : > { %v3920_v5 = vrot.slane %v3342_v57, %v6378_v42  ;;  %v2341_v23 = vrot.slane %v2333_v15, %v6390_v50  ;;  %v7823_v61 = vrot.slane %v2334_v40, %v6390_v50  ;;  %v2312_v52 = vcombine.high %v7752_v49, %v7772_v33  ;;  %v6191_v33 = vld [vmem:[%s6247_s18 + $0xd8] sm:$0xff] }
 0x152   : > { %v3360_v62 = vcombine.high %v3352_v48, %v3352_v48  ;;  %v3368_v19 = vrot.slane %v3352_v48, %v8731_v37  ;;  %v4274_v0 = vsub.f32 %v2178_v17, %v3916_v38  ;;  %v3924_v44 = vrot.slane %v3344_v21, %v6378_v42  ;;  %v274_v25 = vpop.permute.xlu0 %273 }
 0x153   : > { %v4275_v28 = vsub.f32 %v2179_v53, %v3920_v5  ;;  %v2313_v55 = vcombine.low %v7785_v14, %v7791_v20  ;;  %v2381_v29 = vcombine.low %v7805_v63, %v2341_v23  ;;  %v2365_v16 = vcombine.low %v7775_v6, %v528_v10 }
 0x154   : > { %v2366_v26 = vcombine.high %v7775_v6, %v528_v10  ;;  %v4355_v46 = vpack.c.bf16 %v4274_v0, %v4273_v11  ;;  %v4276_v13 = vsub.f32 %v2180_v32, %v3924_v44  ;;  %v3382_v1 = vrot.slane %v3360_v62, %v8731_v37 }
 0x155   : > { %v3928_v49 = vrot.slane %v3368_v19, %v6378_v42  ;;  %v2314_v2 = vcombine.high %v7785_v14, %v7791_v20  ;;  %v2382_v7 = vcombine.high %v7805_v63, %v2341_v23  ;;  %v2397_v9 = vcombine.low %v7812_v47, %v7823_v61 }
 0x156   : > { %v2398_v30 = vcombine.high %v7812_v47, %v7823_v61  ;;  %6097 = vmatprep.mubr.msk.bf16.mxu1 %vm4389_vm0, %v4355_v46  ;;  %v4356_v43 = vpack.c.bf16 %v4276_v13, %v4275_v28  ;;  %v7845_v35 = vrot.slane %v2381_v29, %v6392_v51  ;;  %v3932_v60 = vrot.slane %v3382_v1, %v6378_v42  ;;  %v7860_v47 = vpop.permute.xlu1 %433  ;;  %v370_v29 = vpop.permute.xlu0 %369 }
 0x157   : > { %v4277_v34 = vsub.f32 %v2309_v56, %v3928_v49  ;;  %v2373_v22 = vrot.slane %v2365_v16, %v6390_v50  ;;  %v3390_v4 = vcombine.high %v3368_v19, %v3368_v19  ;;  %v3392_v3 = vcombine.high %v3382_v1, %v3382_v1  ;;  %v6192_v56 = vld [vmem:[%s6247_s18 + $0xe0] sm:$0xff]  ;;  %v2738_v16 = vld [vmem:[%s6348_s29 + $0x68] sm:$0xff] }
 0x158   : > { %v2349_v54 = vcombine.low %v6191_v33, %v480_v58  ;;  %6098 = vmatmul.mubr.msk.bf16.gmra.mrb[28].mxu1 %vm4389_vm0, %v4356_v43  ;;  %v4278_v27 = vsub.f32 %v2310_v36, %v3932_v60  ;;  %v2380_v6 = vrot.slane %v2366_v26, %v6390_v50  ;;  %v2350_v17 = vcombine.high %v6191_v33, %v480_v58 }
 0x159   : > { %v3345_v53 = vcombine.high %v7794_v24, %v7794_v24  ;;  %v3936_v31 = vrot.slane %v3390_v4, %v6378_v42  ;;  %v3940_v39 = vrot.slane %v3392_v3, %v6378_v42  ;;  %v2453_v63 = vcombine.low %v6192_v56, %v322_v18 }
 0x15a   : > { %v2357_v32 = vrot.slane %v2349_v54, %v6390_v50  ;;  %v4357_v41 = vpack.c.bf16 %v4278_v27, %v4277_v34  ;;  %v2364_v57 = vrot.slane %v2350_v17, %v6390_v50  ;;  %v2454_v12 = vcombine.high %v6192_v56, %v322_v18  ;;  %v530_v49 = vpop.permute.xlu1 %529 }
 0x15b   : > { %v3359_v36 = vrot.slane %v3345_v53, %v8731_v37  ;;  %v4279_v15 = vsub.f32 %v2311_v59, %v3936_v31  ;;  %v4280_v40 = vsub.f32 %v2312_v52, %v3940_v39  ;;  %v2315_v10 = vcombine.low %v7788_v8, %v7798_v45 }
 0x15c   : > { %v2413_v24 = vcombine.low %v2357_v32, %v2373_v22  ;;  %v2414_v48 = vcombine.high %v2357_v32, %v2373_v22  ;;  %6101 = vmatprep.mubr.msk.bf16.mxu1 %vm4389_vm0, %v4357_v41  ;;  %v2429_v38 = vcombine.low %v2364_v57, %v2380_v6  ;;  %v2430_v11 = vcombine.high %v2364_v57, %v2380_v6 }
 0x15d   : > { %v3361_v21 = vcombine.high %v3359_v36, %v3359_v36  ;;  %v3375_v5 = vrot.slane %v3359_v36, %v8731_v37  ;;  %v2316_v23 = vcombine.high %v7788_v8, %v7798_v45  ;;  %v4358_v61 = vpack.c.bf16 %v4280_v40, %v4279_v15 }
 0x15e   : > { %v7869_v59 = vrot.slane %v2413_v24, %v6392_v51  ;;  %v7872_v62 = vrot.slane %v2382_v7, %v6392_v51  ;;  %v7875_v19 = vrot.slane %v2414_v48, %v6392_v51  ;;  %v7880_v44 = vrot.slane %v2397_v9, %v6392_v51  ;;  %v324_v57 = vpop.permute.xlu1 %323 }
 0x15f   : > { %v3389_v52 = vrot.slane %v3361_v21, %v8731_v37  ;;  %v3944_v0 = vrot.slane %v3375_v5, %v6378_v42  ;;  %v7883_v28 = vrot.slane %v2398_v30, %v6392_v51  ;;  %v7886_v8 = vrot.slane %v2453_v63, %v6390_v50 }
 0x160   : > { %v7889_v45 = vrot.slane %v2454_v12, %v6390_v50  ;;  %6102 = vmatmul.mubr.msk.bf16.gmra.mrb[32].mxu1 %vm4389_vm0, %v4358_v61  ;;  %v7894_v26 = vrot.slane %v2429_v38, %v6392_v51  ;;  %v7897_v46 = vrot.slane %v2430_v11, %v6392_v51  ;;  %v2445_v13 = vcombine.low %v7845_v35, %v7869_v59 }
 0x161   : > { %v2446_v1 = vcombine.high %v7845_v35, %v7869_v59  ;;  %v3948_v58 = vrot.slane %v3389_v52, %v6378_v42  ;;  %v4281_v18 = vsub.f32 %v2313_v55, %v3944_v0  ;;  %v3391_v7 = vcombine.high %v3375_v5, %v3375_v5  ;;  %v6193_v5 = vld [vmem:[%s6247_s18 + $0xe8] sm:$0xff] }
 0x162   : > { %v3393_v9 = vcombine.high %v3389_v52, %v3389_v52  ;;  %v2447_v30 = vcombine.low %v7872_v62, %v7875_v19  ;;  %v2469_v43 = vcombine.low %v274_v25, %v370_v29  ;;  %v2470_v60 = vcombine.high %v274_v25, %v370_v29 }
 0x163   : > { %v3401_v34 = vrot.slane %v2738_v16, %v8731_v37  ;;  %v4282_v35 = vsub.f32 %v2314_v2, %v3948_v58  ;;  %v3952_v22 = vrot.slane %v3391_v7, %v6378_v42  ;;  %v2501_v3 = vcombine.low %v7860_v47, %v530_v49  ;;  %v482_v2 = vpop.permute.xlu0 %481 }
 0x164   : > { %v3956_v4 = vrot.slane %v3393_v9, %v6378_v42  ;;  %v2477_v55 = vrot.slane %v2469_v43, %v6390_v50  ;;  %v7918_v33 = vrot.slane %v2470_v60, %v6390_v50  ;;  %v2448_v6 = vcombine.high %v7872_v62, %v7875_v19 }
 0x165   : > { %v3409_v54 = vcombine.high %v3401_v34, %v3401_v34  ;;  %v3417_v27 = vrot.slane %v3401_v34, %v8731_v37  ;;  %v4359_v17 = vpack.c.bf16 %v4282_v35, %v4281_v18  ;;  %v4283_v14 = vsub.f32 %v2315_v10, %v3952_v22  ;;  %v6194_v18 = vld [vmem:[%s6247_s18 + $0xf0] sm:$0xff] }
 0x166   : > { %v4284_v20 = vsub.f32 %v2316_v23, %v3956_v4  ;;  %v2449_v53 = vcombine.low %v7880_v44, %v7894_v26  ;;  %v2450_v31 = vcombine.high %v7880_v44, %v7894_v26  ;;  %v2451_v39 = vcombine.low %v7883_v28, %v7897_v46 }
 0x167   : > { %v2502_v32 = vcombine.high %v7860_v47, %v530_v49  ;;  %v2452_v56 = vcombine.high %v7883_v28, %v7897_v46  ;;  %6105 = vmatprep.mubr.msk.bf16.mxu1 %vm4389_vm0, %v4359_v17  ;;  %v3431_v25 = vrot.slane %v3409_v54, %v8731_v37  ;;  %v3960_v41 = vrot.slane %v3417_v27, %v6378_v42  ;;  %v7942_v11 = vpop.permute.xlu0 %275 }
 0x168   : > { %v4360_v63 = vpack.c.bf16 %v4284_v20, %v4283_v14  ;;  %v2517_v36 = vcombine.low %v7886_v8, %v2477_v55  ;;  %v2518_v12 = vcombine.high %v7886_v8, %v2477_v55  ;;  %v2533_v15 = vcombine.low %v7889_v45, %v7918_v33 }
 0x169   : > { %v2509_v47 = vrot.slane %v2501_v3, %v6390_v50  ;;  %v3964_v40 = vrot.slane %v3431_v25, %v6378_v42  ;;  %v4285_v24 = vsub.f32 %v2445_v13, %v3960_v41  ;;  %v3439_v48 = vcombine.high %v3417_v27, %v3417_v27 }
 0x16a   : > { %6106 = vmatmul.mubr.msk.bf16.gmra.mrb[36].mxu1 %vm4389_vm0, %v4360_v63  ;;  %v3441_v38 = vcombine.high %v3431_v25, %v3431_v25  ;;  %v2516_v21 = vrot.slane %v2502_v32, %v6390_v50  ;;  %v2485_v10 = vcombine.low %v6193_v5, %v482_v2  ;;  %v2486_v23 = vcombine.high %v6193_v5, %v482_v2  ;;  %v2739_v25 = vld [vmem:[%s6348_s29 + $0x70] sm:$0xff] }
 0x16b   : > { %v3394_v61 = vcombine.high %v2738_v16, %v2738_v16  ;;  %v2534_v59 = vcombine.high %v7889_v45, %v7918_v33  ;;  %v4286_v62 = vsub.f32 %v2446_v1, %v3964_v40  ;;  %v3968_v19 = vrot.slane %v3439_v48, %v6378_v42  ;;  %v436_v45 = vpop.permute.xlu1 %435  ;;  %v372_v3 = vpop.permute.xlu0 %371 }
 0x16c   : > { %v3972_v52 = vrot.slane %v3441_v38, %v6378_v42  ;;  %v7951_v0 = vrot.slane %v2517_v36, %v6392_v51  ;;  %v2493_v8 = vrot.slane %v2485_v10, %v6390_v50  ;;  %v2500_v29 = vrot.slane %v2486_v23, %v6390_v50 }
 0x16d   : > { %v3408_v13 = vrot.slane %v3394_v61, %v8731_v37  ;;  %v4361_v49 = vpack.c.bf16 %v4286_v62, %v4285_v24  ;;  %v4287_v58 = vsub.f32 %v2447_v30, %v3968_v19  ;;  %v2589_v7 = vcombine.low %v6194_v18, %v324_v57 }
 0x16e   : > { %v4288_v16 = vsub.f32 %v2448_v6, %v3972_v52  ;;  %v2549_v1 = vcombine.low %v2493_v8, %v2509_v47  ;;  %v2550_v9 = vcombine.high %v2493_v8, %v2509_v47  ;;  %v2565_v43 = vcombine.low %v2500_v29, %v2516_v21 }
 0x16f   : > { %v2590_v60 = vcombine.high %v6194_v18, %v324_v57  ;;  %6109 = vmatprep.mubr.msk.bf16.mxu1 %vm4389_vm0, %v4361_v49  ;;  %v2566_v35 = vcombine.high %v2500_v29, %v2516_v21  ;;  %v3410_v22 = vcombine.high %v3408_v13, %v3408_v13  ;;  %v3424_v4 = vrot.slane %v3408_v13, %v8731_v37 }
 0x170   : > { %v4362_v34 = vpack.c.bf16 %v4288_v16, %v4287_v58  ;;  %v7960_v55 = vrot.slane %v2518_v12, %v6392_v51  ;;  %v7963_v30 = vrot.slane %v2533_v15, %v6392_v51  ;;  %v7966_v33 = vrot.slane %v2549_v1, %v6392_v51  ;;  %v532_v15 = vpop.permute.xlu1 %531 }
 0x171   : > { %v2605_v54 = vcombine.low %v7942_v11, %v372_v3  ;;  %v7971_v27 = vrot.slane %v2550_v9, %v6392_v51  ;;  %v3438_v6 = vrot.slane %v3410_v22, %v8731_v37  ;;  %v3976_v17 = vrot.slane %v3424_v4, %v6378_v42 }
 0x172   : > { %6110 = vmatmul.mubr.msk.bf16.gmra.mrb[40].mxu1 %vm4389_vm0, %v4362_v34  ;;  %v3440_v14 = vcombine.high %v3424_v4, %v3424_v4  ;;  %v7976_v20 = vrot.slane %v2534_v59, %v6392_v51  ;;  %v7979_v2 = vrot.slane %v2565_v43, %v6392_v51  ;;  %v7982_v32 = vrot.slane %v2589_v7, %v6390_v50  ;;  %v6195_v7 = vld [vmem:[%s6247_s18 + $0xf8] sm:$0xff] }
 0x173   : > { %v7985_v63 = vrot.slane %v2590_v60, %v6390_v50  ;;  %v7989_v41 = vrot.slane %v2566_v35, %v6392_v51  ;;  %v2581_v57 = vcombine.low %v7951_v0, %v7966_v33  ;;  %v2582_v36 = vcombine.high %v7951_v0, %v7966_v33 }
 0x174   : > { %v2606_v12 = vcombine.high %v7942_v11, %v372_v3  ;;  %v3980_v47 = vrot.slane %v3438_v6, %v6378_v42  ;;  %v4289_v40 = vsub.f32 %v2449_v53, %v3976_v17  ;;  %v3442_v24 = vcombine.high %v3438_v6, %v3438_v6 }
 0x175   : > { %v3984_v48 = vrot.slane %v3440_v14, %v6378_v42  ;;  %v2583_v38 = vcombine.low %v7960_v55, %v7971_v27  ;;  %v2584_v21 = vcombine.high %v7960_v55, %v7971_v27  ;;  %v2613_v5 = vrot.slane %v2605_v54, %v6390_v50 }
 0x176   : > { %v3450_v11 = vrot.slane %v2739_v25, %v8731_v37  ;;  %v4290_v10 = vsub.f32 %v2450_v31, %v3980_v47  ;;  %v3988_v23 = vrot.slane %v3442_v24, %v6378_v42  ;;  %v2637_v61 = vcombine.low %v436_v45, %v532_v15  ;;  %v8048_v24 = vld [vmem:[%s6348_s29 + $0x78] sm:$0xff] }
 0x177   : > { %v4291_v53 = vsub.f32 %v2451_v39, %v3984_v48  ;;  %v2585_v59 = vcombine.low %v7963_v30, %v7979_v2  ;;  %v2586_v62 = vcombine.high %v7963_v30, %v7979_v2  ;;  %v2587_v19 = vcombine.low %v7976_v20, %v7989_v41  ;;  %v484_v39 = vpop.permute.xlu0 %483 }
 0x178   : > { %v2638_v52 = vcombine.high %v436_v45, %v532_v15  ;;  %v4363_v0 = vpack.c.bf16 %v4290_v10, %v4289_v40  ;;  %v4292_v44 = vsub.f32 %v2452_v56, %v3988_v23  ;;  %v3458_v26 = vcombine.high %v3450_v11, %v3450_v11  ;;  %v6007_v27 = vpop.f32.mrb[0].mxu0 }
 0x179   : > { %v3466_v31 = vrot.slane %v3450_v11, %v8731_v37  ;;  %v2588_v8 = vcombine.high %v7976_v20, %v7989_v41  ;;  %v2620_v29 = vrot.slane %v2606_v12, %v6390_v50  ;;  %v2653_v13 = vcombine.low %v7982_v32, %v2613_v5 }
 0x17a   : > { %v2654_v49 = vcombine.high %v7982_v32, %v2613_v5  ;;  %6113 = vmatprep.mubr.msk.bf16.mxu1 %vm4389_vm0, %v4363_v0  ;;  %v4364_v58 = vpack.c.bf16 %v4292_v44, %v4291_v53  ;;  %v3480_v28 = vrot.slane %v3458_v26, %v8731_v37  ;;  %v2645_v56 = vrot.slane %v2637_v61, %v6390_v50 }
 0x17b   : > { %v3992_v46 = vrot.slane %v3466_v31, %v6378_v42  ;;  %v2652_v16 = vrot.slane %v2638_v52, %v6390_v50  ;;  %v3488_v18 = vcombine.high %v3466_v31, %v3466_v31  ;;  %v2621_v45 = vcombine.low %v6195_v7, %v484_v39 }
 0x17c   : > { %v2622_v1 = vcombine.high %v6195_v7, %v484_v39  ;;  %6114 = vmatmul.mubr.msk.bf16.gmra.mrb[44].mxu1 %vm4389_vm0, %v4364_v58  ;;  %v3996_v9 = vrot.slane %v3480_v28, %v6378_v42  ;;  %v3490_v60 = vcombine.high %v3480_v28, %v3480_v28  ;;  %v3443_v34 = vcombine.high %v2739_v25, %v2739_v25 }
 0x17d   : > { %v4293_v43 = vsub.f32 %v2581_v57, %v3992_v46  ;;  %v2669_v35 = vcombine.low %v7985_v63, %v2620_v29  ;;  %v4000_v22 = vrot.slane %v3488_v18, %v6378_v42  ;;  %v2629_v4 = vrot.slane %v2621_v45, %v6390_v50  ;;  %v4616_v57 = vpop.f32.mrb[1].mxu0 }
 0x17e   : > { %v2636_v3 = vrot.slane %v2622_v1, %v6390_v50  ;;  %v2670_v55 = vcombine.high %v7985_v63, %v2620_v29  ;;  %v4294_v33 = vsub.f32 %v2582_v36, %v3996_v9  ;;  %v4004_v54 = vrot.slane %v3490_v60, %v6378_v42  ;;  %v6008_v40 = vpop.f32.mrb[2].mxu0 }
 0x17f   : > { %v3457_v6 = vrot.slane %v3443_v34, %v8731_v37  ;;  %v4295_v17 = vsub.f32 %v2583_v38, %v4000_v22  ;;  %v2685_v14 = vcombine.low %v2629_v4, %v2645_v56  ;;  %v2686_v32 = vcombine.high %v2629_v4, %v2645_v56  ;;  %v4619_v5 = vpop.f32.mrb[3].mxu0 }
 0x180   : > { %v2701_v25 = vcombine.low %v2636_v3, %v2652_v16  ;;  %v8045_v12 = vrot.slane %v2653_v13, %v6392_v51  ;;  %v4365_v15 = vpack.c.bf16 %v4294_v33, %v4293_v43  ;;  %v4296_v47 = vsub.f32 %v2584_v21, %v4004_v54 }
 0x181   : > { %v2702_v50 = vcombine.high %v2636_v3, %v2652_v16  ;;  %v8051_v63 = vrot.slane %v2654_v49, %v6392_v51  ;;  %v8054_v36 = vrot.slane %v2669_v35, %v6392_v51  ;;  %v8057_v48 = vrot.slane %v2685_v14, %v6392_v51  ;;  %v6011_v16 = vpop.f32.mrb[4].mxu0 }
 0x182   : > { %v8060_v38 = vrot.slane %v2686_v32, %v6392_v51  ;;  %6117 = vmatprep.mubr.msk.bf16.mxu1 %vm4389_vm0, %v4365_v15  ;;  %v4366_v21 = vpack.c.bf16 %v4296_v47, %v4295_v17  ;;  %v8064_v11 = vrot.slane %v2701_v25, %v6392_v51  ;;  %v3459_v10 = vcombine.high %v3457_v6, %v3457_v6  ;;  %v4632_v9 = vpop.f32.mrb[5].mxu0 }
 0x183   : > { %v3473_v23 = vrot.slane %v3457_v6, %v8731_v37  ;;  %v8068_v53 = vrot.slane %v2670_v55, %v6392_v51  ;;  %v5130_v61 = vsel %vm4389_vm0, %v6007_v27, 0.0  ;;  %v3499_v52 = vrot.slane %v8048_v24, %v8731_v37  ;;  %v6012_v22 = vpop.f32.mrb[6].mxu0 }
 0x184   : > { %v3492_v0 = vcombine.high %v8048_v24, %v8048_v24  ;;  %6118 = vmatmul.mubr.msk.bf16.gmra.mrb[48].mxu1 %vm4389_vm0, %v4366_v21  ;;  %v8077_v44 = vrot.slane %v2702_v50, %v6392_v51  ;;  %v2717_v26 = vcombine.low %v8045_v12, %v8057_v48  ;;  %v2718_v31 = vcombine.high %v8045_v12, %v8057_v48  ;;  %v4635_v33 = vpop.f32.mrb[7].mxu0 }
 0x185   : > { %v5393_v39 = vmul.f32 %v6007_v27, %v6007_v27  ;;  %v2719_v29 = vcombine.low %v8051_v63, %v8060_v38  ;;  %v2720_v13 = vcombine.high %v8051_v63, %v8060_v38  ;;  %v3487_v49 = vrot.slane %v3459_v10, %v8731_v37 }
 0x186   : > { %v4008_v58 = vrot.slane %v3473_v23, %v6378_v42  ;;  %v2721_v51 = vcombine.low %v8054_v36, %v8064_v11  ;;  %v5127_v28 = vsel %vm4389_vm0, %v4616_v57, 0.0  ;;  %v5391_v46 = vmul.f32 %v4616_v57, %v4616_v57 }
 0x187   : > { %v3489_v56 = vcombine.high %v3473_v23, %v3473_v23  ;;  %v4012_v18 = vrot.slane %v3487_v49, %v6378_v42  ;;  %v3491_v45 = vcombine.high %v3487_v49, %v3487_v49  ;;  %v5128_v1 = vsel %vm4389_vm0, %v4619_v5, 0.0 }
 0x188   : > { %v4297_v7 = vsub.f32 %v2585_v59, %v4008_v58  ;;  %v2722_v43 = vcombine.high %v8054_v36, %v8064_v11  ;;  %v5132_v34 = vsel %vm4389_vm0, %v6008_v40, 0.0  ;;  %v5129_v35 = vadd.f32 %v5128_v1, %v5127_v28  ;;  %v6015_v48 = vpop.f32.mrb[8].mxu0 }
 0x189   : > { %v4016_v60 = vrot.slane %v3489_v56, %v6378_v42  ;;  %v4298_v4 = vsub.f32 %v2586_v62, %v4012_v18  ;;  %v4020_v3 = vrot.slane %v3491_v45, %v6378_v42  ;;  %v5394_v59 = vmul.f32 %v6008_v40, %v6008_v40 }
 0x18a   : > { %v5392_v55 = vmul.f32 %v4619_v5, %v4619_v5  ;;  %v5519_v54 = vsel %vm4389_vm0, %v5391_v46, 0.0  ;;  %v5131_v6 = vadd.f32 %v5130_v61, %v5129_v35  ;;  %v3507_v17 = vcombine.high %v3499_v52, %v3499_v52  ;;  %v4648_v61 = vpop.f32.mrb[9].mxu0 }
 0x18b   : > { %v4299_v27 = vsub.f32 %v2587_v19, %v4016_v60  ;;  %v4367_v14 = vpack.c.bf16 %v4298_v4, %v4297_v7  ;;  %v4300_v32 = vsub.f32 %v2588_v8, %v4020_v3  ;;  %v3515_v2 = vrot.slane %v3499_v52, %v8731_v37  ;;  %v6016_v28 = vpop.f32.mrb[10].mxu0 }
 0x18c   : > { %v5520_v30 = vsel %vm4389_vm0, %v5392_v55, 0.0  ;;  %v5522_v62 = vsel %vm4389_vm0, %v5393_v39, 0.0  ;;  %v5133_v25 = vadd.f32 %v5132_v34, %v5131_v6  ;;  %v3529_v12 = vrot.slane %v3507_v17, %v8731_v37  ;;  %v4651_v45 = vpop.f32.mrb[11].mxu0 }
 0x18d   : > { %v5521_v57 = vadd.f32 %v5520_v30, %v5519_v54  ;;  %6121 = vmatprep.mubr.msk.bf16.mxu1 %vm4389_vm0, %v4367_v14  ;;  %v4368_v19 = vpack.c.bf16 %v4300_v32, %v4299_v27  ;;  %v4024_v15 = vrot.slane %v3515_v2, %v6378_v42  ;;  %v5134_v47 = vsel %vm4389_vm0, %v4632_v9, 0.0 }
 0x18e   : > { %v5395_v50 = vmul.f32 %v4632_v9, %v4632_v9  ;;  %v4028_v41 = vrot.slane %v3529_v12, %v6378_v42  ;;  %v5135_v8 = vadd.f32 %v5134_v47, %v5133_v25  ;;  %v3537_v40 = vcombine.high %v3515_v2, %v3515_v2 }
 0x18f   : > { %v5523_v20 = vadd.f32 %v5522_v62, %v5521_v57  ;;  %6122 = vmatmul.mubr.msk.bf16.gmra.mrb[52].mxu1 %vm4389_vm0, %v4368_v19  ;;  %v5524_v5 = vsel %vm4389_vm0, %v5394_v59, 0.0  ;;  %v4301_v21 = vsub.f32 %v2717_v26, %v4024_v15  ;;  %v3539_v23 = vcombine.high %v3529_v12, %v3529_v12 }
 0x190   : > { %v5526_v10 = vsel %vm4389_vm0, %v5395_v50, 0.0  ;;  %v5397_v39 = vmul.f32 %v6011_v16, %v6011_v16  ;;  %v4302_v49 = vsub.f32 %v2718_v31, %v4028_v41  ;;  %v4032_v58 = vrot.slane %v3537_v40, %v6378_v42  ;;  %v6019_v17 = vpop.f32.mrb[12].mxu0 }
 0x191   : > { %v5525_v52 = vadd.f32 %v5524_v5, %v5523_v20  ;;  %v4036_v46 = vrot.slane %v3539_v23, %v6378_v42  ;;  %v5398_v56 = vmul.f32 %v6012_v22, %v6012_v22  ;;  %v5136_v18 = vsel %vm4389_vm0, %v4635_v33, 0.0  ;;  %v4664_v30 = vpop.f32.mrb[13].mxu0 }
 0x192   : > { %v5396_v7 = vmul.f32 %v4635_v33, %v4635_v33  ;;  %v2723_v26 = vcombine.low %v8068_v53, %v8077_v44  ;;  %v4369_v1 = vpack.c.bf16 %v4302_v49, %v4301_v21  ;;  %v4303_v60 = vsub.f32 %v2719_v29, %v4032_v58  ;;  %v6020_v57 = vpop.f32.mrb[14].mxu0 }
 0x193   : > { %v5527_v9 = vadd.f32 %v5526_v10, %v5525_v52  ;;  %v5138_v31 = vsel %vm4389_vm0, %v6011_v16, 0.0  ;;  %v4304_v34 = vsub.f32 %v2720_v13, %v4036_v46  ;;  %v5137_v35 = vadd.f32 %v5136_v18, %v5135_v8  ;;  %v4667_v50 = vpop.f32.mrb[15].mxu0 }
 0x194   : > { %v5528_v4 = vsel %vm4389_vm0, %v5396_v7, 0.0  ;;  %v5530_v3 = vsel %vm4389_vm0, %v5397_v39, 0.0  ;;  %6125 = vmatprep.mubr.msk.bf16.mxu1 %vm4389_vm0, %v4369_v1  ;;  %v3506_v55 = vrot.slane %v3492_v0, %v8731_v37  ;;  %v5399_v29 = vmul.f32 %v4648_v61, %v4648_v61 }
 0x195   : > { %v5529_v59 = vadd.f32 %v5528_v4, %v5527_v9  ;;  %v4370_v33 = vpack.c.bf16 %v4304_v34, %v4303_v60  ;;  %v5140_v16 = vsel %vm4389_vm0, %v6012_v22, 0.0  ;;  %v5532_v63 = vsel %vm4389_vm0, %v5398_v56, 0.0 }
 0x196   : > { %v5139_v38 = vadd.f32 %v5138_v31, %v5137_v35  ;;  %v3508_v54 = vcombine.high %v3506_v55, %v3506_v55  ;;  %v3522_v27 = vrot.slane %v3506_v55, %v8731_v37  ;;  %v5142_v6 = vsel %vm4389_vm0, %v4648_v61, 0.0 }
 0x197   : > { %v5531_v13 = vadd.f32 %v5530_v3, %v5529_v59  ;;  %6126 = vmatmul.mubr.msk.bf16.gmra.mrb[56].mxu1 %vm4389_vm0, %v4370_v33  ;;  %v5534_v24 = vsel %vm4389_vm0, %v5399_v29, 0.0  ;;  %v5144_v0 = vsel %vm4389_vm0, %v4651_v45, 0.0  ;;  %v5400_v32 = vmul.f32 %v4651_v45, %v4651_v45 }
 0x198   : > { %v5141_v14 = vadd.f32 %v5140_v16, %v5139_v38  ;;  %v3536_v22 = vrot.slane %v3508_v54, %v8731_v37  ;;  %v4040_v2 = vrot.slane %v3522_v27, %v6378_v42  ;;  %v3538_v25 = vcombine.high %v3522_v27, %v3522_v27 }
 0x199   : > { %v5533_v62 = vadd.f32 %v5532_v63, %v5531_v13  ;;  %v2724_v12 = vcombine.high %v8068_v53, %v8077_v44  ;;  %v5401_v19 = vmul.f32 %v6015_v48, %v6015_v48  ;;  %v5536_v47 = vsel %vm4389_vm0, %v5400_v32, 0.0  ;;  %v6023_v18 = vpop.f32.mrb[16].mxu0 }
 0x19a   : > { %v5143_v15 = vadd.f32 %v5142_v6, %v5141_v14  ;;  %v4044_v20 = vrot.slane %v3536_v22, %v6378_v42  ;;  %v4305_v41 = vsub.f32 %v2721_v51, %v4040_v2  ;;  %v3540_v8 = vcombine.high %v3536_v22, %v3536_v22 }
 0x19b   : > { %v5535_v37 = vadd.f32 %v5534_v24, %v5533_v62  ;;  %v5146_v40 = vsel %vm4389_vm0, %v6015_v48, 0.0  ;;  %v4048_v5 = vrot.slane %v3538_v25, %v6378_v42  ;;  %v5402_v21 = vmul.f32 %v6016_v28, %v6016_v28 }
 0x19c   : > { %v5145_v10 = vadd.f32 %v5144_v0, %v5143_v15  ;;  %v4306_v53 = vsub.f32 %v2722_v43, %v4044_v20  ;;  %v4052_v44 = vrot.slane %v3540_v8, %v6378_v42  ;;  %v5403_v61 = vmul.f32 %v4664_v30, %v4664_v30  ;;  %v4680_v43 = vpop.f32.mrb[17].mxu0 }
 0x19d   : > { %v5537_v23 = vadd.f32 %v5536_v47, %v5535_v37  ;;  %v5538_v52 = vsel %vm4389_vm0, %v5401_v19, 0.0  ;;  %v4307_v39 = vsub.f32 %v2723_v26, %v4048_v5  ;;  %v5148_v51 = vsel %vm4389_vm0, %v6016_v28, 0.0  ;;  %v6024_v1 = vpop.f32.mrb[18].mxu0 }
 0x19e   : > { %v5147_v49 = vadd.f32 %v5146_v40, %v5145_v10  ;;  %v4371_v58 = vpack.c.bf16 %v4306_v53, %v4305_v41  ;;  %v4308_v48 = vsub.f32 %v2724_v12, %v4052_v44  ;;  %v5150_v56 = vsel %vm4389_vm0, %v4664_v30, 0.0  ;;  %v4683_v34 = vpop.f32.mrb[19].mxu0 }
 0x19f   : > { %v5539_v46 = vadd.f32 %v5538_v52, %v5537_v23  ;;  %v5540_v7 = vsel %vm4389_vm0, %v5402_v21, 0.0  ;;  %v5542_v11 = vsel %vm4389_vm0, %v5403_v61, 0.0  ;;  %v5404_v42 = vmul.f32 %v4667_v50, %v4667_v50 }
 0x1a0   : > { %v5149_v36 = vadd.f32 %v5148_v51, %v5147_v49  ;;  %6129 = vmatprep.mubr.msk.bf16.mxu1 %vm4389_vm0, %v4371_v58  ;;  %v4372_v45 = vpack.c.bf16 %v4308_v48, %v4307_v39  ;;  %v5152_v28 = vsel %vm4389_vm0, %v4667_v50, 0.0  ;;  %v5405_v9 = vmul.f32 %v6019_v17, %v6019_v17 }
 0x1a1   : > { %v5541_v26 = vadd.f32 %v5540_v7, %v5539_v46  ;;  %v5544_v31 = vsel %vm4389_vm0, %v5404_v42, 0.0  ;;  %v5406_v4 = vmul.f32 %v6020_v57, %v6020_v57  ;;  %v5407_v59 = vmul.f32 %v4680_v43, %v4680_v43  ;;  %v6027_v27 = vpop.f32.mrb[20].mxu0 }
 0x1a2   : > { %v5151_v60 = vadd.f32 %v5150_v56, %v5149_v36  ;;  %6130 = vmatmul.mubr.msk.bf16.gmra.mrb[60].mxu1 %vm4389_vm0, %v4372_v45  ;;  %v5154_v55 = vsel %vm4389_vm0, %v6019_v17, 0.0  ;;  %v5546_v33 = vsel %vm4389_vm0, %v5405_v9, 0.0  ;;  %v5408_v63 = vmul.f32 %v4683_v34, %v4683_v34  ;;  %v4696_v0 = vpop.f32.mrb[21].mxu0 }
 0x1a3   : > { %v5543_v35 = vadd.f32 %v5542_v11, %v5541_v26  ;;  %v5156_v38 = vsel %vm4389_vm0, %v6020_v57, 0.0  ;;  %v5158_v54 = vsel %vm4389_vm0, %v4680_v43, 0.0  ;;  %v5548_v6 = vsel %vm4389_vm0, %v5406_v4, 0.0  ;;  %v6028_v30 = vpop.f32.mrb[22].mxu0 }
 0x1a4   : > { %v5153_v3 = vadd.f32 %v5152_v28, %v5151_v60  ;;  %v5550_v24 = vsel %vm4389_vm0, %v5407_v59, 0.0  ;;  %v5160_v17 = vsel %vm4389_vm0, %v4683_v34, 0.0  ;;  %v5409_v22 = vmul.f32 %v6023_v18, %v6023_v18  ;;  %v4699_v25 = vpop.f32.mrb[23].mxu0 }
 0x1a5   : > { %v5545_v29 = vadd.f32 %v5544_v31, %v5543_v35  ;;  %v5552_v62 = vsel %vm4389_vm0, %v5408_v63, 0.0  ;;  %v5410_v12 = vmul.f32 %v6024_v1, %v6024_v1  ;;  %v5411_v15 = vmul.f32 %v4696_v0, %v4696_v0 }
 0x1a6   : > { %v5155_v16 = vadd.f32 %v5154_v55, %v5153_v3  ;;  %v5162_v47 = vsel %vm4389_vm0, %v6023_v18, 0.0  ;;  %v5554_v20 = vsel %vm4389_vm0, %v5409_v22, 0.0  ;;  %v5412_v37 = vmul.f32 %v4699_v25, %v4699_v25 }
 0x1a7   : > { %v5547_v13 = vadd.f32 %v5546_v33, %v5545_v29  ;;  %v5164_v8 = vsel %vm4389_vm0, %v6024_v1, 0.0  ;;  %v5166_v5 = vsel %vm4389_vm0, %v4696_v0, 0.0  ;;  %v5556_v10 = vsel %vm4389_vm0, %v5410_v12, 0.0 }
 0x1a8   : > { %v5157_v14 = vadd.f32 %v5156_v38, %v5155_v16  ;;  %v5558_v44 = vsel %vm4389_vm0, %v5411_v15, 0.0  ;;  %v5168_v52 = vsel %vm4389_vm0, %v4699_v25, 0.0  ;;  %v5413_v51 = vmul.f32 %v6027_v27, %v6027_v27 }
 0x1a9   : > { %v5549_v32 = vadd.f32 %v5548_v6, %v5547_v13  ;;  %v6031_v21 = vpop.f32.mrb[24].mxu0  ;;  %v5560_v58 = vsel %vm4389_vm0, %v5412_v37, 0.0  ;;  %v5414_v56 = vmul.f32 %v6028_v30, %v6028_v30  ;;  %v5170_v36 = vsel %vm4389_vm0, %v6027_v27, 0.0 }
 0x1aa   : > { %v5159_v2 = vadd.f32 %v5158_v54, %v5157_v14  ;;  %v4712_v23 = vpop.f32.mrb[25].mxu0  ;;  %v5562_v42 = vsel %vm4389_vm0, %v5413_v51, 0.0  ;;  %v5172_v26 = vsel %vm4389_vm0, %v6028_v30, 0.0  ;;  %v5417_v55 = vmul.f32 %v6031_v21, %v6031_v21 }
 0x1ab   : > { %v5551_v57 = vadd.f32 %v5550_v24, %v5549_v32  ;;  %v6032_v39 = vpop.f32.mrb[26].mxu0  ;;  %v5415_v7 = vmul.f32 %v4712_v23, %v4712_v23  ;;  %v5174_v1 = vsel %vm4389_vm0, %v4712_v23, 0.0  ;;  %v5564_v60 = vsel %vm4389_vm0, %v5414_v56, 0.0 }
 0x1ac   : > { %v5161_v19 = vadd.f32 %v5160_v17, %v5159_v2  ;;  %v4715_v48 = vpop.f32.mrb[27].mxu0  ;;  %v5418_v38 = vmul.f32 %v6032_v39, %v6032_v39  ;;  %v5178_v27 = vsel %vm4389_vm0, %v6031_v21, 0.0  ;;  %v5570_v14 = vsel %vm4389_vm0, %v5417_v55, 0.0 }
 0x1ad   : > { %v5553_v50 = vadd.f32 %v5552_v62, %v5551_v57  ;;  %v5416_v45 = vmul.f32 %v4715_v48, %v4715_v48  ;;  %v5566_v34 = vsel %vm4389_vm0, %v5415_v7, 0.0  ;;  %v5176_v3 = vsel %vm4389_vm0, %v4715_v48, 0.0 }
 0x1ae   : > { %v5163_v41 = vadd.f32 %v5162_v47, %v5161_v19  ;;  %v5180_v32 = vsel %vm4389_vm0, %v6032_v39, 0.0  ;;  %v5572_v2 = vsel %vm4389_vm0, %v5418_v38, 0.0 }
 0x1af   : > { %v5555_v40 = vadd.f32 %v5554_v20, %v5553_v50  ;;  %v5568_v33 = vsel %vm4389_vm0, %v5416_v45, 0.0 }
 0x1b0   : > { %v5165_v53 = vadd.f32 %v5164_v8, %v5163_v41 }
 0x1b1   : > { %v5557_v61 = vadd.f32 %v5556_v10, %v5555_v40  ;;  %v6035_v9 = vpop.f32.mrb[28].mxu0 }
 0x1b2   : > { %v5167_v49 = vadd.f32 %v5166_v5, %v5165_v53  ;;  %v4728_v35 = vpop.f32.mrb[29].mxu0  ;;  %v5421_v47 = vmul.f32 %v6035_v9, %v6035_v9  ;;  %v5186_v21 = vsel %vm4389_vm0, %v6035_v9, 0.0 }
 0x1b3   : > { %v5559_v46 = vadd.f32 %v5558_v44, %v5557_v61  ;;  %v6036_v59 = vpop.f32.mrb[30].mxu0  ;;  %v5419_v54 = vmul.f32 %v4728_v35, %v4728_v35  ;;  %v5182_v30 = vsel %vm4389_vm0, %v4728_v35, 0.0 }
 0x1b4   : > { %v5169_v18 = vadd.f32 %v5168_v52, %v5167_v49  ;;  %v4731_v16 = vpop.f32.mrb[31].mxu0  ;;  %v5422_v8 = vmul.f32 %v6036_v59, %v6036_v59  ;;  %v5578_v53 = vsel %vm4389_vm0, %v5421_v47, 0.0  ;;  %v5188_v61 = vsel %vm4389_vm0, %v6036_v59, 0.0 }
 0x1b5   : > { %v5561_v11 = vadd.f32 %v5560_v58, %v5559_v46  ;;  %v5420_v0 = vmul.f32 %v4731_v16, %v4731_v16  ;;  %v5574_v25 = vsel %vm4389_vm0, %v5419_v54, 0.0  ;;  %v5184_v19 = vsel %vm4389_vm0, %v4731_v16, 0.0 }
 0x1b6   : > { %v5171_v43 = vadd.f32 %v5170_v36, %v5169_v18  ;;  %v5580_v49 = vsel %vm4389_vm0, %v5422_v8, 0.0 }
 0x1b7   : > { %v5563_v28 = vadd.f32 %v5562_v42, %v5561_v11  ;;  %v5576_v20 = vsel %vm4389_vm0, %v5420_v0, 0.0 }
 0x1b8   : > { %v5173_v31 = vadd.f32 %v5172_v26, %v5171_v43 }
 0x1b9   : > { %v5565_v4 = vadd.f32 %v5564_v60, %v5563_v28  ;;  %v6039_v22 = vpop.f32.mrb[32].mxu0 }
 0x1ba   : > { %v5175_v29 = vadd.f32 %v5174_v1, %v5173_v31  ;;  %v4744_v57 = vpop.f32.mrb[33].mxu0  ;;  %v5425_v36 = vmul.f32 %v6039_v22, %v6039_v22  ;;  %v5194_v9 = vsel %vm4389_vm0, %v6039_v22, 0.0 }
 0x1bb   : > { %v5567_v63 = vadd.f32 %v5566_v34, %v5565_v4  ;;  %v6040_v15 = vpop.f32.mrb[34].mxu0  ;;  %v5423_v5 = vmul.f32 %v4744_v57, %v4744_v57  ;;  %v5190_v39 = vsel %vm4389_vm0, %v4744_v57, 0.0 }
 0x1bc   : > { %v5177_v13 = vadd.f32 %v5176_v3, %v5175_v29  ;;  %v4747_v41 = vpop.f32.mrb[35].mxu0  ;;  %v5426_v26 = vmul.f32 %v6040_v15, %v6040_v15  ;;  %v5586_v31 = vsel %vm4389_vm0, %v5425_v36, 0.0  ;;  %v5196_v4 = vsel %vm4389_vm0, %v6040_v15, 0.0 }
 0x1bd   : > { %v5569_v6 = vadd.f32 %v5568_v33, %v5567_v63  ;;  %v5424_v23 = vmul.f32 %v4747_v41, %v4747_v41  ;;  %v5582_v48 = vsel %vm4389_vm0, %v5423_v5, 0.0  ;;  %v5192_v18 = vsel %vm4389_vm0, %v4747_v41, 0.0 }
 0x1be   : > { %v5179_v24 = vadd.f32 %v5178_v27, %v5177_v13  ;;  %v5588_v29 = vsel %vm4389_vm0, %v5426_v26, 0.0 }
 0x1bf   : > { %v5571_v17 = vadd.f32 %v5570_v14, %v5569_v6  ;;  %v5584_v42 = vsel %vm4389_vm0, %v5424_v23, 0.0 }
 0x1c0   : > { %v5181_v62 = vadd.f32 %v5180_v32, %v5179_v24 }
 0x1c1   : > { %v5573_v12 = vadd.f32 %v5572_v2, %v5571_v17  ;;  %v6043_v51 = vpop.f32.mrb[36].mxu0 }
 0x1c2   : > { %v5183_v50 = vadd.f32 %v5182_v30, %v5181_v62  ;;  %v4760_v46 = vpop.f32.mrb[37].mxu0  ;;  %v5429_v27 = vmul.f32 %v6043_v51, %v6043_v51  ;;  %v5202_v22 = vsel %vm4389_vm0, %v6043_v51, 0.0 }
 0x1c3   : > { %v5575_v37 = vadd.f32 %v5574_v25, %v5573_v12  ;;  %v6044_v7 = vpop.f32.mrb[38].mxu0  ;;  %v5427_v1 = vmul.f32 %v4760_v46, %v4760_v46  ;;  %v5198_v59 = vsel %vm4389_vm0, %v4760_v46, 0.0 }
 0x1c4   : > { %v5185_v40 = vadd.f32 %v5184_v19, %v5183_v50  ;;  %v4763_v43 = vpop.f32.mrb[39].mxu0  ;;  %v5430_v32 = vmul.f32 %v6044_v7, %v6044_v7  ;;  %v5594_v62 = vsel %vm4389_vm0, %v5429_v27, 0.0  ;;  %v5204_v12 = vsel %vm4389_vm0, %v6044_v7, 0.0 }
 0x1c5   : > { %v5577_v10 = vadd.f32 %v5576_v20, %v5575_v37  ;;  %v5428_v35 = vmul.f32 %v4763_v43, %v4763_v43  ;;  %v5590_v16 = vsel %vm4389_vm0, %v5427_v1, 0.0  ;;  %v5200_v13 = vsel %vm4389_vm0, %v4763_v43, 0.0 }
 0x1c6   : > { %v5187_v44 = vadd.f32 %v5186_v21, %v5185_v40  ;;  %v5596_v50 = vsel %vm4389_vm0, %v5430_v32, 0.0 }
 0x1c7   : > { %v5579_v52 = vadd.f32 %v5578_v53, %v5577_v10  ;;  %v5592_v14 = vsel %vm4389_vm0, %v5428_v35, 0.0 }
 0x1c8   : > { %v5189_v58 = vadd.f32 %v5188_v61, %v5187_v44 }
 0x1c9   : > { %v5581_v56 = vadd.f32 %v5580_v49, %v5579_v52  ;;  %v6047_v55 = vpop.f32.mrb[40].mxu0 }
 0x1ca   : > { %v5191_v11 = vadd.f32 %v5190_v39, %v5189_v58  ;;  %v4776_v63 = vpop.f32.mrb[41].mxu0  ;;  %v5433_v21 = vmul.f32 %v6047_v55, %v6047_v55  ;;  %v5210_v51 = vsel %vm4389_vm0, %v6047_v55, 0.0 }
 0x1cb   : > { %v5583_v45 = vadd.f32 %v5582_v48, %v5581_v56  ;;  %v6048_v54 = vpop.f32.mrb[42].mxu0  ;;  %v5431_v30 = vmul.f32 %v4776_v63, %v4776_v63  ;;  %v5206_v15 = vsel %vm4389_vm0, %v4776_v63, 0.0 }
 0x1cc   : > { %v5193_v28 = vadd.f32 %v5192_v18, %v5191_v11  ;;  %v4779_v24 = vpop.f32.mrb[43].mxu0  ;;  %v5434_v61 = vmul.f32 %v6048_v54, %v6048_v54  ;;  %v5602_v58 = vsel %vm4389_vm0, %v5433_v21, 0.0  ;;  %v5212_v56 = vsel %vm4389_vm0, %v6048_v54, 0.0 }
 0x1cd   : > { %v5585_v60 = vadd.f32 %v5584_v42, %v5583_v45  ;;  %v5432_v57 = vmul.f32 %v4779_v24, %v4779_v24  ;;  %v5598_v41 = vsel %vm4389_vm0, %v5431_v30, 0.0  ;;  %v5208_v40 = vsel %vm4389_vm0, %v4779_v24, 0.0 }
 0x1ce   : > { %v5195_v34 = vadd.f32 %v5194_v9, %v5193_v28  ;;  %v5604_v11 = vsel %vm4389_vm0, %v5434_v61, 0.0 }
 0x1cf   : > { %v5587_v3 = vadd.f32 %v5586_v31, %v5585_v60  ;;  %v5600_v53 = vsel %vm4389_vm0, %v5432_v57, 0.0 }
 0x1d0   : > { %v5197_v33 = vadd.f32 %v5196_v4, %v5195_v34 }
 0x1d1   : > { %v5589_v38 = vadd.f32 %v5588_v29, %v5587_v3 }
 0x1d2   : > { %v5199_v6 = vadd.f32 %v5198_v59, %v5197_v33 }
 0x1d3   : > { %v5591_v0 = vadd.f32 %v5590_v16, %v5589_v38  ;;  %v6051_v47 = vpop.f32.mrb[44].mxu0 }
 0x1d4   : > { %v5201_v17 = vadd.f32 %v5200_v13, %v5199_v6  ;;  %v4792_v37 = vpop.f32.mrb[45].mxu0  ;;  %v5437_v9 = vmul.f32 %v6051_v47, %v6051_v47  ;;  %v5218_v55 = vsel %vm4389_vm0, %v6051_v47, 0.0 }
 0x1d5   : > { %v5593_v2 = vadd.f32 %v5592_v14, %v5591_v0  ;;  %v6052_v5 = vpop.f32.mrb[46].mxu0  ;;  %v5435_v39 = vmul.f32 %v4792_v37, %v4792_v37  ;;  %v5214_v7 = vsel %vm4389_vm0, %v4792_v37, 0.0 }
 0x1d6   : > { %v5203_v25 = vadd.f32 %v5202_v22, %v5201_v17  ;;  %v4795_v44 = vpop.f32.mrb[47].mxu0  ;;  %v5438_v4 = vmul.f32 %v6052_v5, %v6052_v5  ;;  %v5610_v16 = vsel %vm4389_vm0, %v5437_v9, 0.0  ;;  %v5220_v54 = vsel %vm4389_vm0, %v6052_v5, 0.0 }
 0x1d7   : > { %v5595_v19 = vadd.f32 %v5594_v62, %v5593_v2  ;;  %v5436_v46 = vmul.f32 %v4795_v44, %v4795_v44  ;;  %v5606_v43 = vsel %vm4389_vm0, %v5435_v39, 0.0  ;;  %v5216_v28 = vsel %vm4389_vm0, %v4795_v44, 0.0 }
 0x1d8   : > { %v5205_v20 = vadd.f32 %v5204_v12, %v5203_v25  ;;  %v5612_v0 = vsel %vm4389_vm0, %v5438_v4, 0.0 }
 0x1d9   : > { %v5597_v8 = vadd.f32 %v5596_v50, %v5595_v19  ;;  %v5608_v31 = vsel %vm4389_vm0, %v5436_v46, 0.0 }
 0x1da   : > { %v5207_v10 = vadd.f32 %v5206_v15, %v5205_v20 }
 0x1db   : > { %v5599_v23 = vadd.f32 %v5598_v41, %v5597_v8  ;;  %v6055_v36 = vpop.f32.mrb[48].mxu0 }
 0x1dc   : > { %v5209_v52 = vadd.f32 %v5208_v40, %v5207_v10  ;;  %v4808_v45 = vpop.f32.mrb[49].mxu0  ;;  %v5441_v57 = vmul.f32 %v6055_v36, %v6055_v36  ;;  %v5226_v37 = vsel %vm4389_vm0, %v6055_v36, 0.0 }
 0x1dd   : > { %v5601_v49 = vadd.f32 %v5600_v53, %v5599_v23  ;;  %v6056_v1 = vpop.f32.mrb[50].mxu0  ;;  %v5439_v59 = vmul.f32 %v4808_v45, %v4808_v45  ;;  %v5222_v6 = vsel %vm4389_vm0, %v4808_v45, 0.0 }
 0x1de   : > { %v5211_v48 = vadd.f32 %v5210_v51, %v5209_v52  ;;  %v4811_v34 = vpop.f32.mrb[51].mxu0  ;;  %v5442_v50 = vmul.f32 %v6056_v1, %v6056_v1  ;;  %v5618_v40 = vsel %vm4389_vm0, %v5441_v57, 0.0  ;;  %v5228_v10 = vsel %vm4389_vm0, %v6056_v1, 0.0 }
 0x1df   : > { %v5603_v18 = vadd.f32 %v5602_v58, %v5601_v49  ;;  %v5440_v38 = vmul.f32 %v4811_v34, %v4811_v34  ;;  %v5614_v17 = vsel %vm4389_vm0, %v5439_v59, 0.0  ;;  %v5224_v62 = vsel %vm4389_vm0, %v4811_v34, 0.0 }
 0x1e0   : > { %v5213_v42 = vadd.f32 %v5212_v56, %v5211_v48  ;;  %v5620_v61 = vsel %vm4389_vm0, %v5442_v50, 0.0 }
 0x1e1   : > { %v5605_v26 = vadd.f32 %v5604_v11, %v5603_v18  ;;  %v5616_v19 = vsel %vm4389_vm0, %v5440_v38, 0.0 }
 0x1e2   : > { %v5215_v60 = vadd.f32 %v5214_v7, %v5213_v42 }
 0x1e3   : > { %v5607_v35 = vadd.f32 %v5606_v43, %v5605_v26  ;;  %v6059_v14 = vpop.f32.mrb[52].mxu0 }
 0x1e4   : > { %v5217_v3 = vadd.f32 %v5216_v28, %v5215_v60  ;;  %v4824_v30 = vpop.f32.mrb[53].mxu0  ;;  %v5445_v46 = vmul.f32 %v6059_v14, %v6059_v14  ;;  %v5234_v1 = vsel %vm4389_vm0, %v6059_v14, 0.0 }
 0x1e5   : > { %v5609_v29 = vadd.f32 %v5608_v31, %v5607_v35  ;;  %v6060_v25 = vpop.f32.mrb[54].mxu0  ;;  %v5443_v41 = vmul.f32 %v4824_v30, %v4824_v30  ;;  %v5230_v44 = vsel %vm4389_vm0, %v4824_v30, 0.0 }
 0x1e6   : > { %v8238_v33 = vpop.f32.mrb[0].mxu1  ;;  %v5219_v63 = vadd.f32 %v5218_v55, %v5217_v3  ;;  %v4827_v15 = vpop.f32.mrb[55].mxu0  ;;  %v5446_v43 = vmul.f32 %v6060_v25, %v6060_v25  ;;  %v5626_v31 = vsel %vm4389_vm0, %v5445_v46, 0.0  ;;  %v5236_v4 = vsel %vm4389_vm0, %v6060_v25, 0.0 }
 0x1e7   : > { %v8241_v13 = vpop.f32.mrb[1].mxu1  ;;  %v5611_v27 = vadd.f32 %v5610_v16, %v5609_v29  ;;  %v5444_v21 = vmul.f32 %v4827_v15, %v4827_v15  ;;  %v5622_v39 = vsel %vm4389_vm0, %v5443_v41, 0.0  ;;  %v5232_v58 = vsel %vm4389_vm0, %v4827_v15, 0.0 }
 0x1e8   : > { %v8245_v24 = vpop.f32.mrb[2].mxu1  ;;  %v5221_v32 = vadd.f32 %v5220_v54, %v5219_v63  ;;  %v5628_v29 = vsel %vm4389_vm0, %v5446_v43, 0.0 }
 0x1e9   : > { %v8249_v22 = vpop.f32.mrb[3].mxu1  ;;  %v5613_v2 = vadd.f32 %v5612_v0, %v5611_v27  ;;  %v5624_v18 = vsel %vm4389_vm0, %v5444_v21, 0.0 }
 0x1ea   : > { %v5223_v12 = vadd.f32 %v5222_v6, %v5221_v32 }
 0x1eb   : > { %v5615_v47 = vadd.f32 %v5614_v17, %v5613_v2  ;;  %v6063_v23 = vpop.f32.mrb[56].mxu0 }
 0x1ec   : > { %v5225_v20 = vadd.f32 %v5224_v62, %v5223_v12  ;;  %v4840_v51 = vpop.f32.mrb[57].mxu0  ;;  %v5449_v14 = vmul.f32 %v6063_v23, %v6063_v23  ;;  %v5242_v57 = vsel %vm4389_vm0, %v6063_v23, 0.0 }
 0x1ed   : > { %v5617_v8 = vadd.f32 %v5616_v19, %v5615_v47  ;;  %v6064_v48 = vpop.f32.mrb[58].mxu0  ;;  %v5447_v26 = vmul.f32 %v4840_v51, %v4840_v51  ;;  %v5238_v59 = vsel %vm4389_vm0, %v4840_v51, 0.0 }
 0x1ee   : > { %v5227_v5 = vadd.f32 %v5226_v37, %v5225_v20  ;;  %v4843_v7 = vpop.f32.mrb[59].mxu0  ;;  %v5450_v2 = vmul.f32 %v6064_v48, %v6064_v48  ;;  %v5634_v15 = vsel %vm4389_vm0, %v5449_v14, 0.0  ;;  %v5244_v41 = vsel %vm4389_vm0, %v6064_v48, 0.0 }
 0x1ef   : > { %v5619_v53 = vadd.f32 %v5618_v40, %v5617_v8  ;;  %v5448_v35 = vmul.f32 %v4843_v7, %v4843_v7  ;;  %v5630_v63 = vsel %vm4389_vm0, %v5447_v26, 0.0  ;;  %v5240_v27 = vsel %vm4389_vm0, %v4843_v7, 0.0 }
 0x1f0   : > { %v5229_v52 = vadd.f32 %v5228_v10, %v5227_v5  ;;  %v5636_v5 = vsel %vm4389_vm0, %v5450_v2, 0.0 }
 0x1f1   : > { %v5621_v49 = vadd.f32 %v5620_v61, %v5619_v53  ;;  %v8261_v36 = vpop.f32.mrb[4].mxu1  ;;  %v5632_v32 = vsel %vm4389_vm0, %v5448_v35, 0.0  ;;  %v5254_v35 = vsel %vm4389_vm0, %v8241_v13, 0.0 }
 0x1f2   : > { %v5231_v56 = vadd.f32 %v5230_v44, %v5229_v52  ;;  %v8263_v42 = vpop.f32.mrb[5].mxu1 }
 0x1f3   : > { %v5623_v11 = vadd.f32 %v5622_v39, %v5621_v49  ;;  %v8265_v28 = vpop.f32.mrb[6].mxu1  ;;  %v6067_v55 = vpop.f32.mrb[60].mxu0 }
 0x1f4   : > { %v5233_v45 = vadd.f32 %v5232_v58, %v5231_v56  ;;  %v8268_v60 = vpop.f32.mrb[7].mxu1  ;;  %v4856_v38 = vpop.f32.mrb[61].mxu0  ;;  %v5453_v61 = vmul.f32 %v6067_v55, %v6067_v55  ;;  %v5250_v48 = vsel %vm4389_vm0, %v6067_v55, 0.0  ;;  %v5455_v56 = vmul.f32 %v8241_v13, %v8241_v13 }
 0x1f5   : > { %v5625_v9 = vadd.f32 %v5624_v18, %v5623_v11  ;;  %v6068_v6 = vpop.f32.mrb[62].mxu0  ;;  %v5451_v25 = vmul.f32 %v4856_v38, %v4856_v38  ;;  %v5246_v8 = vsel %vm4389_vm0, %v4856_v38, 0.0  ;;  %v5458_v38 = vmul.f32 %v8245_v24, %v8245_v24 }
 0x1f6   : > { %v5235_v34 = vadd.f32 %v5234_v1, %v5233_v45  ;;  %v4859_v17 = vpop.f32.mrb[63].mxu0  ;;  %v5454_v49 = vmul.f32 %v6068_v6, %v6068_v6  ;;  %v5642_v18 = vsel %vm4389_vm0, %v5453_v61, 0.0  ;;  %v5252_v43 = vsel %vm4389_vm0, %v6068_v6, 0.0 }
 0x1f7   : > { %v5627_v3 = vadd.f32 %v5626_v31, %v5625_v9  ;;  %v5452_v50 = vmul.f32 %v4859_v17, %v4859_v17  ;;  %v5638_v10 = vsel %vm4389_vm0, %v5451_v25, 0.0  ;;  %v5248_v23 = vsel %vm4389_vm0, %v4859_v17, 0.0 }
 0x1f8   : > { %v5237_v16 = vadd.f32 %v5236_v4, %v5235_v34  ;;  %v5456_v1 = vmul.f32 %v8249_v22, %v8249_v22  ;;  %v5644_v9 = vsel %vm4389_vm0, %v5454_v49, 0.0  ;;  %v5646_v55 = vsel %vm4389_vm0, %v5455_v56, 0.0 }
 0x1f9   : > { %v5629_v54 = vadd.f32 %v5628_v29, %v5627_v3  ;;  %v5640_v39 = vsel %vm4389_vm0, %v5452_v50, 0.0  ;;  %v5258_v13 = vsel %vm4389_vm0, %v8238_v33, 0.0  ;;  %v5652_v2 = vsel %vm4389_vm0, %v5458_v38, 0.0 }
 0x1fa   : > { %v5239_v0 = vadd.f32 %v5238_v59, %v5237_v16  ;;  %v5457_v59 = vmul.f32 %v8238_v33, %v8238_v33  ;;  %v5256_v16 = vsel %vm4389_vm0, %v8249_v22, 0.0  ;;  %v5260_v22 = vsel %vm4389_vm0, %v8245_v24, 0.0 }
 0x1fb   : > { %v5631_v30 = vadd.f32 %v5630_v63, %v5629_v54  ;;  %v5648_v54 = vsel %vm4389_vm0, %v5456_v1, 0.0  ;;  %v5461_v24 = vmul.f32 %v8261_v36, %v8261_v36 }
 0x1fc   : > { %v5241_v62 = vadd.f32 %v5240_v27, %v5239_v0  ;;  %v8278_v19 = vpop.f32.mrb[8].mxu1  ;;  %v5650_v14 = vsel %vm4389_vm0, %v5457_v59, 0.0  ;;  %v5459_v0 = vmul.f32 %v8263_v42, %v8263_v42 }
 0x1fd   : > { %v5633_v12 = vadd.f32 %v5632_v32, %v5631_v30  ;;  %v8281_v20 = vpop.f32.mrb[9].mxu1  ;;  %v5465_v56 = vmul.f32 %v8278_v19, %v8278_v19 }
 0x1fe   : > { %v5243_v47 = vadd.f32 %v5242_v57, %v5241_v62  ;;  %v8285_v40 = vpop.f32.mrb[10].mxu1  ;;  %v5460_v62 = vmul.f32 %v8268_v60, %v8268_v60  ;;  %v5262_v57 = vsel %vm4389_vm0, %v8263_v42, 0.0 }
 0x1ff   : > { %v5635_v37 = vadd.f32 %v5634_v15, %v5633_v12  ;;  %v8289_v53 = vpop.f32.mrb[11].mxu1 }
 0x200   : > { %v5245_v21 = vadd.f32 %v5244_v41, %v5243_v47  ;;  %v5654_v47 = vsel %vm4389_vm0, %v5459_v0, 0.0  ;;  %v5656_v42 = vsel %vm4389_vm0, %v5460_v62, 0.0 }
 0x201   : > { %v5637_v44 = vadd.f32 %v5636_v5, %v5635_v37  ;;  %v5264_v37 = vsel %vm4389_vm0, %v8268_v60, 0.0  ;;  %v5462_v5 = vmul.f32 %v8265_v28, %v8265_v28  ;;  %v5268_v60 = vsel %vm4389_vm0, %v8265_v28, 0.0 }
 0x202   : > { %v5247_v52 = vadd.f32 %v5246_v8, %v5245_v21 }
 0x203   : > { %v5639_v51 = vadd.f32 %v5638_v10, %v5637_v44  ;;  %v5266_v10 = vsel %vm4389_vm0, %v8261_v36, 0.0  ;;  %v5270_v36 = vsel %vm4389_vm0, %v8281_v20, 0.0 }
 0x204   : > { %v5249_v58 = vadd.f32 %v5248_v23, %v5247_v52  ;;  %v5658_v23 = vsel %vm4389_vm0, %v5461_v24, 0.0  ;;  %v5463_v52 = vmul.f32 %v8281_v20, %v8281_v20  ;;  %v5466_v20 = vmul.f32 %v8285_v40, %v8285_v40 }
 0x205   : > { %v5641_v46 = vadd.f32 %v5640_v39, %v5639_v51  ;;  %v5660_v51 = vsel %vm4389_vm0, %v5462_v5, 0.0 }
 0x206   : > { %v5251_v7 = vadd.f32 %v5250_v48, %v5249_v58  ;;  %v8297_v11 = vpop.f32.mrb[12].mxu1  ;;  %v5464_v58 = vmul.f32 %v8289_v53, %v8289_v53  ;;  %v5668_v38 = vsel %vm4389_vm0, %v5466_v20, 0.0 }
 0x207   : > { %v5643_v45 = vadd.f32 %v5642_v18, %v5641_v46  ;;  %v8300_v26 = vpop.f32.mrb[13].mxu1 }
 0x208   : > { %v5253_v31 = vadd.f32 %v5252_v43, %v5251_v7  ;;  %v8305_v34 = vpop.f32.mrb[14].mxu1  ;;  %v5662_v7 = vsel %vm4389_vm0, %v5463_v52, 0.0 }
 0x209   : > { %v5645_v4 = vadd.f32 %v5644_v9, %v5643_v45  ;;  %v8309_v3 = vpop.f32.mrb[15].mxu1  ;;  %v5272_v45 = vsel %vm4389_vm0, %v8289_v53, 0.0  ;;  %v5467_v53 = vmul.f32 %v8300_v26, %v8300_v26 }
 0x20a   : > { %v5255_v29 = vadd.f32 %v5254_v35, %v5253_v31  ;;  %v5664_v31 = vsel %vm4389_vm0, %v5464_v58, 0.0 }
 0x20b   : > { %v5647_v63 = vadd.f32 %v5646_v55, %v5645_v4  ;;  %v5274_v4 = vsel %vm4389_vm0, %v8278_v19, 0.0  ;;  %v5666_v55 = vsel %vm4389_vm0, %v5465_v56, 0.0  ;;  %v5278_v19 = vsel %vm4389_vm0, %v8300_v26, 0.0 }
 0x20c   : > { %v5257_v27 = vadd.f32 %v5256_v16, %v5255_v29  ;;  %v5276_v16 = vsel %vm4389_vm0, %v8285_v40, 0.0  ;;  %v5470_v26 = vmul.f32 %v8305_v34, %v8305_v34 }
 0x20d   : > { %v5649_v6 = vadd.f32 %v5648_v54, %v5647_v63 }
 0x20e   : > { %v5259_v32 = vadd.f32 %v5258_v13, %v5257_v27  ;;  %v8326_v30 = vpop.f32.mrb[16].mxu1  ;;  %v5468_v27 = vmul.f32 %v8309_v3, %v8309_v3  ;;  %v5676_v5 = vsel %vm4389_vm0, %v5470_v26, 0.0 }
 0x20f   : > { %v5651_v17 = vadd.f32 %v5650_v14, %v5649_v6  ;;  %v8331_v33 = vpop.f32.mrb[17].mxu1  ;;  %v5469_v14 = vmul.f32 %v8297_v11, %v8297_v11 }
 0x210   : > { %v5261_v25 = vadd.f32 %v5260_v22, %v5259_v32  ;;  %v8335_v15 = vpop.f32.mrb[18].mxu1  ;;  %v5670_v32 = vsel %vm4389_vm0, %v5467_v53, 0.0 }
 0x211   : > { %v5653_v12 = vadd.f32 %v5652_v2, %v5651_v17  ;;  %v8340_v41 = vpop.f32.mrb[19].mxu1  ;;  %v5280_v17 = vsel %vm4389_vm0, %v8309_v3, 0.0  ;;  %v5471_v3 = vmul.f32 %v8331_v33, %v8331_v33 }
 0x212   : > { %v5263_v50 = vadd.f32 %v5262_v57, %v5261_v25  ;;  %v5672_v25 = vsel %vm4389_vm0, %v5468_v27, 0.0 }
 0x213   : > { %v5655_v8 = vadd.f32 %v5654_v47, %v5653_v12  ;;  %v5282_v12 = vsel %vm4389_vm0, %v8297_v11, 0.0  ;;  %v5674_v47 = vsel %vm4389_vm0, %v5469_v14, 0.0  ;;  %v5286_v11 = vsel %vm4389_vm0, %v8331_v33, 0.0 }
 0x214   : > { %v5265_v21 = vadd.f32 %v5264_v37, %v5263_v50  ;;  %v5284_v37 = vsel %vm4389_vm0, %v8305_v34, 0.0  ;;  %v5288_v34 = vsel %vm4389_vm0, %v8340_v41, 0.0  ;;  %v5290_v33 = vsel %vm4389_vm0, %v8326_v30, 0.0 }
 0x215   : > { %v5657_v44 = vadd.f32 %v5656_v42, %v5655_v8 }
 0x216   : > { %v5267_v61 = vadd.f32 %v5266_v10, %v5265_v21  ;;  %v5472_v21 = vmul.f32 %v8340_v41, %v8340_v41 }
 0x217   : > { %v5659_v39 = vadd.f32 %v5658_v23, %v5657_v44  ;;  %v5473_v44 = vmul.f32 %v8326_v30, %v8326_v30 }
 0x218   : > { %v5269_v49 = vadd.f32 %v5268_v60, %v5267_v61  ;;  %v8359_v46 = vpop.f32.mrb[20].mxu1  ;;  %v5678_v61 = vsel %vm4389_vm0, %v5471_v3, 0.0  ;;  %v5474_v60 = vmul.f32 %v8335_v15, %v8335_v15 }
 0x219   : > { %v5661_v48 = vadd.f32 %v5660_v51, %v5659_v39  ;;  %v8364_v28 = vpop.f32.mrb[21].mxu1  ;;  %v5680_v51 = vsel %vm4389_vm0, %v5472_v21, 0.0 }
 0x21a   : > { %v5271_v18 = vadd.f32 %v5270_v36, %v5269_v49  ;;  %v8368_v1 = vpop.f32.mrb[22].mxu1  ;;  %v5684_v20 = vsel %vm4389_vm0, %v5474_v60, 0.0 }
 0x21b   : > { %v5663_v43 = vadd.f32 %v5662_v7, %v5661_v48  ;;  %v8373_v35 = vpop.f32.mrb[23].mxu1  ;;  %v5682_v48 = vsel %vm4389_vm0, %v5473_v44, 0.0  ;;  %v5292_v7 = vsel %vm4389_vm0, %v8335_v15, 0.0 }
 0x21c   : > { %v5273_v9 = vadd.f32 %v5272_v45, %v5271_v18  ;;  %v5475_v18 = vmul.f32 %v8364_v28, %v8364_v28  ;;  %v5476_v30 = vmul.f32 %v8373_v35, %v8373_v35  ;;  %v5296_v15 = vsel %vm4389_vm0, %v8373_v35, 0.0 }
 0x21d   : > { %v5665_v59 = vadd.f32 %v5664_v31, %v5663_v43  ;;  %v5294_v31 = vsel %vm4389_vm0, %v8364_v28, 0.0  ;;  %v5298_v28 = vsel %vm4389_vm0, %v8359_v46, 0.0 }
 0x21e   : > { %v5275_v29 = vadd.f32 %v5274_v4, %v5273_v9 }
 0x21f   : > { %v5667_v63 = vadd.f32 %v5666_v55, %v5665_v59  ;;  %v5477_v59 = vmul.f32 %v8359_v46, %v8359_v46 }
 0x220   : > { %v5277_v54 = vadd.f32 %v5276_v16, %v5275_v29  ;;  %v8387_v6 = vpop.f32.mrb[24].mxu1  ;;  %v5686_v29 = vsel %vm4389_vm0, %v5475_v18, 0.0  ;;  %v5478_v16 = vmul.f32 %v8368_v1, %v8368_v1 }
 0x221   : > { %v5669_v13 = vadd.f32 %v5668_v38, %v5667_v63  ;;  %v8392_v40 = vpop.f32.mrb[25].mxu1  ;;  %v5688_v38 = vsel %vm4389_vm0, %v5476_v30, 0.0 }
 0x222   : > { %v5279_v0 = vadd.f32 %v5278_v19, %v5277_v54  ;;  %v8396_v2 = vpop.f32.mrb[26].mxu1  ;;  %v5692_v26 = vsel %vm4389_vm0, %v5478_v16, 0.0 }
 0x223   : > { %v5671_v22 = vadd.f32 %v5670_v32, %v5669_v13  ;;  %v8401_v57 = vpop.f32.mrb[27].mxu1  ;;  %v5690_v13 = vsel %vm4389_vm0, %v5477_v59, 0.0  ;;  %v5300_v32 = vsel %vm4389_vm0, %v8368_v1, 0.0 }
 0x224   : > { %v5281_v62 = vadd.f32 %v5280_v17, %v5279_v0  ;;  %v5479_v0 = vmul.f32 %v8392_v40, %v8392_v40  ;;  %v5480_v46 = vmul.f32 %v8401_v57, %v8401_v57  ;;  %v5304_v1 = vsel %vm4389_vm0, %v8401_v57, 0.0 }
 0x225   : > { %v5673_v24 = vadd.f32 %v5672_v25, %v5671_v22  ;;  %v5302_v25 = vsel %vm4389_vm0, %v8392_v40, 0.0  ;;  %v5306_v40 = vsel %vm4389_vm0, %v8387_v6, 0.0  ;;  %v5308_v57 = vsel %vm4389_vm0, %v8396_v2, 0.0 }
 0x226   : > { %v5283_v50 = vadd.f32 %v5282_v12, %v5281_v62 }
 0x227   : > { %v5675_v8 = vadd.f32 %v5674_v47, %v5673_v24  ;;  %v5481_v24 = vmul.f32 %v8387_v6, %v8387_v6 }
 0x228   : > { %v5285_v42 = vadd.f32 %v5284_v37, %v5283_v50  ;;  %v5694_v50 = vsel %vm4389_vm0, %v5479_v0, 0.0  ;;  %v5482_v37 = vmul.f32 %v8396_v2, %v8396_v2 }
 0x229   : > { %v5677_v10 = vadd.f32 %v5676_v5, %v5675_v8  ;;  %v5696_v5 = vsel %vm4389_vm0, %v5480_v46, 0.0 }
 0x22a   : > { %v5287_v23 = vadd.f32 %v5286_v11, %v5285_v42  ;;  %v5698_v11 = vsel %vm4389_vm0, %v5481_v24, 0.0 }
 0x22b   : > { %v5679_v52 = vadd.f32 %v5678_v61, %v5677_v10  ;;  %v8423_v49 = vpop.f32.mrb[28].mxu1 }
 0x22c   : > { %v5289_v39 = vadd.f32 %v5288_v34, %v5287_v23  ;;  %v4984_v36 = vpop.f32.mrb[29].mxu1  ;;  %v5700_v34 = vsel %vm4389_vm0, %v5482_v37, 0.0 }
 0x22d   : > { %v5681_v58 = vadd.f32 %v5680_v51, %v5679_v52  ;;  %v8430_v41 = vpop.f32.mrb[30].mxu1  ;;  %v5483_v44 = vmul.f32 %v4984_v36, %v4984_v36  ;;  %v5310_v6 = vsel %vm4389_vm0, %v4984_v36, 0.0 }
 0x22e   : > { %v5291_v56 = vadd.f32 %v5290_v33, %v5289_v39  ;;  %v4987_v45 = vpop.f32.mrb[31].mxu1 }
 0x22f   : > { %v5683_v43 = vadd.f32 %v5682_v48, %v5681_v58  ;;  %v5484_v39 = vmul.f32 %v4987_v45, %v4987_v45  ;;  %v5485_v58 = vmul.f32 %v8423_v49, %v8423_v49  ;;  %v5312_v2 = vsel %vm4389_vm0, %v4987_v45, 0.0 }
 0x230   : > { %v5293_v9 = vadd.f32 %v5292_v7, %v5291_v56  ;;  %v5702_v56 = vsel %vm4389_vm0, %v5483_v44, 0.0  ;;  %v5486_v7 = vmul.f32 %v8430_v41, %v8430_v41  ;;  %v5316_v45 = vsel %vm4389_vm0, %v8430_v41, 0.0 }
 0x231   : > { %v5685_v4 = vadd.f32 %v5684_v20, %v5683_v43  ;;  %v5704_v20 = vsel %vm4389_vm0, %v5484_v39, 0.0 }
 0x232   : > { %v5295_v55 = vadd.f32 %v5294_v31, %v5293_v9  ;;  %v5314_v9 = vsel %vm4389_vm0, %v8423_v49, 0.0  ;;  %v5706_v31 = vsel %vm4389_vm0, %v5485_v58, 0.0 }
 0x233   : > { %v5687_v53 = vadd.f32 %v5686_v29, %v5685_v4  ;;  %v8447_v54 = vpop.f32.mrb[32].mxu1 }
 0x234   : > { %v5297_v63 = vadd.f32 %v5296_v15, %v5295_v55  ;;  %v5000_v19 = vpop.f32.mrb[33].mxu1  ;;  %v5708_v15 = vsel %vm4389_vm0, %v5486_v7, 0.0 }
 0x235   : > { %v5689_v27 = vadd.f32 %v5688_v38, %v5687_v53  ;;  %v8454_v35 = vpop.f32.mrb[34].mxu1  ;;  %v5487_v59 = vmul.f32 %v5000_v19, %v5000_v19  ;;  %v5318_v49 = vsel %vm4389_vm0, %v5000_v19, 0.0 }
 0x236   : > { %v5299_v14 = vadd.f32 %v5298_v28, %v5297_v63  ;;  %v5003_v17 = vpop.f32.mrb[35].mxu1  ;;  %v5324_v24 = vsel %vm4389_vm0, %v8454_v35, 0.0 }
 0x237   : > { %v5691_v22 = vadd.f32 %v5690_v13, %v5689_v27  ;;  %v5488_v63 = vmul.f32 %v5003_v17, %v5003_v17  ;;  %v5489_v27 = vmul.f32 %v8447_v54, %v8447_v54  ;;  %v5320_v41 = vsel %vm4389_vm0, %v5003_v17, 0.0 }
 0x238   : > { %v5301_v62 = vadd.f32 %v5300_v32, %v5299_v14  ;;  %v5710_v14 = vsel %vm4389_vm0, %v5487_v59, 0.0  ;;  %v5490_v32 = vmul.f32 %v8454_v35, %v8454_v35 }
 0x239   : > { %v5693_v12 = vadd.f32 %v5692_v26, %v5691_v22  ;;  %v5712_v26 = vsel %vm4389_vm0, %v5488_v63, 0.0  ;;  %v5714_v46 = vsel %vm4389_vm0, %v5489_v27, 0.0 }
 0x23a   : > { %v5303_v47 = vadd.f32 %v5302_v25, %v5301_v62  ;;  %v5322_v62 = vsel %vm4389_vm0, %v8447_v54, 0.0  ;;  %v5716_v17 = vsel %vm4389_vm0, %v5490_v32, 0.0 }
 0x23b   : > { %v5695_v3 = vadd.f32 %v5694_v50, %v5693_v12 }
 0x23c   : > { %v5305_v8 = vadd.f32 %v5304_v1, %v5303_v47 }
 0x23d   : > { %v5697_v42 = vadd.f32 %v5696_v5, %v5695_v3  ;;  %v8473_v21 = vpop.f32.mrb[36].mxu1 }
 0x23e   : > { %v5307_v10 = vadd.f32 %v5306_v40, %v5305_v8  ;;  %v5016_v23 = vpop.f32.mrb[37].mxu1  ;;  %v5493_v54 = vmul.f32 %v8473_v21, %v8473_v21 }
 0x23f   : > { %v5699_v61 = vadd.f32 %v5698_v11, %v5697_v42  ;;  %v8478_v52 = vpop.f32.mrb[38].mxu1  ;;  %v5491_v12 = vmul.f32 %v5016_v23, %v5016_v23  ;;  %v5326_v37 = vsel %vm4389_vm0, %v5016_v23, 0.0  ;;  %v5330_v23 = vsel %vm4389_vm0, %v8473_v21, 0.0 }
 0x240   : > { %v5309_v60 = vadd.f32 %v5308_v57, %v5307_v10  ;;  %v5019_v51 = vpop.f32.mrb[39].mxu1  ;;  %v5494_v57 = vmul.f32 %v8478_v52, %v8478_v52  ;;  %v5722_v39 = vsel %vm4389_vm0, %v5493_v54, 0.0  ;;  %v5332_v58 = vsel %vm4389_vm0, %v8478_v52, 0.0 }
 0x241   : > { %v5701_v33 = vadd.f32 %v5700_v34, %v5699_v61  ;;  %v5492_v3 = vmul.f32 %v5019_v51, %v5019_v51  ;;  %v5718_v42 = vsel %vm4389_vm0, %v5491_v12, 0.0  ;;  %v5328_v35 = vsel %vm4389_vm0, %v5019_v51, 0.0 }
 0x242   : > { %v5311_v48 = vadd.f32 %v5310_v6, %v5309_v60  ;;  %v5724_v51 = vsel %vm4389_vm0, %v5494_v57, 0.0 }
 0x243   : > { %v5703_v18 = vadd.f32 %v5702_v56, %v5701_v33  ;;  %v5720_v34 = vsel %vm4389_vm0, %v5492_v3, 0.0 }
 0x244   : > { %v5313_v43 = vadd.f32 %v5312_v2, %v5311_v48 }
 0x245   : > { %v5705_v36 = vadd.f32 %v5704_v20, %v5703_v18  ;;  %v8491_v30 = vpop.f32.mrb[40].mxu1 }
 0x246   : > { %v5315_v4 = vadd.f32 %v5314_v9, %v5313_v43  ;;  %v5032_v55 = vpop.f32.mrb[41].mxu1  ;;  %v5497_v21 = vmul.f32 %v8491_v30, %v8491_v30 }
 0x247   : > { %v5707_v29 = vadd.f32 %v5706_v31, %v5705_v36  ;;  %v8496_v53 = vpop.f32.mrb[42].mxu1  ;;  %v5495_v33 = vmul.f32 %v5032_v55, %v5032_v55  ;;  %v5334_v7 = vsel %vm4389_vm0, %v5032_v55, 0.0  ;;  %v5338_v55 = vsel %vm4389_vm0, %v8491_v30, 0.0 }
 0x248   : > { %v5317_v16 = vadd.f32 %v5316_v45, %v5315_v4  ;;  %v5035_v38 = vpop.f32.mrb[43].mxu1  ;;  %v5498_v45 = vmul.f32 %v8496_v53, %v8496_v53  ;;  %v5730_v63 = vsel %vm4389_vm0, %v5497_v21, 0.0  ;;  %v5340_v27 = vsel %vm4389_vm0, %v8496_v53, 0.0 }
 0x249   : > { %v5709_v28 = vadd.f32 %v5708_v15, %v5707_v29  ;;  %v5496_v18 = vmul.f32 %v5035_v38, %v5035_v38  ;;  %v5726_v36 = vsel %vm4389_vm0, %v5495_v33, 0.0  ;;  %v5336_v52 = vsel %vm4389_vm0, %v5035_v38, 0.0 }
 0x24a   : > { %v5319_v13 = vadd.f32 %v5318_v49, %v5317_v16  ;;  %v5732_v38 = vsel %vm4389_vm0, %v5498_v45, 0.0 }
 0x24b   : > { %v5711_v0 = vadd.f32 %v5710_v14, %v5709_v28  ;;  %v5728_v15 = vsel %vm4389_vm0, %v5496_v18, 0.0 }
 0x24c   : > { %v5321_v22 = vadd.f32 %v5320_v41, %v5319_v13 }
 0x24d   : > { %v5713_v19 = vadd.f32 %v5712_v26, %v5711_v0 }
 0x24e   : > { %v5323_v25 = vadd.f32 %v5322_v62, %v5321_v22 }
 0x24f   : > { %v5715_v47 = vadd.f32 %v5714_v46, %v5713_v19  ;;  %v6115_v1 = vpop.f32.mrb[44].mxu1 }
 0x250   : > { %v5325_v50 = vadd.f32 %v5324_v24, %v5323_v25  ;;  %v5048_v5 = vpop.f32.mrb[45].mxu1  ;;  %v5501_v22 = vmul.f32 %v6115_v1, %v6115_v1 }
 0x251   : > { %v5717_v8 = vadd.f32 %v5716_v17, %v5715_v47  ;;  %v6116_v11 = vpop.f32.mrb[46].mxu1  ;;  %v5499_v28 = vmul.f32 %v5048_v5, %v5048_v5  ;;  %v5342_v41 = vsel %vm4389_vm0, %v5048_v5, 0.0  ;;  %v5346_v47 = vsel %vm4389_vm0, %v6115_v1, 0.0 }
 0x252   : > { %v5327_v40 = vadd.f32 %v5326_v37, %v5325_v50  ;;  %v5051_v44 = vpop.f32.mrb[47].mxu1  ;;  %v5502_v25 = vmul.f32 %v6116_v11, %v6116_v11  ;;  %v5738_v3 = vsel %vm4389_vm0, %v5501_v22, 0.0  ;;  %v5348_v54 = vsel %vm4389_vm0, %v6116_v11, 0.0 }
 0x253   : > { %v5719_v10 = vadd.f32 %v5718_v42, %v5717_v8  ;;  %v5500_v0 = vmul.f32 %v5051_v44, %v5051_v44  ;;  %v5734_v30 = vsel %vm4389_vm0, %v5499_v28, 0.0  ;;  %v5344_v19 = vsel %vm4389_vm0, %v5051_v44, 0.0 }
 0x254   : > { %v5329_v61 = vadd.f32 %v5328_v35, %v5327_v40  ;;  %v5740_v42 = vsel %vm4389_vm0, %v5502_v25, 0.0 }
 0x255   : > { %v5721_v60 = vadd.f32 %v5720_v34, %v5719_v10  ;;  %v5736_v53 = vsel %vm4389_vm0, %v5500_v0, 0.0 }
 0x256   : > { %v5331_v6 = vadd.f32 %v5330_v23, %v5329_v61 }
 0x257   : > { %v5723_v48 = vadd.f32 %v5722_v39, %v5721_v60  ;;  %v6119_v2 = vpop.f32.mrb[48].mxu1 }
 0x258   : > { %v5333_v56 = vadd.f32 %v5332_v58, %v5331_v6  ;;  %v5064_v20 = vpop.f32.mrb[49].mxu1  ;;  %v5505_v61 = vmul.f32 %v6119_v2, %v6119_v2 }
 0x259   : > { %v5725_v43 = vadd.f32 %v5724_v51, %v5723_v48  ;;  %v6120_v31 = vpop.f32.mrb[50].mxu1  ;;  %v5503_v8 = vmul.f32 %v5064_v20, %v5064_v20  ;;  %v5350_v44 = vsel %vm4389_vm0, %v5064_v20, 0.0  ;;  %v5354_v48 = vsel %vm4389_vm0, %v6119_v2, 0.0 }
 0x25a   : > { %v5335_v9 = vadd.f32 %v5334_v7, %v5333_v56  ;;  %v5067_v59 = vpop.f32.mrb[51].mxu1  ;;  %v5506_v6 = vmul.f32 %v6120_v31, %v6120_v31  ;;  %v5746_v18 = vsel %vm4389_vm0, %v5505_v61, 0.0  ;;  %v5356_v21 = vsel %vm4389_vm0, %v6120_v31, 0.0 }
 0x25b   : > { %v5727_v4 = vadd.f32 %v5726_v36, %v5725_v43  ;;  %v5504_v35 = vmul.f32 %v5067_v59, %v5067_v59  ;;  %v5742_v1 = vsel %vm4389_vm0, %v5503_v8, 0.0  ;;  %v5352_v60 = vsel %vm4389_vm0, %v5067_v59, 0.0 }
 0x25c   : > { %v5337_v29 = vadd.f32 %v5336_v52, %v5335_v9  ;;  %v5748_v36 = vsel %vm4389_vm0, %v5506_v6, 0.0 }
 0x25d   : > { %v5729_v16 = vadd.f32 %v5728_v15, %v5727_v4  ;;  %v5744_v11 = vsel %vm4389_vm0, %v5504_v35, 0.0 }
 0x25e   : > { %v5339_v49 = vadd.f32 %v5338_v55, %v5337_v29 }
 0x25f   : > { %v5731_v13 = vadd.f32 %v5730_v63, %v5729_v16 }
 0x260   : > { %v5341_v14 = vadd.f32 %v5340_v27, %v5339_v49 }
 0x261   : > { %v5733_v32 = vadd.f32 %v5732_v38, %v5731_v13 }
 0x262   : > { %v5343_v26 = vadd.f32 %v5342_v41, %v5341_v14  ;;  %v6123_v46 = vpop.f32.mrb[52].mxu1 }
 0x263   : > { %v5735_v62 = vadd.f32 %v5734_v30, %v5733_v32  ;;  %v5080_v24 = vpop.f32.mrb[53].mxu1  ;;  %v5509_v29 = vmul.f32 %v6123_v46, %v6123_v46  ;;  %v5362_v31 = vsel %vm4389_vm0, %v6123_v46, 0.0 }
 0x264   : > { %v5345_v12 = vadd.f32 %v5344_v19, %v5343_v26  ;;  %v6124_v50 = vpop.f32.mrb[54].mxu1  ;;  %v5507_v43 = vmul.f32 %v5080_v24, %v5080_v24  ;;  %v5358_v59 = vsel %vm4389_vm0, %v5080_v24, 0.0 }
 0x265   : > { %v5737_v17 = vadd.f32 %v5736_v53, %v5735_v62  ;;  %v5083_v5 = vpop.f32.mrb[55].mxu1  ;;  %v5510_v63 = vmul.f32 %v6124_v50, %v6124_v50  ;;  %v5754_v13 = vsel %vm4389_vm0, %v5509_v29, 0.0  ;;  %v5364_v41 = vsel %vm4389_vm0, %v6124_v50, 0.0 }
 0x266   : > { %v5347_v37 = vadd.f32 %v5346_v47, %v5345_v12  ;;  %v5508_v52 = vmul.f32 %v5083_v5, %v5083_v5  ;;  %v5750_v2 = vsel %vm4389_vm0, %v5507_v43, 0.0  ;;  %v5360_v16 = vsel %vm4389_vm0, %v5083_v5, 0.0 }
 0x267   : > { %v5739_v40 = vadd.f32 %v5738_v3, %v5737_v17  ;;  %v5756_v26 = vsel %vm4389_vm0, %v5510_v63, 0.0 }
 0x268   : > { %v5349_v10 = vadd.f32 %v5348_v54, %v5347_v37  ;;  %v5752_v28 = vsel %vm4389_vm0, %v5508_v52, 0.0 }
 0x269   : > { %v5741_v57 = vadd.f32 %v5740_v42, %v5739_v40 }
 0x26a   : > { %v5351_v34 = vadd.f32 %v5350_v44, %v5349_v10  ;;  %v6127_v39 = vpop.f32.mrb[56].mxu1 }
 0x26b   : > { %v5743_v23 = vadd.f32 %v5742_v1, %v5741_v57  ;;  %v5096_v58 = vpop.f32.mrb[57].mxu1  ;;  %v5513_v46 = vmul.f32 %v6127_v39, %v6127_v39  ;;  %v5370_v5 = vsel %vm4389_vm0, %v6127_v39, 0.0 }
 0x26c   : > { %v5353_v33 = vadd.f32 %v5352_v60, %v5351_v34  ;;  %v6128_v56 = vpop.f32.mrb[58].mxu1  ;;  %v5511_v14 = vmul.f32 %v5096_v58, %v5096_v58  ;;  %v5366_v25 = vsel %vm4389_vm0, %v5096_v58, 0.0 }
 0x26d   : > { %v5745_v51 = vadd.f32 %v5744_v11, %v5743_v23  ;;  %v5099_v20 = vpop.f32.mrb[59].mxu1  ;;  %v5514_v37 = vmul.f32 %v6128_v56, %v6128_v56  ;;  %v5762_v40 = vsel %vm4389_vm0, %v5513_v46, 0.0  ;;  %v5372_v35 = vsel %vm4389_vm0, %v6128_v56, 0.0 }
 0x26e   : > { %v5355_v7 = vadd.f32 %v5354_v48, %v5353_v33  ;;  %v5512_v62 = vmul.f32 %v5099_v20, %v5099_v20  ;;  %v5758_v47 = vsel %vm4389_vm0, %v5511_v14, 0.0  ;;  %v5368_v3 = vsel %vm4389_vm0, %v5099_v20, 0.0 }
 0x26f   : > { %v5747_v9 = vadd.f32 %v5746_v18, %v5745_v51  ;;  %v5764_v57 = vsel %vm4389_vm0, %v5514_v37, 0.0 }
 0x270   : > { %v5357_v4 = vadd.f32 %v5356_v21, %v5355_v7  ;;  %v5760_v8 = vsel %vm4389_vm0, %v5512_v62, 0.0 }
 0x271   : > { %v5749_v45 = vadd.f32 %v5748_v36, %v5747_v9 }
 0x272   : > { %v5359_v15 = vadd.f32 %v5358_v59, %v5357_v4 }
 0x273   : > { %v5751_v55 = vadd.f32 %v5750_v2, %v5749_v45 }
 0x274   : > { %v5361_v49 = vadd.f32 %v5360_v16, %v5359_v15 }
 0x275   : > { %v5753_v27 = vadd.f32 %v5752_v28, %v5751_v55  ;;  %v6131_v0 = vpop.f32.mrb[60].mxu1 }
 0x276   : > { %v5363_v38 = vadd.f32 %v5362_v31, %v5361_v49  ;;  %v5112_v22 = vpop.f32.mrb[61].mxu1  ;;  %v5517_v60 = vmul.f32 %v6131_v0, %v6131_v0  ;;  %v5378_v56 = vsel %vm4389_vm0, %v6131_v0, 0.0 }
 0x277   : > { %v5755_v32 = vadd.f32 %v5754_v13, %v5753_v27  ;;  %v6132_v19 = vpop.f32.mrb[62].mxu1  ;;  %v5515_v10 = vmul.f32 %v5112_v22, %v5112_v22  ;;  %v5374_v1 = vsel %vm4389_vm0, %v5112_v22, 0.0 }
 0x278   : > { %v5365_v30 = vadd.f32 %v5364_v41, %v5363_v38  ;;  %v5115_v53 = vpop.f32.mrb[63].mxu1  ;;  %v5518_v58 = vmul.f32 %v6132_v19, %v6132_v19  ;;  %v5770_v7 = vsel %vm4389_vm0, %v5517_v60, 0.0  ;;  %v5380_v20 = vsel %vm4389_vm0, %v6132_v19, 0.0 }
 0x279   : > { %v5757_v12 = vadd.f32 %v5756_v26, %v5755_v32  ;;  %v5516_v34 = vmul.f32 %v5115_v53, %v5115_v53  ;;  %v5766_v33 = vsel %vm4389_vm0, %v5515_v10, 0.0  ;;  %v5376_v11 = vsel %vm4389_vm0, %v5115_v53, 0.0 }
 0x27a   : > { %v5367_v24 = vadd.f32 %v5366_v25, %v5365_v30  ;;  %v5772_v36 = vsel %vm4389_vm0, %v5518_v58, 0.0  ;;  %v8732_v38 = vlaneseq }
 0x27b   : > { %v5759_v17 = vadd.f32 %v5758_v47, %v5757_v12  ;;  %v5768_v51 = vsel %vm4389_vm0, %v5516_v34, 0.0 }
 0x27c   : > { %v5369_v50 = vadd.f32 %v5368_v3, %v5367_v24  ;;  %v5784_v14 = vand.u32 127, %v8732_v38 }
 0x27d   : > { %v5761_v54 = vadd.f32 %v5760_v8, %v5759_v17 }
 0x27e   : > { %v5371_v42 = vadd.f32 %v5370_v5, %v5369_v50  ;;  %vm5785_vm1 = vcmp.eq.s32.totalorder %v5784_v14, 0 }
 0x27f   : > { %v5763_v44 = vadd.f32 %v5762_v40, %v5761_v54 }
 0x280   : > { %v5373_v61 = vadd.f32 %v5372_v35, %v5371_v42 }
 0x281   : > { %v5765_v23 = vadd.f32 %v5764_v57, %v5763_v44 }
 0x282   : > { %v5375_v6 = vadd.f32 %v5374_v1, %v5373_v61 }
 0x283   : > { %v5767_v39 = vadd.f32 %v5766_v33, %v5765_v23 }
 0x284   : > { %v5377_v48 = vadd.f32 %v5376_v11, %v5375_v6 }
 0x285   : > { %v5769_v18 = vadd.f32 %v5768_v51, %v5767_v39 }
 0x286   : > { %v5379_v43 = vadd.f32 %v5378_v56, %v5377_v48 }
 0x287   : > { %v5771_v21 = vadd.f32 %v5770_v7, %v5769_v18 }
 0x288   : > { %v5381_v9 = vadd.f32 %v5380_v20, %v5379_v43 }
 0x289   : > { %v5773_v4 = vadd.f32 %v5772_v36, %v5771_v21 }
 0x28a   : > { %5382 = vadd.xlane.f32.xlu0 %v5381_v9 }
 0x28b   : > { %5774 = vadd.xlane.f32.xlu1 %v5773_v4 }
 0x317   : > { %v5383_v52 = vpop.xlane.xlu0 %5382 }
 0x318   : > { %v5384_v59 = vrot.slane %v5383_v52, 4  ;;  %v5775_v45 = vpop.xlane.xlu1 %5774 }
 0x319   : > { %v5776_v29 = vrot.slane %v5775_v45, 4 }
 0x31a   : > { %v5385_v15 = vadd.f32 %v5384_v59, %v5383_v52 }
 0x31b   : > { %v5777_v2 = vadd.f32 %v5776_v29, %v5775_v45 }
 0x31c   : > { %v5386_v55 = vrot.slane %v5385_v15, 2 }
 0x31d   : > { %v5778_v16 = vrot.slane %v5777_v2, 2 }
 0x31e   : > { %v5387_v63 = vadd.f32 %v5386_v55, %v5385_v15 }
 0x31f   : > { %v5779_v49 = vadd.f32 %v5778_v16, %v5777_v2 }
 0x320   : > { %v5388_v28 = vrot.slane %v5387_v63, 1 }
 0x321   : > { %v5780_v31 = vrot.slane %v5779_v49, 1 }
 0x322   : > { %v5389_v27 = vadd.f32 %v5388_v28, %v5387_v63 }
 0x323   : > { %v5781_v13 = vadd.f32 %v5780_v31, %v5779_v49 }
 0x324   : > { %6137 = vpush %v5389_v27 }
 0x325   : > { %6139 = vpush %v5781_v13 }
 0x355   : > { %s6138_s4 = spop %6137 }
 0x356   : > { %s6140_s8 = spop %6139  ;;  %v5786_v0 = vstv %s6138_s4 }
 0x357   : > { %v5787_v41 = vstv %s6140_s8 }
 0x358   : > { %v5788_v32 = vsel %vm5785_vm1, %v5786_v0, %v5787_v41 }
 0x359   : > { %5789 = vst [vmem:[%s195_s7] sm:$0xff] %v5788_v32 }
 0x35a PF: > { %s13_s12 = sadd.s32 1, %s6202_s12  }
 0x35b   : > { %p10_p5 = scmp.ge.s32.totalorder %s13_s12, 4  }
 0x35d   :  { %12 = sbr.rel (!%p10_p5) target bundleno = 1 (0x1), region = 65 }

// kernel: lpfa_forward.3
= control target key start
LH: loop header
LB: loop body
LE: loop exit
PB: predicated region body
PF: predicated region fallthrough
CT: control target
= control target key end

     0   :  { %s11432_s27 = smov 0   ;;  %s15973_s0 = inlined_call_operand.vmem [shape: f32[256,256], index: 0, kind: input, shape index: {}]   ;;  %s15974_s1 = inlined_call_operand.vmem [shape: f32[256,32], index: 1, kind: input, shape index: {}]   ;;  %s15975_s2 = inlined_call_operand.vmem [shape: bf16[32,32], index: 2, kind: input, shape index: {}]   ;;  %s15976_s3 = inlined_call_operand.vmem [shape: bf16[2,32,64], index: 3, kind: input, shape index: {}]   ;;  %s15977_s4 = inlined_call_operand.vmem [shape: bf16[32,64], index: 4, kind: input, shape index: {}]   ;;  %s15978_s5 = inlined_call_operand.vmem [shape: f32[1,64], index: 5, kind: input, shape index: {}]   ;;  %s15979_s6 = inlined_call_operand.vmem [shape: bf16[64,64], index: 6, kind: input, shape index: {}]   ;;  %s15980_s7 = inlined_call_operand.vmem [shape: f32[1,64], index: 7, kind: input, shape index: {}]   ;;  %s15981_s8 = inlined_call_operand.vmem [shape: f32[256,64], index: 8, kind: output, shape index: {}]  }
   0x1 LB: > { %s11438_s28 = sadd.s32 4294967295, %s11379_s27   ;;  %p10434_p0 = scmp.ge.s32.totalorder %s11379_s27, 1  ;;  %s11379_s27 = sphi %s11432_s27, %s18_s27  }
   0x2   : > { %p285_p1 = scmp.lt.s32.totalorder %s11379_s27, 3 }
   0x4   : > { %p286_p2 = pnand %p10434_p0, %p285_p1 }
   0x6   : > { %289 = sbr.rel (%p286_p2) target bundleno = 1419 (0x58b), region = 52 }
   0xd   : > { %s10435_s29 = sshll.u32 %s11438_s28, 4  ;;  %s11381_s12 = smov 32   ;;  %v11308_v2 = vld [vmem:[%s15975_s2] sm:$0xff]   ;;  %v11309_v3 = vld [vmem:[%s15975_s2 + $0x8] sm:$0xff]   ;;  %v11384_v15 = vmov 1966171168   ;;  %v712_v17 = vlaneseq }
   0xe   : > { %p331_p3 = scmp.lt.s32.totalorder %s10435_s29, 31  ;;  %s11382_s13 = smov 96   ;;  %10870 = vmatprep.subr.bf16.mxu0 %v11308_v2  ;;  %v2917_v16 = vunpack.c.l.s4 %v11384_v15  ;;  %v11385_v28 = vmov 1983009808   ;;  %v11386_v33 = vmov 1934713408  }
   0xf   : > { %s11383_s14 = smov 64   ;;  %10871 = vmatpush3.bf16.msra.mxu0 %v11308_v2  ;;  %p343_p4 = scmp.lt.s32.totalorder %s11438_s28, 1  ;;  %v713_v20 = vshrl.u32 %v712_v17, 7  ;;  %v710_v29 = vunpack.c.l.s4 %v11385_v28  ;;  %v774_v34 = vunpack.c.l.s4 %v11386_v33  ;;  %vm4547_vm0 = vcmask 261120  }
  0x10   : > { %s16489_s29 = smov (!%p331_p3, %s10435_s29), 31  ;;  %10872 = vmatprep.subr.bf16.mxu0 %v11309_v3  ;;  %v2918_v18 = vunpack.c.0.s8 %v2917_v16  ;;  %vm8181_vm1 = vcmask 523264   ;;  %vm10199_vm2 = vcmask 1041409   ;;  %vm10201_vm3 = vcmask 1042434  }
  0x11   : > { %s10658_s30 = sshll.u32 %s16489_s29, 4  ;;  %s16491_s28 = smov (!%p343_p4, %s11438_s28), 1  ;;  %v711_v38 = vunpack.c.0.s8 %v710_v29  ;;  %v775_v44 = vunpack.c.0.s8 %v774_v34  ;;  %v11603_v45 = vsub.s32 0, %v713_v20  ;;  %vm10203_vm4 = vcmask 1043459  }
  0x12   : > { %s11449_s11 = scalar_lea.vmem %s15973_s0, %s10658_s30  ;;  %s10659_s19 = sshll.u32 %s16491_s28, 4  ;;  %v11580_v22 = vsub.s32 %v2918_v18, %v713_v20  ;;  %vm10205_vm5 = vcmask 1044484   ;;  %vm10207_vm6 = vcmask 1045509   ;;  %vm10209_vm7 = vcmask 1046534  }
  0x13   : > { %v11452_v0 = vld [vmem:[%s11449_s11] sm:$0xff]  ;;  %v11459_v1 = vld [vmem:[%s11449_s11 + $0x8] sm:$0xff]  ;;  %v11476_v4 = vld [vmem:[%s11449_s11 + $0x10] sm:$0xff]  ;;  %10873 = vmatpush3.bf16.msra.mxu0 %v11309_v3  ;;  %s11501_s22 = scalar_lea.vmem %s15976_s3, %s10659_s19  ;;  %s10439_s23 = sshll.u32 %s16489_s29, 3  ;;  %16062 = vst [vmem:[#allocation4_spill] sm:$0xff] %v11603_v45  ;;  %v11612_v50 = vsub.s32 %v711_v38, %v713_v20  ;;  %v11625_v57 = vsub.s32 %v775_v44, %v713_v20  ;;  %vm10211_vm8 = vcmask 1047559  }
  0x14   : > { %499 = vrot.lane.b32.xlu1 %v11452_v0, %s11381_s12  ;;  %403 = vrot.lane.b32.xlu0 %v11452_v0, %s11382_s13  ;;  %v11483_v5 = vld [vmem:[%s11449_s11 + $0x18] sm:$0xff]  ;;  %v11496_v6 = vld [vmem:[%s11449_s11 + $0x20] sm:$0xff]  ;;  %s11574_s26 = scalar_lea.vmem %s15974_s1, %s10439_s23  ;;  %16061 = vst [vmem:[#allocation3_spill] sm:$0xff] %v11580_v22  ;;  %s15306_s10 = scalar_lea.vmem %s15981_s8, %s10439_s23 }
  0x15   : > { %v11504_v7 = vld [vmem:[%s11501_s22] sm:$0xff]   ;;  %v11511_v8 = vld [vmem:[%s11449_s11 + $0x28] sm:$0xff]  ;;  %v11525_v9 = vld [vmem:[%s11449_s11 + $0x30] sm:$0xff] }
  0x16   : > { %11002 = vmatprep.subr.bf16.mxu0 %v11504_v7  ;;  %11290 = vmatprep.subr.bf16.mxu1 %v11504_v7  ;;  %v11532_v10 = vld [vmem:[%s11449_s11 + $0x38] sm:$0xff]  ;;  %v11543_v11 = vld [vmem:[%s11449_s11 + $0x40] sm:$0xff]  ;;  %v11550_v12 = vld [vmem:[%s11449_s11 + $0x48] sm:$0xff] }
  0x17   : > { %11292 = vmatpush3.bf16.msra.mxu1 %v11504_v7  ;;  %16060 = vst [vmem:[#allocation2_spill] sm:$0xff] %v11550_v12  ;;  %v365_v13 = vld [vmem:[%s11449_s11 + $0x50] sm:$0xff]  ;;  %v366_v14 = vld [vmem:[%s11449_s11 + $0x58] sm:$0xff]  ;;  %v367_v19 = vld [vmem:[%s11449_s11 + $0x60] sm:$0xff] }
  0x18   : > { %563 = vrot.lane.b32.xlu1 %v11459_v1, %s11382_s13  ;;  %451 = vrot.lane.b32.xlu0 %v11452_v0, %s11383_s14  ;;  %v2883_v21 = vld [vmem:[%s11574_s26] sm:$0xff]  ;;  %v368_v23 = vld [vmem:[%s11449_s11 + $0x68] sm:$0xff] }
  0x19   : > { %v2915_v24 = vcombine.high %v2883_v21, %v2883_v21  ;;  %v2922_v25 = vrot.slane %v2883_v21, %v11580_v22  ;;  %v2884_v26 = vld [vmem:[%s11574_s26 + $0x8] sm:$0xff]  ;;  %v369_v32 = vld [vmem:[%s11449_s11 + $0x70] sm:$0xff]  ;;  %v370_v43 = vld [vmem:[%s11449_s11 + $0x78] sm:$0xff] }
  0x1a   : > { %v2964_v30 = vcombine.high %v2884_v26, %v2884_v26  ;;  %v2971_v35 = vrot.slane %v2884_v26, %v11580_v22  ;;  %v2885_v36 = vld [vmem:[%s11574_s26 + $0x10] sm:$0xff]  ;;  %v2886_v56 = vld [vmem:[%s11574_s26 + $0x18] sm:$0xff]  ;;  %v2887_v29 = vld [vmem:[%s11574_s26 + $0x20] sm:$0xff] }
  0x1b   : > { %v2929_v27 = vrot.slane %v2915_v24, %v11580_v22  ;;  %v2930_v31 = vcombine.high %v2922_v25, %v2922_v25  ;;  %v11594_v39 = vrot.slane %v2922_v25, %v11580_v22  ;;  %v3013_v42 = vcombine.high %v2885_v36, %v2885_v36  ;;  %v2888_v44 = vld [vmem:[%s11574_s26 + $0x28] sm:$0xff]  ;;  %v374_v61 = vld [vmem:[%s11449_s11 + $0x98] sm:$0xff] }
  0x1c   : > { %659 = vrot.lane.b32.xlu1 %v11459_v1, %s11381_s12  ;;  %611 = vrot.lane.b32.xlu0 %v11459_v1, %s11383_s14  ;;  %v2978_v40 = vrot.slane %v2964_v30, %v11580_v22  ;;  %v2979_v47 = vcombine.high %v2971_v35, %v2971_v35  ;;  %v3020_v49 = vrot.slane %v2885_v36, %v11580_v22 }
  0x1d   : > { %v2931_v37 = vcombine.high %v2929_v27, %v2929_v27  ;;  %v11600_v41 = vrot.slane %v2930_v31, %v11580_v22  ;;  %v11606_v46 = vrot.slane %v2929_v27, %v11580_v22  ;;  %v2960_v51 = vcombine.high %v11594_v39, %v11594_v39 }
  0x1e   : > { %v2980_v52 = vcombine.high %v2978_v40, %v2978_v40  ;;  %v11621_v54 = vrot.slane %v2971_v35, %v11580_v22  ;;  %v3027_v55 = vrot.slane %v3013_v42, %v11580_v22  ;;  %v11632_v60 = vrot.slane %v2979_v47, %v11580_v22 }
  0x1f   : > { %v11609_v48 = vrot.slane %v2931_v37, %v11580_v22  ;;  %v2962_v53 = vcombine.high %v11600_v41, %v11600_v41  ;;  %v2961_v59 = vcombine.high %v11606_v46, %v11606_v46  ;;  %v11639_v63 = vrot.slane %v2978_v40, %v11580_v22  ;;  %v372_v37 = vld [vmem:[%s11449_s11 + $0x88] sm:$0xff] }
  0x20   : > { %453 = vrot.lane.b32.xlu1 %v11476_v4, %s11383_s14  ;;  %405 = vrot.lane.b32.xlu0 %v11476_v4, %s11382_s13  ;;  %v3028_v2 = vcombine.high %v3020_v49, %v3020_v49  ;;  %v11642_v3 = vrot.slane %v2960_v51, %v11603_v45  ;;  %v3062_v15 = vcombine.high %v2886_v56, %v2886_v56 }
  0x21   : > { %v2963_v62 = vcombine.high %v11609_v48, %v11609_v48  ;;  %v11652_v16 = vrot.slane %v2962_v53, %v11603_v45  ;;  %v3009_v17 = vcombine.high %v11621_v54, %v11621_v54  ;;  %v3029_v18 = vcombine.high %v3027_v55, %v3027_v55 }
  0x22   : > { %v11660_v21 = vrot.slane %v2961_v59, %v11603_v45  ;;  %v3069_v24 = vrot.slane %v2886_v56, %v11580_v22  ;;  %v3010_v26 = vcombine.high %v11639_v63, %v11639_v63  ;;  %v11671_v27 = vrot.slane %v3020_v49, %v11580_v22 }
  0x23   : > { %v11666_v25 = vrot.slane %v2963_v62, %v11603_v45  ;;  %v11674_v28 = vrot.slane %v3028_v2, %v11580_v22  ;;  %v3076_v33 = vrot.slane %v3062_v15, %v11580_v22  ;;  %v11690_v35 = vrot.slane %v3009_v17, %v11603_v45 }
  0x24   : > { %565 = vrot.lane.b32.xlu1 %v11483_v5, %s11382_s13  ;;  %501 = vrot.lane.b32.xlu0 %v11476_v4, %s11381_s12  ;;  %v11693_v36 = vrot.slane %v3029_v18, %v11580_v22  ;;  %v3077_v42 = vcombine.high %v3069_v24, %v3069_v24  ;;  %v11705_v49 = vrot.slane %v3010_v26, %v11603_v45 }
  0x25   : > { %v3058_v51 = vcombine.high %v11671_v27, %v11671_v27  ;;  %v3078_v56 = vcombine.high %v3076_v33, %v3076_v33  ;;  %v3118_v59 = vrot.slane %v2887_v29, %v11580_v22  ;;  %v11722_v2 = vrot.slane %v3069_v24, %v11580_v22  ;;  %v373_v24 = vld [vmem:[%s11449_s11 + $0x90] sm:$0xff] }
  0x26   : > { %16064 = vst [vmem:[#allocation6_spill] sm:$0xff] %v11693_v36  ;;  %v3061_v62 = vcombine.high %v11693_v36, %v11693_v36  ;;  %v3160_v15 = vcombine.high %v2888_v44, %v2888_v44 }
  0x27   : > { %16065 = vst [vmem:[#allocation7_spill] sm:$0xff] %v11722_v2  ;;  %v11733_v26 = vrot.slane %v3058_v51, %v11603_v45  ;;  %v11747_v17 = vrot.slane %v3078_v56, %v11580_v22  ;;  %v2889_v51 = vld [vmem:[%s11574_s26 + $0x30] sm:$0xff]  ;;  %v11769_v40 = vrot.slane %v3118_v59, %v11580_v22 }
  0x28   : > { %661 = vrot.lane.b32.xlu1 %v11483_v5, %s11381_s12  ;;  %613 = vrot.lane.b32.xlu0 %v11483_v5, %s11383_s14  ;;  %v3174_v18 = vrot.slane %v3160_v15, %v11580_v22  ;;  %v3209_v15 = vcombine.high %v2889_v51, %v2889_v51  ;;  %v3216_v20 = vrot.slane %v2889_v51, %v11580_v22 }
  0x29   : > { %16068 = vst [vmem:[#allocation10_spill] sm:$0xff] %v11747_v17  ;;  %16071 = vst [vmem:[#allocation13_spill] sm:$0xff] %v11769_v40  ;;  %v3110_v30 = vcombine.high %v11747_v17, %v11747_v17  ;;  %v2890_v17 = vld [vmem:[%s11574_s26 + $0x38] sm:$0xff] }
  0x2c   : > { %455 = vrot.lane.b32.xlu1 %v11496_v6, %s11383_s14  ;;  %407 = vrot.lane.b32.xlu0 %v11496_v6, %s11382_s13 }
  0x30   : > { %567 = vrot.lane.b32.xlu1 %v11511_v8, %s11382_s13  ;;  %503 = vrot.lane.b32.xlu0 %v11496_v6, %s11381_s12 }
  0x34   : > { %663 = vrot.lane.b32.xlu1 %v11511_v8, %s11381_s12  ;;  %615 = vrot.lane.b32.xlu0 %v11511_v8, %s11383_s14 }
  0x38   : > { %457 = vrot.lane.b32.xlu1 %v11525_v9, %s11383_s14  ;;  %409 = vrot.lane.b32.xlu0 %v11525_v9, %s11382_s13 }
  0x3c   : > { %569 = vrot.lane.b32.xlu1 %v11532_v10, %s11382_s13  ;;  %505 = vrot.lane.b32.xlu0 %v11525_v9, %s11381_s12 }
  0x40   : > { %665 = vrot.lane.b32.xlu1 %v11532_v10, %s11381_s12  ;;  %617 = vrot.lane.b32.xlu0 %v11532_v10, %s11383_s14 }
  0x44   : > { %459 = vrot.lane.b32.xlu1 %v11543_v11, %s11383_s14  ;;  %411 = vrot.lane.b32.xlu0 %v11543_v11, %s11382_s13 }
  0x48   : > { %571 = vrot.lane.b32.xlu1 %v11550_v12, %s11382_s13  ;;  %507 = vrot.lane.b32.xlu0 %v11543_v11, %s11381_s12 }
  0x4c   : > { %667 = vrot.lane.b32.xlu1 %v11550_v12, %s11381_s12  ;;  %619 = vrot.lane.b32.xlu0 %v11550_v12, %s11383_s14 }
  0x50   : > { %461 = vrot.lane.b32.xlu1 %v365_v13, %s11383_s14  ;;  %413 = vrot.lane.b32.xlu0 %v365_v13, %s11382_s13 }
  0x54   : > { %573 = vrot.lane.b32.xlu1 %v366_v14, %s11382_s13  ;;  %509 = vrot.lane.b32.xlu0 %v365_v13, %s11381_s12  ;;  %v3176_v13 = vcombine.high %v3174_v18, %v3174_v18 }
  0x58   : > { %669 = vrot.lane.b32.xlu1 %v366_v14, %s11381_s12  ;;  %621 = vrot.lane.b32.xlu0 %v366_v14, %s11383_s14  ;;  %v11647_v14 = vrot.slane %v2980_v52, %v11580_v22  ;;  %v3060_v52 = vcombine.high %v11674_v28, %v11674_v28 }
  0x5a   : > { %v3012_v31 = vcombine.high %v11647_v14, %v11647_v14 }
  0x5c   : > { %463 = vrot.lane.b32.xlu1 %v367_v19, %s11383_s14  ;;  %415 = vrot.lane.b32.xlu0 %v367_v19, %s11382_s13  ;;  %v11712_v53 = vrot.slane %v3012_v31, %v11603_v45  ;;  %v3167_v31 = vrot.slane %v2888_v44, %v11580_v22  ;;  %v3107_v44 = vcombine.high %v11722_v2, %v11722_v2 }
  0x5e   : > { %v3175_v34 = vcombine.high %v3167_v31, %v3167_v31 }
  0x60   : > { %575 = vrot.lane.b32.xlu1 %v368_v23, %s11382_s13  ;;  %511 = vrot.lane.b32.xlu0 %v367_v19, %s11381_s12  ;;  %v371_v19 = vld [vmem:[%s11449_s11 + $0x80] sm:$0xff] }
  0x64   : > { %671 = vrot.lane.b32.xlu1 %v368_v23, %s11381_s12  ;;  %623 = vrot.lane.b32.xlu0 %v368_v23, %s11383_s14  ;;  %v3011_v23 = vcombine.high %v11632_v60, %v11632_v60 }
  0x66   : > { %v11697_v38 = vrot.slane %v3011_v23, %v11603_v45  ;;  %v11729_v23 = vrot.slane %v3077_v42, %v11580_v22  ;;  %v11744_v42 = vrot.slane %v3076_v33, %v11580_v22  ;;  %v11760_v33 = vrot.slane %v3061_v62, %v11603_v45 }
  0x68   : > { %465 = vrot.lane.b32.xlu1 %v369_v32, %s11383_s14  ;;  %417 = vrot.lane.b32.xlu0 %v369_v32, %s11382_s13  ;;  %16066 = vst [vmem:[#allocation8_spill] sm:$0xff] %v11729_v23  ;;  %16067 = vst [vmem:[#allocation9_spill] sm:$0xff] %v11744_v42  ;;  %v3109_v47 = vcombine.high %v11729_v23, %v11729_v23  ;;  %v3108_v62 = vcombine.high %v11744_v42, %v11744_v42 }
  0x69   : > { %16070 = vst [vmem:[#allocation12_spill] sm:$0xff] %v11760_v33  ;;  %v11797_v23 = vrot.slane %v3167_v31, %v11580_v22 }
  0x6a   : > { %v11789_v58 = vrot.slane %v3109_v47, %v11603_v45  ;;  %v3223_v47 = vrot.slane %v3209_v15, %v11580_v22  ;;  %v11823_v15 = vrot.slane %v3176_v13, %v11580_v22 }
  0x6b   : > { %16077 = vst [vmem:[#allocation19_spill] sm:$0xff] %v11797_v23 }
  0x6c   : > { %577 = vrot.lane.b32.xlu1 %v370_v43, %s11382_s13  ;;  %513 = vrot.lane.b32.xlu0 %v369_v32, %s11381_s12  ;;  %v11682_v32 = vrot.slane %v3027_v55, %v11580_v22  ;;  %16075 = vst [vmem:[#allocation17_spill] sm:$0xff] %v11789_v58  ;;  %v11808_v58 = vrot.slane %v3108_v62, %v11603_v45  ;;  %16082 = vst [vmem:[#allocation24_spill] sm:$0xff] %v11823_v15 }
  0x6d   : > { %v11843_v62 = vrot.slane %v3216_v20, %v11580_v22 }
  0x6e   : > { %16063 = vst [vmem:[#allocation5_spill] sm:$0xff] %v11682_v32  ;;  %v3059_v55 = vcombine.high %v11682_v32, %v11682_v32  ;;  %16079 = vst [vmem:[#allocation21_spill] sm:$0xff] %v11808_v58 }
  0x6f   : > { %16084 = vst [vmem:[#allocation26_spill] sm:$0xff] %v11843_v62 }
  0x70   : > { %673 = vrot.lane.b32.xlu1 %v370_v43, %s11381_s12  ;;  %625 = vrot.lane.b32.xlu0 %v370_v43, %s11383_s14  ;;  %v3111_v43 = vcombine.high %v2887_v29, %v2887_v29  ;;  %v11736_v29 = vrot.slane %v3060_v52, %v11603_v45  ;;  %v11753_v52 = vrot.slane %v3059_v55, %v11603_v45 }
  0x72   : > { %16069 = vst [vmem:[#allocation11_spill] sm:$0xff] %v11753_v52 }
  0x74   : > { %467 = vrot.lane.b32.xlu1 %v371_v19, %s11383_s14  ;;  %419 = vrot.lane.b32.xlu0 %v371_v19, %s11382_s13 }
  0x78   : > { %579 = vrot.lane.b32.xlu1 %v372_v37, %s11382_s13  ;;  %515 = vrot.lane.b32.xlu0 %v371_v19, %s11381_s12  ;;  %v3125_v19 = vrot.slane %v3111_v43, %v11580_v22  ;;  %v3126_v43 = vcombine.high %v3118_v59, %v3118_v59  ;;  %v11782_v59 = vrot.slane %v3107_v44, %v11603_v45 }
  0x79   : > { %v11820_v44 = vrot.slane %v3174_v18, %v11580_v22 }
  0x7a   : > { %v11776_v56 = vrot.slane %v3126_v43, %v11580_v22  ;;  %16073 = vst [vmem:[#allocation15_spill] sm:$0xff] %v11782_v59  ;;  %v11785_v55 = vrot.slane %v3125_v19, %v11580_v22  ;;  %v11804_v59 = vrot.slane %v3175_v34, %v11580_v22  ;;  %v3224_v43 = vcombine.high %v3216_v20, %v3216_v20 }
  0x7b   : > { %16081 = vst [vmem:[#allocation23_spill] sm:$0xff] %v11820_v44 }
  0x7c   : > { %675 = vrot.lane.b32.xlu1 %v372_v37, %s11381_s12  ;;  %627 = vrot.lane.b32.xlu0 %v372_v37, %s11383_s14  ;;  %v3127_v37 = vcombine.high %v3125_v19, %v3125_v19  ;;  %16072 = vst [vmem:[#allocation14_spill] sm:$0xff] %v11776_v56  ;;  %16074 = vst [vmem:[#allocation16_spill] sm:$0xff] %v11785_v55  ;;  %v3156_v19 = vcombine.high %v11769_v40, %v11769_v40 }
  0x7d   : > { %16078 = vst [vmem:[#allocation20_spill] sm:$0xff] %v11804_v59  ;;  %v3158_v31 = vcombine.high %v11776_v56, %v11776_v56  ;;  %v3157_v34 = vcombine.high %v11785_v55, %v11785_v55  ;;  %v3225_v56 = vcombine.high %v3223_v47, %v3223_v47  ;;  %v11853_v2 = vrot.slane %v3224_v43, %v11580_v22  ;;  %v375_v55 = vld [vmem:[%s11449_s11 + $0xa0] sm:$0xff] }
  0x7e   : > { %v11794_v51 = vrot.slane %v3127_v37, %v11580_v22  ;;  %v11811_v37 = vrot.slane %v3110_v30, %v11603_v45  ;;  %v11838_v13 = vrot.slane %v3156_v19, %v11603_v45  ;;  %v3207_v30 = vcombine.high %v11804_v59, %v11804_v59 }
  0x7f   : > { %v11846_v40 = vrot.slane %v3158_v31, %v11603_v45  ;;  %16086 = vst [vmem:[#allocation28_spill] sm:$0xff] %v11853_v2  ;;  %v11858_v20 = vrot.slane %v3157_v34, %v11603_v45  ;;  %v3206_v19 = vcombine.high %v11820_v44, %v11820_v44  ;;  %v3208_v31 = vcombine.high %v11823_v15, %v11823_v15 }
  0x80   : > { %469 = vrot.lane.b32.xlu1 %v373_v24, %s11383_s14  ;;  %421 = vrot.lane.b32.xlu0 %v373_v24, %s11382_s13  ;;  %16076 = vst [vmem:[#allocation18_spill] sm:$0xff] %v11794_v51  ;;  %16080 = vst [vmem:[#allocation22_spill] sm:$0xff] %v11811_v37  ;;  %v3159_v37 = vcombine.high %v11794_v51, %v11794_v51  ;;  %v11885_v43 = vrot.slane %v3225_v56, %v11580_v22 }
  0x81   : > { %16083 = vst [vmem:[#allocation25_spill] sm:$0xff] %v11838_v13  ;;  %16085 = vst [vmem:[#allocation27_spill] sm:$0xff] %v11846_v40  ;;  %v11877_v40 = vrot.slane %v3207_v30, %v11603_v45  ;;  %v3254_v13 = vcombine.high %v11843_v62, %v11843_v62  ;;  %v3258_v59 = vcombine.high %v2890_v17, %v2890_v17 }
  0x82   : > { %16087 = vst [vmem:[#allocation29_spill] sm:$0xff] %v11858_v20  ;;  %v11867_v42 = vrot.slane %v3159_v37, %v11603_v45  ;;  %v11882_v37 = vrot.slane %v3223_v47, %v11580_v22  ;;  %16092 = vst [vmem:[#allocation34_spill] sm:$0xff] %v11885_v43  ;;  %v11897_v30 = vrot.slane %v3206_v19, %v11603_v45 }
  0x83   : > { %16090 = vst [vmem:[#allocation32_spill] sm:$0xff] %v11877_v40  ;;  %v11900_v56 = vrot.slane %v3208_v31, %v11603_v45  ;;  %v376_v40 = vld [vmem:[%s11449_s11 + $0xa8] sm:$0xff]  ;;  %v11912_v47 = vrot.slane %v3254_v13, %v11603_v45  ;;  %v3272_v62 = vrot.slane %v3258_v59, %v11580_v22 }
  0x84   : > { %581 = vrot.lane.b32.xlu1 %v374_v61, %s11382_s13  ;;  %517 = vrot.lane.b32.xlu0 %v373_v24, %s11381_s12  ;;  %v3205_v24 = vcombine.high %v11797_v23, %v11797_v23  ;;  %16088 = vst [vmem:[#allocation30_spill] sm:$0xff] %v11867_v42  ;;  %16091 = vst [vmem:[#allocation33_spill] sm:$0xff] %v11882_v37  ;;  %v3265_v42 = vrot.slane %v2890_v17, %v11580_v22 }
  0x85   : > { %16093 = vst [vmem:[#allocation35_spill] sm:$0xff] %v11897_v30  ;;  %16094 = vst [vmem:[#allocation36_spill] sm:$0xff] %v11900_v56  ;;  %v3255_v31 = vcombine.high %v11882_v37, %v11882_v37  ;;  %v377_v37 = vld [vmem:[%s11449_s11 + $0xb0] sm:$0xff] }
  0x86   : > { %v11833_v58 = vpop.permute.xlu1 %499  ;;  %v11835_v18 = vpop.permute.xlu0 %403  ;;  %v11874_v34 = vrot.slane %v3205_v24, %v11603_v45  ;;  %16095 = vst [vmem:[#allocation37_spill] sm:$0xff] %v11912_v47 }
  0x87   : > { %v723_v24 = vcombine.low %v11835_v18, %v11833_v58 }
  0x88   : > { %677 = vrot.lane.b32.xlu1 %v374_v61, %s11381_s12  ;;  %629 = vrot.lane.b32.xlu0 %v374_v61, %s11383_s14  ;;  %16089 = vst [vmem:[#allocation31_spill] sm:$0xff] %v11874_v34  ;;  %v3256_v34 = vcombine.high %v11853_v2, %v11853_v2 }
  0x89   : > { %v731_v56 = vrot.slane %v723_v24, %v11612_v50  ;;  %v3274_v24 = vcombine.high %v3272_v62, %v3272_v62 }
  0x8a   : > { %v564_v20 = vpop.permute.xlu1 %563  ;;  %v452_v51 = vpop.permute.xlu0 %451  ;;  %v11922_v17 = vrot.slane %v3256_v34, %v11603_v45  ;;  %v11946_v34 = vrot.slane %v3255_v31, %v11603_v45 }
  0x8b   : > { %v707_v61 = vcombine.low %v11452_v0, %v452_v51  ;;  %v708_v44 = vcombine.high %v11452_v0, %v452_v51  ;;  %v3257_v0 = vcombine.high %v11885_v43, %v11885_v43  ;;  %v724_v51 = vcombine.high %v11835_v18, %v11833_v58 }
  0x8c   : > { %471 = vrot.lane.b32.xlu1 %v375_v55, %s11383_s14  ;;  %423 = vrot.lane.b32.xlu0 %v375_v55, %s11382_s13  ;;  %16096 = vst [vmem:[#allocation38_spill] sm:$0xff] %v11922_v17  ;;  %v3273_v18 = vcombine.high %v3265_v42, %v3265_v42  ;;  %16097 = vst [vmem:[#allocation39_spill] sm:$0xff] %v11946_v34 }
  0x8d   : > { %v715_v23 = vrot.slane %v707_v61, %v11612_v50  ;;  %v11930_v30 = vrot.slane %v708_v44, %v11612_v50  ;;  %v11956_v17 = vrot.slane %v3257_v0, %v11603_v45 }
  0x8e   : > { %v660_v33 = vpop.permute.xlu1 %659  ;;  %v612_v52 = vpop.permute.xlu0 %611  ;;  %v11959_v31 = vrot.slane %v3273_v18, %v11580_v22 }
  0x8f   : > { %v755_v19 = vcombine.low %v564_v20, %v660_v33  ;;  %v756_v2 = vcombine.high %v564_v20, %v660_v33  ;;  %v739_v13 = vcombine.low %v11459_v1, %v612_v52  ;;  %v740_v47 = vcombine.high %v11459_v1, %v612_v52  ;;  %16098 = vst [vmem:[#allocation40_spill] sm:$0xff] %v11956_v17 }
  0x90   : > { %583 = vrot.lane.b32.xlu1 %v376_v40, %s11382_s13  ;;  %519 = vrot.lane.b32.xlu0 %v375_v55, %s11381_s12  ;;  %v772_v44 = vcombine.high %v715_v23, %v731_v56  ;;  %v11962_v55 = vrot.slane %v3272_v62, %v11580_v22  ;;  %v11972_v62 = vrot.slane %v3274_v24, %v11580_v22 }
  0x91   : > { %v763_v59 = vrot.slane %v755_v19, %v11612_v50  ;;  %v11937_v33 = vrot.slane %v756_v2, %v11612_v50  ;;  %v747_v1 = vrot.slane %v739_v13, %v11612_v50  ;;  %v754_v52 = vrot.slane %v740_v47, %v11612_v50 }
  0x92   : > { %v454_v20 = vpop.permute.xlu1 %453  ;;  %v11941_v61 = vpop.permute.xlu0 %405  ;;  %v738_v19 = vrot.slane %v724_v51, %v11612_v50  ;;  %v11951_v13 = vrot.slane %v3265_v42, %v11580_v22  ;;  %v771_v47 = vcombine.low %v715_v23, %v731_v56  ;;  %v786_v0 = vrot.slane %v772_v44, %v11625_v57 }
  0x93   : > { %v803_v2 = vcombine.low %v747_v1, %v763_v59  ;;  %v804_v58 = vcombine.high %v747_v1, %v763_v59  ;;  %v819_v42 = vcombine.low %v754_v52, %v11937_v33  ;;  %v843_v23 = vcombine.low %v11476_v4, %v454_v20 }
  0x94   : > { %679 = vrot.lane.b32.xlu1 %v376_v40, %s11381_s12  ;;  %631 = vrot.lane.b32.xlu0 %v376_v40, %s11383_s14  ;;  %v787_v51 = vcombine.low %v11930_v30, %v738_v19  ;;  %v788_v17 = vcombine.high %v11930_v30, %v738_v19  ;;  %v779_v24 = vrot.slane %v771_v47, %v11625_v57  ;;  %v378_v30 = vld [vmem:[%s11449_s11 + $0xb8] sm:$0xff] }
  0x95   : > { %v818_v59 = vrot.slane %v804_v58, %v11625_v57  ;;  %v811_v18 = vrot.slane %v803_v2, %v11625_v57  ;;  %v844_v2 = vcombine.high %v11476_v4, %v454_v20  ;;  %v820_v22 = vcombine.high %v754_v52, %v11937_v33 }
  0x96   : > { %v566_v56 = vpop.permute.xlu1 %565  ;;  %v502_v40 = vpop.permute.xlu0 %501  ;;  %v795_v19 = vrot.slane %v787_v51, %v11625_v57  ;;  %v827_v58 = vrot.slane %v819_v42, %v11625_v57  ;;  %v851_v34 = vrot.slane %v843_v23, %v11612_v50  ;;  %v802_v33 = vrot.slane %v788_v17, %v11625_v57  ;;  %v12003_v23 = vld [vmem:[%s11501_s22 + $0x8] sm:$0xff]  }
  0x97   : > { %v859_v1 = vcombine.low %v11941_v61, %v502_v40  ;;  %v837_v43 = vcombine.low %v786_v0, %v818_v59  ;;  %v838_v15 = vcombine.high %v786_v0, %v818_v59  ;;  %v860_v59 = vcombine.high %v11941_v61, %v502_v40  ;;  %11291 = vmatprep.subr.bf16.mxu1 %v12003_v23 }
  0x98   : > { %473 = vrot.lane.b32.xlu1 %v377_v37, %s11383_s14  ;;  %425 = vrot.lane.b32.xlu0 %v377_v37, %s11382_s13  ;;  %v835_v20 = vcombine.low %v779_v24, %v811_v18  ;;  %v836_v47 = vcombine.high %v779_v24, %v811_v18  ;;  %v11997_v52 = vrot.slane %v844_v2, %v11612_v50 }
  0x99   : > { %v867_v4 = vrot.slane %v859_v1, %v11612_v50  ;;  %v4341_v42 = vsub.f32 %v837_v43, %v11642_v3  ;;  %v4342_v61 = vsub.f32 %v838_v15, %v11652_v16  ;;  %v840_v18 = vcombine.high %v795_v19, %v827_v58  ;;  %11293 = vmatpush3.bf16.msra.mxu1 %v12003_v23 }
  0x9a   : > { %v662_v12 = vpop.permute.xlu1 %661  ;;  %v614_v44 = vpop.permute.xlu0 %613  ;;  %v12013_v3 = vrot.slane %v860_v59, %v11612_v50  ;;  %v16099_v16 = vrot.slane %v11594_v39, %v11603_v45 }
  0x9b   : > { %v891_v0 = vcombine.low %v566_v56, %v662_v12  ;;  %v892_v36 = vcombine.high %v566_v56, %v662_v12  ;;  %v875_v32 = vcombine.low %v11483_v5, %v614_v44  ;;  %v876_v51 = vcombine.high %v11483_v5, %v614_v44 }
  0x9c   : > { %585 = vrot.lane.b32.xlu1 %v378_v30, %s11382_s13  ;;  %521 = vrot.lane.b32.xlu0 %v377_v37, %s11381_s12  ;;  %v834_v12 = vrot.slane %v820_v22, %v11625_v57  ;;  %v839_v56 = vcombine.low %v795_v19, %v827_v58  ;;  %v4339_v15 = vsub.f32 %v835_v20, %v16099_v16 }
  0x9d   : > { %v899_v5 = vrot.slane %v891_v0, %v11612_v50  ;;  %v883_v40 = vrot.slane %v875_v32, %v11612_v50  ;;  %v16100_v22 = vrot.slane %v11600_v41, %v11603_v45  ;;  %v907_v37 = vcombine.low %v851_v34, %v867_v4 }
  0x9e   : > { %v12008_v1 = vpop.permute.xlu1 %455  ;;  %v12010_v17 = vpop.permute.xlu0 %407  ;;  %v12023_v32 = vrot.slane %v892_v36, %v11612_v50  ;;  %v12026_v44 = vrot.slane %v876_v51, %v11612_v50  ;;  %v908_v2 = vcombine.high %v851_v34, %v867_v4  ;;  %v4468_v39 = vpack.c.bf16 %v4342_v61, %v4341_v42 }
  0x9f   : > { %v4340_v43 = vsub.f32 %v836_v47, %v16100_v22  ;;  %v939_v58 = vcombine.low %v883_v40, %v899_v5  ;;  %v3305_v41 = vcombine.high %v11959_v31, %v11959_v31  ;;  %v841_v19 = vcombine.low %v802_v33, %v834_v12 }
  0xa0   : > { %681 = vrot.lane.b32.xlu1 %v378_v30, %s11381_s12  ;;  %633 = vrot.lane.b32.xlu0 %v378_v30, %s11383_s14  ;;  %v940_v59 = vcombine.high %v883_v40, %v899_v5  ;;  %v3304_v0 = vcombine.high %v11962_v55, %v11962_v55  ;;  %v842_v34 = vcombine.high %v802_v33, %v834_v12  ;;  %v379_v5 = vld [vmem:[%s11449_s11 + $0xc0] sm:$0xff] }
  0xa1   : > { %v4467_v24 = vpack.c.bf16 %v4340_v43, %v4339_v15  ;;  %v947_v36 = vrot.slane %v939_v58, %v11625_v57  ;;  %v923_v4 = vcombine.low %v11997_v52, %v12013_v3  ;;  %v16101_v30 = vrot.slane %v11606_v46, %v11603_v45 }
  0xa2   : > { %v12033_v20 = vpop.permute.xlu1 %567  ;;  %v504_v47 = vpop.permute.xlu0 %503  ;;  %v16102_v42 = vrot.slane %v11609_v48, %v11603_v45  ;;  %v915_v40 = vrot.slane %v907_v37, %v11625_v57  ;;  %v955_v16 = vcombine.low %v12026_v44, %v12023_v32  ;;  %v979_v33 = vcombine.low %v11496_v6, %v12008_v1 }
  0xa3   : > { %10874 = vmatprep.mubr.msk.bf16.mxu0 %vm4547_vm0, %v4467_v24  ;;  %v4343_v51 = vsub.f32 %v839_v56, %v16101_v30  ;;  %v995_v12 = vcombine.low %v12010_v17, %v504_v47  ;;  %v922_v46 = vrot.slane %v908_v2, %v11625_v57  ;;  %v924_v56 = vcombine.high %v11997_v52, %v12013_v3  ;;  %v380_v30 = vld [vmem:[%s11449_s11 + $0xc8] sm:$0xff] }
  0xa4   : > { %v4344_v61 = vsub.f32 %v840_v18, %v16102_v42  ;;  %10875 = vmatmul.mubr.msk.bf16.vlgmr.msra.gmra.mrb[0].mxu0 %vm4547_vm0, %v4468_v39  ;;  %v16103_v48 = vcombine.high %v11951_v13, %v11951_v13  ;;  %v3306_v15 = vcombine.high %v11972_v62, %v11972_v62  ;;  %v954_v22 = vrot.slane %v940_v59, %v11625_v57 }
  0xa5   : > { %11003 = vmatpush3.bf16.msra.mxu0 %v11504_v7  ;;  %v971_v43 = vcombine.low %v915_v40, %v947_v36  ;;  %v4345_v2 = vsub.f32 %v841_v19, %v11660_v21  ;;  %475 = vrot.lane.b32.xlu1 %v379_v5, %s11383_s14  ;;  %v972_v7 = vcombine.high %v915_v40, %v947_v36 }
  0xa6   : > { %v12063_v18 = vrot.slane %v16103_v48, %v11603_v45  ;;  %v4469_v37 = vpack.c.bf16 %v4344_v61, %v4343_v51  ;;  %v664_v58 = vpop.permute.xlu1 %663  ;;  %v616_v52 = vpop.permute.xlu0 %615  ;;  %v4346_v24 = vsub.f32 %v842_v34, %v11666_v25  ;;  %427 = vrot.lane.b32.xlu0 %v379_v5, %s11382_s13  ;;  %v931_v59 = vrot.slane %v923_v4, %v11625_v57 }
  0xa7   : > { %v1027_v3 = vcombine.low %v12033_v20, %v664_v58  ;;  %v1011_v39 = vcombine.low %v11511_v8, %v616_v52  ;;  %v963_v51 = vrot.slane %v955_v16, %v11625_v57  ;;  %v12078_v42 = vrot.slane %v979_v33, %v11612_v50  ;;  %11004 = vmatprep.subr.bf16.mxu0 %v12003_v23 }
  0xa8   : > { %10878 = vmatprep.mubr.msk.bf16.mxu0 %vm4547_vm0, %v4469_v37  ;;  %v12082_v21 = vrot.slane %v995_v12, %v11612_v50  ;;  %v956_v25 = vcombine.high %v12026_v44, %v12023_v32  ;;  %v980_v19 = vcombine.high %v11496_v6, %v12008_v1  ;;  %v996_v36 = vcombine.high %v12010_v17, %v504_v47 }
  0xa9   : > { %v12090_v34 = vrot.slane %v1027_v3, %v11612_v50  ;;  %v973_v4 = vcombine.low %v922_v46, %v954_v22  ;;  %v974_v61 = vcombine.high %v922_v46, %v954_v22  ;;  %v1028_v40 = vcombine.high %v12033_v20, %v664_v58  ;;  %587 = vrot.lane.b32.xlu1 %v380_v30, %s11382_s13 }
  0xaa   : > { %v4470_v16 = vpack.c.bf16 %v4346_v24, %v4345_v2  ;;  %v12094_v33 = vpop.permute.xlu1 %457  ;;  %v12096_v12 = vpop.permute.xlu0 %409  ;;  %v1012_v6 = vcombine.high %v11511_v8, %v616_v52  ;;  %v1019_v1 = vrot.slane %v1011_v39, %v11612_v50  ;;  %v16104_v17 = vrot.slane %v11621_v54, %v11603_v45  ;;  %523 = vrot.lane.b32.xlu0 %v379_v5, %s11381_s12 }
  0xab   : > { %v16105_v44 = vrot.slane %v11632_v60, %v11603_v45  ;;  %v975_v20 = vcombine.low %v931_v59, %v963_v51  ;;  %v976_v46 = vcombine.high %v931_v59, %v963_v51  ;;  %v1043_v48 = vcombine.low %v12078_v42, %v12082_v21  ;;  %11005 = vmatpush3.bf16.msra.mxu0 %v12003_v23 }
  0xac   : > { %v4347_v32 = vsub.f32 %v971_v43, %v16104_v17  ;;  %10879 = vmatmul.mubr.msk.bf16.gmra.mrb[4].mxu0 %vm4547_vm0, %v4470_v16  ;;  %v12115_v8 = vrot.slane %v3305_v41, %v11603_v45  ;;  %v12118_v54 = vrot.slane %v980_v19, %v11612_v50  ;;  %v12121_v60 = vrot.slane %v996_v36, %v11612_v50 }
  0xad   : > { %v4348_v47 = vsub.f32 %v972_v7, %v16105_v44  ;;  %v1075_v5 = vcombine.low %v1019_v1, %v12090_v34  ;;  %v3942_v22 = vrot.slane %v11962_v55, %v11603_v45  ;;  %v970_v43 = vrot.slane %v956_v25, %v11625_v57  ;;  %683 = vrot.lane.b32.xlu1 %v380_v30, %s11381_s12  ;;  %v382_v44 = vld [vmem:[%s11449_s11 + $0xd8] sm:$0xff] }
  0xae   : > { %v4349_v41 = vsub.f32 %v973_v4, %v11690_v35  ;;  %v4350_v58 = vsub.f32 %v974_v61, %v11697_v38  ;;  %v12130_v2 = vpop.permute.xlu1 %569  ;;  %v12132_v52 = vpop.permute.xlu0 %505  ;;  %v938_v7 = vrot.slane %v924_v56, %v11625_v57  ;;  %v1044_v3 = vcombine.high %v12078_v42, %v12082_v21  ;;  %635 = vrot.lane.b32.xlu0 %v380_v30, %s11383_s14  ;;  %v381_v35 = vld [vmem:[%s11449_s11 + $0xd0] sm:$0xff] }
  0xaf   : > { %v4471_v37 = vpack.c.bf16 %v4348_v47, %v4347_v32  ;;  %v1042_v23 = vrot.slane %v1028_v40, %v11612_v50  ;;  %v1026_v24 = vrot.slane %v1012_v6, %v11612_v50  ;;  %v1051_v38 = vrot.slane %v1043_v48, %v11625_v57 }
  0xb0   : > { %v1083_v39 = vrot.slane %v1075_v5, %v11625_v57  ;;  %v16106_v59 = vrot.slane %v11639_v63, %v11603_v45  ;;  %v16107_v51 = vrot.slane %v11647_v14, %v11603_v45  ;;  %v1059_v21 = vcombine.low %v12118_v54, %v12121_v60 }
  0xb1   : > { %10882 = vmatprep.mubr.msk.bf16.mxu0 %vm4547_vm0, %v4471_v37  ;;  %v1115_v30 = vcombine.low %v11525_v9, %v12094_v33  ;;  %v1131_v25 = vcombine.low %v12096_v12, %v12132_v52  ;;  %v3946_v19 = vrot.slane %v11972_v62, %v11603_v45  ;;  %v977_v36 = vcombine.low %v938_v7, %v970_v43 }
  0xb2   : > { %v4351_v56 = vsub.f32 %v975_v20, %v16106_v59  ;;  %v4352_v42 = vsub.f32 %v976_v46, %v16107_v51  ;;  %v978_v63 = vcombine.high %v938_v7, %v970_v43  ;;  %v1076_v4 = vcombine.high %v1019_v1, %v12090_v34  ;;  %v666_v14 = vpop.permute.xlu1 %665  ;;  %v618_v40 = vpop.permute.xlu0 %617  ;;  %477 = vrot.lane.b32.xlu1 %v381_v35, %s11383_s14 }
  0xb3   : > { %v4472_v61 = vpack.c.bf16 %v4350_v58, %v4349_v41  ;;  %v1060_v16 = vcombine.high %v12118_v54, %v12121_v60  ;;  %v1091_v6 = vcombine.low %v1026_v24, %v1042_v23  ;;  %v1163_v32 = vcombine.low %v12130_v2, %v666_v14  ;;  %429 = vrot.lane.b32.xlu0 %v381_v35, %s11382_s13 }
  0xb4   : > { %v4473_v17 = vpack.c.bf16 %v4352_v42, %v4351_v56  ;;  %v1058_v47 = vrot.slane %v1044_v3, %v11625_v57  ;;  %v1107_v20 = vcombine.low %v1051_v38, %v1083_v39  ;;  %v1108_v46 = vcombine.high %v1051_v38, %v1083_v39 }
  0xb5   : > { %10883 = vmatmul.mubr.msk.bf16.gmra.mrb[8].mxu0 %vm4547_vm0, %v4472_v61  ;;  %v1147_v34 = vcombine.low %v11532_v10, %v618_v40  ;;  %v1067_v1 = vrot.slane %v1059_v21, %v11625_v57  ;;  %v1092_v48 = vcombine.high %v1026_v24, %v1042_v23  ;;  %v1123_v54 = vrot.slane %v1115_v30, %v11612_v50 }
  0xb6   : > { %10886 = vmatprep.mubr.msk.bf16.mxu0 %vm4547_vm0, %v4473_v17  ;;  %v1139_v60 = vrot.slane %v1131_v25, %v11612_v50  ;;  %v1090_v5 = vrot.slane %v1076_v4, %v11625_v57  ;;  %v1116_v43 = vcombine.high %v11525_v9, %v12094_v33  ;;  %v4353_v37 = vsub.f32 %v977_v36, %v11705_v49  ;;  %v12178_v58 = vpop.permute.xlu1 %459  ;;  %v12180_v7 = vpop.permute.xlu0 %411 }
  0xb7   : > { %v4354_v41 = vsub.f32 %v978_v63, %v11712_v53  ;;  %589 = vrot.lane.b32.xlu1 %v382_v44, %s11382_s13  ;;  %v1099_v3 = vrot.slane %v1091_v6, %v11625_v57  ;;  %v1132_v23 = vcombine.high %v12096_v12, %v12132_v52  ;;  %v1164_v24 = vcombine.high %v12130_v2, %v666_v14  ;;  %v383_v63 = vld [vmem:[%s11449_s11 + $0xe0] sm:$0xff] }
  0xb8   : > { %v1171_v38 = vrot.slane %v1163_v32, %v11612_v50  ;;  %525 = vrot.lane.b32.xlu0 %v381_v35, %s11381_s12  ;;  %v1148_v9 = vcombine.high %v11532_v10, %v618_v40  ;;  %v1155_v49 = vrot.slane %v1147_v34, %v11612_v50  ;;  %v16108_v53 = vrot.slane %v11671_v27, %v11603_v45 }
  0xb9   : > { %v16109_v39 = vrot.slane %v11674_v28, %v11603_v45  ;;  %v12198_v12 = vrot.slane %v1060_v16, %v11625_v57  ;;  %v12201_v2 = vrot.slane %v1092_v48, %v11625_v57  ;;  %v1179_v52 = vcombine.low %v1123_v54, %v1139_v60  ;;  %v16110_v48 = vld [vmem:[#allocation5_spill] sm:$0xff] }
  0xba   : > { %v4355_v33 = vsub.f32 %v1107_v20, %v16108_v53  ;;  %v12207_v10 = vrot.slane %v3304_v0, %v11603_v45  ;;  %v1109_v27 = vcombine.low %v1058_v47, %v1090_v5  ;;  %v1110_v35 = vcombine.high %v1058_v47, %v1090_v5  ;;  %v12210_v51 = vpop.permute.xlu1 %571  ;;  %v12212_v42 = vpop.permute.xlu0 %507 }
  0xbb   : > { %v4356_v59 = vsub.f32 %v1108_v46, %v16109_v39  ;;  %v1130_v56 = vrot.slane %v1116_v43, %v11612_v50  ;;  %v4474_v28 = vpack.c.bf16 %v4354_v41, %v4353_v37  ;;  %685 = vrot.lane.b32.xlu1 %v382_v44, %s11381_s12  ;;  %v1111_v21 = vcombine.low %v1067_v1, %v1099_v3 }
  0xbc   : > { %v1112_v30 = vcombine.high %v1067_v1, %v1099_v3  ;;  %v1211_v25 = vcombine.low %v1155_v49, %v1171_v38  ;;  %637 = vrot.lane.b32.xlu0 %v382_v44, %s11383_s14  ;;  %v1146_v0 = vrot.slane %v1132_v23, %v11612_v50  ;;  %v1180_v4 = vcombine.high %v1123_v54, %v1139_v60 }
  0xbd   : > { %v4475_v36 = vpack.c.bf16 %v4356_v59, %v4355_v33  ;;  %v1178_v61 = vrot.slane %v1164_v24, %v11612_v50  ;;  %10887 = vmatmul.mubr.msk.bf16.gmra.mrb[12].mxu0 %vm4547_vm0, %v4474_v28  ;;  %v1162_v14 = vrot.slane %v1148_v9, %v11612_v50  ;;  %v1113_v40 = vcombine.low %v12198_v12, %v12201_v2 }
  0xbe   : > { %v1114_v16 = vcombine.high %v12198_v12, %v12201_v2  ;;  %v1187_v6 = vrot.slane %v1179_v52, %v11625_v57  ;;  %v12231_v17 = vrot.slane %v3306_v15, %v11603_v45  ;;  %v1212_v32 = vcombine.high %v1155_v49, %v1171_v38  ;;  %v668_v46 = vpop.permute.xlu1 %667  ;;  %v620_v34 = vpop.permute.xlu0 %619  ;;  %v16112_v15 = vld [vmem:[#allocation6_spill] sm:$0xff] }
  0xbf   : > { %10890 = vmatprep.mubr.msk.bf16.mxu0 %vm4547_vm0, %v4475_v36  ;;  %v1251_v44 = vcombine.low %v11543_v11, %v12178_v58  ;;  %v4357_v47 = vsub.f32 %v1109_v27, %v11733_v26  ;;  %v4358_v20 = vsub.f32 %v1110_v35, %v11736_v29  ;;  %479 = vrot.lane.b32.xlu1 %v383_v63, %s11383_s14  ;;  %v384_v26 = vld [vmem:[%s11449_s11 + $0xe8] sm:$0xff]  ;;  %v16114_v49 = vld [vmem:[#allocation2_spill] sm:$0xff] }
  0xc0   : > { %v1219_v1 = vrot.slane %v1211_v25, %v11625_v57  ;;  %v16111_v54 = vrot.slane %v16110_v48, %v11603_v45  ;;  %v16113_v5 = vrot.slane %v16112_v15, %v11603_v45  ;;  %v1267_v37 = vcombine.low %v12180_v7, %v12212_v42  ;;  %431 = vrot.lane.b32.xlu0 %v383_v63, %s11382_s13  ;;  %v16119_v48 = vld [vmem:[#allocation8_spill] sm:$0xff] }
  0xc1   : > { %v12250_v29 = vrot.slane %v1180_v4, %v11625_v57  ;;  %v1195_v41 = vcombine.low %v1130_v56, %v1146_v0  ;;  %v1196_v3 = vcombine.high %v1130_v56, %v1146_v0  ;;  %v1227_v23 = vcombine.low %v1162_v14, %v1178_v61 }
  0xc2   : > { %v4359_v60 = vsub.f32 %v1111_v21, %v16111_v54  ;;  %v4360_v43 = vsub.f32 %v1112_v30, %v16113_v5  ;;  %v1228_v24 = vcombine.high %v1162_v14, %v1178_v61  ;;  %v1252_v38 = vcombine.high %v11543_v11, %v12178_v58  ;;  %v12264_v2 = vpop.permute.xlu1 %461  ;;  %v12266_v52 = vpop.permute.xlu0 %413  ;;  %v16116_v14 = vld [vmem:[#allocation12_spill] sm:$0xff] }
  0xc3   : > { %v1299_v9 = vcombine.low %v12210_v51, %v668_v46  ;;  %v1283_v53 = vcombine.low %v16114_v49, %v620_v34  ;;  %v12257_v33 = vrot.slane %v1212_v32, %v11625_v57  ;;  %v12260_v39 = vrot.slane %v1251_v44, %v11612_v50  ;;  %591 = vrot.lane.b32.xlu1 %v384_v26, %s11382_s13 }
  0xc4   : > { %v4476_v59 = vpack.c.bf16 %v4358_v20, %v4357_v47  ;;  %v1268_v12 = vcombine.high %v12180_v7, %v12212_v42  ;;  %v1243_v11 = vcombine.low %v1187_v6, %v1219_v1  ;;  %v1244_v58 = vcombine.high %v1187_v6, %v1219_v1  ;;  %527 = vrot.lane.b32.xlu0 %v383_v63, %s11381_s12  ;;  %v11334_v42 = vld [vmem:[%s11449_s11 + $0x48] sm:$0xff] }
  0xc5   : > { %v4477_v27 = vpack.c.bf16 %v4360_v43, %v4359_v60  ;;  %v1275_v35 = vrot.slane %v1267_v37, %v11612_v50  ;;  %v1203_v56 = vrot.slane %v1195_v41, %v11625_v57  ;;  %v1235_v28 = vrot.slane %v1227_v23, %v11625_v57 }
  0xc6   : > { %10891 = vmatmul.mubr.msk.bf16.gmra.mrb[16].mxu0 %vm4547_vm0, %v4476_v59  ;;  %v1300_v7 = vcombine.high %v12210_v51, %v668_v46  ;;  %v1284_v21 = vcombine.high %v11334_v42, %v620_v34  ;;  %v12277_v30 = vrot.slane %v1196_v3, %v11625_v57  ;;  %v12280_v25 = vrot.slane %v1228_v24, %v11625_v57  ;;  %v16115_v51 = vld [vmem:[#allocation11_spill] sm:$0xff]  ;;  %v12289_v32 = vpop.permute.xlu1 %573  ;;  %v510_v44 = vpop.permute.xlu0 %509  ;;  %v11335_v59 = vld [vmem:[%s11449_s11 + $0x50] sm:$0xff] }
  0xc7   : > { %10894 = vmatprep.mubr.msk.bf16.mxu0 %vm4547_vm0, %v4477_v27  ;;  %v1307_v36 = vrot.slane %v1299_v9, %v11612_v50  ;;  %v1291_v63 = vrot.slane %v1283_v53, %v11612_v50  ;;  %v1266_v0 = vrot.slane %v1252_v38, %v11612_v50  ;;  %v1282_v4 = vrot.slane %v1268_v12, %v11612_v50  ;;  %v16117_v46 = vld [vmem:[#allocation7_spill] sm:$0xff] }
  0xc8   : > { %v4361_v61 = vsub.f32 %v1113_v40, %v16115_v51  ;;  %v4362_v6 = vsub.f32 %v1114_v16, %v16116_v14  ;;  %687 = vrot.lane.b32.xlu1 %v384_v26, %s11381_s12  ;;  %v1245_v47 = vcombine.low %v12250_v29, %v12257_v33  ;;  %v1315_v20 = vcombine.low %v12260_v39, %v1275_v35  ;;  %v385_v16 = vld [vmem:[%s11449_s11 + $0xf0] sm:$0xff]  ;;  %v16125_v51 = vld [vmem:[#allocation10_spill] sm:$0xff] }
  0xc9   : > { %v16118_v34 = vrot.slane %v16117_v46, %v11603_v45  ;;  %v16120_v54 = vrot.slane %v16119_v48, %v11603_v45  ;;  %639 = vrot.lane.b32.xlu0 %v384_v26, %s11383_s14  ;;  %v1246_v60 = vcombine.high %v12250_v29, %v12257_v33  ;;  %v1247_v15 = vcombine.low %v1203_v56, %v1235_v28  ;;  %v11336_v46 = vld [vmem:[%s11449_s11 + $0x58] sm:$0xff] }
  0xca   : > { %v1314_v5 = vrot.slane %v1300_v7, %v11612_v50  ;;  %v1298_v43 = vrot.slane %v1284_v21, %v11612_v50  ;;  %v1248_v37 = vcombine.high %v1203_v56, %v1235_v28  ;;  %v1249_v41 = vcombine.low %v12277_v30, %v12280_v25  ;;  %v12312_v9 = vpop.permute.xlu1 %669  ;;  %v12314_v49 = vpop.permute.xlu0 %621  ;;  %v16122_v21 = vld [vmem:[#allocation17_spill] sm:$0xff] }
  0xcb   : > { %v4363_v1 = vsub.f32 %v1243_v11, %v16118_v34  ;;  %v4364_v40 = vsub.f32 %v1244_v58, %v16120_v54  ;;  %v1250_v3 = vcombine.high %v12277_v30, %v12280_v25  ;;  %v1347_v23 = vcombine.low %v1291_v63, %v1307_v36 }
  0xcc   : > { %v1316_v26 = vcombine.high %v12260_v39, %v1275_v35  ;;  %v1331_v24 = vcombine.low %v1266_v0, %v1282_v4  ;;  %v1332_v38 = vcombine.high %v1266_v0, %v1282_v4  ;;  %v4478_v29 = vpack.c.bf16 %v4362_v6, %v4361_v61  ;;  %481 = vrot.lane.b32.xlu1 %v385_v16, %s11383_s14  ;;  %v386_v39 = vld [vmem:[%s11449_s11 + $0xf8] sm:$0xff]  ;;  %v16121_v35 = vld [vmem:[#allocation15_spill] sm:$0xff] }
  0xcd   : > { %v12318_v53 = vrot.slane %v1315_v20, %v11625_v57  ;;  %v4479_v33 = vpack.c.bf16 %v4364_v40, %v4363_v1  ;;  %v1387_v12 = vcombine.low %v11335_v59, %v12264_v2  ;;  %v1388_v11 = vcombine.high %v11335_v59, %v12264_v2  ;;  %433 = vrot.lane.b32.xlu0 %v385_v16, %s11382_s13 }
  0xce   : > { %10895 = vmatmul.mubr.msk.bf16.gmra.mrb[20].mxu0 %vm4547_vm0, %v4478_v29  ;;  %v1348_v58 = vcombine.high %v1291_v63, %v1307_v36  ;;  %v1363_v27 = vcombine.low %v1298_v43, %v1314_v5  ;;  %v4365_v56 = vsub.f32 %v1245_v47, %v16121_v35  ;;  %v1403_v28 = vcombine.low %v12266_v52, %v510_v44  ;;  %v16123_v36 = vld [vmem:[#allocation9_spill] sm:$0xff]  ;;  %v12342_v6 = vpop.permute.xlu1 %463  ;;  %v12344_v47 = vpop.permute.xlu0 %415 }
  0xcf   : > { %v1355_v7 = vrot.slane %v1347_v23, %v11625_v57  ;;  %v1364_v42 = vcombine.high %v1298_v43, %v1314_v5  ;;  %10898 = vmatprep.mubr.msk.bf16.mxu0 %vm4547_vm0, %v4479_v33  ;;  %v4366_v30 = vsub.f32 %v1246_v60, %v16122_v21  ;;  %v1404_v2 = vcombine.high %v12266_v52, %v510_v44  ;;  %v16127_v33 = vld [vmem:[#allocation21_spill] sm:$0xff]  ;;  %v16131_v21 = vld [vmem:[#allocation14_spill] sm:$0xff] }
  0xd0   : > { %v1330_v25 = vrot.slane %v1316_v26, %v11625_v57  ;;  %v12334_v0 = vrot.slane %v1331_v24, %v11625_v57  ;;  %v16124_v63 = vrot.slane %v16123_v36, %v11603_v45  ;;  %v16126_v61 = vrot.slane %v16125_v51, %v11603_v45  ;;  %593 = vrot.lane.b32.xlu1 %v386_v39, %s11382_s13 }
  0xd1   : > { %v12348_v52 = vrot.slane %v1332_v38, %v11625_v57  ;;  %v1395_v44 = vrot.slane %v1387_v12, %v11612_v50  ;;  %v1435_v20 = vcombine.low %v12289_v32, %v12312_v9  ;;  %v1419_v34 = vcombine.low %v11336_v46, %v12314_v49  ;;  %529 = vrot.lane.b32.xlu0 %v385_v16, %s11381_s12  ;;  %v16128_v12 = vld [vmem:[#allocation22_spill] sm:$0xff] }
  0xd2   : > { %v4367_v4 = vsub.f32 %v1247_v15, %v16124_v63  ;;  %v4368_v14 = vsub.f32 %v1248_v37, %v16126_v61  ;;  %v1362_v1 = vrot.slane %v1348_v58, %v11625_v57  ;;  %v12358_v48 = vrot.slane %v1363_v27, %v11625_v57  ;;  %v12371_v24 = vpop.permute.xlu1 %575  ;;  %v12373_v38 = vpop.permute.xlu0 %511 }
  0xd3   : > { %v1402_v54 = vrot.slane %v1388_v11, %v11612_v50  ;;  %v1411_v40 = vrot.slane %v1403_v28, %v11612_v50  ;;  %v12363_v60 = vrot.slane %v1364_v42, %v11625_v57  ;;  %v1379_v15 = vcombine.low %v12318_v53, %v1355_v7  ;;  %v16129_v28 = vld [vmem:[#allocation13_spill] sm:$0xff] }
  0xd4   : > { %v4480_v5 = vpack.c.bf16 %v4366_v30, %v4365_v56  ;;  %v1418_v43 = vrot.slane %v1404_v2, %v11612_v50  ;;  %v1380_v37 = vcombine.high %v12318_v53, %v1355_v7  ;;  %v4481_v16 = vpack.c.bf16 %v4368_v14, %v4367_v4  ;;  %689 = vrot.lane.b32.xlu1 %v386_v39, %s11381_s12 }
  0xd5   : > { %v1436_v23 = vcombine.high %v12289_v32, %v12312_v9  ;;  %v1420_v26 = vcombine.high %v11336_v46, %v12314_v49  ;;  %v1443_v29 = vrot.slane %v1435_v20, %v11612_v50  ;;  %v4369_v59 = vsub.f32 %v1249_v41, %v16127_v33  ;;  %641 = vrot.lane.b32.xlu0 %v386_v39, %s11383_s14 }
  0xd6   : > { %v4370_v11 = vsub.f32 %v1250_v3, %v16128_v12  ;;  %v1427_v53 = vrot.slane %v1419_v34, %v11612_v50  ;;  %v1381_v58 = vcombine.low %v1330_v25, %v1362_v1  ;;  %v1382_v32 = vcombine.high %v1330_v25, %v1362_v1  ;;  %10899 = vmatmul.mubr.msk.bf16.gmra.mrb[24].mxu0 %vm4547_vm0, %v4480_v5  ;;  %v672_v25 = vpop.permute.xlu1 %671  ;;  %v16133_v1 = vld [vmem:[#allocation25_spill] sm:$0xff] }
  0xd7   : > { %v1383_v9 = vcombine.low %v12334_v0, %v12358_v48  ;;  %v1451_v49 = vcombine.low %v1395_v44, %v1411_v40  ;;  %v1384_v27 = vcombine.high %v12334_v0, %v12358_v48  ;;  %v1385_v41 = vcombine.low %v12348_v52, %v12363_v60  ;;  %10902 = vmatprep.mubr.msk.bf16.mxu0 %vm4547_vm0, %v4481_v16  ;;  %v624_v0 = vpop.permute.xlu0 %623 }
  0xd8   : > { %v1452_v3 = vcombine.high %v1395_v44, %v1411_v40  ;;  %v1467_v35 = vcombine.low %v1402_v54, %v1418_v43  ;;  %v1450_v39 = vrot.slane %v1436_v23, %v11612_v50  ;;  %v1434_v56 = vrot.slane %v1420_v26, %v11612_v50  ;;  %v11337_v44 = vld [vmem:[%s11449_s11 + $0x60] sm:$0xff]  ;;  %v16134_v40 = vld [vmem:[#allocation27_spill] sm:$0xff] }
  0xd9   : > { %v16130_v7 = vrot.slane %v16129_v28, %v11603_v45  ;;  %v16132_v30 = vrot.slane %v16131_v21, %v11603_v45  ;;  %v1386_v36 = vcombine.high %v12348_v52, %v12363_v60  ;;  %v1468_v63 = vcombine.high %v1402_v54, %v1418_v43  ;;  %v16137_v28 = vld [vmem:[#allocation18_spill] sm:$0xff] }
  0xda   : > { %v4482_v4 = vpack.c.bf16 %v4370_v11, %v4369_v59  ;;  %v1483_v51 = vcombine.low %v1427_v53, %v1443_v29  ;;  %v12400_v61 = vrot.slane %v1451_v49, %v11625_v57  ;;  %v1484_v14 = vcombine.high %v1427_v53, %v1443_v29  ;;  %v11338_v29 = vld [vmem:[%s11449_s11 + $0x68] sm:$0xff] }
  0xdb   : > { %v4371_v42 = vsub.f32 %v1379_v15, %v16130_v7  ;;  %v4372_v2 = vsub.f32 %v1380_v37, %v16132_v30  ;;  %v1523_v20 = vcombine.low %v11337_v44, %v12342_v6  ;;  %v1524_v46 = vcombine.high %v11337_v44, %v12342_v6  ;;  %v12415_v37 = vpop.permute.xlu1 %465  ;;  %v12417_v16 = vpop.permute.xlu0 %417 }
  0xdc   : > { %v12406_v34 = vrot.slane %v1452_v3, %v11625_v57  ;;  %v4373_v48 = vsub.f32 %v1381_v58, %v16133_v1  ;;  %v4374_v52 = vsub.f32 %v1382_v32, %v16134_v40  ;;  %v1539_v54 = vcombine.low %v12344_v47, %v12373_v38 }
  0xdd   : > { %v12413_v60 = vrot.slane %v1467_v35, %v11625_v57  ;;  %v1499_v15 = vcombine.low %v1434_v56, %v1450_v39  ;;  %v1500_v5 = vcombine.high %v1434_v56, %v1450_v39  ;;  %v4483_v43 = vpack.c.bf16 %v4372_v2, %v4371_v42  ;;  %v16135_v35 = vld [vmem:[#allocation16_spill] sm:$0xff] }
  0xde   : > { %v1491_v6 = vrot.slane %v1483_v51, %v11625_v57  ;;  %v1540_v23 = vcombine.high %v12344_v47, %v12373_v38  ;;  %v1571_v26 = vcombine.low %v12371_v24, %v672_v25  ;;  %v1555_v33 = vcombine.low %v11338_v29, %v624_v0  ;;  %10903 = vmatmul.mubr.msk.bf16.gmra.mrb[28].mxu0 %vm4547_vm0, %v4482_v4  ;;  %v16139_v51 = vld [vmem:[#allocation29_spill] sm:$0xff] }
  0xdf   : > { %v12425_v59 = vrot.slane %v1468_v63, %v11625_v57  ;;  %v1498_v12 = vrot.slane %v1484_v14, %v11625_v57  ;;  %v1531_v11 = vrot.slane %v1523_v20, %v11612_v50  ;;  %v1538_v53 = vrot.slane %v1524_v46, %v11612_v50  ;;  %10906 = vmatprep.mubr.msk.bf16.mxu0 %vm4547_vm0, %v4483_v43  ;;  %v12446_v21 = vpop.permute.xlu1 %577  ;;  %v12448_v30 = vpop.permute.xlu0 %513  ;;  %v16140_v20 = vld [vmem:[#allocation30_spill] sm:$0xff] }
  0xe0   : > { %v4484_v58 = vpack.c.bf16 %v4374_v52, %v4373_v48  ;;  %v1547_v47 = vrot.slane %v1539_v54, %v11612_v50  ;;  %v1572_v38 = vcombine.high %v12371_v24, %v672_v25  ;;  %v1556_v32 = vcombine.high %v11338_v29, %v624_v0  ;;  %v16143_v29 = vld [vmem:[#allocation20_spill] sm:$0xff] }
  0xe1   : > { %v12435_v49 = vrot.slane %v1499_v15, %v11625_v57  ;;  %v12438_v3 = vrot.slane %v1500_v5, %v11625_v57  ;;  %v16136_v39 = vrot.slane %v16135_v35, %v11603_v45  ;;  %v16138_v7 = vrot.slane %v16137_v28, %v11603_v45  ;;  %v16146_v35 = vld [vmem:[#allocation32_spill] sm:$0xff] }
  0xe2   : > { %v1515_v24 = vcombine.low %v12400_v61, %v1491_v6  ;;  %v1554_v2 = vrot.slane %v1540_v23, %v11612_v50  ;;  %v1579_v25 = vrot.slane %v1571_v26, %v11612_v50  ;;  %v1563_v0 = vrot.slane %v1555_v33, %v11612_v50 }
  0xe3   : > { %v4375_v56 = vsub.f32 %v1383_v9, %v16136_v39  ;;  %v4376_v42 = vsub.f32 %v1384_v27, %v16138_v7  ;;  %v1516_v63 = vcombine.high %v12400_v61, %v1491_v6  ;;  %v1517_v9 = vcombine.low %v12406_v34, %v1498_v12 }
  0xe4   : > { %v1518_v4 = vcombine.high %v12406_v34, %v1498_v12  ;;  %v4377_v27 = vsub.f32 %v1385_v41, %v16139_v51  ;;  %v1587_v14 = vcombine.low %v1531_v11, %v1547_v47  ;;  %v1586_v44 = vrot.slane %v1572_v38, %v11612_v50  ;;  %v12467_v34 = vpop.permute.xlu1 %673  ;;  %v12469_v41 = vpop.permute.xlu0 %625  ;;  %v11339_v38 = vld [vmem:[%s11449_s11 + $0x70] sm:$0xff] }
  0xe5   : > { %v4378_v46 = vsub.f32 %v1386_v36, %v16140_v20  ;;  %v1570_v1 = vrot.slane %v1556_v32, %v11612_v50  ;;  %v1519_v48 = vcombine.low %v12413_v60, %v12435_v49  ;;  %v1520_v40 = vcombine.high %v12413_v60, %v12435_v49  ;;  %v16141_v60 = vld [vmem:[#allocation19_spill] sm:$0xff] }
  0xe6   : > { %v1521_v61 = vcombine.low %v12425_v59, %v12438_v3  ;;  %v4485_v52 = vpack.c.bf16 %v4376_v42, %v4375_v56  ;;  %v1588_v54 = vcombine.high %v1531_v11, %v1547_v47  ;;  %v1603_v15 = vcombine.low %v1538_v53, %v1554_v2  ;;  %10907 = vmatmul.mubr.msk.bf16.gmra.mrb[32].mxu0 %vm4547_vm0, %v4484_v58  ;;  %v16145_v49 = vld [vmem:[#allocation31_spill] sm:$0xff] }
  0xe7   : > { %v1604_v36 = vcombine.high %v1538_v53, %v1554_v2  ;;  %v1619_v5 = vcombine.low %v1563_v0, %v1579_v25  ;;  %v1522_v43 = vcombine.high %v12425_v59, %v12438_v3  ;;  %v1620_v6 = vcombine.high %v1563_v0, %v1579_v25 }
  0xe8   : > { %v16142_v23 = vrot.slane %v16141_v60, %v11603_v45  ;;  %v16144_v33 = vrot.slane %v16143_v29, %v11603_v45  ;;  %10910 = vmatprep.mubr.msk.bf16.mxu0 %vm4547_vm0, %v4485_v52  ;;  %v1595_v11 = vrot.slane %v1587_v14, %v11625_v57  ;;  %v4486_v53 = vpack.c.bf16 %v4378_v46, %v4377_v27  ;;  %v12491_v56 = vpop.permute.xlu1 %467  ;;  %v12493_v28 = vpop.permute.xlu0 %419  ;;  %v11340_v27 = vld [vmem:[%s11449_s11 + $0x78] sm:$0xff] }
  0xe9   : > { %v1635_v47 = vcombine.low %v1570_v1, %v1586_v44  ;;  %v1659_v59 = vcombine.low %v11339_v38, %v12415_v37  ;;  %v1636_v32 = vcombine.high %v1570_v1, %v1586_v44  ;;  %v1660_v58 = vcombine.high %v11339_v38, %v12415_v37  ;;  %v16152_v38 = vld [vmem:[#allocation36_spill] sm:$0xff] }
  0xea   : > { %v4379_v26 = vsub.f32 %v1515_v24, %v16142_v23  ;;  %v4380_v12 = vsub.f32 %v1516_v63, %v16144_v33  ;;  %v12486_v3 = vsub.f32 %v1517_v9, %v16145_v49  ;;  %v12489_v39 = vsub.f32 %v1518_v4, %v16146_v35 }
  0xeb   : > { %v1602_v7 = vrot.slane %v1588_v54, %v11625_v57  ;;  %v12497_v42 = vrot.slane %v1603_v15, %v11625_v57  ;;  %v12500_v24 = vrot.slane %v1604_v36, %v11625_v57  ;;  %v1627_v37 = vrot.slane %v1619_v5, %v11625_v57  ;;  %v16149_v36 = vld [vmem:[#allocation24_spill] sm:$0xff] }
  0xec   : > { %v1634_v2 = vrot.slane %v1620_v6, %v11625_v57  ;;  %v4487_v25 = vpack.c.bf16 %v4380_v12, %v4379_v26  ;;  %v1675_v0 = vcombine.low %v12417_v16, %v12448_v30  ;;  %v1676_v63 = vcombine.high %v12417_v16, %v12448_v30  ;;  %v16147_v16 = vld [vmem:[#allocation23_spill] sm:$0xff]  ;;  %v12525_v52 = vpop.permute.xlu1 %579  ;;  %v12527_v54 = vpop.permute.xlu0 %515 }
  0xed   : > { %v12509_v9 = vrot.slane %v1635_v47, %v11625_v57  ;;  %v1667_v4 = vrot.slane %v1659_v59, %v11612_v50  ;;  %v1707_v51 = vcombine.low %v12446_v21, %v12467_v34  ;;  %v1691_v14 = vcombine.low %v11340_v27, %v12469_v41 }
  0xee   : > { %v12517_v44 = vrot.slane %v1636_v32, %v11625_v57  ;;  %v1674_v20 = vrot.slane %v1660_v58, %v11612_v50  ;;  %v4488_v46 = vpack.c.bf16 %v12489_v39, %v12486_v3  ;;  %v16148_v30 = vrot.slane %v16147_v16, %v11603_v45  ;;  %10911 = vmatmul.mubr.msk.bf16.gmra.mrb[36].mxu0 %vm4547_vm0, %v4486_v53 }
  0xef   : > { %v1651_v15 = vcombine.low %v1595_v11, %v1627_v37  ;;  %v16150_v5 = vrot.slane %v16149_v36, %v11603_v45  ;;  %v1708_v60 = vcombine.high %v12446_v21, %v12467_v34  ;;  %v1692_v23 = vcombine.high %v11340_v27, %v12469_v41  ;;  %10914 = vmatprep.mubr.msk.bf16.mxu0 %vm4547_vm0, %v4487_v25  ;;  %v16158_v36 = vld [vmem:[#allocation38_spill] sm:$0xff] }
  0xf0   : > { %v4383_v1 = vsub.f32 %v1519_v48, %v16148_v30  ;;  %v1652_v26 = vcombine.high %v1595_v11, %v1627_v37  ;;  %v1653_v29 = vcombine.low %v1602_v7, %v1634_v2  ;;  %v1683_v48 = vrot.slane %v1675_v0, %v11612_v50  ;;  %v16151_v11 = vld [vmem:[#allocation35_spill] sm:$0xff]  ;;  %v676_v35 = vpop.permute.xlu1 %675  ;;  %v628_v39 = vpop.permute.xlu0 %627 }
  0xf1   : > { %v4384_v6 = vsub.f32 %v1520_v40, %v16150_v5  ;;  %v1690_v33 = vrot.slane %v1676_v63, %v11612_v50  ;;  %v1654_v12 = vcombine.high %v1602_v7, %v1634_v2  ;;  %v1655_v47 = vcombine.low %v12497_v42, %v12509_v9  ;;  %v16155_v63 = vld [vmem:[#allocation28_spill] sm:$0xff] }
  0xf2   : > { %v1715_v40 = vrot.slane %v1707_v51, %v11612_v50  ;;  %v1699_v21 = vrot.slane %v1691_v14, %v11612_v50  ;;  %v1656_v34 = vcombine.high %v12497_v42, %v12509_v9  ;;  %v1657_v41 = vcombine.low %v12500_v24, %v12517_v44  ;;  %v11341_v51 = vld [vmem:[%s11449_s11 + $0x80] sm:$0xff] }
  0xf3   : > { %v12548_v53 = vsub.f32 %v1521_v61, %v16151_v11  ;;  %v12551_v59 = vsub.f32 %v1522_v43, %v16152_v38  ;;  %v1658_v32 = vcombine.high %v12500_v24, %v12517_v44  ;;  %v4489_v58 = vpack.c.bf16 %v4384_v6, %v4383_v1  ;;  %v16153_v61 = vld [vmem:[#allocation26_spill] sm:$0xff] }
  0xf4   : > { %v1722_v49 = vrot.slane %v1708_v60, %v11612_v50  ;;  %v1706_v3 = vrot.slane %v1692_v23, %v11612_v50  ;;  %v1723_v7 = vcombine.low %v1667_v4, %v1683_v48  ;;  %v1724_v42 = vcombine.high %v1667_v4, %v1683_v48  ;;  %v16157_v4 = vld [vmem:[#allocation37_spill] sm:$0xff]  ;;  %v12576_v6 = vpop.permute.xlu1 %469  ;;  %v12578_v60 = vpop.permute.xlu0 %421 }
  0xf5   : > { %v1739_v37 = vcombine.low %v1674_v20, %v1690_v33  ;;  %v1740_v2 = vcombine.high %v1674_v20, %v1690_v33  ;;  %v1755_v25 = vcombine.low %v1699_v21, %v1715_v40  ;;  %v16154_v0 = vrot.slane %v16153_v61, %v11603_v45 }
  0xf6   : > { %v16156_v9 = vrot.slane %v16155_v63, %v11603_v45  ;;  %v1795_v27 = vcombine.low %v11341_v51, %v12491_v56  ;;  %v4490_v14 = vpack.c.bf16 %v12551_v59, %v12548_v53  ;;  %v1796_v44 = vcombine.high %v11341_v51, %v12491_v56  ;;  %10915 = vmatmul.mubr.msk.bf16.gmra.mrb[40].mxu0 %vm4547_vm0, %v4488_v46  ;;  %v11342_v53 = vld [vmem:[%s11449_s11 + $0x88] sm:$0xff] }
  0xf7   : > { %v4387_v43 = vsub.f32 %v1651_v15, %v16154_v0  ;;  %v12569_v16 = vsub.f32 %v1653_v29, %v16157_v4  ;;  %v1811_v20 = vcombine.low %v12493_v28, %v12527_v54  ;;  %v1756_v30 = vcombine.high %v1699_v21, %v1715_v40  ;;  %10918 = vmatprep.mubr.msk.bf16.mxu0 %vm4547_vm0, %v4489_v58  ;;  %v16164_v4 = vld [vmem:[#allocation40_spill] sm:$0xff] }
  0xf8   : > { %v4388_v24 = vsub.f32 %v1652_v26, %v16156_v9  ;;  %v1771_v1 = vcombine.low %v1706_v3, %v1722_v49  ;;  %v1772_v15 = vcombine.high %v1706_v3, %v1722_v49  ;;  %v12574_v5 = vsub.f32 %v1654_v12, %v16158_v36  ;;  %v16163_v9 = vld [vmem:[#allocation39_spill] sm:$0xff]  ;;  %v12620_v51 = vpop.permute.xlu1 %581 }
  0xf9   : > { %v1731_v56 = vrot.slane %v1723_v7, %v11625_v57  ;;  %v1738_v23 = vrot.slane %v1724_v42, %v11625_v57  ;;  %v12584_v26 = vrot.slane %v1739_v37, %v11625_v57  ;;  %v12587_v29 = vrot.slane %v1740_v2, %v11625_v57  ;;  %v16161_v42 = vld [vmem:[#allocation34_spill] sm:$0xff] }
  0xfa   : > { %v1763_v48 = vrot.slane %v1755_v25, %v11625_v57  ;;  %v4491_v33 = vpack.c.bf16 %v4388_v24, %v4387_v43  ;;  %v1803_v12 = vrot.slane %v1795_v27, %v11612_v50  ;;  %v1812_v46 = vcombine.high %v12493_v28, %v12527_v54  ;;  %v16159_v28 = vld [vmem:[#allocation33_spill] sm:$0xff]  ;;  %v518_v27 = vpop.permute.xlu0 %517 }
  0xfb   : > { %v1810_v40 = vrot.slane %v1796_v44, %v11612_v50  ;;  %v1819_v21 = vrot.slane %v1811_v20, %v11612_v50  ;;  %v1843_v11 = vcombine.low %v12525_v52, %v676_v35  ;;  %v1827_v38 = vcombine.low %v11342_v53, %v628_v39 }
  0xfc   : > { %v1770_v59 = vrot.slane %v1756_v30, %v11625_v57  ;;  %v12600_v58 = vrot.slane %v1771_v1, %v11625_v57  ;;  %v12603_v49 = vrot.slane %v1772_v15, %v11625_v57  ;;  %v4492_v3 = vpack.c.bf16 %v12574_v5, %v12569_v16 }
  0xfd   : > { %v16160_v54 = vrot.slane %v16159_v28, %v11603_v45  ;;  %v16162_v37 = vrot.slane %v16161_v42, %v11603_v45  ;;  %v1844_v25 = vcombine.high %v12525_v52, %v676_v35  ;;  %v1828_v61 = vcombine.high %v11342_v53, %v628_v39 }
  0xfe   : > { %v1787_v0 = vcombine.low %v1731_v56, %v1763_v48  ;;  %v1788_v43 = vcombine.high %v1731_v56, %v1763_v48  ;;  %v1826_v63 = vrot.slane %v1812_v46, %v11612_v50  ;;  %v12618_v24 = vsub.f32 %v1657_v41, %v16163_v9  ;;  %10919 = vmatmul.mubr.msk.bf16.gmra.mrb[44].mxu0 %vm4547_vm0, %v4490_v14 }
  0xff   : > { %v12610_v7 = vsub.f32 %v1655_v47, %v16160_v54  ;;  %v4392_v2 = vsub.f32 %v1656_v34, %v16162_v37  ;;  %v1859_v44 = vcombine.low %v1803_v12, %v1819_v21  ;;  %v1851_v47 = vrot.slane %v1843_v11, %v11612_v50  ;;  %10922 = vmatprep.mubr.msk.bf16.mxu0 %vm4547_vm0, %v4491_v33  ;;  %v11343_v11 = vld [vmem:[%s11449_s11 + $0x90] sm:$0xff] }
 0x100   : > { %v12624_v16 = vsub.f32 %v1658_v32, %v16164_v4  ;;  %v1835_v34 = vrot.slane %v1827_v38, %v11612_v50  ;;  %v1789_v52 = vcombine.low %v1738_v23, %v1770_v59  ;;  %v1790_v35 = vcombine.high %v1738_v23, %v1770_v59  ;;  %v678_v38 = vpop.permute.xlu1 %677  ;;  %v630_v59 = vpop.permute.xlu0 %629 }
 0x101   : > { %v1791_v39 = vcombine.low %v12584_v26, %v12600_v58  ;;  %v1792_v41 = vcombine.high %v12584_v26, %v12600_v58  ;;  %v1793_v20 = vcombine.low %v12587_v29, %v12603_v49  ;;  %v1860_v30 = vcombine.high %v1803_v12, %v1819_v21 }
 0x102   : > { %v1858_v32 = vrot.slane %v1844_v25, %v11612_v50  ;;  %v1842_v1 = vrot.slane %v1828_v61, %v11612_v50  ;;  %v1794_v15 = vcombine.high %v12587_v29, %v12603_v49  ;;  %v4493_v36 = vpack.c.bf16 %v4392_v2, %v12610_v7  ;;  %v11344_v25 = vld [vmem:[%s11449_s11 + $0x98] sm:$0xff]  ;;  %v11345_v49 = vld [vmem:[%s11449_s11 + $0xa0] sm:$0xff] }
 0x103   : > { %v1875_v5 = vcombine.low %v1810_v40, %v1826_v63  ;;  %v1876_v56 = vcombine.high %v1810_v40, %v1826_v63  ;;  %v12641_v14 = vrot.slane %v1859_v44, %v11625_v57  ;;  %v4494_v23 = vpack.c.bf16 %v12624_v16, %v12618_v24 }
 0x104   : > { %v1891_v26 = vcombine.low %v1835_v34, %v1851_v47  ;;  %v16165_v48 = vrot.slane %v11951_v13, %v11603_v45  ;;  %v1892_v46 = vcombine.high %v1835_v34, %v1851_v47  ;;  %v16166_v33 = vrot.slane %v11959_v31, %v11603_v45  ;;  %v2891_v47 = vld [vmem:[%s11574_s26 + $0x40] sm:$0xff] }
 0x105   : > { %v1931_v40 = vcombine.low %v11343_v11, %v12576_v6  ;;  %v1932_v53 = vcombine.high %v11343_v11, %v12576_v6  ;;  %v12659_v58 = vrot.slane %v1860_v30, %v11625_v57  ;;  %v1907_v13 = vcombine.low %v1842_v1, %v1858_v32 }
 0x106   : > { %v12648_v12 = vsub.f32 %v1787_v0, %v16165_v48  ;;  %v12653_v21 = vsub.f32 %v1788_v43, %v16166_v33  ;;  %v12662_v28 = vsub.f32 %v1789_v52, %v12063_v18  ;;  %v12665_v54 = vsub.f32 %v1790_v35, %v12115_v8  ;;  %10923 = vmatmul.mubr.msk.bf16.gmra.mrb[48].mxu0 %vm4547_vm0, %v4492_v3 }
 0x107   : > { %v12668_v31 = vrot.slane %v1875_v5, %v11625_v57  ;;  %v12671_v7 = vrot.slane %v1876_v56, %v11625_v57  ;;  %v1908_v42 = vcombine.high %v1842_v1, %v1858_v32  ;;  %v1947_v6 = vcombine.low %v12578_v60, %v518_v27  ;;  %10926 = vmatprep.mubr.msk.bf16.mxu0 %vm4547_vm0, %v4493_v36 }
 0x108   : > { %v12675_v37 = vrot.slane %v1891_v26, %v11625_v57  ;;  %v1948_v2 = vcombine.high %v12578_v60, %v518_v27  ;;  %v1979_v18 = vcombine.low %v12620_v51, %v678_v38  ;;  %v1963_v8 = vcombine.low %v11344_v25, %v630_v59 }
 0x109   : > { %v12681_v61 = vrot.slane %v1892_v46, %v11625_v57  ;;  %v4495_v0 = vpack.c.bf16 %v12653_v21, %v12648_v12  ;;  %v1939_v43 = vrot.slane %v1931_v40, %v11612_v50  ;;  %v1946_v63 = vrot.slane %v1932_v53, %v11612_v50 }
 0x10a   : > { %v12689_v9 = vrot.slane %v1907_v13, %v11625_v57  ;;  %v4496_v60 = vpack.c.bf16 %v12665_v54, %v12662_v28  ;;  %v1980_v27 = vcombine.high %v12620_v51, %v678_v38  ;;  %v1964_v44 = vcombine.high %v11344_v25, %v630_v59  ;;  %v472_v51 = vpop.permute.xlu1 %471 }
 0x10b   : > { %v12697_v4 = vrot.slane %v1908_v42, %v11625_v57  ;;  %v12702_v34 = vsub.f32 %v1791_v39, %v3942_v22  ;;  %v12707_v3 = vsub.f32 %v1792_v41, %v3946_v19  ;;  %v1955_v52 = vrot.slane %v1947_v6, %v11612_v50  ;;  %v16167_v22 = vld [vmem:[#allocation3_spill] sm:$0xff]  ;;  %v12720_v39 = vpop.permute.xlu0 %423 }
 0x10c   : > { %v1923_v35 = vcombine.low %v12641_v14, %v12675_v37  ;;  %v1962_v30 = vrot.slane %v1948_v2, %v11612_v50  ;;  %v1987_v32 = vrot.slane %v1979_v18, %v11612_v50  ;;  %v1971_v1 = vrot.slane %v1963_v8, %v11612_v50 }
 0x10d   : > { %v1924_v55 = vcombine.high %v12641_v14, %v12675_v37  ;;  %v1925_v62 = vcombine.low %v12659_v58, %v12681_v61  ;;  %v3314_v19 = vrot.slane %v2891_v47, %v16167_v22  ;;  %v3307_v41 = vcombine.high %v2891_v47, %v2891_v47 }
 0x10e   : > { %v1926_v36 = vcombine.high %v12659_v58, %v12681_v61  ;;  %v1927_v5 = vcombine.low %v12668_v31, %v12689_v9  ;;  %v1994_v56 = vrot.slane %v1980_v27, %v11612_v50  ;;  %v1978_v26 = vrot.slane %v1964_v44, %v11612_v50  ;;  %v12742_v6 = vpop.permute.xlu1 %583  ;;  %10927 = vmatmul.mubr.msk.bf16.gmra.mrb[52].mxu0 %vm4547_vm0, %v4494_v23 }
 0x10f   : > { %v1928_v48 = vcombine.high %v12668_v31, %v12689_v9  ;;  %v1995_v12 = vcombine.low %v1939_v43, %v1955_v52  ;;  %v12734_v46 = vsub.f32 %v1793_v20, %v12207_v10  ;;  %v12737_v33 = vsub.f32 %v1794_v15, %v12231_v17  ;;  %10930 = vmatprep.mubr.msk.bf16.mxu0 %vm4547_vm0, %v4495_v0  ;;  %v520_v23 = vpop.permute.xlu0 %519 }
 0x110   : > { %v1929_v21 = vcombine.low %v12671_v7, %v12697_v4  ;;  %v1996_v11 = vcombine.high %v1939_v43, %v1955_v52  ;;  %v2011_v40 = vcombine.low %v1946_v63, %v1962_v30  ;;  %v2027_v53 = vcombine.low %v1971_v1, %v1987_v32 }
 0x111   : > { %v2012_v38 = vcombine.high %v1946_v63, %v1962_v30  ;;  %v2028_v59 = vcombine.high %v1971_v1, %v1987_v32  ;;  %v3322_v13 = vcombine.high %v3314_v19, %v3314_v19  ;;  %v3321_v42 = vrot.slane %v3307_v41, %v16167_v22 }
 0x112   : > { %v1930_v10 = vcombine.high %v12671_v7, %v12697_v4  ;;  %v4497_v17 = vpack.c.bf16 %v12707_v3, %v12702_v34  ;;  %v2043_v29 = vcombine.low %v1978_v26, %v1994_v56  ;;  %v2067_v20 = vcombine.low %v11345_v49, %v472_v51 }
 0x113   : > { %v12755_v15 = vrot.slane %v1995_v12, %v11625_v57  ;;  %v4498_v2 = vpack.c.bf16 %v12737_v33, %v12734_v46  ;;  %v2044_v24 = vcombine.high %v1978_v26, %v1994_v56  ;;  %v3330_v16 = vrot.slane %v3314_v19, %v16167_v22  ;;  %v680_v19 = vpop.permute.xlu1 %679 }
 0x114   : > { %v12761_v18 = vrot.slane %v1996_v11, %v11625_v57  ;;  %v12764_v25 = vrot.slane %v2011_v40, %v11625_v57  ;;  %v12767_v8 = vrot.slane %v2027_v53, %v11625_v57  ;;  %v2068_v0 = vcombine.high %v11345_v49, %v472_v51 }
 0x115   : > { %v12770_v43 = vrot.slane %v2012_v38, %v11625_v57  ;;  %v12773_v63 = vrot.slane %v2028_v59, %v11625_v57  ;;  %v3344_v27 = vrot.slane %v3322_v13, %v16167_v22  ;;  %v3323_v44 = vcombine.high %v3321_v42, %v3321_v42  ;;  %v632_v38 = vpop.permute.xlu0 %631 }
 0x116   : > { %v12777_v47 = vrot.slane %v2043_v29, %v11625_v57  ;;  %v12780_v34 = vrot.slane %v2067_v20, %v11612_v50  ;;  %v2083_v3 = vcombine.low %v12720_v39, %v520_v23  ;;  %v2084_v52 = vcombine.high %v12720_v39, %v520_v23  ;;  %10931 = vmatmul.mubr.msk.bf16.gmra.mrb[56].mxu0 %vm4547_vm0, %v4496_v60  ;;  %v2892_v20 = vld [vmem:[%s11574_s26 + $0x48] sm:$0xff] }
 0x117   : > { %v12785_v51 = vrot.slane %v2044_v24, %v11625_v57  ;;  %v3958_v30 = vrot.slane %v3330_v16, %v11603_v45  ;;  %v3962_v32 = vrot.slane %v3344_v27, %v11603_v45  ;;  %v3352_v1 = vcombine.high %v3330_v16, %v3330_v16  ;;  %10934 = vmatprep.mubr.msk.bf16.mxu0 %vm4547_vm0, %v4497_v17  ;;  %v11346_v23 = vld [vmem:[%s11449_s11 + $0xa8] sm:$0xff] }
 0x118   : > { %v2059_v41 = vcombine.low %v12755_v15, %v12767_v8  ;;  %v12792_v56 = vrot.slane %v2068_v0, %v11612_v50  ;;  %v3337_v26 = vrot.slane %v3321_v42, %v16167_v22  ;;  %v3351_v12 = vrot.slane %v3323_v44, %v16167_v22 }
 0x119   : > { %v2060_v39 = vcombine.high %v12755_v15, %v12767_v8  ;;  %v2061_v11 = vcombine.low %v12761_v18, %v12773_v63  ;;  %v2062_v40 = vcombine.high %v12761_v18, %v12773_v63  ;;  %v3354_v53 = vcombine.high %v3344_v27, %v3344_v27 }
 0x11a   : > { %v2063_v59 = vcombine.low %v12764_v25, %v12777_v47  ;;  %v2064_v13 = vcombine.high %v12764_v25, %v12777_v47  ;;  %v2091_v42 = vrot.slane %v2083_v3, %v11612_v50  ;;  %v2115_v29 = vcombine.low %v12742_v6, %v680_v19 }
 0x11b   : > { %v4403_v28 = vsub.f32 %v1923_v35, %v3958_v30  ;;  %v4404_v54 = vsub.f32 %v1924_v55, %v3962_v32  ;;  %v3966_v60 = vrot.slane %v3352_v1, %v11603_v45  ;;  %v3353_v24 = vcombine.high %v3337_v26, %v3337_v26  ;;  %v474_v32 = vpop.permute.xlu1 %473  ;;  %v12832_v1 = vpop.permute.xlu0 %425 }
 0x11c   : > { %v3355_v16 = vcombine.high %v3351_v12, %v3351_v12  ;;  %v2099_v0 = vcombine.low %v11346_v23, %v632_v38  ;;  %v3363_v17 = vrot.slane %v2892_v20, %v16167_v22  ;;  %v3970_v27 = vrot.slane %v3354_v53, %v11603_v45 }
 0x11d   : > { %v2098_v44 = vrot.slane %v2084_v52, %v11612_v50  ;;  %v2116_v3 = vcombine.high %v12742_v6, %v680_v19  ;;  %v2100_v35 = vcombine.high %v11346_v23, %v632_v38  ;;  %v3974_v30 = vrot.slane %v3337_v26, %v11603_v45 }
 0x11e   : > { %v2131_v14 = vcombine.low %v12780_v34, %v2091_v42  ;;  %v2123_v37 = vrot.slane %v2115_v29, %v11612_v50  ;;  %v2107_v55 = vrot.slane %v2099_v0, %v11612_v50  ;;  %v4405_v52 = vsub.f32 %v1925_v62, %v3966_v60  ;;  %10935 = vmatmul.mubr.msk.bf16.gmra.mrb[60].mxu0 %vm4547_vm0, %v4498_v2  ;;  %v11347_v2 = vld [vmem:[%s11449_s11 + $0xb0] sm:$0xff] }
 0x11f   : > { %v3978_v6 = vrot.slane %v3351_v12, %v11603_v45  ;;  %v2132_v19 = vcombine.high %v12780_v34, %v2091_v42  ;;  %v4499_v26 = vpack.c.bf16 %v4404_v54, %v4403_v28  ;;  %v3982_v53 = vrot.slane %v3353_v24, %v11603_v45  ;;  %v12880_v9 = vpop.permute.xlu1 %585 }
 0x120   : > { %v3986_v38 = vrot.slane %v3355_v16, %v11603_v45  ;;  %v3371_v29 = vcombine.high %v3363_v17, %v3363_v17  ;;  %v4406_v23 = vsub.f32 %v1926_v36, %v3970_v27  ;;  %v2147_v0 = vcombine.low %v12792_v56, %v2098_v44 }
 0x121   : > { %v2130_v49 = vrot.slane %v2116_v3, %v11612_v50  ;;  %v2114_v62 = vrot.slane %v2100_v35, %v11612_v50  ;;  %v4407_v34 = vsub.f32 %v1927_v5, %v3974_v30  ;;  %v12857_v12 = vrot.slane %v2131_v14, %v11625_v57  ;;  %10938 = vmatprep.mubr.msk.bf16.mxu0 %vm4547_vm0, %v4499_v26 }
 0x122   : > { %v2148_v58 = vcombine.high %v12792_v56, %v2098_v44  ;;  %v2163_v61 = vcombine.low %v2107_v55, %v2123_v37  ;;  %v4408_v36 = vsub.f32 %v1928_v48, %v3978_v6  ;;  %v12865_v46 = vrot.slane %v2132_v19, %v11625_v57  ;;  %v522_v48 = vpop.permute.xlu0 %521 }
 0x123   : > { %v2164_v33 = vcombine.high %v2107_v55, %v2123_v37  ;;  %v2203_v42 = vcombine.low %v11347_v2, %v474_v32  ;;  %v12871_v5 = vsub.f32 %v1929_v21, %v3982_v53  ;;  %v12876_v56 = vsub.f32 %v1930_v10, %v3986_v38  ;;  %v682_v38 = vpop.permute.xlu1 %681 }
 0x124   : > { %v3379_v28 = vrot.slane %v3363_v17, %v16167_v22  ;;  %v3393_v31 = vrot.slane %v3371_v29, %v16167_v22  ;;  %v4500_v54 = vpack.c.bf16 %v4406_v23, %v4405_v52  ;;  %v2179_v60 = vcombine.low %v2114_v62, %v2130_v49  ;;  %v11328_v52 = vld [vmem:[%s15977_s4] sm:$0xff]  }
 0x125   : > { %v2180_v24 = vcombine.high %v2114_v62, %v2130_v49  ;;  %v2204_v16 = vcombine.high %v11347_v2, %v474_v32  ;;  %v12883_v27 = vrot.slane %v2147_v0, %v11625_v57  ;;  %v12886_v21 = vrot.slane %v2163_v61, %v11625_v57  ;;  %11134 = vmatprep.subr.bf16.mxu0 %v11328_v52 }
 0x126   : > { %v3990_v7 = vrot.slane %v3379_v28, %v11603_v45  ;;  %v3356_v4 = vcombine.high %v2892_v20, %v2892_v20  ;;  %v4501_v10 = vpack.c.bf16 %v4408_v36, %v4407_v34  ;;  %v12890_v17 = vrot.slane %v2148_v58, %v11625_v57  ;;  %10939 = vmatmul.mubr.msk.bf16.gmra.mrb[64].mxu0 %vm4547_vm0, %v4500_v54  ;;  %v634_v29 = vpop.permute.xlu0 %633 }
 0x127   : > { %v12893_v44 = vrot.slane %v2164_v33, %v11625_v57  ;;  %v12896_v3 = vrot.slane %v2203_v42, %v11612_v50  ;;  %v4502_v49 = vpack.c.bf16 %v12876_v56, %v12871_v5  ;;  %v3401_v35 = vcombine.high %v3379_v28, %v3379_v28  ;;  %v11348_v5 = vld [vmem:[%s11449_s11 + $0xb8] sm:$0xff] }
 0x128   : > { %v3403_v30 = vcombine.high %v3393_v31, %v3393_v31  ;;  %v3370_v14 = vrot.slane %v3356_v4, %v16167_v22  ;;  %v12902_v37 = vrot.slane %v2179_v60, %v11625_v57  ;;  %v12905_v20 = vrot.slane %v2180_v24, %v11625_v57  ;;  %10942 = vmatprep.mubr.msk.bf16.mxu0 %vm4547_vm0, %v4501_v10  ;;  %v12956_v4 = vpop.permute.xlu1 %475 }
 0x129   : > { %v3994_v55 = vrot.slane %v3393_v31, %v11603_v45  ;;  %v12909_v32 = vrot.slane %v2204_v16, %v11612_v50  ;;  %v2195_v6 = vcombine.low %v12857_v12, %v12886_v21  ;;  %v4411_v19 = vsub.f32 %v2059_v41, %v3990_v7 }
 0x12a   : > { %v3372_v26 = vcombine.high %v3370_v14, %v3370_v14  ;;  %v2219_v53 = vcombine.low %v12832_v1, %v522_v48  ;;  %v2196_v23 = vcombine.high %v12857_v12, %v12886_v21  ;;  %v2197_v0 = vcombine.low %v12865_v46, %v12893_v44  ;;  %v12958_v10 = vpop.permute.xlu0 %427 }
 0x12b   : > { %v2198_v62 = vcombine.high %v12865_v46, %v12893_v44  ;;  %v3386_v41 = vrot.slane %v3370_v14, %v16167_v22  ;;  %v3998_v34 = vrot.slane %v3401_v35, %v11603_v45  ;;  %v4002_v58 = vrot.slane %v3403_v30, %v11603_v45 }
 0x12c   : > { %v3400_v61 = vrot.slane %v3372_v26, %v16167_v22  ;;  %v2220_v36 = vcombine.high %v12832_v1, %v522_v48  ;;  %v2199_v33 = vcombine.low %v12883_v27, %v12902_v37  ;;  %v4412_v2 = vsub.f32 %v2060_v39, %v3994_v55  ;;  %v2893_v48 = vld [vmem:[%s11574_s26 + $0x50] sm:$0xff] }
 0x12d   : > { %v2251_v42 = vcombine.low %v12880_v9, %v682_v38  ;;  %v2235_v56 = vcombine.low %v11348_v5, %v634_v29  ;;  %v2200_v28 = vcombine.high %v12883_v27, %v12902_v37  ;;  %v2227_v31 = vrot.slane %v2219_v53, %v11612_v50 }
 0x12e   : > { %v2252_v54 = vcombine.high %v12880_v9, %v682_v38  ;;  %v2236_v1 = vcombine.high %v11348_v5, %v634_v29  ;;  %v2201_v60 = vcombine.low %v12890_v17, %v12905_v20  ;;  %v3402_v24 = vcombine.high %v3386_v41, %v3386_v41  ;;  %10943 = vmatmul.mubr.msk.bf16.gmra.mrb[68].mxu0 %vm4547_vm0, %v4502_v49  ;;  %v12986_v5 = vpop.permute.xlu1 %587 }
 0x12f   : > { %v3404_v16 = vcombine.high %v3400_v61, %v3400_v61  ;;  %v3412_v15 = vrot.slane %v2893_v48, %v16167_v22  ;;  %v4413_v8 = vsub.f32 %v2061_v11, %v3998_v34  ;;  %v4414_v39 = vsub.f32 %v2062_v40, %v4002_v58 }
 0x130   : > { %v4006_v7 = vrot.slane %v3386_v41, %v11603_v45  ;;  %v2234_v9 = vrot.slane %v2220_v36, %v11612_v50  ;;  %v4503_v35 = vpack.c.bf16 %v4412_v2, %v4411_v19  ;;  %v4010_v30 = vrot.slane %v3400_v61, %v11603_v45 }
 0x131   : > { %v2259_v14 = vrot.slane %v2251_v42, %v11612_v50  ;;  %v2243_v55 = vrot.slane %v2235_v56, %v11612_v50  ;;  %v2267_v18 = vcombine.low %v12896_v3, %v2227_v31  ;;  %v2266_v63 = vrot.slane %v2252_v54, %v11612_v50  ;;  %v524_v56 = vpop.permute.xlu0 %523 }
 0x132   : > { %v2250_v11 = vrot.slane %v2236_v1, %v11612_v50  ;;  %v3420_v40 = vcombine.high %v3412_v15, %v3412_v15  ;;  %v2202_v52 = vcombine.high %v12890_v17, %v12905_v20  ;;  %10946 = vmatprep.mubr.msk.bf16.mxu0 %vm4547_vm0, %v4503_v35  ;;  %v2268_v19 = vcombine.high %v12896_v3, %v2227_v31 }
 0x133   : > { %v4014_v26 = vrot.slane %v3402_v24, %v11603_v45  ;;  %v4018_v53 = vrot.slane %v3404_v16, %v11603_v45  ;;  %v4504_v38 = vpack.c.bf16 %v4414_v39, %v4413_v8  ;;  %v4415_v49 = vsub.f32 %v2063_v59, %v4006_v7 }
 0x134   : > { %v2283_v29 = vcombine.low %v12909_v32, %v2234_v9  ;;  %v2284_v41 = vcombine.high %v12909_v32, %v2234_v9  ;;  %v4416_v34 = vsub.f32 %v2064_v13, %v4010_v30  ;;  %v2299_v58 = vcombine.low %v2243_v55, %v2259_v14 }
 0x135   : > { %v2300_v61 = vcombine.high %v2243_v55, %v2259_v14  ;;  %v3428_v3 = vrot.slane %v3412_v15, %v16167_v22  ;;  %v12983_v36 = vrot.slane %v2267_v18, %v11625_v57  ;;  %v2315_v2 = vcombine.low %v2250_v11, %v2266_v63 }
 0x136   : > { %v2316_v42 = vcombine.high %v2250_v11, %v2266_v63  ;;  %v3442_v59 = vrot.slane %v3420_v40, %v16167_v22  ;;  %v12989_v32 = vrot.slane %v2268_v19, %v11625_v57  ;;  %v16168_v25 = vcombine.low %v12770_v43, %v12785_v51  ;;  %10947 = vmatmul.mubr.msk.bf16.gmra.mrb[72].mxu0 %vm4547_vm0, %v4504_v38 }
 0x137   : > { %v16169_v13 = vcombine.high %v12770_v43, %v12785_v51  ;;  %v4022_v54 = vrot.slane %v3428_v3, %v11603_v45  ;;  %v12999_v1 = vrot.slane %v2283_v29, %v11625_v57  ;;  %v13002_v24 = vrot.slane %v2284_v41, %v11625_v57  ;;  %v11349_v43 = vld [vmem:[%s11449_s11 + $0xc0] sm:$0xff] }
 0x138   : > { %v4417_v47 = vsub.f32 %v16168_v25, %v4014_v26  ;;  %v4026_v16 = vrot.slane %v3442_v59, %v11603_v45  ;;  %v3405_v15 = vcombine.high %v2893_v48, %v2893_v48  ;;  %v4505_v8 = vpack.c.bf16 %v4416_v34, %v4415_v49  ;;  %v684_v26 = vpop.permute.xlu1 %683 }
 0x139   : > { %v4418_v31 = vsub.f32 %v16169_v13, %v4018_v53  ;;  %v13006_v39 = vrot.slane %v2299_v58, %v11625_v57  ;;  %v13009_v7 = vrot.slane %v2300_v61, %v11625_v57  ;;  %v2339_v51 = vcombine.low %v11349_v43, %v12956_v4  ;;  %v636_v53 = vpop.permute.xlu0 %635  ;;  %v2894_v13 = vld [vmem:[%s11574_s26 + $0x58] sm:$0xff] }
 0x13a   : > { %v13015_v9 = vrot.slane %v2315_v2, %v11625_v57  ;;  %v13018_v35 = vrot.slane %v2316_v42, %v11625_v57  ;;  %v2340_v48 = vcombine.high %v11349_v43, %v12956_v4  ;;  %v3419_v30 = vrot.slane %v3405_v15, %v16167_v22  ;;  %10950 = vmatprep.mubr.msk.bf16.mxu0 %vm4547_vm0, %v4505_v8 }
 0x13b   : > { %v4506_v14 = vpack.c.bf16 %v4418_v31, %v4417_v47  ;;  %v4419_v55 = vsub.f32 %v2195_v6, %v4022_v54  ;;  %v3450_v18 = vcombine.high %v3428_v3, %v3428_v3  ;;  %v3452_v63 = vcombine.high %v3442_v59, %v3442_v59  ;;  %v11350_v3 = vld [vmem:[%s11449_s11 + $0xc8] sm:$0xff] }
 0x13c   : > { %v4420_v11 = vsub.f32 %v2196_v23, %v4026_v16  ;;  %v3421_v40 = vcombine.high %v3419_v30, %v3419_v30  ;;  %v3435_v19 = vrot.slane %v3419_v30, %v16167_v22  ;;  %v2355_v4 = vcombine.low %v12958_v10, %v524_v56 }
 0x13d   : > { %v2331_v38 = vcombine.low %v12983_v36, %v13006_v39  ;;  %v2332_v6 = vcombine.high %v12983_v36, %v13006_v39  ;;  %v2333_v49 = vcombine.low %v12989_v32, %v13009_v7  ;;  %v13038_v12 = vrot.slane %v2339_v51, %v11612_v50 }
 0x13e   : > { %v2334_v21 = vcombine.high %v12989_v32, %v13009_v7  ;;  %v2335_v23 = vcombine.low %v12999_v1, %v13015_v9  ;;  %v3449_v29 = vrot.slane %v3421_v40, %v16167_v22  ;;  %v2356_v41 = vcombine.high %v12958_v10, %v524_v56  ;;  %10951 = vmatmul.mubr.msk.bf16.gmra.mrb[76].mxu0 %vm4547_vm0, %v4506_v14  ;;  %v13068_v14 = vpop.permute.xlu0 %429 }
 0x13f   : > { %v2336_v34 = vcombine.high %v12999_v1, %v13015_v9  ;;  %v4030_v58 = vrot.slane %v3450_v18, %v11603_v45  ;;  %v2387_v61 = vcombine.low %v12986_v5, %v684_v26  ;;  %v2371_v2 = vcombine.low %v11350_v3, %v636_v53 }
 0x140   : > { %v4507_v42 = vpack.c.bf16 %v4420_v11, %v4419_v55  ;;  %v4034_v59 = vrot.slane %v3452_v63, %v11603_v45  ;;  %v2363_v25 = vrot.slane %v2355_v4, %v11612_v50  ;;  %v3451_v47 = vcombine.high %v3435_v19, %v3435_v19  ;;  %v13066_v63 = vpop.permute.xlu1 %477 }
 0x141   : > { %v4038_v31 = vrot.slane %v3435_v19, %v11603_v45  ;;  %v4042_v10 = vrot.slane %v3449_v29, %v11603_v45  ;;  %v3453_v56 = vcombine.high %v3449_v29, %v3449_v29  ;;  %v3461_v54 = vrot.slane %v2894_v13, %v16167_v22 }
 0x142   : > { %v2354_v16 = vrot.slane %v2340_v48, %v11612_v50  ;;  %v2370_v15 = vrot.slane %v2356_v41, %v11612_v50  ;;  %v2388_v8 = vcombine.high %v12986_v5, %v684_v26  ;;  %v2372_v43 = vcombine.high %v11350_v3, %v636_v53  ;;  %10954 = vmatprep.mubr.msk.bf16.mxu0 %vm4547_vm0, %v4507_v42 }
 0x143   : > { %v2337_v51 = vcombine.low %v13002_v24, %v13018_v35  ;;  %v2395_v30 = vrot.slane %v2387_v61, %v11612_v50  ;;  %v2379_v55 = vrot.slane %v2371_v2, %v11612_v50  ;;  %v3469_v18 = vcombine.high %v3461_v54, %v3461_v54 }
 0x144   : > { %v4421_v48 = vsub.f32 %v2197_v0, %v4030_v58  ;;  %v4422_v5 = vsub.f32 %v2198_v62, %v4034_v59  ;;  %v2403_v11 = vcombine.low %v13038_v12, %v2363_v25  ;;  %v4046_v40 = vrot.slane %v3451_v47, %v11603_v45  ;;  %v13103_v59 = vpop.permute.xlu1 %589 }
 0x145   : > { %v2338_v19 = vcombine.high %v13002_v24, %v13018_v35  ;;  %v4423_v4 = vsub.f32 %v2199_v33, %v4038_v31  ;;  %v4424_v26 = vsub.f32 %v2200_v28, %v4042_v10  ;;  %v4050_v0 = vrot.slane %v3453_v56, %v11603_v45  ;;  %v11351_v10 = vld [vmem:[%s11449_s11 + $0xd0] sm:$0xff] }
 0x146   : > { %v2404_v46 = vcombine.high %v13038_v12, %v2363_v25  ;;  %v2419_v44 = vcombine.low %v2354_v16, %v2370_v15  ;;  %v2402_v62 = vrot.slane %v2388_v8, %v11612_v50  ;;  %v2386_v53 = vrot.slane %v2372_v43, %v11612_v50  ;;  %v526_v25 = vpop.permute.xlu0 %525 }
 0x147   : > { %v2420_v29 = vcombine.high %v2354_v16, %v2370_v15  ;;  %v2435_v41 = vcombine.low %v2379_v55, %v2395_v30  ;;  %v3477_v58 = vrot.slane %v3461_v54, %v16167_v22  ;;  %v3491_v33 = vrot.slane %v3469_v18, %v16167_v22 }
 0x148   : > { %v4508_v61 = vpack.c.bf16 %v4422_v5, %v4421_v48  ;;  %v13093_v27 = vrot.slane %v2403_v11, %v11625_v57  ;;  %v4425_v37 = vsub.f32 %v2201_v60, %v4046_v40  ;;  %v2436_v28 = vcombine.high %v2379_v55, %v2395_v30 }
 0x149   : > { %v4509_v12 = vpack.c.bf16 %v4424_v26, %v4423_v4  ;;  %v4426_v3 = vsub.f32 %v2202_v52, %v4050_v0  ;;  %v4054_v2 = vrot.slane %v3477_v58, %v11603_v45  ;;  %v4058_v42 = vrot.slane %v3491_v33, %v11603_v45 }
 0x14a   : > { %10955 = vmatmul.mubr.msk.bf16.gmra.mrb[80].mxu0 %vm4547_vm0, %v4508_v61  ;;  %v2451_v47 = vcombine.low %v2386_v53, %v2402_v62  ;;  %v2452_v31 = vcombine.high %v2386_v53, %v2402_v62  ;;  %v2475_v60 = vcombine.low %v11351_v10, %v13066_v63  ;;  %v3454_v56 = vcombine.high %v2894_v13, %v2894_v13 }
 0x14b   : > { %10958 = vmatprep.mubr.msk.bf16.mxu0 %vm4547_vm0, %v4509_v12  ;;  %v13110_v17 = vrot.slane %v2404_v46, %v11625_v57  ;;  %v13113_v20 = vrot.slane %v2419_v44, %v11625_v57  ;;  %v13116_v52 = vrot.slane %v2420_v29, %v11625_v57  ;;  %v13119_v54 = vrot.slane %v2435_v41, %v11625_v57  ;;  %v13163_v12 = vld [vmem:[%s11574_s26 + $0x60] sm:$0xff] }
 0x14c   : > { %v13122_v16 = vrot.slane %v2436_v28, %v11625_v57  ;;  %v3499_v15 = vcombine.high %v3477_v58, %v3477_v58  ;;  %v3501_v8 = vcombine.high %v3491_v33, %v3491_v33  ;;  %v3468_v13 = vrot.slane %v3454_v56, %v16167_v22 }
 0x14d   : > { %v4510_v43 = vpack.c.bf16 %v4426_v3, %v4425_v37  ;;  %v4427_v30 = vsub.f32 %v2331_v38, %v4054_v2  ;;  %v4428_v55 = vsub.f32 %v2332_v6, %v4058_v42  ;;  %v2476_v18 = vcombine.high %v11351_v10, %v13066_v63  ;;  %v686_v6 = vpop.permute.xlu1 %685  ;;  %v638_v63 = vpop.permute.xlu0 %637  ;;  %v11352_v37 = vld [vmem:[%s11449_s11 + $0xd8] sm:$0xff] }
 0x14e   : > { %v13133_v48 = vrot.slane %v2451_v47, %v11625_v57  ;;  %v13136_v5 = vrot.slane %v2452_v31, %v11625_v57  ;;  %v13139_v11 = vrot.slane %v2475_v60, %v11612_v50  ;;  %v3470_v40 = vcombine.high %v3468_v13, %v3468_v13 }
 0x14f   : > { %v2467_v4 = vcombine.low %v13093_v27, %v13119_v54  ;;  %v2468_v38 = vcombine.high %v13093_v27, %v13119_v54  ;;  %v3484_v36 = vrot.slane %v3468_v13, %v16167_v22  ;;  %v2491_v39 = vcombine.low %v13068_v14, %v526_v25 }
 0x150   : > { %v2469_v26 = vcombine.low %v13110_v17, %v13122_v16  ;;  %v4062_v0 = vrot.slane %v3499_v15, %v11603_v45  ;;  %v4066_v46 = vrot.slane %v3501_v8, %v11603_v45  ;;  %v3498_v44 = vrot.slane %v3470_v40, %v16167_v22 }
 0x151   : > { %v2470_v62 = vcombine.high %v13110_v17, %v13122_v16  ;;  %v4511_v53 = vpack.c.bf16 %v4428_v55, %v4427_v30  ;;  %v4070_v29 = vrot.slane %v3484_v36, %v11603_v45  ;;  %v2492_v41 = vcombine.high %v13068_v14, %v526_v25  ;;  %v13188_v7 = vpop.permute.xlu1 %479 }
 0x152   : > { %10959 = vmatmul.mubr.msk.bf16.gmra.mrb[84].mxu0 %vm4547_vm0, %v4510_v43  ;;  %v2471_v58 = vcombine.low %v13113_v20, %v13133_v48  ;;  %v4074_v33 = vrot.slane %v3498_v44, %v11603_v45  ;;  %v2523_v61 = vcombine.low %v13103_v59, %v686_v6  ;;  %v2507_v28 = vcombine.low %v11352_v37, %v638_v63 }
 0x153   : > { %v2472_v3 = vcombine.high %v13113_v20, %v13133_v48  ;;  %10962 = vmatprep.mubr.msk.bf16.mxu0 %vm4547_vm0, %v4511_v53  ;;  %v2490_v14 = vrot.slane %v2476_v18, %v11612_v50  ;;  %v2499_v2 = vrot.slane %v2491_v39, %v11612_v50  ;;  %v3510_v42 = vrot.slane %v13163_v12, %v16167_v22 }
 0x154   : > { %v4429_v25 = vsub.f32 %v2333_v49, %v4062_v0  ;;  %v4430_v47 = vsub.f32 %v2334_v21, %v4066_v46  ;;  %v3500_v31 = vcombine.high %v3484_v36, %v3484_v36  ;;  %v3502_v10 = vcombine.high %v3498_v44, %v3498_v44 }
 0x155   : > { %v4431_v60 = vsub.f32 %v2335_v23, %v4070_v29  ;;  %v4432_v56 = vsub.f32 %v2336_v34, %v4074_v33  ;;  %v2506_v15 = vrot.slane %v2492_v41, %v11612_v50  ;;  %v3518_v8 = vcombine.high %v3510_v42, %v3510_v42  ;;  %v13195_v34 = vpop.permute.xlu0 %431 }
 0x156   : > { %v2524_v13 = vcombine.high %v13103_v59, %v686_v6  ;;  %v2531_v49 = vrot.slane %v2523_v61, %v11612_v50  ;;  %v2508_v43 = vcombine.high %v11352_v37, %v638_v63  ;;  %v2515_v32 = vrot.slane %v2507_v28, %v11612_v50 }
 0x157   : > { %v2473_v21 = vcombine.low %v13116_v52, %v13136_v5  ;;  %v2539_v23 = vcombine.low %v13139_v11, %v2499_v2  ;;  %v3526_v1 = vrot.slane %v3510_v42, %v16167_v22  ;;  %v3540_v9 = vrot.slane %v3518_v8, %v16167_v22  ;;  %v13219_v42 = vpop.permute.xlu1 %591 }
 0x158   : > { %v2474_v59 = vcombine.high %v13116_v52, %v13136_v5  ;;  %v4512_v30 = vpack.c.bf16 %v4430_v47, %v4429_v25  ;;  %v4078_v55 = vrot.slane %v3500_v31, %v11603_v45  ;;  %v4082_v18 = vrot.slane %v3502_v10, %v11603_v45 }
 0x159   : > { %v4513_v40 = vpack.c.bf16 %v4432_v56, %v4431_v60  ;;  %v2540_v36 = vcombine.high %v13139_v11, %v2499_v2  ;;  %v4086_v39 = vrot.slane %v3526_v1, %v11603_v45  ;;  %v4090_v6 = vrot.slane %v3540_v9, %v11603_v45  ;;  %v11353_v11 = vld [vmem:[%s11449_s11 + $0xe0] sm:$0xff]  ;;  %v528_v24 = vpop.permute.xlu0 %527 }
 0x15a   : > { %10963 = vmatmul.mubr.msk.bf16.gmra.mrb[88].mxu0 %vm4547_vm0, %v4512_v30  ;;  %v2555_v63 = vcombine.low %v2490_v14, %v2506_v15  ;;  %v2538_v0 = vrot.slane %v2524_v13, %v11612_v50  ;;  %v2522_v46 = vrot.slane %v2508_v43, %v11612_v50  ;;  %v2571_v44 = vcombine.low %v2515_v32, %v2531_v49 }
 0x15b   : > { %10966 = vmatprep.mubr.msk.bf16.mxu0 %vm4547_vm0, %v4513_v40  ;;  %v13209_v53 = vrot.slane %v2539_v23, %v11625_v57  ;;  %v2556_v29 = vcombine.high %v2490_v14, %v2506_v15  ;;  %v2572_v41 = vcombine.high %v2515_v32, %v2531_v49  ;;  %v2611_v33 = vcombine.low %v11353_v11, %v13188_v7  ;;  %v688_v30 = vpop.permute.xlu1 %687 }
 0x15c   : > { %v4433_v61 = vsub.f32 %v2337_v51, %v4078_v55  ;;  %v4434_v37 = vsub.f32 %v2338_v19, %v4082_v18  ;;  %v3548_v28 = vcombine.high %v3526_v1, %v3526_v1  ;;  %v3550_v2 = vcombine.high %v3540_v9, %v3540_v9 }
 0x15d   : > { %v13222_v25 = vrot.slane %v2540_v36, %v11625_v57  ;;  %v4435_v14 = vsub.f32 %v2467_v4, %v4086_v39  ;;  %v4436_v47 = vsub.f32 %v2468_v38, %v4090_v6  ;;  %v3503_v51 = vcombine.high %v13163_v12, %v13163_v12  ;;  %v640_v39 = vpop.permute.xlu0 %639 }
 0x15e   : > { %v13233_v35 = vrot.slane %v2555_v63, %v11625_v57  ;;  %v13236_v19 = vrot.slane %v2571_v44, %v11625_v57  ;;  %v2587_v31 = vcombine.low %v2522_v46, %v2538_v0  ;;  %v2588_v10 = vcombine.high %v2522_v46, %v2538_v0 }
 0x15f   : > { %v13239_v60 = vrot.slane %v2556_v29, %v11625_v57  ;;  %v13242_v4 = vrot.slane %v2572_v41, %v11625_v57  ;;  %v2612_v27 = vcombine.high %v11353_v11, %v13188_v7  ;;  %v3517_v54 = vrot.slane %v3503_v51, %v16167_v22  ;;  %v13284_v11 = vld [vmem:[%s11574_s26 + $0x68] sm:$0xff]  ;;  %v13291_v16 = vpop.permute.xlu1 %481 }
 0x160   : > { %v4514_v38 = vpack.c.bf16 %v4434_v37, %v4433_v61  ;;  %v13247_v56 = vrot.slane %v2611_v33, %v11612_v50  ;;  %v4094_v15 = vrot.slane %v3548_v28, %v11603_v45  ;;  %v4098_v8 = vrot.slane %v3550_v2, %v11603_v45  ;;  %v11354_v61 = vld [vmem:[%s11449_s11 + $0xe8] sm:$0xff] }
 0x161   : > { %v4515_v13 = vpack.c.bf16 %v4436_v47, %v4435_v14  ;;  %v3519_v49 = vcombine.high %v3517_v54, %v3517_v54  ;;  %v3533_v43 = vrot.slane %v3517_v54, %v16167_v22  ;;  %v2627_v32 = vcombine.low %v13195_v34, %v528_v24 }
 0x162   : > { %10967 = vmatmul.mubr.msk.bf16.gmra.mrb[92].mxu0 %vm4547_vm0, %v4514_v38  ;;  %v13255_v7 = vrot.slane %v2587_v31, %v11625_v57  ;;  %v13258_v23 = vrot.slane %v2588_v10, %v11625_v57  ;;  %v2603_v1 = vcombine.low %v13209_v53, %v13236_v19  ;;  %v2604_v9 = vcombine.high %v13209_v53, %v13236_v19  ;;  %v13300_v31 = vpop.permute.xlu0 %433 }
 0x163   : > { %v2605_v55 = vcombine.low %v13222_v25, %v13242_v4  ;;  %10970 = vmatprep.mubr.msk.bf16.mxu0 %vm4547_vm0, %v4515_v13  ;;  %v3547_v18 = vrot.slane %v3519_v49, %v16167_v22  ;;  %v4102_v40 = vrot.slane %v3533_v43, %v11603_v45  ;;  %v2628_v36 = vcombine.high %v13195_v34, %v528_v24 }
 0x164   : > { %v2606_v6 = vcombine.high %v13222_v25, %v13242_v4  ;;  %v4437_v63 = vsub.f32 %v2469_v26, %v4094_v15  ;;  %v4438_v0 = vsub.f32 %v2470_v62, %v4098_v8  ;;  %v3549_v46 = vcombine.high %v3533_v43, %v3533_v43 }
 0x165   : > { %v4106_v44 = vrot.slane %v3547_v18, %v11603_v45  ;;  %v4439_v29 = vsub.f32 %v2471_v58, %v4102_v40  ;;  %v2635_v34 = vrot.slane %v2627_v32, %v11612_v50  ;;  %v3551_v41 = vcombine.high %v3547_v18, %v3547_v18 }
 0x166   : > { %v2626_v33 = vrot.slane %v2612_v27, %v11612_v50  ;;  %v2659_v26 = vcombine.low %v13219_v42, %v688_v30  ;;  %v2643_v37 = vcombine.low %v11354_v61, %v640_v39  ;;  %v3559_v17 = vrot.slane %v13284_v11, %v16167_v22 }
 0x167   : > { %v4440_v62 = vsub.f32 %v2472_v3, %v4106_v44  ;;  %v2642_v58 = vrot.slane %v2628_v36, %v11612_v50  ;;  %v2660_v28 = vcombine.high %v13219_v42, %v688_v30  ;;  %v2644_v2 = vcombine.high %v11354_v61, %v640_v39  ;;  %v13338_v39 = vpop.permute.xlu0 %529 }
 0x168   : > { %v4516_v14 = vpack.c.bf16 %v4438_v0, %v4437_v63  ;;  %v4110_v47 = vrot.slane %v3549_v46, %v11603_v45  ;;  %v4114_v51 = vrot.slane %v3551_v41, %v11603_v45  ;;  %v3567_v24 = vcombine.high %v3559_v17, %v3559_v17 }
 0x169   : > { %v2607_v10 = vcombine.low %v13233_v35, %v13255_v7  ;;  %v4517_v27 = vpack.c.bf16 %v4440_v62, %v4439_v29  ;;  %v2675_v20 = vcombine.low %v13247_v56, %v2635_v34  ;;  %v2676_v48 = vcombine.high %v13247_v56, %v2635_v34 }
 0x16a   : > { %v2608_v3 = vcombine.high %v13233_v35, %v13255_v7  ;;  %v2609_v42 = vcombine.low %v13239_v60, %v13258_v23  ;;  %10971 = vmatmul.mubr.msk.bf16.gmra.mrb[96].mxu0 %vm4547_vm0, %v4516_v14  ;;  %v2667_v54 = vrot.slane %v2659_v26, %v11612_v50  ;;  %v2651_v38 = vrot.slane %v2643_v37, %v11612_v50  ;;  %v13326_v7 = vpop.permute.xlu1 %593 }
 0x16b   : > { %v2610_v15 = vcombine.high %v13239_v60, %v13258_v23  ;;  %10974 = vmatprep.mubr.msk.bf16.mxu0 %vm4547_vm0, %v4517_v27  ;;  %v2691_v8 = vcombine.low %v2626_v33, %v2642_v58  ;;  %v2674_v56 = vrot.slane %v2660_v28, %v11612_v50  ;;  %v2658_v13 = vrot.slane %v2644_v2, %v11612_v50 }
 0x16c   : > { %v4441_v35 = vsub.f32 %v2473_v21, %v4110_v47  ;;  %v4442_v49 = vsub.f32 %v2474_v59, %v4114_v51  ;;  %v3575_v43 = vrot.slane %v3559_v17, %v16167_v22  ;;  %v3589_v32 = vrot.slane %v3567_v24, %v16167_v22 }
 0x16d   : > { %v13329_v30 = vrot.slane %v2675_v20, %v11625_v57  ;;  %v13332_v18 = vrot.slane %v2676_v48, %v11625_v57  ;;  %v2692_v40 = vcombine.high %v2626_v33, %v2642_v58  ;;  %v3552_v21 = vcombine.high %v13284_v11, %v13284_v11  ;;  %v642_v48 = vpop.permute.xlu0 %641 }
 0x16e   : > { %v2707_v36 = vcombine.low %v2651_v38, %v2667_v54  ;;  %v4118_v52 = vrot.slane %v3575_v43, %v11603_v45  ;;  %v4122_v5 = vrot.slane %v3589_v32, %v11603_v45  ;;  %v3597_v59 = vcombine.high %v3575_v43, %v3575_v43  ;;  %v13360_v19 = vpop.permute.xlu1 %689  ;;  %v11356_v43 = vld [vmem:[%s11449_s11 + $0xf8] sm:$0xff] }
 0x16f   : > { %v2708_v63 = vcombine.high %v2651_v38, %v2667_v54  ;;  %v2723_v0 = vcombine.low %v2658_v13, %v2674_v56  ;;  %v3599_v46 = vcombine.high %v3589_v32, %v3589_v32  ;;  %v3566_v44 = vrot.slane %v3552_v21, %v16167_v22  ;;  %v13399_v32 = vld [vmem:[%s11574_s26 + $0x70] sm:$0xff] }
 0x170   : > { %v4518_v29 = vpack.c.bf16 %v4442_v49, %v4441_v35  ;;  %v4443_v34 = vsub.f32 %v2603_v1, %v4118_v52  ;;  %v4444_v41 = vsub.f32 %v2604_v9, %v4122_v5  ;;  %v4126_v33 = vrot.slane %v3597_v59, %v11603_v45  ;;  %v11355_v9 = vld [vmem:[%s11449_s11 + $0xf0] sm:$0xff] }
 0x171   : > { %v2724_v26 = vcombine.high %v2658_v13, %v2674_v56  ;;  %v4130_v61 = vrot.slane %v3599_v46, %v11603_v45  ;;  %v3568_v37 = vcombine.high %v3566_v44, %v3566_v44  ;;  %v3582_v17 = vrot.slane %v3566_v44, %v16167_v22 }
 0x172   : > { %v13351_v62 = vrot.slane %v2691_v8, %v11625_v57  ;;  %v13354_v58 = vrot.slane %v2692_v40, %v11625_v57  ;;  %10975 = vmatmul.mubr.msk.bf16.gmra.mrb[100].mxu0 %vm4547_vm0, %v4518_v29  ;;  %v13358_v1 = vrot.slane %v2707_v36, %v11625_v57  ;;  %v4519_v53 = vpack.c.bf16 %v4444_v41, %v4443_v34 }
 0x173   : > { %v2747_v28 = vcombine.low %v11355_v9, %v13291_v16  ;;  %v3596_v2 = vrot.slane %v3568_v37, %v16167_v22  ;;  %v4134_v14 = vrot.slane %v3582_v17, %v11603_v45  ;;  %v2763_v47 = vcombine.low %v13300_v31, %v13338_v39 }
 0x174   : > { %v13369_v51 = vrot.slane %v2708_v63, %v11625_v57  ;;  %v13372_v24 = vrot.slane %v2723_v0, %v11625_v57  ;;  %10978 = vmatprep.mubr.msk.bf16.mxu0 %vm4547_vm0, %v4519_v53  ;;  %v4445_v27 = vsub.f32 %v2605_v55, %v4126_v33  ;;  %v4446_v20 = vsub.f32 %v2606_v6, %v4130_v61  ;;  %v13449_v53 = vld [vmem:[%s11574_s26 + $0x78] sm:$0xff] }
 0x175   : > { %v13382_v54 = vrot.slane %v2724_v26, %v11625_v57  ;;  %v4138_v38 = vrot.slane %v3596_v2, %v11603_v45  ;;  %v4447_v8 = vsub.f32 %v2607_v10, %v4134_v14  ;;  %v2795_v56 = vcombine.low %v13326_v7, %v13360_v19 }
 0x176   : > { %v2739_v13 = vcombine.low %v13329_v30, %v13358_v1  ;;  %v2740_v55 = vcombine.high %v13329_v30, %v13358_v1  ;;  %v3598_v35 = vcombine.high %v3582_v17, %v3582_v17  ;;  %v3600_v25 = vcombine.high %v3596_v2, %v3596_v2 }
 0x177   : > { %v13392_v4 = vrot.slane %v2747_v28, %v11612_v50  ;;  %v4448_v6 = vsub.f32 %v2608_v3, %v4138_v38  ;;  %v13395_v49 = vrot.slane %v2763_v47, %v11612_v50  ;;  %v2779_v10 = vcombine.low %v11356_v43, %v642_v48 }
 0x178   : > { %v4520_v40 = vpack.c.bf16 %v4446_v20, %v4445_v27  ;;  %v4142_v21 = vrot.slane %v3598_v35, %v11603_v45  ;;  %v4146_v36 = vrot.slane %v3600_v25, %v11603_v45  ;;  %v3608_v30 = vrot.slane %v13399_v32, %v16167_v22 }
 0x179   : > { %v2748_v52 = vcombine.high %v11355_v9, %v13291_v16  ;;  %v4521_v5 = vpack.c.bf16 %v4448_v6, %v4447_v8  ;;  %v13407_v3 = vrot.slane %v2795_v56, %v11612_v50  ;;  %v13410_v59 = vrot.slane %v2779_v10, %v11612_v50 }
 0x17a   : > { %v2741_v63 = vcombine.low %v13332_v18, %v13369_v51  ;;  %10979 = vmatmul.mubr.msk.bf16.gmra.mrb[104].mxu0 %vm4547_vm0, %v4520_v40  ;;  %v2764_v0 = vcombine.high %v13300_v31, %v13338_v39  ;;  %v3616_v46 = vcombine.high %v3608_v30, %v3608_v30  ;;  %v3624_v44 = vrot.slane %v3608_v30, %v16167_v22 }
 0x17b   : > { %10982 = vmatprep.mubr.msk.bf16.mxu0 %vm4547_vm0, %v4521_v5  ;;  %v2811_v16 = vcombine.low %v13392_v4, %v13395_v49  ;;  %v2796_v29 = vcombine.high %v13326_v7, %v13360_v19  ;;  %v4449_v34 = vsub.f32 %v2609_v42, %v4142_v21  ;;  %v2780_v41 = vcombine.high %v11356_v43, %v642_v48  ;;  %v13438_v42 = vpop.f32.mrb[0].mxu0 }
 0x17c   : > { %v4450_v31 = vsub.f32 %v2610_v15, %v4146_v36  ;;  %v3638_v39 = vrot.slane %v3616_v46, %v16167_v22  ;;  %v4150_v33 = vrot.slane %v3624_v44, %v11603_v45  ;;  %v3646_v26 = vcombine.high %v3624_v44, %v3624_v44  ;;  %v13442_v23 = vpop.f32.mrb[1].mxu0 }
 0x17d   : > { %v2742_v61 = vcombine.high %v13332_v18, %v13369_v51  ;;  %v2743_v7 = vcombine.low %v13351_v62, %v13372_v24  ;;  %v13436_v37 = vrot.slane %v2748_v52, %v11612_v50  ;;  %v2843_v60 = vcombine.low %v13410_v59, %v13407_v3  ;;  %v13457_v28 = vpop.f32.mrb[2].mxu0 }
 0x17e   : > { %v4154_v15 = vrot.slane %v3638_v39, %v11603_v45  ;;  %v3648_v17 = vcombine.high %v3638_v39, %v3638_v39  ;;  %v4158_v1 = vrot.slane %v3646_v26, %v11603_v45  ;;  %v3601_v18 = vcombine.high %v13399_v32, %v13399_v32  ;;  %v13463_v51 = vpop.f32.mrb[3].mxu0 }
 0x17f   : > { %v13452_v19 = vrot.slane %v2764_v0, %v11612_v50  ;;  %v13455_v9 = vrot.slane %v2811_v16, %v11625_v57  ;;  %v4451_v2 = vsub.f32 %v2739_v13, %v4150_v33  ;;  %v3657_v14 = vrot.slane %v13449_v53, %v16167_v22 }
 0x180   : > { %v5286_v47 = vpack.c.bf16 %v13457_v28, %v13438_v42  ;;  %v13466_v27 = vrot.slane %v2796_v29, %v11612_v50  ;;  %v4522_v20 = vpack.c.bf16 %v4450_v31, %v4449_v34  ;;  %v13469_v48 = vrot.slane %v2780_v41, %v11612_v50 }
 0x181   : > { %v5285_v38 = vpack.c.bf16 %v13463_v51, %v13442_v23  ;;  %v2851_v8 = vrot.slane %v2843_v60, %v11625_v57  ;;  %v4452_v56 = vsub.f32 %v2740_v55, %v4154_v15  ;;  %v4162_v13 = vrot.slane %v3648_v17, %v11603_v45  ;;  %v11357_v23 = vld [vmem:[%s15977_s4] sm:$0xff]  }
 0x182   : > { %v2744_v35 = vcombine.high %v13351_v62, %v13372_v24  ;;  %v2745_v25 = vcombine.low %v13354_v58, %v13382_v54  ;;  %10983 = vmatmul.mubr.msk.bf16.gmra.mrb[108].mxu0 %vm4547_vm0, %v4522_v20  ;;  %v4453_v6 = vsub.f32 %v2741_v63, %v4158_v1  ;;  %v3615_v50 = vrot.slane %v3601_v18, %v16167_v22 }
 0x183   : > { %v4523_v43 = vpack.c.bf16 %v4452_v56, %v4451_v2  ;;  %v4454_v10 = vsub.f32 %v2742_v61, %v4162_v13  ;;  %v3665_v40 = vcombine.high %v3657_v14, %v3657_v14  ;;  %v3650_v21 = vcombine.high %v13449_v53, %v13449_v53 }
 0x184   : > { %v2746_v55 = vcombine.high %v13354_v58, %v13382_v54  ;;  %v2812_v62 = vcombine.high %v13392_v4, %v13395_v49  ;;  %v3617_v24 = vcombine.high %v3615_v50, %v3615_v50  ;;  %v3631_v36 = vrot.slane %v3615_v50, %v16167_v22  ;;  %v13496_v58 = vpop.f32.mrb[4].mxu0 }
 0x185   : > { %v2827_v30 = vcombine.low %v13436_v37, %v13452_v19  ;;  %v2844_v52 = vcombine.high %v13410_v59, %v13407_v3  ;;  %v2859_v5 = vcombine.low %v13469_v48, %v13466_v27  ;;  %v2875_v63 = vcombine.low %v13455_v9, %v2851_v8  ;;  %10986 = vmatprep.mubr.msk.bf16.mxu0 %vm4547_vm0, %v4523_v43  ;;  %v13499_v4 = vpop.f32.mrb[5].mxu0 }
 0x186   : > { %v2876_v54 = vcombine.high %v13455_v9, %v2851_v8  ;;  %v3645_v49 = vrot.slane %v3617_v24, %v16167_v22  ;;  %v4166_v0 = vrot.slane %v3631_v36, %v11603_v45  ;;  %v3647_v46 = vcombine.high %v3631_v36, %v3631_v36  ;;  %v13503_v44 = vpop.f32.mrb[6].mxu0 }
 0x187   : > { %v4524_v3 = vpack.c.bf16 %v4454_v10, %v4453_v6  ;;  %v3673_v59 = vrot.slane %v3657_v14, %v16167_v22  ;;  %v3687_v16 = vrot.slane %v3665_v40, %v16167_v22  ;;  %v3664_v29 = vrot.slane %v3650_v21, %v16167_v22  ;;  %v13510_v41 = vpop.f32.mrb[7].mxu0 }
 0x188   : > { %v5288_v34 = vpack.c.bf16 %v13503_v44, %v13496_v58  ;;  %v4170_v31 = vrot.slane %v3645_v49, %v11603_v45  ;;  %v4455_v39 = vsub.f32 %v2743_v7, %v4166_v0  ;;  %v3649_v33 = vcombine.high %v3645_v49, %v3645_v49  ;;  %v13524_v50 = vpop.f32.mrb[8].mxu0 }
 0x189   : > { %v5287_v26 = vpack.c.bf16 %v13510_v41, %v13499_v4  ;;  %v4174_v61 = vrot.slane %v3647_v46, %v11603_v45  ;;  %v4182_v60 = vrot.slane %v3673_v59, %v11603_v45  ;;  %v4186_v15 = vrot.slane %v3687_v16, %v11603_v45  ;;  %v13531_v24 = vpop.f32.mrb[9].mxu0 }
 0x18a   : > { %v2826_v17 = vrot.slane %v2812_v62, %v11625_v57  ;;  %v2858_v1 = vrot.slane %v2844_v52, %v11625_v57  ;;  %10987 = vmatmul.mubr.msk.bf16.gmra.mrb[112].mxu0 %vm4547_vm0, %v4524_v3  ;;  %v4456_v18 = vsub.f32 %v2744_v35, %v4170_v31  ;;  %v4178_v9 = vrot.slane %v3649_v33, %v11603_v45 }
 0x18b   : > { %v2835_v7 = vrot.slane %v2827_v30, %v11625_v57  ;;  %v2867_v2 = vrot.slane %v2859_v5, %v11625_v57  ;;  %v3695_v14 = vcombine.high %v3673_v59, %v3673_v59  ;;  %v3666_v20 = vcombine.high %v3664_v29, %v3664_v29 }
 0x18c   : > { %v4525_v8 = vpack.c.bf16 %v4456_v18, %v4455_v39  ;;  %v4457_v56 = vsub.f32 %v2745_v25, %v4174_v61  ;;  %v4458_v13 = vsub.f32 %v2746_v55, %v4178_v9  ;;  %v3697_v6 = vcombine.high %v3687_v16, %v3687_v16  ;;  %v13533_v55 = vpop.f32.mrb[10].mxu0 }
 0x18d   : > { %v4459_v43 = vsub.f32 %v2875_v63, %v4182_v60  ;;  %v4460_v10 = vsub.f32 %v2876_v54, %v4186_v15  ;;  %v2828_v40 = vcombine.high %v13436_v37, %v13452_v19  ;;  %v2860_v35 = vcombine.high %v13469_v48, %v13466_v27  ;;  %v13539_v19 = vpop.f32.mrb[11].mxu0 }
 0x18e   : > { %v2877_v21 = vcombine.low %v2826_v17, %v2858_v1  ;;  %v2878_v62 = vcombine.high %v2826_v17, %v2858_v1  ;;  %10990 = vmatprep.mubr.msk.bf16.mxu0 %vm4547_vm0, %v4525_v8  ;;  %v2879_v36 = vcombine.low %v2835_v7, %v2867_v2  ;;  %v2880_v25 = vcombine.high %v2835_v7, %v2867_v2 }
 0x18f   : > { %v3680_v30 = vrot.slane %v3664_v29, %v16167_v22  ;;  %v3694_v52 = vrot.slane %v3666_v20, %v16167_v22  ;;  %v5290_v37 = vpack.c.bf16 %v13533_v55, %v13524_v50  ;;  %v4526_v27 = vpack.c.bf16 %v4458_v13, %v4457_v56 }
 0x190   : > { %v4190_v48 = vrot.slane %v3695_v14, %v11603_v45  ;;  %v4194_v5 = vrot.slane %v3697_v6, %v11603_v45  ;;  %v5289_v63 = vpack.c.bf16 %v13539_v19, %v13531_v24  ;;  %v4527_v54 = vpack.c.bf16 %v4460_v10, %v4459_v43  ;;  %v13551_v39 = vpop.f32.mrb[12].mxu0 }
 0x191   : > { %v4198_v49 = vrot.slane %v3680_v30, %v11603_v45  ;;  %v4202_v0 = vrot.slane %v3694_v52, %v11603_v45  ;;  %v2842_v46 = vrot.slane %v2828_v40, %v11625_v57  ;;  %v2874_v3 = vrot.slane %v2860_v35, %v11625_v57  ;;  %v4822_v60 = vpop.f32.mrb[13].mxu0 }
 0x192   : > { %10991 = vmatmul.mubr.msk.bf16.gmra.mrb[116].mxu0 %vm4547_vm0, %v4526_v27  ;;  %v4461_v59 = vsub.f32 %v2877_v21, %v4190_v48  ;;  %v4462_v16 = vsub.f32 %v2878_v62, %v4194_v5  ;;  %v3696_v29 = vcombine.high %v3680_v30, %v3680_v30  ;;  %v3698_v31 = vcombine.high %v3694_v52, %v3694_v52  ;;  %v10889_v1 = vpop.f32.mrb[14].mxu0  ;;  %v11329_v52 = vld [vmem:[%s15977_s4 + $0x8] sm:$0xff]  }
 0x193   : > { %10994 = vmatprep.mubr.msk.bf16.mxu0 %vm4547_vm0, %v4527_v54  ;;  %v4463_v33 = vsub.f32 %v2879_v36, %v4198_v49  ;;  %v4464_v61 = vsub.f32 %v2880_v25, %v4202_v0  ;;  %v2881_v15 = vcombine.low %v2842_v46, %v2874_v3  ;;  %v2882_v17 = vcombine.high %v2842_v46, %v2874_v3  ;;  %v4825_v9 = vpop.f32.mrb[15].mxu0 }
 0x194   : > { %v5292_v18 = vpack.c.bf16 %v10889_v1, %v13551_v39  ;;  %v4528_v7 = vpack.c.bf16 %v4462_v16, %v4461_v59  ;;  %v4206_v57 = vrot.slane %v3696_v29, %v11603_v45  ;;  %v4210_v2 = vrot.slane %v3698_v31, %v11603_v45 }
 0x195   : > { %v5291_v14 = vpack.c.bf16 %v4825_v9, %v4822_v60  ;;  %v4529_v20 = vpack.c.bf16 %v4464_v61, %v4463_v33 }
 0x196   : > { %v4465_v8 = vsub.f32 %v2881_v15, %v4206_v57  ;;  %v4466_v56 = vsub.f32 %v2882_v17, %v4210_v2 }
 0x198   : > { %v4530_v35 = vpack.c.bf16 %v4466_v56, %v4465_v8 }
 0x199   : > { %v10892_v13 = vpop.f32.mrb[16].mxu0 }
 0x19a   : > { %10995 = vmatmul.mubr.msk.bf16.gmra.mrb[120].mxu0 %vm4547_vm0, %v4528_v7  ;;  %v4838_v6 = vpop.f32.mrb[17].mxu0 }
 0x19b   : > { %10998 = vmatprep.mubr.msk.bf16.mxu0 %vm4547_vm0, %v4529_v20  ;;  %v10893_v43 = vpop.f32.mrb[18].mxu0 }
 0x19c   : > { %v5294_v10 = vpack.c.bf16 %v10893_v43, %v10892_v13  ;;  %v4841_v40 = vpop.f32.mrb[19].mxu0 }
 0x19d   : > { %v5293_v21 = vpack.c.bf16 %v4841_v40, %v4838_v6 }
 0x1a1   : > { %v10896_v62 = vpop.f32.mrb[20].mxu0 }
 0x1a2   : > { %10999 = vmatmul.mubr.msk.bf16.gmra.mrb[124].mxu0 %vm4547_vm0, %v4530_v35  ;;  %v4854_v24 = vpop.f32.mrb[21].mxu0 }
 0x1a3   : > { %11006 = vmatprep.mubr.msk.bf16.mxu0 %vm4547_vm0, %v5285_v38  ;;  %v10897_v36 = vpop.f32.mrb[22].mxu0 }
 0x1a4   : > { %v5296_v25 = vpack.c.bf16 %v10897_v36, %v10896_v62  ;;  %v4857_v30 = vpop.f32.mrb[23].mxu0 }
 0x1a5   : > { %v5295_v19 = vpack.c.bf16 %v4857_v30, %v4854_v24  ;;  %v11330_v30 = vld [vmem:[%s15979_s6] sm:$0xff]  }
 0x1a6   : > { %11154 = vmatprep.subr.bf16.mxu1 %v11330_v30 }
 0x1a9   : > { %v10900_v51 = vpop.f32.mrb[24].mxu0 }
 0x1aa   : > { %11007 = vmatmul.mubr.msk.bf16.vlgmr.msra.gmra.mrb[128].mxu0 %vm4547_vm0, %v5286_v47  ;;  %v4870_v38 = vpop.f32.mrb[25].mxu0 }
 0x1ab   : > { %11135 = vmatpush3.bf16.msra.mxu0 %v11357_v23  ;;  %11010 = vmatprep.mubr.msk.bf16.mxu0 %vm4547_vm0, %v5287_v26  ;;  %v10901_v27 = vpop.f32.mrb[26].mxu0 }
 0x1ac   : > { %11136 = vmatprep.subr.bf16.mxu0 %v11329_v52  ;;  %v5298_v48 = vpack.c.bf16 %v10901_v27, %v10900_v51  ;;  %v4873_v5 = vpop.f32.mrb[27].mxu0 }
 0x1ad   : > { %v5297_v42 = vpack.c.bf16 %v4873_v5, %v4870_v38 }
 0x1af   : > { %11137 = vmatpush3.bf16.msra.mxu0 %v11329_v52 }
 0x1b1   : > { %v10904_v28 = vpop.f32.mrb[28].mxu0 }
 0x1b2   : > { %11011 = vmatmul.mubr.msk.bf16.gmra.mrb[132].mxu0 %vm4547_vm0, %v5288_v34  ;;  %v4886_v47 = vpop.f32.mrb[29].mxu0 }
 0x1b3   : > { %11014 = vmatprep.mubr.msk.bf16.mxu0 %vm4547_vm0, %v5289_v63  ;;  %v10905_v4 = vpop.f32.mrb[30].mxu0 }
 0x1b4   : > { %v5300_v41 = vpack.c.bf16 %v10905_v4, %v10904_v28  ;;  %v4889_v26 = vpop.f32.mrb[31].mxu0 }
 0x1b5   : > { %v5299_v54 = vpack.c.bf16 %v4889_v26, %v4886_v47 }
 0x1b9   : > { %v10908_v49 = vpop.f32.mrb[32].mxu0 }
 0x1ba   : > { %11015 = vmatmul.mubr.msk.bf16.gmra.mrb[136].mxu0 %vm4547_vm0, %v5290_v37  ;;  %v4902_v0 = vpop.f32.mrb[33].mxu0 }
 0x1bb   : > { %11018 = vmatprep.mubr.msk.bf16.mxu0 %vm4547_vm0, %v5291_v14  ;;  %v10909_v58 = vpop.f32.mrb[34].mxu0 }
 0x1bc   : > { %v5302_v44 = vpack.c.bf16 %v10909_v58, %v10908_v49  ;;  %v4905_v34 = vpop.f32.mrb[35].mxu0 }
 0x1bd   : > { %v5301_v46 = vpack.c.bf16 %v4905_v34, %v4902_v0 }
 0x1c1   : > { %v10912_v63 = vpop.f32.mrb[36].mxu0 }
 0x1c2   : > { %11019 = vmatmul.mubr.msk.bf16.gmra.mrb[140].mxu0 %vm4547_vm0, %v5292_v18  ;;  %v4918_v3 = vpop.f32.mrb[37].mxu0 }
 0x1c3   : > { %11022 = vmatprep.mubr.msk.bf16.mxu0 %vm4547_vm0, %v5293_v21  ;;  %v10913_v59 = vpop.f32.mrb[38].mxu0 }
 0x1c4   : > { %v5304_v16 = vpack.c.bf16 %v10913_v59, %v10912_v63  ;;  %v4921_v29 = vpop.f32.mrb[39].mxu0  ;;  %v11358_v63 = vld [vmem:[%s11574_s26] sm:$0xff] }
 0x1c5   : > { %v5303_v50 = vpack.c.bf16 %v4921_v29, %v4918_v3  ;;  %v11359_v3 = vld [vmem:[%s11574_s26 + $0x8] sm:$0xff] }
 0x1c6   : > { %v6109_v59 = vpack.c.bf16 %v11359_v3, %v11358_v63 }
 0x1c9   : > { %v10916_v55 = vpop.f32.mrb[40].mxu0 }
 0x1ca   : > { %11023 = vmatmul.mubr.msk.bf16.gmra.mrb[144].mxu0 %vm4547_vm0, %v5294_v10  ;;  %v4934_v37 = vpop.f32.mrb[41].mxu0 }
 0x1cb   : > { %11026 = vmatprep.mubr.msk.bf16.mxu0 %vm4547_vm0, %v5295_v19  ;;  %v10917_v31 = vpop.f32.mrb[42].mxu0 }
 0x1cc   : > { %v5306_v39 = vpack.c.bf16 %v10917_v31, %v10916_v55  ;;  %v4937_v33 = vpop.f32.mrb[43].mxu0  ;;  %v11331_v55 = vld [vmem:[%s15979_s6 + $0x8] sm:$0xff]  }
 0x1cd   : > { %v5305_v61 = vpack.c.bf16 %v4937_v33, %v4934_v37  ;;  %v11361_v33 = vld [vmem:[%s11574_s26 + $0x18] sm:$0xff] }
 0x1d1   : > { %v10920_v60 = vpop.f32.mrb[44].mxu0 }
 0x1d2   : > { %11027 = vmatmul.mubr.msk.bf16.gmra.mrb[148].mxu0 %vm4547_vm0, %v5296_v25  ;;  %v4950_v15 = vpop.f32.mrb[45].mxu0 }
 0x1d3   : > { %11030 = vmatprep.mubr.msk.bf16.mxu0 %vm4547_vm0, %v5297_v42  ;;  %v10921_v17 = vpop.f32.mrb[46].mxu0 }
 0x1d4   : > { %v5308_v1 = vpack.c.bf16 %v10921_v17, %v10920_v60  ;;  %v4953_v18 = vpop.f32.mrb[47].mxu0  ;;  %v11363_v17 = vld [vmem:[%s11574_s26 + $0x28] sm:$0xff] }
 0x1d5   : > { %v5307_v9 = vpack.c.bf16 %v4953_v18, %v4950_v15  ;;  %v11362_v15 = vld [vmem:[%s11574_s26 + $0x20] sm:$0xff] }
 0x1d9   : > { %v10924_v7 = vpop.f32.mrb[48].mxu0 }
 0x1da   : > { %11031 = vmatmul.mubr.msk.bf16.gmra.mrb[152].mxu0 %vm4547_vm0, %v5298_v48  ;;  %v4966_v57 = vpop.f32.mrb[49].mxu0 }
 0x1db   : > { %11034 = vmatprep.mubr.msk.bf16.mxu0 %vm4547_vm0, %v5299_v54  ;;  %v10925_v2 = vpop.f32.mrb[50].mxu0 }
 0x1dc   : > { %v5310_v14 = vpack.c.bf16 %v10925_v2, %v10924_v7  ;;  %v4969_v20 = vpop.f32.mrb[51].mxu0 }
 0x1dd   : > { %v5309_v8 = vpack.c.bf16 %v4969_v20, %v4966_v57  ;;  %v11365_v20 = vld [vmem:[%s11574_s26 + $0x38] sm:$0xff] }
 0x1e1   : > { %v10928_v56 = vpop.f32.mrb[52].mxu0 }
 0x1e2   : > { %11035 = vmatmul.mubr.msk.bf16.gmra.mrb[156].mxu0 %vm4547_vm0, %v5300_v41  ;;  %v4982_v13 = vpop.f32.mrb[53].mxu0 }
 0x1e3   : > { %11038 = vmatprep.mubr.msk.bf16.mxu0 %vm4547_vm0, %v5301_v46  ;;  %v10929_v6 = vpop.f32.mrb[54].mxu0 }
 0x1e4   : > { %v5312_v43 = vpack.c.bf16 %v10929_v6, %v10928_v56  ;;  %v4985_v10 = vpop.f32.mrb[55].mxu0  ;;  %v11367_v6 = vld [vmem:[%s11574_s26 + $0x48] sm:$0xff] }
 0x1e5   : > { %v5311_v40 = vpack.c.bf16 %v4985_v10, %v4982_v13  ;;  %v11366_v13 = vld [vmem:[%s11574_s26 + $0x40] sm:$0xff] }
 0x1e9   : > { %v10932_v35 = vpop.f32.mrb[56].mxu0 }
 0x1ea   : > { %11039 = vmatmul.mubr.msk.bf16.gmra.mrb[160].mxu0 %vm4547_vm0, %v5302_v44  ;;  %v4998_v21 = vpop.f32.mrb[57].mxu0 }
 0x1eb   : > { %11042 = vmatprep.mubr.msk.bf16.mxu0 %vm4547_vm0, %v5303_v50  ;;  %v10933_v62 = vpop.f32.mrb[58].mxu0 }
 0x1ec   : > { %v5314_v24 = vpack.c.bf16 %v10933_v62, %v10932_v35  ;;  %v5001_v36 = vpop.f32.mrb[59].mxu0 }
 0x1ed   : > { %v5313_v25 = vpack.c.bf16 %v5001_v36, %v4998_v21  ;;  %v11369_v36 = vld [vmem:[%s11574_s26 + $0x58] sm:$0xff] }
 0x1ef   : > { %11062 = vmatprep.mubr.msk.bf16.mxu1 %vm4547_vm0, %v5313_v25 }
 0x1f0   : > { %11063 = vmatmul.mubr.msk.bf16.vlgmr.msra.gmra.mrb[0].mxu1 %vm4547_vm0, %v5314_v24  ;;  %v11368_v24 = vld [vmem:[%s11574_s26 + $0x50] sm:$0xff] }
 0x1f1   : > { %v10936_v52 = vpop.f32.mrb[60].mxu0  ;;  %11155 = vmatpush3.bf16.msra.mxu1 %v11330_v30  ;;  %v6114_v25 = vpack.c.bf16 %v11369_v36, %v11368_v24 }
 0x1f2   : > { %11043 = vmatmul.mubr.msk.bf16.gmra.mrb[164].mxu0 %vm4547_vm0, %v5304_v16  ;;  %v5014_v19 = vpop.f32.mrb[61].mxu0  ;;  %11156 = vmatprep.subr.bf16.mxu1 %v11331_v55 }
 0x1f3   : > { %11046 = vmatprep.mubr.msk.bf16.mxu0 %vm4547_vm0, %v5305_v61  ;;  %v10937_v23 = vpop.f32.mrb[62].mxu0 }
 0x1f4   : > { %v5316_v51 = vpack.c.bf16 %v10937_v23, %v10936_v52  ;;  %v5017_v38 = vpop.f32.mrb[63].mxu0  ;;  %v6115_v52 = vpack.c.bf16 %v13284_v11, %v13163_v12 }
 0x1f5   : > { %v5315_v27 = vpack.c.bf16 %v5017_v38, %v5014_v19  ;;  %11157 = vmatpush3.bf16.msra.mxu1 %v11331_v55 }
 0x1f7   : > { %11066 = vmatprep.mubr.msk.bf16.mxu1 %vm4547_vm0, %v5315_v27 }
 0x1f8   : > { %11067 = vmatmul.mubr.msk.bf16.gmra.mrb[4].mxu1 %vm4547_vm0, %v5316_v51 }
 0x1f9   : > { %v10940_v48 = vpop.f32.mrb[64].mxu0 }
 0x1fa   : > { %11047 = vmatmul.mubr.msk.bf16.gmra.mrb[168].mxu0 %vm4547_vm0, %v5306_v39  ;;  %v5030_v5 = vpop.f32.mrb[65].mxu0  ;;  %v11360_v39 = vld [vmem:[%s11574_s26 + $0x10] sm:$0xff] }
 0x1fb   : > { %11050 = vmatprep.mubr.msk.bf16.mxu0 %vm4547_vm0, %v5307_v9  ;;  %v10941_v42 = vpop.f32.mrb[66].mxu0  ;;  %v6110_v61 = vpack.c.bf16 %v11361_v33, %v11360_v39 }
 0x1fc   : > { %v5318_v28 = vpack.c.bf16 %v10941_v42, %v10940_v48  ;;  %v5033_v47 = vpop.f32.mrb[67].mxu0  ;;  %v6116_v48 = vpack.c.bf16 %v13449_v53, %v13399_v32  ;;  %v11332_v32 = vld [vmem:[%s15979_s6 + $0x10] sm:$0xff]  }
 0x1fd   : > { %v5317_v4 = vpack.c.bf16 %v5033_v47, %v5030_v5  ;;  %11158 = vmatprep.subr.bf16.mxu1 %v11332_v32 }
 0x1fe   : > { %11159 = vmatpush3.bf16.msra.mxu1 %v11332_v32 }
 0x1ff   : > { %11070 = vmatprep.mubr.msk.bf16.mxu1 %vm4547_vm0, %v5317_v4 }
 0x200   : > { %11071 = vmatmul.mubr.msk.bf16.gmra.mrb[8].mxu1 %vm4547_vm0, %v5318_v28 }
 0x201   : > { %v10944_v41 = vpop.f32.mrb[68].mxu0 }
 0x202   : > { %11051 = vmatmul.mubr.msk.bf16.gmra.mrb[172].mxu0 %vm4547_vm0, %v5308_v1  ;;  %v5046_v26 = vpop.f32.mrb[69].mxu0  ;;  %v6111_v1 = vpack.c.bf16 %v11363_v17, %v11362_v15 }
 0x203   : > { %11054 = vmatprep.mubr.msk.bf16.mxu0 %vm4547_vm0, %v5309_v8  ;;  %v10945_v54 = vpop.f32.mrb[70].mxu0 }
 0x204   : > { %v5320_v49 = vpack.c.bf16 %v10945_v54, %v10944_v41  ;;  %v5049_v0 = vpop.f32.mrb[71].mxu0 }
 0x205   : > { %v5319_v58 = vpack.c.bf16 %v5049_v0, %v5046_v26 }
 0x207   : > { %11074 = vmatprep.mubr.msk.bf16.mxu1 %vm4547_vm0, %v5319_v58 }
 0x208   : > { %11075 = vmatmul.mubr.msk.bf16.gmra.mrb[12].mxu1 %vm4547_vm0, %v5320_v49 }
 0x209   : > { %v10948_v44 = vpop.f32.mrb[72].mxu0 }
 0x20a   : > { %11055 = vmatmul.mubr.msk.bf16.gmra.mrb[176].mxu0 %vm4547_vm0, %v5310_v14  ;;  %v5062_v34 = vpop.f32.mrb[73].mxu0  ;;  %v11364_v14 = vld [vmem:[%s11574_s26 + $0x30] sm:$0xff] }
 0x20b   : > { %11058 = vmatprep.mubr.msk.bf16.mxu0 %vm4547_vm0, %v5311_v40  ;;  %v10949_v46 = vpop.f32.mrb[74].mxu0  ;;  %v6112_v8 = vpack.c.bf16 %v11365_v20, %v11364_v14 }
 0x20c   : > { %v5322_v16 = vpack.c.bf16 %v10949_v46, %v10948_v44  ;;  %v5065_v29 = vpop.f32.mrb[75].mxu0 }
 0x20d   : > { %v5321_v50 = vpack.c.bf16 %v5065_v29, %v5062_v34 }
 0x20f   : > { %11078 = vmatprep.mubr.msk.bf16.mxu1 %vm4547_vm0, %v5321_v50 }
 0x210   : > { %11079 = vmatmul.mubr.msk.bf16.gmra.mrb[16].mxu1 %vm4547_vm0, %v5322_v16 }
 0x211   : > { %v10952_v37 = vpop.f32.mrb[76].mxu0 }
 0x212   : > { %11059 = vmatmul.mubr.msk.bf16.gmra.mrb[180].mxu0 %vm4547_vm0, %v5312_v43  ;;  %v5078_v31 = vpop.f32.mrb[77].mxu0  ;;  %v6113_v43 = vpack.c.bf16 %v11367_v6, %v11366_v13 }
 0x213   : > { %11138 = vmatprep.mubr.msk.bf16.mxu0 %vm4547_vm0, %v6109_v59  ;;  %v10953_v60 = vpop.f32.mrb[78].mxu0 }
 0x214   : > { %v5324_v18 = vpack.c.bf16 %v10953_v60, %v10952_v37  ;;  %v5081_v9 = vpop.f32.mrb[79].mxu0 }
 0x215   : > { %v5323_v7 = vpack.c.bf16 %v5081_v9, %v5078_v31  ;;  %v11333_v9 = vld [vmem:[%s15979_s6 + $0x18] sm:$0xff]  }
 0x216   : > { %11160 = vmatprep.subr.bf16.mxu1 %v11333_v9 }
 0x217   : > { %11082 = vmatprep.mubr.msk.bf16.mxu1 %vm4547_vm0, %v5323_v7  ;;  %11161 = vmatpush3.bf16.msra.mxu1 %v11333_v9 }
 0x218   : > { %11083 = vmatmul.mubr.msk.bf16.gmra.mrb[20].mxu1 %vm4547_vm0, %v5324_v18 }
 0x21a   : > { %11139 = vmatmul.mubr.msk.bf16.vlgmr.msra.gmra.mrb[184].mxu0 %vm4547_vm0, %v6110_v61 }
 0x21b   : > { %11142 = vmatprep.mubr.msk.bf16.mxu0 %vm4547_vm0, %v6111_v1 }
 0x21d   : > { %v10956_v57 = vpop.f32.mrb[80].mxu0 }
 0x21e   : > { %v5094_v2 = vpop.f32.mrb[81].mxu0 }
 0x21f   : > { %v10957_v56 = vpop.f32.mrb[82].mxu0 }
 0x220   : > { %v5326_v10 = vpack.c.bf16 %v10957_v56, %v10956_v57  ;;  %v5097_v40 = vpop.f32.mrb[83].mxu0 }
 0x221   : > { %v5325_v35 = vpack.c.bf16 %v5097_v40, %v5094_v2 }
 0x222   : > { %11143 = vmatmul.mubr.msk.bf16.gmra.mrb[188].mxu0 %vm4547_vm0, %v6112_v8 }
 0x223   : > { %11086 = vmatprep.mubr.msk.bf16.mxu1 %vm4547_vm0, %v5325_v35  ;;  %11146 = vmatprep.mubr.msk.bf16.mxu0 %vm4547_vm0, %v6113_v43 }
 0x224   : > { %11087 = vmatmul.mubr.msk.bf16.gmra.mrb[24].mxu1 %vm4547_vm0, %v5326_v10 }
 0x225   : > { %v10960_v21 = vpop.f32.mrb[84].mxu0 }
 0x226   : > { %v5110_v62 = vpop.f32.mrb[85].mxu0 }
 0x227   : > { %v10961_v30 = vpop.f32.mrb[86].mxu0 }
 0x228   : > { %v5328_v19 = vpack.c.bf16 %v10961_v30, %v10960_v21  ;;  %v5113_v23 = vpop.f32.mrb[87].mxu0 }
 0x229   : > { %v5327_v51 = vpack.c.bf16 %v5113_v23, %v5110_v62 }
 0x22a   : > { %11147 = vmatmul.mubr.msk.bf16.gmra.mrb[192].mxu0 %vm4547_vm0, %v6114_v25 }
 0x22b   : > { %11090 = vmatprep.mubr.msk.bf16.mxu1 %vm4547_vm0, %v5327_v51  ;;  %11150 = vmatprep.mubr.msk.bf16.mxu0 %vm4547_vm0, %v6115_v52 }
 0x22c   : > { %11091 = vmatmul.mubr.msk.bf16.gmra.mrb[28].mxu1 %vm4547_vm0, %v5328_v19 }
 0x22d   : > { %v10964_v38 = vpop.f32.mrb[88].mxu0 }
 0x22e   : > { %v5126_v27 = vpop.f32.mrb[89].mxu0 }
 0x22f   : > { %v10965_v5 = vpop.f32.mrb[90].mxu0 }
 0x230   : > { %v5330_v42 = vpack.c.bf16 %v10965_v5, %v10964_v38  ;;  %v5129_v28 = vpop.f32.mrb[91].mxu0 }
 0x231   : > { %v5329_v12 = vpack.c.bf16 %v5129_v28, %v5126_v27 }
 0x232   : > { %11151 = vmatmul.mubr.msk.bf16.gmra.mrb[196].mxu0 %vm4547_vm0, %v6116_v48 }
 0x233   : > { %11094 = vmatprep.mubr.msk.bf16.mxu1 %vm4547_vm0, %v5329_v12 }
 0x234   : > { %11095 = vmatmul.mubr.msk.bf16.gmra.mrb[32].mxu1 %vm4547_vm0, %v5330_v42 }
 0x235   : > { %v10968_v11 = vpop.f32.mrb[92].mxu0 }
 0x236   : > { %v5142_v47 = vpop.f32.mrb[93].mxu0 }
 0x237   : > { %v10969_v4 = vpop.f32.mrb[94].mxu0 }
 0x238   : > { %v5332_v41 = vpack.c.bf16 %v10969_v4, %v10968_v11  ;;  %v5145_v26 = vpop.f32.mrb[95].mxu0 }
 0x239   : > { %v5331_v54 = vpack.c.bf16 %v5145_v26, %v5142_v47 }
 0x23b   : > { %11098 = vmatprep.mubr.msk.bf16.mxu1 %vm4547_vm0, %v5331_v54 }
 0x23c   : > { %11099 = vmatmul.mubr.msk.bf16.gmra.mrb[36].mxu1 %vm4547_vm0, %v5332_v41 }
 0x23d   : > { %v10972_v53 = vpop.f32.mrb[96].mxu0 }
 0x23e   : > { %v5158_v49 = vpop.f32.mrb[97].mxu0 }
 0x23f   : > { %v10973_v0 = vpop.f32.mrb[98].mxu0 }
 0x240   : > { %v5334_v58 = vpack.c.bf16 %v10973_v0, %v10972_v53  ;;  %v5161_v44 = vpop.f32.mrb[99].mxu0 }
 0x241   : > { %v5333_v34 = vpack.c.bf16 %v5161_v44, %v5158_v49 }
 0x243   : > { %11102 = vmatprep.mubr.msk.bf16.mxu1 %vm4547_vm0, %v5333_v34 }
 0x244   : > { %11103 = vmatmul.mubr.msk.bf16.gmra.mrb[40].mxu1 %vm4547_vm0, %v5334_v58 }
 0x245   : > { %v10976_v46 = vpop.f32.mrb[100].mxu0 }
 0x246   : > { %v5174_v63 = vpop.f32.mrb[101].mxu0 }
 0x247   : > { %v10977_v3 = vpop.f32.mrb[102].mxu0 }
 0x248   : > { %v5336_v59 = vpack.c.bf16 %v10977_v3, %v10976_v46  ;;  %v5177_v16 = vpop.f32.mrb[103].mxu0 }
 0x249   : > { %v5335_v29 = vpack.c.bf16 %v5177_v16, %v5174_v63 }
 0x24b   : > { %11106 = vmatprep.mubr.msk.bf16.mxu1 %vm4547_vm0, %v5335_v29 }
 0x24c   : > { %11107 = vmatmul.mubr.msk.bf16.gmra.mrb[44].mxu1 %vm4547_vm0, %v5336_v59 }
 0x24d   : > { %v10980_v50 = vpop.f32.mrb[104].mxu0 }
 0x24e   : > { %v5190_v55 = vpop.f32.mrb[105].mxu0 }
 0x24f   : > { %v10981_v37 = vpop.f32.mrb[106].mxu0 }
 0x250   : > { %v5338_v31 = vpack.c.bf16 %v10981_v37, %v10980_v50  ;;  %v5193_v39 = vpop.f32.mrb[107].mxu0 }
 0x251   : > { %v5337_v33 = vpack.c.bf16 %v5193_v39, %v5190_v55 }
 0x253   : > { %11110 = vmatprep.mubr.msk.bf16.mxu1 %vm4547_vm0, %v5337_v33 }
 0x254   : > { %11111 = vmatmul.mubr.msk.bf16.gmra.mrb[48].mxu1 %vm4547_vm0, %v5338_v31 }
 0x255   : > { %v10984_v61 = vpop.f32.mrb[108].mxu0 }
 0x256   : > { %v5206_v60 = vpop.f32.mrb[109].mxu0 }
 0x257   : > { %v10985_v15 = vpop.f32.mrb[110].mxu0 }
 0x258   : > { %v5340_v17 = vpack.c.bf16 %v10985_v15, %v10984_v61  ;;  %v5209_v1 = vpop.f32.mrb[111].mxu0 }
 0x259   : > { %v5339_v18 = vpack.c.bf16 %v5209_v1, %v5206_v60 }
 0x25b   : > { %11114 = vmatprep.mubr.msk.bf16.mxu1 %vm4547_vm0, %v5339_v18 }
 0x25c   : > { %11115 = vmatmul.mubr.msk.bf16.gmra.mrb[52].mxu1 %vm4547_vm0, %v5340_v17 }
 0x25d   : > { %v10988_v7 = vpop.f32.mrb[112].mxu0 }
 0x25e   : > { %v5222_v57 = vpop.f32.mrb[113].mxu0 }
 0x25f   : > { %v10989_v2 = vpop.f32.mrb[114].mxu0 }
 0x260   : > { %v5342_v14 = vpack.c.bf16 %v10989_v2, %v10988_v7  ;;  %v5225_v20 = vpop.f32.mrb[115].mxu0 }
 0x261   : > { %v5341_v8 = vpack.c.bf16 %v5225_v20, %v5222_v57 }
 0x263   : > { %11118 = vmatprep.mubr.msk.bf16.mxu1 %vm4547_vm0, %v5341_v8 }
 0x264   : > { %11119 = vmatmul.mubr.msk.bf16.gmra.mrb[56].mxu1 %vm4547_vm0, %v5342_v14 }
 0x265   : > { %v10992_v56 = vpop.f32.mrb[116].mxu0 }
 0x266   : > { %v5238_v13 = vpop.f32.mrb[117].mxu0 }
 0x267   : > { %v10993_v6 = vpop.f32.mrb[118].mxu0 }
 0x268   : > { %v5344_v43 = vpack.c.bf16 %v10993_v6, %v10992_v56  ;;  %v5241_v10 = vpop.f32.mrb[119].mxu0 }
 0x269   : > { %v5343_v40 = vpack.c.bf16 %v5241_v10, %v5238_v13 }
 0x26b   : > { %11122 = vmatprep.mubr.msk.bf16.mxu1 %vm4547_vm0, %v5343_v40 }
 0x26c   : > { %11123 = vmatmul.mubr.msk.bf16.gmra.mrb[60].mxu1 %vm4547_vm0, %v5344_v43 }
 0x26d   : > { %v10996_v35 = vpop.f32.mrb[120].mxu0 }
 0x26e   : > { %v5254_v21 = vpop.f32.mrb[121].mxu0 }
 0x26f   : > { %v10997_v62 = vpop.f32.mrb[122].mxu0 }
 0x270   : > { %v5346_v24 = vpack.c.bf16 %v10997_v62, %v10996_v35  ;;  %v5257_v36 = vpop.f32.mrb[123].mxu0 }
 0x271   : > { %v5345_v25 = vpack.c.bf16 %v5257_v36, %v5254_v21 }
 0x273   : > { %11126 = vmatprep.mubr.msk.bf16.mxu1 %vm4547_vm0, %v5345_v25 }
 0x274   : > { %11127 = vmatmul.mubr.msk.bf16.gmra.mrb[64].mxu1 %vm4547_vm0, %v5346_v24 }
 0x275   : > { %v11000_v30 = vpop.f32.mrb[124].mxu0 }
 0x276   : > { %v5270_v52 = vpop.f32.mrb[125].mxu0 }
 0x277   : > { %v11001_v19 = vpop.f32.mrb[126].mxu0 }
 0x278   : > { %v5348_v23 = vpack.c.bf16 %v11001_v19, %v11000_v30  ;;  %v5273_v51 = vpop.f32.mrb[127].mxu0  ;;  %v13777_v19 = vld [vmem:[%s15978_s5] ss:$0 sm:$0xff] }
 0x279   : > { %v5347_v38 = vpack.c.bf16 %v5273_v51, %v5270_v52 }
 0x27b   : > { %11130 = vmatprep.mubr.msk.bf16.mxu1 %vm4547_vm0, %v5347_v38 }
 0x27c   : > { %11131 = vmatmul.mubr.msk.bf16.gmra.mrb[68].mxu1 %vm4547_vm0, %v5348_v23 }
 0x27d   : > { %v11008_v27 = vpop.f32.mrb[128].mxu0 }
 0x27e   : > { %v5598_v48 = vpop.f32.mrb[129].mxu0  ;;  %v13784_v38 = vadd.f32 %v11008_v27, %v13777_v19 }
 0x27f   : > { %v11009_v5 = vpop.f32.mrb[130].mxu0  ;;  %v13787_v45 = vadd.f32 %v13777_v19, %v5598_v48 }
 0x280   : > { %v5601_v42 = vpop.f32.mrb[131].mxu0  ;;  %v13790_v22 = vadd.f32 %v11009_v5, %v13777_v19 }
 0x285   : > { %v11012_v28 = vpop.f32.mrb[132].mxu0 }
 0x286   : > { %v5614_v12 = vpop.f32.mrb[133].mxu0 }
 0x287   : > { %v11013_v11 = vpop.f32.mrb[134].mxu0 }
 0x288   : > { %v5617_v47 = vpop.f32.mrb[135].mxu0 }
 0x289   : > { %v13807_v48 = vadd.f32 %v13777_v19, %v5617_v47 }
 0x28b   : > { %16176 = vst [vmem:[#allocation8_spill] sm:$0xff] %v13807_v48 }
 0x28d   : > { %v11016_v4 = vpop.f32.mrb[136].mxu0 }
 0x28e   : > { %v5630_v41 = vpop.f32.mrb[137].mxu0  ;;  %v13810_v5 = vadd.f32 %v11016_v4, %v13777_v19 }
 0x28f   : > { %v11017_v26 = vpop.f32.mrb[138].mxu0 }
 0x290   : > { %v13680_v54 = vpop.f32.mrb[139].mxu0 }
 0x295   : > { %v13682_v32 = vpop.f32.mrb[140].mxu0 }
 0x296   : > { %v13684_v53 = vpop.f32.mrb[141].mxu0 }
 0x297   : > { %v13686_v49 = vpop.f32.mrb[142].mxu0  ;;  %v13830_v47 = vadd.f32 %v13777_v19, %v13684_v53 }
 0x298   : > { %v13688_v0 = vpop.f32.mrb[143].mxu0  ;;  %v13834_v4 = vadd.f32 %v13686_v49, %v13777_v19 }
 0x29a   : > { %16179 = vst [vmem:[#allocation9_spill] sm:$0xff] %v13834_v4 }
 0x29d   : > { %v13690_v58 = vpop.f32.mrb[144].mxu0 }
 0x29e   : > { %v13692_v44 = vpop.f32.mrb[145].mxu0 }
 0x29f   : > { %v13694_v34 = vpop.f32.mrb[146].mxu0 }
 0x2a0   : > { %v13696_v46 = vpop.f32.mrb[147].mxu0  ;;  %v13850_v53 = vadd.f32 %v13694_v34, %v13777_v19 }
 0x2a2   : > { %16181 = vst [vmem:[#allocation21_spill] sm:$0xff] %v13850_v53 }
 0x2a5   : > { %v13698_v63 = vpop.f32.mrb[148].mxu0 }
 0x2a6   : > { %v13700_v3 = vpop.f32.mrb[149].mxu0 }
 0x2a7   : > { %v13702_v59 = vpop.f32.mrb[150].mxu0 }
 0x2a8   : > { %v13704_v16 = vpop.f32.mrb[151].mxu0 }
 0x2a9   : > { %v13870_v53 = vadd.f32 %v13777_v19, %v13704_v16 }
 0x2ab   : > { %16184 = vst [vmem:[#allocation14_spill] sm:$0xff] %v13870_v53 }
 0x2ad   : > { %v13706_v29 = vpop.f32.mrb[152].mxu0 }
 0x2ae   : > { %v13708_v50 = vpop.f32.mrb[153].mxu0 }
 0x2af   : > { %v13710_v55 = vpop.f32.mrb[154].mxu0 }
 0x2b0   : > { %v13712_v37 = vpop.f32.mrb[155].mxu0 }
 0x2b5   : > { %v13714_v31 = vpop.f32.mrb[156].mxu0 }
 0x2b6   : > { %v13716_v39 = vpop.f32.mrb[157].mxu0  ;;  %v13890_v16 = vadd.f32 %v13714_v31, %v13777_v19 }
 0x2b7   : > { %v13718_v33 = vpop.f32.mrb[158].mxu0 }
 0x2b8   : > { %v13720_v61 = vpop.f32.mrb[159].mxu0  ;;  %16186 = vst [vmem:[#allocation27_spill] sm:$0xff] %v13890_v16 }
 0x2bd   : > { %v13722_v60 = vpop.f32.mrb[160].mxu0 }
 0x2be   : > { %v13724_v15 = vpop.f32.mrb[161].mxu0 }
 0x2bf   : > { %v13726_v17 = vpop.f32.mrb[162].mxu0  ;;  %v13910_v31 = vadd.f32 %v13777_v19, %v13724_v15 }
 0x2c0   : > { %v13728_v1 = vpop.f32.mrb[163].mxu0 }
 0x2c3   : > { %v13736_v57 = vpop.f32.mrb[0].mxu1 }
 0x2c4   : > { %v13740_v14 = vpop.f32.mrb[1].mxu1 }
 0x2c5   : > { %v13730_v18 = vpop.f32.mrb[164].mxu0  ;;  %v13742_v20 = vpop.f32.mrb[2].mxu1 }
 0x2c6   : > { %v13732_v9 = vpop.f32.mrb[165].mxu0  ;;  %v13744_v8 = vpop.f32.mrb[3].mxu1 }
 0x2c7   : > { %v13734_v7 = vpop.f32.mrb[166].mxu0 }
 0x2c8   : > { %v13738_v2 = vpop.f32.mrb[167].mxu0  ;;  %v13930_v15 = vadd.f32 %v13734_v7, %v13777_v19  ;;  %v13950_v7 = vadd.f32 %v13777_v19, %v13744_v8 }
 0x2ca   : > { %16191 = vst [vmem:[#allocation19_spill] sm:$0xff] %v13930_v15 }
 0x2cb   : > { %v13752_v43 = vpop.f32.mrb[4].mxu1 }
 0x2cc   : > { %v13756_v40 = vpop.f32.mrb[5].mxu1 }
 0x2cd   : > { %v13746_v56 = vpop.f32.mrb[168].mxu0  ;;  %v13758_v35 = vpop.f32.mrb[6].mxu1 }
 0x2ce   : > { %v13748_v13 = vpop.f32.mrb[169].mxu0  ;;  %v13760_v21 = vpop.f32.mrb[7].mxu1 }
 0x2cf   : > { %v13750_v6 = vpop.f32.mrb[170].mxu0 }
 0x2d0   : > { %v13754_v10 = vpop.f32.mrb[171].mxu0 }
 0x2d1   : > { %v13970_v8 = vadd.f32 %v13777_v19, %v13754_v10 }
 0x2d3   : > { %v13768_v25 = vpop.f32.mrb[8].mxu1 }
 0x2d4   : > { %16170 = vst [vmem:[#allocation5_spill] sm:$0xff] %v13768_v25  ;;  %v13772_v52 = vpop.f32.mrb[9].mxu1  ;;  %v13799_v25 = vadd.f32 %v13777_v19, %v5614_v12  ;;  %v13822_v12 = vadd.f32 %v13777_v19, %v13680_v54  ;;  %v13842_v54 = vadd.f32 %v13690_v58, %v13777_v19  ;;  %v13862_v58 = vadd.f32 %v13777_v19, %v13700_v3 }
 0x2d5   : > { %v13762_v62 = vpop.f32.mrb[172].mxu0  ;;  %16172 = vst [vmem:[#allocation2_spill] sm:$0xff] %v13772_v52  ;;  %v13779_v23 = vpop.f32.mrb[10].mxu1  ;;  %v13793_v52 = vadd.f32 %v13777_v19, %v5601_v42  ;;  %v13813_v42 = vadd.f32 %v13777_v19, %v5630_v41  ;;  %v13882_v3 = vadd.f32 %v13710_v55, %v13777_v19  ;;  %v13902_v55 = vadd.f32 %v13777_v19, %v13720_v61 }
 0x2d6   : > { %v13764_v24 = vpop.f32.mrb[173].mxu0  ;;  %v13781_v51 = vpop.f32.mrb[11].mxu1  ;;  %v13922_v61 = vadd.f32 %v13730_v18, %v13777_v19  ;;  %v13942_v18 = vadd.f32 %v13777_v19, %v13740_v14  ;;  %v13962_v14 = vadd.f32 %v13750_v6, %v13777_v19 }
 0x2d7   : > { %v13766_v36 = vpop.f32.mrb[174].mxu0  ;;  %16173 = vst [vmem:[#allocation11_spill] sm:$0xff] %v13781_v51  ;;  %v13802_v51 = vadd.f32 %v11013_v11, %v13777_v19  ;;  %v13826_v11 = vadd.f32 %v13682_v32, %v13777_v19  ;;  %v13846_v32 = vadd.f32 %v13777_v19, %v13692_v44  ;;  %v13866_v44 = vadd.f32 %v13702_v59, %v13777_v19 }
 0x2d8   : > { %v13770_v30 = vpop.f32.mrb[175].mxu0  ;;  %16185 = vst [vmem:[#allocation25_spill] sm:$0xff] %v13882_v3  ;;  %v13886_v59 = vadd.f32 %v13777_v19, %v13712_v37  ;;  %16188 = vst [vmem:[#allocation18_spill] sm:$0xff] %v13902_v55  ;;  %v13906_v37 = vadd.f32 %v13722_v60, %v13777_v19  ;;  %v13926_v60 = vadd.f32 %v13777_v19, %v13732_v9 }
 0x2d9   : > { %16171 = vst [vmem:[#allocation6_spill] sm:$0xff] %v13770_v30  ;;  %v13796_v30 = vadd.f32 %v11012_v28, %v13777_v19  ;;  %16175 = vst [vmem:[#allocation7_spill] sm:$0xff] %v13802_v51  ;;  %v13816_v28 = vadd.f32 %v11017_v26, %v13777_v19  ;;  %v13946_v9 = vadd.f32 %v13742_v20, %v13777_v19 }
 0x2da   : > { %16178 = vst [vmem:[#allocation17_spill] sm:$0xff] %v13826_v11  ;;  %v13854_v11 = vadd.f32 %v13777_v19, %v13696_v46  ;;  %16183 = vst [vmem:[#allocation13_spill] sm:$0xff] %v13866_v44  ;;  %v13874_v46 = vadd.f32 %v13706_v29, %v13777_v19  ;;  %v13894_v29 = vadd.f32 %v13777_v19, %v13716_v39 }
 0x2db   : > { %16174 = vst [vmem:[#allocation12_spill] sm:$0xff] %v13796_v30  ;;  %16177 = vst [vmem:[#allocation15_spill] sm:$0xff] %v13816_v28  ;;  %v11076_v26 = vpop.f32.mrb[12].mxu1  ;;  %v13838_v28 = vadd.f32 %v13777_v19, %v13688_v0  ;;  %v13858_v0 = vadd.f32 %v13698_v63, %v13777_v19  ;;  %v13878_v63 = vadd.f32 %v13777_v19, %v13708_v50 }
 0x2dc   : > { %v5870_v4 = vpop.f32.mrb[13].mxu1  ;;  %v13898_v50 = vadd.f32 %v13718_v33, %v13777_v19  ;;  %v13914_v39 = vadd.f32 %v13726_v17, %v13777_v19  ;;  %v13918_v33 = vadd.f32 %v13777_v19, %v13728_v1  ;;  %16190 = vst [vmem:[#allocation30_spill] sm:$0xff] %v13922_v61  ;;  %v13934_v17 = vadd.f32 %v13736_v57, %v13777_v19 }
 0x2dd   : > { %v13804_v27 = vpop.f32.mrb[176].mxu0  ;;  %16180 = vst [vmem:[#allocation10_spill] sm:$0xff] %v13838_v28  ;;  %16182 = vst [vmem:[#allocation22_spill] sm:$0xff] %v13858_v0  ;;  %v11077_v34 = vpop.f32.mrb[14].mxu1  ;;  %v13938_v1 = vadd.f32 %v13777_v19, %v13738_v2  ;;  %v13954_v57 = vadd.f32 %v13746_v56, %v13777_v19  ;;  %v13958_v2 = vadd.f32 %v13777_v19, %v13748_v13  ;;  %v16223_v28 = vld [vmem:[#allocation4_spill] sm:$0xff] }
 0x2de   : > { %v13818_v30 = vpop.f32.mrb[177].mxu0  ;;  %v5873_v0 = vpop.f32.mrb[15].mxu1  ;;  %16187 = vst [vmem:[#allocation16_spill] sm:$0xff] %v13898_v50  ;;  %16189 = vst [vmem:[#allocation29_spill] sm:$0xff] %v13914_v39  ;;  %v13974_v56 = vadd.f32 %v13777_v19, %v13756_v40  ;;  %v13978_v13 = vadd.f32 %v13758_v35, %v13777_v19  ;;  %v13990_v10 = vadd.f32 %v13777_v19, %v13764_v24 }
 0x2df   : > { %v11057_v41 = vpop.f32.mrb[178].mxu0  ;;  %16192 = vst [vmem:[#allocation20_spill] sm:$0xff] %v13938_v1  ;;  %16193 = vst [vmem:[#allocation31_spill] sm:$0xff] %v13946_v9  ;;  %v13966_v9 = vadd.f32 %v13752_v43, %v13777_v19  ;;  %v13982_v1 = vadd.f32 %v13777_v19, %v13760_v21  ;;  %v13986_v43 = vadd.f32 %v13762_v62, %v13777_v19 }
 0x2e0   : > { %v5793_v49 = vpop.f32.mrb[179].mxu0  ;;  %16194 = vst [vmem:[#allocation32_spill] sm:$0xff] %v13962_v14  ;;  %16196 = vst [vmem:[#allocation24_spill] sm:$0xff] %v13978_v13  ;;  %v13994_v40 = vadd.f32 %v13766_v36, %v13777_v19  ;;  %v16200_v13 = vld [vmem:[#allocation5_spill] sm:$0xff]  ;;  %v16202_v39 = vld [vmem:[#allocation6_spill] sm:$0xff]  ;;  %v14010_v24 = vadd.f32 %v13779_v23, %v13777_v19 }
 0x2e1   : > { %16195 = vst [vmem:[#allocation23_spill] sm:$0xff] %v13966_v9  ;;  %16197 = vst [vmem:[#allocation35_spill] sm:$0xff] %v13982_v1  ;;  %v13998_v9 = vadd.f32 %v16200_v13, %v13777_v19  ;;  %v14002_v21 = vadd.f32 %v13777_v19, %v16202_v39  ;;  %v16204_v1 = vld [vmem:[#allocation2_spill] sm:$0xff]  ;;  %v16207_v36 = vld [vmem:[#allocation11_spill] sm:$0xff]  ;;  %v14018_v13 = vadd.f32 %v13804_v27, %v13777_v19 }
 0x2e2   : > { %16198 = vst [vmem:[#allocation36_spill] sm:$0xff] %v13986_v43  ;;  %16199 = vst [vmem:[#allocation26_spill] sm:$0xff] %v13994_v40  ;;  %v14006_v62 = vadd.f32 %v13777_v19, %v16204_v1  ;;  %v14014_v40 = vadd.f32 %v13777_v19, %v16207_v36  ;;  %v14022_v39 = vadd.f32 %v13777_v19, %v13818_v30 }
 0x2e3   : > { %v11080_v20 = vpop.f32.mrb[16].mxu1  ;;  %16201 = vst [vmem:[#allocation28_spill] sm:$0xff] %v13998_v9  ;;  %16203 = vst [vmem:[#allocation37_spill] sm:$0xff] %v14002_v21  ;;  %v14025_v1 = vadd.f32 %v11057_v41, %v13777_v19  ;;  %v14028_v21 = vadd.f32 %v11076_v26, %v13777_v19  ;;  %v14031_v23 = vadd.f32 %v13777_v19, %v5793_v49 }
 0x2e4   : > { %v5886_v14 = vpop.f32.mrb[17].mxu1  ;;  %16205 = vst [vmem:[#allocation38_spill] sm:$0xff] %v14006_v62  ;;  %16206 = vst [vmem:[#allocation33_spill] sm:$0xff] %v14010_v24  ;;  %v14034_v36 = vadd.f32 %v13777_v19, %v5870_v4  ;;  %v14037_v24 = vadd.f32 %v11077_v34, %v13777_v19  ;;  %v14040_v27 = vadd.f32 %v13777_v19, %v5873_v0 }
 0x2e5   : > { %v11060_v50 = vpop.f32.mrb[180].mxu0  ;;  %v11081_v35 = vpop.f32.mrb[18].mxu1  ;;  %16208 = vst [vmem:[#allocation34_spill] sm:$0xff] %v14014_v40  ;;  %16209 = vst [vmem:[#allocation39_spill] sm:$0xff] %v14025_v1 }
 0x2e6   : > { %v5806_v61 = vpop.f32.mrb[181].mxu0  ;;  %v5889_v43 = vpop.f32.mrb[19].mxu1  ;;  %16210 = vst [vmem:[#allocation40_spill] sm:$0xff] %v14028_v21  ;;  %16211 = vst [vmem:[#allocation5_spill] sm:$0xff] %v14034_v36  ;;  %v14043_v30 = vadd.f32 %v11060_v50, %v13777_v19  ;;  %v14052_v21 = vadd.f32 %v11080_v20, %v13777_v19  ;;  %v14059_v50 = vadd.f32 %v13777_v19, %v5886_v14 }
 0x2e7   : > { %v11061_v15 = vpop.f32.mrb[182].mxu0  ;;  %16212 = vst [vmem:[#allocation6_spill] sm:$0xff] %v14037_v24  ;;  %16213 = vst [vmem:[#allocation2_spill] sm:$0xff] %v14040_v27  ;;  %v14046_v41 = vadd.f32 %v13777_v19, %v5806_v61  ;;  %v16218_v24 = vld [vmem:[#allocation3_spill] sm:$0xff]  ;;  %v14062_v61 = vadd.f32 %v11081_v35, %v13777_v19  ;;  %v14068_v20 = vadd.f32 %v13777_v19, %v5889_v43 }
 0x2e8   : > { %v5809_v6 = vpop.f32.mrb[183].mxu0  ;;  %16214 = vst [vmem:[#allocation11_spill] sm:$0xff] %v14043_v30  ;;  %v14049_v26 = vadd.f32 %v11061_v15, %v13777_v19  ;;  %16216 = vst [vmem:[#allocation42_spill] sm:$0xff] %v14052_v21 }
 0x2e9   : > { %v14055_v4 = vadd.f32 %v13777_v19, %v5809_v6  ;;  %16219 = vst [vmem:[#allocation3_spill] sm:$0xff] %v14059_v50  ;;  %16220 = vst [vmem:[#allocation44_spill] sm:$0xff] %v14062_v61 }
 0x2ea   : > { %16215 = vst [vmem:[#allocation41_spill] sm:$0xff] %v14049_v26  ;;  %16221 = vst [vmem:[#allocation45_spill] sm:$0xff] %v14068_v20 }
 0x2eb   : > { %16217 = vst [vmem:[#allocation43_spill] sm:$0xff] %v14055_v4  ;;  %v11084_v26 = vpop.f32.mrb[20].mxu1 }
 0x2ec   : > { %v14072_v16 = vpop.f32.mrb[21].mxu1  ;;  %v14079_v55 = vadd.f32 %v11084_v26, %v13777_v19 }
 0x2ed   : > { %v11140_v49 = vpop.f32.mrb[184].mxu0  ;;  %v14081_v3 = vpop.f32.mrb[22].mxu1 }
 0x2ee   : > { %v6368_v34 = vcombine.high %v11140_v49, %v11140_v49  ;;  %v6375_v0 = vrot.slane %v11140_v49, %v16218_v24  ;;  %v6191_v27 = vpop.f32.mrb[185].mxu0  ;;  %16222 = vst [vmem:[#allocation46_spill] sm:$0xff] %v14079_v55  ;;  %v14085_v53 = vpop.f32.mrb[23].mxu1 }
 0x2ef   : > { %v6270_v30 = vcombine.high %v6191_v27, %v6191_v27  ;;  %v6277_v15 = vrot.slane %v6191_v27, %v16218_v24  ;;  %v14065_v1 = vpop.f32.mrb[186].mxu0 }
 0x2f0   : > { %v6382_v6 = vrot.slane %v6368_v34, %v16218_v24  ;;  %v6383_v4 = vcombine.high %v6375_v0, %v6375_v0  ;;  %v6391_v49 = vrot.slane %v6375_v0, %v16218_v24  ;;  %v14074_v14 = vpop.f32.mrb[187].mxu0 }
 0x2f1   : > { %v6284_v35 = vrot.slane %v6270_v30, %v16218_v24  ;;  %v6285_v61 = vcombine.high %v6277_v15, %v6277_v15  ;;  %v6293_v27 = vrot.slane %v6277_v15, %v16218_v24 }
 0x2f2   : > { %v6384_v43 = vcombine.high %v6382_v6, %v6382_v6  ;;  %v6398_v34 = vrot.slane %v6382_v6, %v16218_v24  ;;  %v6405_v44 = vrot.slane %v6383_v4, %v16218_v24  ;;  %v6413_v0 = vcombine.high %v6391_v49, %v6391_v49 }
 0x2f3   : > { %v7121_v51 = vrot.slane %v6391_v49, %v16223_v28  ;;  %v6286_v48 = vcombine.high %v6284_v35, %v6284_v35  ;;  %v6300_v30 = vrot.slane %v6284_v35, %v16218_v24  ;;  %v6307_v15 = vrot.slane %v6285_v61, %v16218_v24 }
 0x2f4   : > { %v14091_v26 = vrot.slane %v6384_v43, %v16218_v24  ;;  %v6414_v55 = vcombine.high %v6398_v34, %v6398_v34  ;;  %v6415_v21 = vcombine.high %v6405_v44, %v6405_v44  ;;  %v7125_v20 = vrot.slane %v6405_v44, %v16223_v28 }
 0x2f5   : > { %v7129_v6 = vrot.slane %v6413_v0, %v16223_v28  ;;  %v7137_v4 = vrot.slane %v6398_v34, %v16223_v28  ;;  %v14097_v50 = vadd.f32 %v7121_v51, %v13846_v32  ;;  %v14100_v49 = vrot.slane %v6286_v48, %v16218_v24  ;;  %v14102_v35 = vpop.f32.mrb[188].mxu0 }
 0x2f6   : > { %16224 = vst [vmem:[#allocation4_spill] sm:$0xff] %v14091_v26  ;;  %v6416_v61 = vcombine.high %v14091_v26, %v14091_v26  ;;  %v14107_v43 = vrot.slane %v6415_v21, %v16223_v28  ;;  %v6417_v34 = vcombine.high %v14065_v1, %v14065_v1  ;;  %v14113_v0 = vpop.f32.mrb[189].mxu0  ;;  %v14116_v51 = vrot.slane %v6414_v55, %v16223_v28 }
 0x2f7   : > { %16225 = vst [vmem:[#allocation47_spill] sm:$0xff] %v14097_v50  ;;  %16226 = vst [vmem:[#allocation48_spill] sm:$0xff] %v14100_v49  ;;  %v14119_v48 = vadd.f32 %v7125_v20, %v13854_v11  ;;  %v14122_v32 = vadd.f32 %v7129_v6, %v13842_v54  ;;  %v14125_v21 = vadd.f32 %v7137_v4, %v13862_v58  ;;  %v14129_v44 = vpop.f32.mrb[190].mxu0  ;;  %v14132_v26 = vmul.f32 0.2, %v14097_v50 }
 0x2f8   : > { %16227 = vst [vmem:[#allocation49_spill] sm:$0xff] %v14107_v43  ;;  %16228 = vst [vmem:[#allocation50_spill] sm:$0xff] %v14116_v51  ;;  %v14127_v43 = vpop.f32.mrb[24].mxu1  ;;  %v6315_v36 = vcombine.high %v6293_v27, %v6293_v27  ;;  %v6316_v9 = vcombine.high %v6300_v30, %v6300_v30  ;;  %v6317_v55 = vcombine.high %v6307_v15, %v6307_v15  ;;  %v14136_v11 = vpop.f32.mrb[191].mxu0 }
 0x2f9   : > { %16229 = vst [vmem:[#allocation51_spill] sm:$0xff] %v14119_v48  ;;  %16230 = vst [vmem:[#allocation52_spill] sm:$0xff] %v14122_v32  ;;  %v14134_v51 = vpop.f32.mrb[25].mxu1  ;;  %v6318_v54 = vcombine.high %v14100_v49, %v14100_v49  ;;  %v7057_v58 = vrot.slane %v6293_v27, %v16223_v28  ;;  %v7061_v20 = vrot.slane %v6307_v15, %v16223_v28 }
 0x2fa   : > { %16231 = vst [vmem:[#allocation53_spill] sm:$0xff] %v14125_v21  ;;  %16232 = vst [vmem:[#allocation54_spill] sm:$0xff] %v14132_v26  ;;  %v7073_v6 = vrot.slane %v6300_v30, %v16223_v28  ;;  %v14143_v4 = vpop.f32.mrb[26].mxu1  ;;  %v14146_v21 = vrot.slane %v6416_v61, %v16223_v28  ;;  %v7065_v32 = vrot.slane %v6315_v36, %v16223_v28 }
 0x2fb   : > { %v7069_v50 = vrot.slane %v6317_v55, %v16223_v28  ;;  %v14152_v48 = vpop.f32.mrb[27].mxu1  ;;  %v14155_v27 = vrot.slane %v6316_v9, %v16223_v28  ;;  %v14158_v15 = vadd.f32 %v7057_v58, %v13787_v45  ;;  %v14161_v30 = vadd.f32 %v7061_v20, %v13793_v52 }
 0x2fc   : > { %16233 = vst [vmem:[#allocation55_spill] sm:$0xff] %v14146_v21  ;;  %v14164_v61 = vadd.f32 %v7073_v6, %v13799_v25  ;;  %v7696_v36 = vadd.f32 %v7065_v32, %v13784_v38  ;;  %v6424_v26 = vrot.slane %v14065_v1, %v16218_v24  ;;  %v6431_v21 = vrot.slane %v6417_v34, %v16218_v24 }
 0x2fd   : > { %16234 = vst [vmem:[#allocation56_spill] sm:$0xff] %v14155_v27  ;;  %16235 = vst [vmem:[#allocation57_spill] sm:$0xff] %v14158_v15  ;;  %v7697_v55 = vadd.f32 %v7069_v50, %v13790_v22  ;;  %v14172_v9 = vrot.slane %v6318_v54, %v16223_v28  ;;  %v14175_v45 = vmul.f32 0.2, %v14158_v15  ;;  %v6319_v52 = vcombine.high %v14074_v14, %v14074_v14  ;;  %v14181_v38 = vpop.f32.mrb[192].mxu0 }
 0x2fe   : > { %16236 = vst [vmem:[#allocation58_spill] sm:$0xff] %v14161_v30  ;;  %16237 = vst [vmem:[#allocation59_spill] sm:$0xff] %v14164_v61  ;;  %v6326_v25 = vrot.slane %v14074_v14, %v16218_v24  ;;  %v7824_v22 = vmul.f32 0.2, %v7696_v36  ;;  %v6432_v32 = vcombine.high %v6424_v26, %v6424_v26  ;;  %v6433_v1 = vcombine.high %v6431_v21, %v6431_v21  ;;  %v14183_v58 = vpop.f32.mrb[193].mxu0 }
 0x2ff   : > { %16238 = vst [vmem:[#allocation60_spill] sm:$0xff] %v14172_v9  ;;  %16239 = vst [vmem:[#allocation61_spill] sm:$0xff] %v14175_v45  ;;  %v7825_v50 = vmul.f32 0.2, %v7697_v55  ;;  %v6440_v34 = vrot.slane %v6424_v26, %v16218_v24  ;;  %v6447_v54 = vrot.slane %v6431_v21, %v16218_v24  ;;  %v6333_v20 = vrot.slane %v6319_v52, %v16218_v24  ;;  %v14188_v9 = vpop.f32.mrb[28].mxu1  ;;  %v14190_v27 = vpop.f32.mrb[194].mxu0 }
 0x300   : > { %v6334_v6 = vcombine.high %v6326_v25, %v6326_v25  ;;  %16240 = vst [vmem:[#allocation62_spill] sm:$0xff] %v14190_v27  ;;  %v7952_v14 = vmax.f32 %v7696_v36, %v7824_v22  ;;  %v6454_v49 = vrot.slane %v6432_v32, %v16218_v24  ;;  %v14194_v15 = vrot.slane %v6433_v1, %v16218_v24  ;;  %v14196_v45 = vpop.f32.mrb[29].mxu1  ;;  %v14198_v30 = vpop.f32.mrb[195].mxu0 }
 0x301   : > { %v7953_v61 = vmax.f32 %v7697_v55, %v7825_v50  ;;  %v6462_v26 = vcombine.high %v6440_v34, %v6440_v34  ;;  %v6463_v21 = vcombine.high %v6447_v54, %v6447_v54  ;;  %v7153_v52 = vrot.slane %v6440_v34, %v16223_v28  ;;  %v14202_v62 = vpop.f32.mrb[30].mxu1 }
 0x302   : > { %16241 = vst [vmem:[#allocation63_spill] sm:$0xff] %v14194_v15  ;;  %v7169_v40 = vrot.slane %v6447_v54, %v16223_v28  ;;  %v6464_v36 = vcombine.high %v6454_v49, %v6454_v49  ;;  %v6465_v55 = vcombine.high %v14194_v15, %v14194_v15  ;;  %v7157_v22 = vrot.slane %v6454_v49, %v16223_v28  ;;  %v14209_v50 = vpop.f32.mrb[31].mxu1 }
 0x303   : > { %v14204_v27 = vpack.c.bf16 %v7953_v61, %v7952_v14  ;;  %v7161_v32 = vrot.slane %v6462_v26, %v16223_v28  ;;  %v14215_v34 = vadd.f32 %v7153_v52, %v13878_v63  ;;  %v14219_v61 = vadd.f32 %v13777_v19, %v14072_v16 }
 0x304   : > { %v14222_v54 = vrot.slane %v6464_v36, %v16223_v28  ;;  %v14225_v14 = vrot.slane %v6463_v21, %v16223_v28  ;;  %v14228_v49 = vadd.f32 %v7157_v22, %v13886_v59  ;;  %v14231_v26 = vadd.f32 %v7169_v40, %v13894_v29 }
 0x305   : > { %16242 = vst [vmem:[#allocation64_spill] sm:$0xff] %v14215_v34  ;;  %v14234_v1 = vrot.slane %v6465_v55, %v16223_v28  ;;  %v14237_v63 = vadd.f32 %v7161_v32, %v13874_v46  ;;  %v6335_v16 = vcombine.high %v6333_v20, %v6333_v20  ;;  %v6342_v52 = vrot.slane %v6326_v25, %v16218_v24  ;;  %v14240_v36 = vpop.f32.mrb[196].mxu0 }
 0x306   : > { %16243 = vst [vmem:[#allocation65_spill] sm:$0xff] %v14222_v54  ;;  %16244 = vst [vmem:[#allocation66_spill] sm:$0xff] %v14225_v14  ;;  %v14243_v21 = vmul.f32 0.2, %v14215_v34  ;;  %v6349_v59 = vrot.slane %v6333_v20, %v16218_v24  ;;  %v6356_v22 = vrot.slane %v6334_v6, %v16218_v24  ;;  %v14249_v29 = vadd.f32 %v14081_v3, %v13777_v19  ;;  %v14251_v40 = vpop.f32.mrb[197].mxu0 }
 0x307   : > { %16245 = vst [vmem:[#allocation67_spill] sm:$0xff] %v14228_v49  ;;  %16246 = vst [vmem:[#allocation68_spill] sm:$0xff] %v14231_v26  ;;  %v14254_v46 = vrot.slane %v6335_v16, %v16218_v24  ;;  %v6364_v55 = vcombine.high %v6342_v52, %v6342_v52  ;;  %v7089_v25 = vrot.slane %v6342_v52, %v16223_v28  ;;  %v14261_v20 = vpop.f32.mrb[198].mxu0 }
 0x308   : > { %16247 = vst [vmem:[#allocation69_spill] sm:$0xff] %v14234_v1  ;;  %16248 = vst [vmem:[#allocation70_spill] sm:$0xff] %v14237_v63  ;;  %v6564_v32 = vcombine.high %v14102_v35, %v14102_v35  ;;  %v14259_v1 = vpop.f32.mrb[32].mxu1  ;;  %v6365_v6 = vcombine.high %v6349_v59, %v6349_v59  ;;  %v6366_v14 = vcombine.high %v6356_v22, %v6356_v22  ;;  %v14267_v16 = vpop.f32.mrb[199].mxu0 }
 0x309   : > { %16249 = vst [vmem:[#allocation71_spill] sm:$0xff] %v14243_v21  ;;  %16250 = vst [vmem:[#allocation72_spill] sm:$0xff] %v14249_v29  ;;  %v7093_v3 = vrot.slane %v6356_v22, %v16223_v28  ;;  %v7105_v29 = vrot.slane %v6349_v59, %v16223_v28  ;;  %v14265_v26 = vpop.f32.mrb[33].mxu1  ;;  %v6367_v52 = vcombine.high %v14254_v46, %v14254_v46 }
 0x30a   : > { %16251 = vst [vmem:[#allocation73_spill] sm:$0xff] %v14251_v40  ;;  %16252 = vst [vmem:[#allocation74_spill] sm:$0xff] %v14254_v46  ;;  %v7097_v15 = vrot.slane %v6364_v55, %v16223_v28  ;;  %v14273_v63 = vadd.f32 %v7089_v25, %v13813_v42  ;;  %v14277_v54 = vadd.f32 %v13777_v19, %v14085_v53  ;;  %v14279_v34 = vpop.f32.mrb[34].mxu1 }
 0x30b   : > { %16253 = vst [vmem:[#allocation75_spill] sm:$0xff] %v14261_v20  ;;  %16254 = vst [vmem:[#allocation76_spill] sm:$0xff] %v14267_v16  ;;  %v14282_v59 = vrot.slane %v6366_v14, %v16223_v28  ;;  %v14287_v21 = vadd.f32 %v7093_v3, %v13822_v12  ;;  %v14290_v55 = vadd.f32 %v7105_v29, %v13830_v47  ;;  %v14292_v42 = vpop.f32.mrb[35].mxu1 }
 0x30c   : > { %16255 = vst [vmem:[#allocation77_spill] sm:$0xff] %v14277_v54  ;;  %v14295_v25 = vrot.slane %v6365_v6, %v16223_v28  ;;  %v14298_v53 = vrot.slane %v6367_v52, %v16223_v28  ;;  %v14301_v14 = vadd.f32 %v7097_v15, %v13810_v5  ;;  %v6571_v22 = vrot.slane %v14102_v35, %v16218_v24 }
 0x30d   : > { %16256 = vst [vmem:[#allocation78_spill] sm:$0xff] %v14282_v59  ;;  %16257 = vst [vmem:[#allocation79_spill] sm:$0xff] %v14290_v55  ;;  %v14306_v12 = vmul.f32 0.2, %v14273_v63  ;;  %v6578_v47 = vrot.slane %v6564_v32, %v16218_v24  ;;  %v6466_v29 = vcombine.high %v14113_v0, %v14113_v0  ;;  %v6473_v6 = vrot.slane %v14113_v0, %v16218_v24 }
 0x30e   : > { %16258 = vst [vmem:[#allocation80_spill] sm:$0xff] %v14295_v25  ;;  %16259 = vst [vmem:[#allocation81_spill] sm:$0xff] %v14298_v53  ;;  %v6579_v3 = vcombine.high %v6571_v22, %v6571_v22  ;;  %v6587_v52 = vrot.slane %v6571_v22, %v16218_v24  ;;  %v6613_v5 = vcombine.high %v14129_v44, %v14129_v44 }
 0x30f   : > { %16260 = vst [vmem:[#allocation82_spill] sm:$0xff] %v14301_v14  ;;  %v6620_v35 = vrot.slane %v14129_v44, %v16218_v24  ;;  %v6580_v15 = vcombine.high %v6578_v47, %v6578_v47  ;;  %v6594_v54 = vrot.slane %v6578_v47, %v16218_v24  ;;  %v6480_v32 = vrot.slane %v6466_v29, %v16218_v24  ;;  %v14323_v22 = vpop.f32.mrb[36].mxu1 }
 0x310   : > { %v6481_v49 = vcombine.high %v6473_v6, %v6473_v6  ;;  %v6601_v16 = vrot.slane %v6579_v3, %v16218_v24  ;;  %v6609_v20 = vcombine.high %v6587_v52, %v6587_v52  ;;  %v7249_v0 = vrot.slane %v6587_v52, %v16223_v28  ;;  %v14329_v47 = vpop.f32.mrb[37].mxu1 }
 0x311   : > { %v6489_v53 = vrot.slane %v6473_v6, %v16218_v24  ;;  %v14326_v25 = vrot.slane %v6580_v15, %v16218_v24  ;;  %v6610_v55 = vcombine.high %v6594_v54, %v6594_v54  ;;  %v7265_v44 = vrot.slane %v6594_v54, %v16223_v28  ;;  %v14336_v6 = vpop.f32.mrb[38].mxu1 }
 0x312   : > { %v6482_v46 = vcombine.high %v6480_v32, %v6480_v32  ;;  %v6611_v29 = vcombine.high %v6601_v16, %v6601_v16  ;;  %v7253_v14 = vrot.slane %v6601_v16, %v16223_v28  ;;  %v7257_v3 = vrot.slane %v6609_v20, %v16223_v28  ;;  %v14349_v16 = vpop.f32.mrb[39].mxu1 }
 0x313   : > { %16261 = vst [vmem:[#allocation83_spill] sm:$0xff] %v14326_v25  ;;  %v14334_v52 = vadd.f32 %v7249_v0, %v14022_v39  ;;  %v6612_v15 = vcombine.high %v14326_v25, %v14326_v25  ;;  %v14343_v54 = vadd.f32 %v7265_v44, %v14046_v41  ;;  %v14347_v40 = vadd.f32 %v14127_v43, %v13777_v19 }
 0x314   : > { %v14352_v39 = vrot.slane %v6611_v29, %v16223_v28  ;;  %v14355_v20 = vrot.slane %v6610_v55, %v16223_v28  ;;  %v14358_v0 = vadd.f32 %v7253_v14, %v14031_v23  ;;  %v14361_v59 = vadd.f32 %v7257_v3, %v14018_v13 }
 0x315   : > { %16262 = vst [vmem:[#allocation84_spill] sm:$0xff] %v14334_v52  ;;  %16263 = vst [vmem:[#allocation85_spill] sm:$0xff] %v14343_v54  ;;  %v14364_v41 = vmul.f32 0.2, %v14334_v52  ;;  %v6496_v43 = vrot.slane %v6480_v32, %v16218_v24  ;;  %v6503_v44 = vrot.slane %v6481_v49, %v16218_v24  ;;  %v14369_v54 = vrot.slane %v6482_v46, %v16218_v24 }
 0x316   : > { %16264 = vst [vmem:[#allocation86_spill] sm:$0xff] %v14352_v39  ;;  %16265 = vst [vmem:[#allocation87_spill] sm:$0xff] %v14355_v20  ;;  %v6511_v29 = vcombine.high %v6489_v53, %v6489_v53  ;;  %v7185_v55 = vrot.slane %v6489_v53, %v16223_v28  ;;  %v6627_v20 = vrot.slane %v6613_v5, %v16218_v24 }
 0x317   : > { %16266 = vst [vmem:[#allocation88_spill] sm:$0xff] %v14358_v0  ;;  %16267 = vst [vmem:[#allocation89_spill] sm:$0xff] %v14361_v59  ;;  %v6628_v23 = vcombine.high %v6620_v35, %v6620_v35  ;;  %v6512_v14 = vcombine.high %v6496_v43, %v6496_v43  ;;  %v6513_v25 = vcombine.high %v6503_v44, %v6503_v44  ;;  %v14384_v53 = vpop.f32.mrb[40].mxu1 }
 0x318   : > { %16268 = vst [vmem:[#allocation90_spill] sm:$0xff] %v14364_v41  ;;  %16269 = vst [vmem:[#allocation91_spill] sm:$0xff] %v14369_v54  ;;  %v6514_v13 = vcombine.high %v14369_v54, %v14369_v54  ;;  %v7189_v3 = vrot.slane %v6503_v44, %v16223_v28  ;;  %v14377_v32 = vrot.slane %v6612_v15, %v16223_v28 }
 0x319   : > { %v7193_v49 = vrot.slane %v6511_v29, %v16223_v28  ;;  %v7201_v46 = vrot.slane %v6496_v43, %v16223_v28  ;;  %v14382_v59 = vadd.f32 %v7185_v55, %v13910_v31  ;;  %v14387_v5 = vrot.slane %v6513_v25, %v16223_v28  ;;  %v14397_v29 = vpop.f32.mrb[41].mxu1 }
 0x31a   : > { %16270 = vst [vmem:[#allocation92_spill] sm:$0xff] %v14377_v32  ;;  %v14392_v44 = vrot.slane %v6512_v14, %v16223_v28  ;;  %v14395_v15 = vadd.f32 %v7189_v3, %v13918_v33  ;;  %v14400_v43 = vrot.slane %v6514_v13, %v16223_v28  ;;  %v6629_v55 = vcombine.high %v6627_v20, %v6627_v20  ;;  %v14408_v32 = vpop.f32.mrb[42].mxu1 }
 0x31b   : > { %16271 = vst [vmem:[#allocation93_spill] sm:$0xff] %v14382_v59  ;;  %16272 = vst [vmem:[#allocation94_spill] sm:$0xff] %v14387_v5  ;;  %v14403_v31 = vadd.f32 %v7193_v49, %v13906_v37  ;;  %v14406_v25 = vadd.f32 %v7201_v46, %v13926_v60  ;;  %v14411_v14 = vmul.f32 0.2, %v14382_v59  ;;  %v6636_v33 = vrot.slane %v6620_v35, %v16218_v24  ;;  %v14416_v13 = vpop.f32.mrb[43].mxu1 }
 0x31c   : > { %16273 = vst [vmem:[#allocation95_spill] sm:$0xff] %v14392_v44  ;;  %16274 = vst [vmem:[#allocation96_spill] sm:$0xff] %v14395_v15  ;;  %v6643_v3 = vrot.slane %v6627_v20, %v16218_v24  ;;  %v6650_v39 = vrot.slane %v6628_v23, %v16218_v24  ;;  %v14419_v37 = vrot.slane %v6629_v55, %v16218_v24 }
 0x31d   : > { %16275 = vst [vmem:[#allocation97_spill] sm:$0xff] %v14400_v43  ;;  %16276 = vst [vmem:[#allocation98_spill] sm:$0xff] %v14403_v31  ;;  %v14423_v60 = vadd.f32 %v13777_v19, %v14134_v51  ;;  %v6515_v49 = vcombine.high %v14136_v11, %v14136_v11  ;;  %v6522_v46 = vrot.slane %v14136_v11, %v16218_v24 }
 0x31e   : > { %16277 = vst [vmem:[#allocation99_spill] sm:$0xff] %v14406_v25  ;;  %16278 = vst [vmem:[#allocation100_spill] sm:$0xff] %v14411_v14  ;;  %v6658_v35 = vcombine.high %v6636_v33, %v6636_v33  ;;  %v6659_v52 = vcombine.high %v6643_v3, %v6643_v3  ;;  %v6660_v20 = vcombine.high %v6650_v39, %v6650_v39 }
 0x31f   : > { %16279 = vst [vmem:[#allocation101_spill] sm:$0xff] %v14419_v37  ;;  %v7281_v23 = vrot.slane %v6636_v33, %v16223_v28  ;;  %v6661_v41 = vcombine.high %v14419_v37, %v14419_v37  ;;  %v7285_v55 = vrot.slane %v6650_v39, %v16223_v28  ;;  %v7297_v0 = vrot.slane %v6643_v3, %v16223_v28 }
 0x320   : > { %v14436_v51 = vadd.f32 %v14143_v4, %v13777_v19  ;;  %v7289_v43 = vrot.slane %v6658_v35, %v16223_v28  ;;  %v14440_v11 = vrot.slane %v6660_v20, %v16223_v28  ;;  %v14448_v25 = vrot.slane %v6659_v52, %v16223_v28  ;;  %v14457_v35 = vpop.f32.mrb[44].mxu1 }
 0x321   : > { %v14445_v33 = vadd.f32 %v7281_v23, %v13942_v18  ;;  %v14451_v39 = vadd.f32 %v7285_v55, %v13950_v7  ;;  %v14454_v4 = vadd.f32 %v7297_v0, %v13974_v56  ;;  %v6529_v3 = vrot.slane %v6515_v49, %v16218_v24  ;;  %v14466_v23 = vpop.f32.mrb[45].mxu1 }
 0x322   : > { %16280 = vst [vmem:[#allocation102_spill] sm:$0xff] %v14436_v51  ;;  %16281 = vst [vmem:[#allocation103_spill] sm:$0xff] %v14440_v11  ;;  %v14460_v20 = vrot.slane %v6661_v41, %v16223_v28  ;;  %v14463_v44 = vadd.f32 %v7289_v43, %v13934_v17  ;;  %v6530_v18 = vcombine.high %v6522_v46, %v6522_v46  ;;  %v14474_v55 = vpop.f32.mrb[46].mxu1 }
 0x323   : > { %16282 = vst [vmem:[#allocation104_spill] sm:$0xff] %v14445_v33  ;;  %16283 = vst [vmem:[#allocation105_spill] sm:$0xff] %v14448_v25  ;;  %v6538_v52 = vrot.slane %v6522_v46, %v16218_v24  ;;  %v14469_v7 = vmul.f32 0.2, %v14445_v33  ;;  %v6531_v56 = vcombine.high %v6529_v3, %v6529_v3  ;;  %v6545_v0 = vrot.slane %v6529_v3, %v16218_v24  ;;  %v14480_v51 = vpop.f32.mrb[47].mxu1 }
 0x324   : > { %16284 = vst [vmem:[#allocation106_spill] sm:$0xff] %v14451_v39  ;;  %16285 = vst [vmem:[#allocation107_spill] sm:$0xff] %v14454_v4  ;;  %v6760_v49 = vcombine.high %v14181_v38, %v14181_v38  ;;  %v6552_v41 = vrot.slane %v6530_v18, %v16218_v24  ;;  %v6767_v46 = vrot.slane %v14181_v38, %v16218_v24 }
 0x325   : > { %16286 = vst [vmem:[#allocation108_spill] sm:$0xff] %v14460_v20  ;;  %16287 = vst [vmem:[#allocation109_spill] sm:$0xff] %v14463_v44  ;;  %v6560_v17 = vcombine.high %v6538_v52, %v6538_v52  ;;  %v7217_v43 = vrot.slane %v6538_v52, %v16223_v28  ;;  %v14483_v20 = vrot.slane %v6531_v56, %v16218_v24 }
 0x326   : > { %16288 = vst [vmem:[#allocation110_spill] sm:$0xff] %v14469_v7  ;;  %v6561_v25 = vcombine.high %v6545_v0, %v6545_v0  ;;  %v7233_v3 = vrot.slane %v6545_v0, %v16223_v28  ;;  %v6774_v4 = vrot.slane %v6760_v49, %v16218_v24  ;;  %v6562_v37 = vcombine.high %v6552_v41, %v6552_v41 }
 0x327   : > { %16289 = vst [vmem:[#allocation111_spill] sm:$0xff] %v14483_v20  ;;  %v7221_v44 = vrot.slane %v6552_v41, %v16223_v28  ;;  %v7225_v18 = vrot.slane %v6560_v17, %v16223_v28  ;;  %v14490_v52 = vadd.f32 %v7217_v43, %v13958_v2  ;;  %v6563_v38 = vcombine.high %v14483_v20, %v14483_v20 }
 0x328   : > { %v14497_v11 = vadd.f32 %v7233_v3, %v13990_v10  ;;  %v5922_v0 = vadd.f32 %v13777_v19, %v14152_v48  ;;  %v14502_v49 = vrot.slane %v6562_v37, %v16223_v28  ;;  %v14505_v41 = vrot.slane %v6561_v25, %v16223_v28  ;;  %v14520_v37 = vpop.f32.mrb[48].mxu1 }
 0x329   : > { %16290 = vst [vmem:[#allocation112_spill] sm:$0xff] %v14490_v52  ;;  %v14508_v2 = vadd.f32 %v7221_v44, %v13970_v8  ;;  %v14511_v17 = vadd.f32 %v7225_v18, %v13954_v57  ;;  %v14514_v43 = vrot.slane %v6563_v38, %v16223_v28  ;;  %v14517_v10 = vmul.f32 0.2, %v14490_v52  ;;  %v14529_v44 = vpop.f32.mrb[49].mxu1 }
 0x32a   : > { %16291 = vst [vmem:[#allocation113_spill] sm:$0xff] %v14497_v11  ;;  %16292 = vst [vmem:[#allocation114_spill] sm:$0xff] %v14502_v49  ;;  %v6775_v3 = vcombine.high %v6767_v46, %v6767_v46  ;;  %v6783_v48 = vrot.slane %v6767_v46, %v16218_v24  ;;  %v6776_v56 = vcombine.high %v6774_v4, %v6774_v4  ;;  %v14535_v7 = vpop.f32.mrb[50].mxu1 }
 0x32b   : > { %16293 = vst [vmem:[#allocation115_spill] sm:$0xff] %v14505_v41  ;;  %16294 = vst [vmem:[#allocation116_spill] sm:$0xff] %v14508_v2  ;;  %v14523_v25 = vrot.slane %v6774_v4, %v16218_v24  ;;  %v6662_v8 = vcombine.high %v14183_v58, %v14183_v58  ;;  %v6669_v57 = vrot.slane %v14183_v58, %v16218_v24  ;;  %v14541_v41 = vpop.f32.mrb[51].mxu1 }
 0x32c   : > { %16295 = vst [vmem:[#allocation117_spill] sm:$0xff] %v14511_v17  ;;  %16296 = vst [vmem:[#allocation118_spill] sm:$0xff] %v14514_v43  ;;  %v6797_v18 = vrot.slane %v6775_v3, %v16218_v24  ;;  %v6805_v38 = vcombine.high %v6783_v48, %v6783_v48  ;;  %v7377_v33 = vrot.slane %v6783_v48, %v16223_v28 }
 0x32d   : > { %16297 = vst [vmem:[#allocation119_spill] sm:$0xff] %v14517_v10  ;;  %v5943_v46 = vadd.f32 %v14188_v9, %v13777_v19  ;;  %v6676_v4 = vrot.slane %v6662_v8, %v16218_v24  ;;  %v6677_v39 = vcombine.high %v6669_v57, %v6669_v57  ;;  %v6685_v43 = vrot.slane %v6669_v57, %v16218_v24 }
 0x32e   : > { %v6806_v58 = vcombine.high %v14523_v25, %v14523_v25  ;;  %v6807_v11 = vcombine.high %v6797_v18, %v6797_v18  ;;  %v7381_v3 = vrot.slane %v6797_v18, %v16223_v28  ;;  %v7385_v48 = vrot.slane %v6805_v38, %v16223_v28 }
 0x32f   : > { %v14546_v20 = vadd.f32 %v7377_v33, %v14423_v60  ;;  %v6678_v9 = vcombine.high %v6676_v4, %v6676_v4  ;;  %v6692_v17 = vrot.slane %v6676_v4, %v16218_v24  ;;  %v6699_v8 = vrot.slane %v6677_v39, %v16218_v24 }
 0x330   : > { %v6707_v49 = vcombine.high %v6685_v43, %v6685_v43  ;;  %v14551_v57 = vrot.slane %v6776_v56, %v16218_v24  ;;  %v14554_v52 = vrot.slane %v6807_v11, %v16223_v28  ;;  %v14556_v10 = vadd.f32 %v7381_v3, %v5922_v0  ;;  %v14569_v3 = vpop.f32.mrb[52].mxu1 }
 0x331   : > { %16298 = vst [vmem:[#allocation120_spill] sm:$0xff] %v14546_v20  ;;  %v14559_v18 = vadd.f32 %v7385_v48, %v14347_v40  ;;  %v14562_v60 = vrot.slane %v6678_v9, %v16218_v24  ;;  %v6708_v33 = vcombine.high %v6692_v17, %v6692_v17  ;;  %v6709_v38 = vcombine.high %v6699_v8, %v6699_v8  ;;  %v16311_v20 = vld [vmem:[#allocation5_spill] sm:$0xff] }
 0x332   : > { %16299 = vst [vmem:[#allocation121_spill] sm:$0xff] %v14554_v52  ;;  %16300 = vst [vmem:[#allocation122_spill] sm:$0xff] %v14556_v10  ;;  %v7313_v4 = vrot.slane %v6685_v43, %v16223_v28  ;;  %v7317_v39 = vrot.slane %v6699_v8, %v16223_v28  ;;  %v7321_v56 = vrot.slane %v6707_v49, %v16223_v28  ;;  %v14581_v8 = vpop.f32.mrb[53].mxu1  ;;  %v16305_v49 = vld [vmem:[#allocation38_spill] sm:$0xff]  ;;  %v16309_v52 = vld [vmem:[#allocation28_spill] sm:$0xff] }
 0x333   : > { %16301 = vst [vmem:[#allocation123_spill] sm:$0xff] %v14559_v18  ;;  %16302 = vst [vmem:[#allocation124_spill] sm:$0xff] %v14562_v60  ;;  %v7329_v11 = vrot.slane %v6692_v17, %v16223_v28  ;;  %v7401_v0 = vrot.slane %v6806_v58, %v16223_v28  ;;  %v6710_v40 = vcombine.high %v14562_v60, %v14562_v60  ;;  %v16307_v58 = vld [vmem:[#allocation34_spill] sm:$0xff] }
 0x334   : > { %v14574_v48 = vrot.slane %v6709_v38, %v16223_v28  ;;  %v14579_v9 = vrot.slane %v6708_v33, %v16223_v28  ;;  %v14584_v17 = vadd.f32 %v7313_v4, %v16305_v49  ;;  %v14587_v18 = vadd.f32 %v7317_v39, %v16307_v58  ;;  %v16318_v58 = vld [vmem:[#allocation57_spill] sm:$0xff] }
 0x335   : > { %v14590_v10 = vadd.f32 %v7321_v56, %v16309_v52  ;;  %v14593_v38 = vadd.f32 %v7329_v11, %v16311_v20  ;;  %v14598_v43 = vrot.slane %v6710_v40, %v16223_v28  ;;  %v14600_v33 = vadd.f32 %v7401_v0, %v5943_v46  ;;  %v16316_v20 = vld [vmem:[#allocation58_spill] sm:$0xff]  ;;  %v16317_v11 = vld [vmem:[#allocation61_spill] sm:$0xff] }
 0x336   : > { %16303 = vst [vmem:[#allocation125_spill] sm:$0xff] %v14574_v48  ;;  %16304 = vst [vmem:[#allocation126_spill] sm:$0xff] %v14579_v9  ;;  %v14595_v48 = vpop.f32.mrb[54].mxu1  ;;  %v16314_v9 = vld [vmem:[#allocation62_spill] sm:$0xff]  ;;  %v14609_v52 = vmul.f32 0.2, %v14584_v17  ;;  %v5935_v46 = vadd.f32 %v13777_v19, %v14196_v45  ;;  %v6718_v45 = vrot.slane %v14198_v30, %v16218_v24 }
 0x337   : > { %16306 = vst [vmem:[#allocation38_spill] sm:$0xff] %v14584_v17  ;;  %16308 = vst [vmem:[#allocation34_spill] sm:$0xff] %v14587_v18  ;;  %v6809_v4 = vcombine.high %v16314_v9, %v16314_v9  ;;  %v6816_v39 = vrot.slane %v16314_v9, %v16218_v24  ;;  %v14606_v49 = vpop.f32.mrb[55].mxu1  ;;  %v7823_v56 = vmul.f32 0.2, %v16316_v20 }
 0x338   : > { %16310 = vst [vmem:[#allocation28_spill] sm:$0xff] %v14590_v10  ;;  %16312 = vst [vmem:[#allocation5_spill] sm:$0xff] %v14593_v38  ;;  %v7950_v38 = vmax.f32 %v16318_v58, %v16317_v11  ;;  %v14617_v0 = vmul.f32 0.2, %v14600_v33  ;;  %v7393_v10 = vrot.slane %v14523_v25, %v16223_v28  ;;  %v6711_v11 = vcombine.high %v14198_v30, %v14198_v30  ;;  %v14643_v18 = vpop.f32.mrb[56].mxu1 }
 0x339   : > { %16313 = vst [vmem:[#allocation127_spill] sm:$0xff] %v14598_v43  ;;  %16315 = vst [vmem:[#allocation62_spill] sm:$0xff] %v14609_v52  ;;  %v6823_v40 = vrot.slane %v6809_v4, %v16218_v24  ;;  %v6824_v43 = vcombine.high %v6816_v39, %v6816_v39  ;;  %v14621_v9 = vrot.slane %v6816_v39, %v16218_v24  ;;  %v14651_v2 = vpop.f32.mrb[57].mxu1 }
 0x33a   : > { %v7951_v60 = vmax.f32 %v16316_v20, %v7823_v56  ;;  %v14640_v56 = vadd.f32 %v7393_v10, %v5935_v46  ;;  %v6725_v52 = vrot.slane %v6711_v11, %v16218_v24  ;;  %v6726_v58 = vcombine.high %v6718_v45, %v6718_v45  ;;  %16319 = vst [vmem:[#allocation58_spill] sm:$0xff] %v14651_v2  ;;  %v14660_v46 = vpop.f32.mrb[58].mxu1 }
 0x33b   : > { %v6825_v17 = vcombine.high %v6823_v40, %v6823_v40  ;;  %v14633_v4 = vrot.slane %v6823_v40, %v16218_v24  ;;  %v14636_v39 = vrot.slane %v6824_v43, %v16218_v24  ;;  %v6854_v20 = vcombine.high %v14621_v9, %v14621_v9  ;;  %16320 = vst [vmem:[#allocation61_spill] sm:$0xff] %v14660_v46  ;;  %v14668_v54 = vpop.f32.mrb[59].mxu1 }
 0x33c   : > { %v8078_v25 = vpack.c.bf16 %v7951_v60, %v7950_v38  ;;  %v6734_v40 = vrot.slane %v6718_v45, %v16218_v24  ;;  %v5946_v43 = vadd.f32 %v14202_v62, %v13777_v19  ;;  %v14655_v10 = vmul.f32 0.2, %v14640_v56  ;;  %16321 = vst [vmem:[#allocation57_spill] sm:$0xff] %v14668_v54 }
 0x33d   : > { %v14646_v30 = vrot.slane %v6825_v17, %v16218_v24  ;;  %v6727_v60 = vcombine.high %v6725_v52, %v6725_v52  ;;  %v6741_v38 = vrot.slane %v6725_v52, %v16218_v24  ;;  %v6808_v17 = vcombine.high %v14551_v57, %v14551_v57 }
 0x33e   : > { %11162 = vmatprep.mubr.msk.bf16.mxu1 %vm8181_vm1, %v8078_v25  ;;  %v6748_v11 = vrot.slane %v6726_v58, %v16218_v24  ;;  %v6756_v45 = vcombine.high %v6734_v40, %v6734_v40  ;;  %v7345_v62 = vrot.slane %v6734_v40, %v16223_v28  ;;  %v5938_v25 = vadd.f32 %v13777_v19, %v14209_v50 }
 0x33f   : > { %11163 = vmatmul.mubr.msk.bf16.vlgmr.msra.gmra.mrb[72].mxu1 %vm8181_vm1, %v14204_v27  ;;  %v8034_v52 = vmax.f32 %v14640_v56, %v14655_v10  ;;  %v14673_v31 = vrot.slane %v6727_v60, %v16218_v24  ;;  %v6757_v5 = vcombine.high %v6741_v38, %v6741_v38  ;;  %v7361_v58 = vrot.slane %v6741_v38, %v16223_v28  ;;  %v16323_v27 = vld [vmem:[#allocation3_spill] sm:$0xff] }
 0x340   : > { %v6758_v59 = vcombine.high %v6748_v11, %v6748_v11  ;;  %v7349_v40 = vrot.slane %v6748_v11, %v16223_v28  ;;  %v7353_v14 = vrot.slane %v6756_v45, %v16223_v28  ;;  %v14679_v15 = vadd.f32 %v7345_v62, %v16323_v27  ;;  %v16328_v11 = vld [vmem:[#allocation45_spill] sm:$0xff]  ;;  %v16330_v62 = vld [vmem:[#allocation42_spill] sm:$0xff] }
 0x341   : > { %16322 = vst [vmem:[#allocation128_spill] sm:$0xff] %v14673_v31  ;;  %v6759_v50 = vcombine.high %v14673_v31, %v14673_v31  ;;  %v14686_v10 = vrot.slane %v6757_v5, %v16223_v28  ;;  %v14689_v60 = vadd.f32 %v7361_v58, %v14219_v61  ;;  %v7405_v5 = vrot.slane %v6808_v17, %v16223_v28  ;;  %v16334_v58 = vld [vmem:[#allocation8_spill] sm:$0xff] }
 0x342   : > { %16324 = vst [vmem:[#allocation3_spill] sm:$0xff] %v14679_v15  ;;  %v14692_v38 = vrot.slane %v6758_v59, %v16223_v28  ;;  %v14695_v45 = vadd.f32 %v7349_v40, %v16328_v11  ;;  %v14698_v27 = vadd.f32 %v7353_v14, %v16330_v62  ;;  %v14701_v54 = vmul.f32 0.2, %v14679_v15  ;;  %v16335_v59 = vld [vmem:[#allocation48_spill] sm:$0xff]  ;;  %v14713_v11 = vpop.f32.mrb[60].mxu1  ;;  %v16338_v14 = vld [vmem:[#allocation59_spill] sm:$0xff] }
 0x343   : > { %16325 = vst [vmem:[#allocation129_spill] sm:$0xff] %v14686_v10  ;;  %16326 = vst [vmem:[#allocation130_spill] sm:$0xff] %v14689_v60  ;;  %v14704_v56 = vrot.slane %v6759_v50, %v16223_v28  ;;  %v7397_v61 = vrot.slane %v14551_v57, %v16223_v28  ;;  %v16336_v10 = vrot.slane %v16335_v59, %v16223_v28  ;;  %v7826_v62 = vmul.f32 0.2, %v16338_v14 }
 0x344   : > { %16327 = vst [vmem:[#allocation131_spill] sm:$0xff] %v14692_v38  ;;  %16329 = vst [vmem:[#allocation45_spill] sm:$0xff] %v14695_v45  ;;  %v5959_v60 = vadd.f32 %v14259_v1, %v13777_v19  ;;  %v7417_v50 = vrot.slane %v6854_v20, %v16223_v28  ;;  %v5951_v17 = vadd.f32 %v13777_v19, %v14265_v26  ;;  %v16343_v45 = vld [vmem:[#allocation56_spill] sm:$0xff] }
 0x345   : > { %16331 = vst [vmem:[#allocation42_spill] sm:$0xff] %v14698_v27  ;;  %16332 = vst [vmem:[#allocation132_spill] sm:$0xff] %v14701_v54  ;;  %v7699_v40 = vadd.f32 %v16336_v10, %v16334_v58  ;;  %v7781_v57 = vadd.f32 %v7405_v5, %v5946_v43  ;;  %v7779_v31 = vadd.f32 %v7397_v61, %v5938_v25  ;;  %v16342_v54 = vld [vmem:[#allocation12_spill] sm:$0xff] }
 0x346   : > { %16333 = vst [vmem:[#allocation133_spill] sm:$0xff] %v14704_v56  ;;  %16337 = vst [vmem:[#allocation8_spill] sm:$0xff] %v14713_v11  ;;  %v14721_v56 = vpop.f32.mrb[61].mxu1  ;;  %v7409_v10 = vrot.slane %v14621_v9, %v16223_v28  ;;  %v7954_v59 = vmax.f32 %v16338_v14, %v7826_v62  ;;  %v7784_v38 = vadd.f32 %v7417_v50, %v5959_v60  ;;  %v16344_v14 = vld [vmem:[#allocation7_spill] sm:$0xff]  ;;  %v16345_v60 = vld [vmem:[#allocation60_spill] sm:$0xff] }
 0x347   : > { %16339 = vst [vmem:[#allocation48_spill] sm:$0xff] %v14721_v56  ;;  %v7827_v27 = vmul.f32 0.2, %v7699_v40  ;;  %v14725_v58 = vpop.f32.mrb[62].mxu1  ;;  %v5962_v1 = vadd.f32 %v14279_v34, %v13777_v19  ;;  %v6856_v20 = vcombine.high %v14636_v39, %v14636_v39  ;;  %v7909_v15 = vmul.f32 0.2, %v7781_v57 }
 0x348   : > { %16340 = vst [vmem:[#allocation59_spill] sm:$0xff] %v14725_v58  ;;  %v14732_v26 = vpop.f32.mrb[63].mxu1  ;;  %v7907_v43 = vmul.f32 0.2, %v7779_v31  ;;  %v7782_v5 = vadd.f32 %v7409_v10, %v5951_v17  ;;  %v7912_v61 = vmul.f32 0.2, %v7784_v38  ;;  %v7700_v58 = vadd.f32 %v16343_v45, %v16342_v54 }
 0x349   : > { %16341 = vst [vmem:[#allocation134_spill] sm:$0xff] %v14732_v26  ;;  %v7955_v25 = vmax.f32 %v7699_v40, %v7827_v27  ;;  %v7421_v9 = vrot.slane %v6856_v20, %v16223_v28  ;;  %v7701_v62 = vadd.f32 %v16345_v60, %v16344_v14  ;;  %v8037_v50 = vmax.f32 %v7781_v57, %v7909_v15  ;;  %v14750_v15 = vld [vmem:[%s15978_s5] ss:$0 sm:$0xff] }
 0x34a   : > { %v8035_v19 = vmax.f32 %v7779_v31, %v7907_v43  ;;  %v7910_v56 = vmul.f32 0.2, %v7782_v5  ;;  %v8040_v11 = vmax.f32 %v7784_v38, %v7912_v61  ;;  %v7828_v26 = vmul.f32 0.2, %v7700_v58  ;;  %v14754_v38 = vpop.f32.mrb[64].mxu1 }
 0x34b   : > { %v8080_v34 = vpack.c.bf16 %v7955_v25, %v7954_v59  ;;  %v7785_v46 = vadd.f32 %v7421_v9, %v5962_v1  ;;  %v7829_v2 = vmul.f32 0.2, %v7701_v62  ;;  %v16346_v27 = vmax.f32 %v14600_v33, %v14617_v0 }
 0x34c   : > { %v14744_v17 = vpack.c.bf16 %v8035_v19, %v8034_v52  ;;  %v8038_v54 = vmax.f32 %v7782_v5, %v7910_v56  ;;  %v5954_v31 = vadd.f32 %v14750_v15, %v14292_v42  ;;  %v7956_v57 = vmax.f32 %v7700_v58, %v7828_v26  ;;  %v14758_v52 = vpop.f32.mrb[65].mxu1 }
 0x34d   : > { %v14742_v40 = vpack.c.bf16 %v8037_v50, %v16346_v27  ;;  %11166 = vmatprep.mubr.msk.bf16.mxu1 %vm8181_vm1, %v8080_v34  ;;  %v7913_v45 = vmul.f32 0.2, %v7785_v46  ;;  %v7957_v33 = vmax.f32 %v7701_v62, %v7829_v2  ;;  %v7413_v0 = vrot.slane %v14636_v39, %v16223_v28  ;;  %v14767_v1 = vpop.f32.mrb[66].mxu1 }
 0x34e   : > { %v7831_v56 = vmul.f32 0.2, %v14287_v21  ;;  %v7958_v10 = vmax.f32 %v14273_v63, %v14306_v12  ;;  %v5975_v59 = vadd.f32 %v14750_v15, %v14323_v22  ;;  %v6855_v42 = vcombine.high %v14633_v4, %v14633_v4  ;;  %v14771_v26 = vpop.f32.mrb[67].mxu1 }
 0x34f   : > { %v8041_v58 = vmax.f32 %v7785_v46, %v7913_v45  ;;  %v8081_v2 = vpack.c.bf16 %v7957_v33, %v7956_v57  ;;  %v7783_v20 = vadd.f32 %v7413_v0, %v5954_v31  ;;  %v5967_v39 = vadd.f32 %v14750_v15, %v14329_v47  ;;  %v14796_v34 = vpop.f32.mrb[68].mxu1 }
 0x350   : > { %v7959_v43 = vmax.f32 %v14287_v21, %v7831_v56  ;;  %v7433_v63 = vrot.slane %v6855_v42, %v16223_v28  ;;  %v7425_v12 = vrot.slane %v14633_v4, %v16223_v28  ;;  %v6956_v22 = vcombine.high %v14240_v36, %v14240_v36  ;;  %v14806_v33 = vpop.f32.mrb[69].mxu1 }
 0x351   : > { %v14779_v25 = vpack.c.bf16 %v8041_v58, %v8040_v11  ;;  %11167 = vmatmul.mubr.msk.bf16.gmra.mrb[76].mxu1 %vm8181_vm1, %v8081_v2  ;;  %v7911_v46 = vmul.f32 0.2, %v7783_v20  ;;  %v6963_v47 = vrot.slane %v14240_v36, %v16218_v24  ;;  %v5978_v5 = vadd.f32 %v14750_v15, %v14336_v6 }
 0x352   : > { %v8082_v21 = vpack.c.bf16 %v7959_v43, %v7958_v10  ;;  %v7788_v61 = vadd.f32 %v7433_v63, %v5975_v59  ;;  %v7786_v9 = vadd.f32 %v7425_v12, %v5967_v39  ;;  %v6970_v14 = vrot.slane %v6956_v22, %v16218_v24  ;;  %v16348_v59 = vld [vmem:[#allocation73_spill] sm:$0xff]  ;;  %v16350_v39 = vld [vmem:[#allocation78_spill] sm:$0xff] }
 0x353   : > { %16347 = vst [vmem:[#allocation12_spill] sm:$0xff] %v14779_v25  ;;  %v8039_v4 = vmax.f32 %v7783_v20, %v7911_v46  ;;  %v6971_v60 = vcombine.high %v6963_v47, %v6963_v47  ;;  %v14788_v62 = vrot.slane %v6963_v47, %v16218_v24  ;;  %v6857_v11 = vcombine.high %v14646_v30, %v14646_v30  ;;  %v16349_v20 = vld [vmem:[#allocation15_spill] sm:$0xff]  ;;  %v16351_v63 = vld [vmem:[#allocation82_spill] sm:$0xff] }
 0x354   : > { %11170 = vmatprep.mubr.msk.bf16.mxu1 %vm8181_vm1, %v8082_v21  ;;  %v7916_v50 = vmul.f32 0.2, %v7788_v61  ;;  %v7914_v36 = vmul.f32 0.2, %v7786_v9  ;;  %v6972_v19 = vcombine.high %v6970_v14, %v6970_v14  ;;  %v14794_v6 = vrot.slane %v6970_v14, %v16218_v24 }
 0x355   : > { %v14798_v27 = vpack.c.bf16 %v8039_v4, %v8038_v54  ;;  %v14801_v31 = vrot.slane %v6971_v60, %v16218_v24  ;;  %v7437_v57 = vrot.slane %v6857_v11, %v16223_v28  ;;  %v6858_v42 = vcombine.high %v16348_v59, %v16348_v59  ;;  %v14813_v54 = vpop.f32.mrb[70].mxu1 }
 0x356   : > { %v8044_v0 = vmax.f32 %v7788_v61, %v7916_v50  ;;  %v8042_v56 = vmax.f32 %v7786_v9, %v7914_v36  ;;  %v14809_v10 = vrot.slane %v6972_v19, %v16218_v24  ;;  %v6865_v2 = vrot.slane %v16348_v59, %v16218_v24  ;;  %v14820_v22 = vpop.f32.mrb[71].mxu1  ;;  %v16352_v61 = vld [vmem:[#allocation10_spill] sm:$0xff] }
 0x357   : > { %v7789_v58 = vadd.f32 %v7437_v57, %v5978_v5  ;;  %v7705_v43 = vadd.f32 %v16350_v39, %v16349_v20  ;;  %v7832_v12 = vmul.f32 0.2, %v16351_v63  ;;  %v6872_v46 = vrot.slane %v6858_v42, %v16218_v24  ;;  %v16353_v5 = vld [vmem:[#allocation74_spill] sm:$0xff] }
 0x358   : > { %v5970_v47 = vadd.f32 %v14750_v15, %v14349_v16  ;;  %v7429_v21 = vrot.slane %v14646_v30, %v16223_v28  ;;  %v16354_v9 = vrot.slane %v16353_v5, %v16223_v28  ;;  %v6873_v60 = vcombine.high %v6865_v2, %v6865_v2  ;;  %v16355_v5 = vld [vmem:[#allocation79_spill] sm:$0xff] }
 0x359   : > { %v7917_v4 = vmul.f32 0.2, %v7789_v58  ;;  %v6881_v11 = vrot.slane %v6865_v2, %v16218_v24  ;;  %v7833_v50 = vmul.f32 0.2, %v7705_v43  ;;  %v6874_v36 = vcombine.high %v6872_v46, %v6872_v46 }
 0x35a   : > { %v7707_v14 = vadd.f32 %v16354_v9, %v16352_v61  ;;  %v14833_v19 = vrot.slane %v6872_v46, %v16218_v24  ;;  %v7960_v57 = vmax.f32 %v16351_v63, %v7832_v12  ;;  %v7787_v16 = vadd.f32 %v7429_v21, %v5970_v47 }
 0x35b   : > { %v8045_v59 = vmax.f32 %v7789_v58, %v7917_v4  ;;  %v6895_v30 = vrot.slane %v6873_v60, %v16218_v24  ;;  %v6903_v42 = vcombine.high %v6881_v11, %v6881_v11  ;;  %v7961_v20 = vmax.f32 %v7705_v43, %v7833_v50 }
 0x35c   : > { %v14838_v39 = vrot.slane %v6874_v36, %v16218_v24  ;;  %v7915_v61 = vmul.f32 0.2, %v7787_v16  ;;  %v7834_v9 = vmul.f32 0.2, %v16355_v5  ;;  %v7835_v2 = vmul.f32 0.2, %v7707_v14 }
 0x35d   : > { %v14841_v45 = vpack.c.bf16 %v8045_v59, %v8044_v0  ;;  %v8083_v25 = vpack.c.bf16 %v7961_v20, %v7960_v57  ;;  %v5991_v46 = vadd.f32 %v14750_v15, %v14384_v53  ;;  %v7449_v63 = vrot.slane %v6903_v42, %v16223_v28  ;;  %v16356_v36 = vld [vmem:[#allocation17_spill] sm:$0xff]  ;;  %v16357_v57 = vld [vmem:[#allocation80_spill] sm:$0xff] }
 0x35e   : > { %v8043_v58 = vmax.f32 %v7787_v16, %v7915_v61  ;;  %v7962_v12 = vmax.f32 %v16355_v5, %v7834_v9  ;;  %v7963_v47 = vmax.f32 %v7707_v14, %v7835_v2  ;;  %v5983_v43 = vadd.f32 %v14750_v15, %v14397_v29  ;;  %v16358_v59 = vld [vmem:[#allocation9_spill] sm:$0xff]  ;;  %v16360_v5 = vld [vmem:[#allocation51_spill] sm:$0xff] }
 0x35f   : > { %11171 = vmatmul.mubr.msk.bf16.gmra.mrb[80].mxu1 %vm8181_vm1, %v8083_v25  ;;  %v7792_v21 = vadd.f32 %v7449_v63, %v5991_v46  ;;  %v7441_v4 = vrot.slane %v6881_v11, %v16223_v28  ;;  %v5994_v0 = vadd.f32 %v14750_v15, %v14408_v32  ;;  %v6905_v60 = vcombine.high %v6895_v30, %v6895_v30  ;;  %v16359_v14 = vld [vmem:[#allocation81_spill] sm:$0xff] }
 0x360   : > { %v14853_v50 = vpack.c.bf16 %v8043_v58, %v8042_v56  ;;  %v8084_v53 = vpack.c.bf16 %v7963_v47, %v7962_v12  ;;  %v7708_v16 = vadd.f32 %v16357_v57, %v16356_v36  ;;  %v7709_v42 = vadd.f32 %v16359_v14, %v16358_v59  ;;  %v16361_v58 = vld [vmem:[#allocation54_spill] sm:$0xff]  ;;  %v16362_v12 = vld [vmem:[#allocation47_spill] sm:$0xff] }
 0x361   : > { %v7920_v20 = vmul.f32 0.2, %v7792_v21  ;;  %v7790_v29 = vadd.f32 %v7441_v4, %v5983_v43  ;;  %v7453_v25 = vrot.slane %v6905_v60, %v16223_v28  ;;  %v5986_v11 = vadd.f32 %v14750_v15, %v14416_v13 }
 0x362   : > { %11174 = vmatprep.mubr.msk.bf16.mxu1 %vm8181_vm1, %v8084_v53  ;;  %v7836_v32 = vmul.f32 0.2, %v7708_v16  ;;  %v7837_v61 = vmul.f32 0.2, %v7709_v42  ;;  %v7445_v56 = vrot.slane %v6895_v30, %v16223_v28  ;;  %v7839_v9 = vmul.f32 0.2, %v16360_v5 }
 0x363   : > { %v8048_v2 = vmax.f32 %v7792_v21, %v7920_v20  ;;  %v7918_v46 = vmul.f32 0.2, %v7790_v29  ;;  %v7793_v63 = vadd.f32 %v7453_v25, %v5994_v0  ;;  %v7966_v47 = vmax.f32 %v16362_v12, %v16361_v58 }
 0x364   : > { %v7964_v43 = vmax.f32 %v7708_v16, %v7836_v32  ;;  %v7965_v4 = vmax.f32 %v7709_v42, %v7837_v61  ;;  %v7791_v60 = vadd.f32 %v7445_v56, %v5986_v11  ;;  %v7967_v36 = vmax.f32 %v16360_v5, %v7839_v9 }
 0x365   : > { %v8046_v13 = vmax.f32 %v7790_v29, %v7918_v46  ;;  %v7921_v57 = vmul.f32 0.2, %v7793_v63  ;;  %v6007_v53 = vadd.f32 %v14750_v15, %v14457_v35  ;;  %v6904_v30 = vcombine.high %v14833_v19, %v14833_v19  ;;  %v16363_v29 = vld [vmem:[#allocation75_spill] sm:$0xff] }
 0x366   : > { %v8085_v59 = vpack.c.bf16 %v7965_v4, %v7964_v43  ;;  %v7919_v21 = vmul.f32 0.2, %v7791_v60  ;;  %v8086_v14 = vpack.c.bf16 %v7967_v36, %v7966_v47  ;;  %v5999_v0 = vadd.f32 %v14750_v15, %v14466_v23  ;;  %v16364_v36 = vld [vmem:[#allocation76_spill] sm:$0xff] }
 0x367   : > { %v8049_v20 = vmax.f32 %v7793_v63, %v7921_v57  ;;  %v7465_v16 = vrot.slane %v6904_v30, %v16223_v28  ;;  %v7457_v42 = vrot.slane %v14833_v19, %v16223_v28  ;;  %v7005_v25 = vcombine.high %v16363_v29, %v16363_v29 }
 0x368   : > { %11175 = vmatmul.mubr.msk.bf16.gmra.mrb[84].mxu1 %vm8181_vm1, %v8085_v59  ;;  %v8047_v35 = vmax.f32 %v7791_v60, %v7919_v21  ;;  %v7012_v11 = vrot.slane %v16363_v29, %v16218_v24  ;;  %v6010_v32 = vadd.f32 %v14750_v15, %v14474_v55  ;;  %v6906_v23 = vcombine.high %v14838_v39, %v14838_v39 }
 0x369   : > { %v14886_v61 = vpack.c.bf16 %v8049_v20, %v8048_v2  ;;  %11178 = vmatprep.mubr.msk.bf16.mxu1 %vm8181_vm1, %v8086_v14  ;;  %v7796_v19 = vadd.f32 %v7465_v16, %v6007_v53  ;;  %v7794_v56 = vadd.f32 %v7457_v42, %v5999_v0  ;;  %v7019_v5 = vrot.slane %v7005_v25, %v16218_v24  ;;  %v16365_v0 = vld [vmem:[#allocation21_spill] sm:$0xff]  ;;  %v16367_v42 = vld [vmem:[#allocation52_spill] sm:$0xff] }
 0x36a   : > { %v14890_v9 = vpack.c.bf16 %v8047_v35, %v8046_v13  ;;  %v7020_v46 = vcombine.high %v7012_v11, %v7012_v11  ;;  %v14893_v63 = vrot.slane %v7012_v11, %v16218_v24  ;;  %v7469_v58 = vrot.slane %v6906_v23, %v16223_v28  ;;  %v16366_v20 = vld [vmem:[#allocation49_spill] sm:$0xff] }
 0x36b   : > { %v7924_v55 = vmul.f32 0.2, %v7796_v19  ;;  %v7922_v12 = vmul.f32 0.2, %v7794_v56  ;;  %v7021_v47 = vcombine.high %v7019_v5, %v7019_v5  ;;  %v14897_v2 = vrot.slane %v7019_v5, %v16218_v24 }
 0x36c   : > { %v14900_v43 = vrot.slane %v7020_v46, %v16218_v24  ;;  %v7050_v4 = vcombine.high %v14893_v63, %v14893_v63  ;;  %v7797_v60 = vadd.f32 %v7469_v58, %v6010_v32  ;;  %v6907_v13 = vcombine.high %v16364_v36, %v16364_v36 }
 0x36d   : > { %v8052_v57 = vmax.f32 %v7796_v19, %v7924_v55  ;;  %v8050_v53 = vmax.f32 %v7794_v56, %v7922_v12  ;;  %v14907_v30 = vrot.slane %v7021_v47, %v16218_v24  ;;  %v6914_v59 = vrot.slane %v16364_v36, %v16218_v24 }
 0x36e   : > { %v7925_v21 = vmul.f32 0.2, %v7797_v60  ;;  %v6921_v14 = vrot.slane %v6907_v13, %v16218_v24  ;;  %v7713_v16 = vadd.f32 %v16366_v20, %v16365_v0  ;;  %v7840_v29 = vmul.f32 0.2, %v16367_v42  ;;  %v16368_v13 = vld [vmem:[#allocation14_spill] sm:$0xff] }
 0x36f   : > { %v6922_v25 = vcombine.high %v6914_v59, %v6914_v59  ;;  %v6930_v35 = vrot.slane %v6914_v59, %v16218_v24  ;;  %v6002_v11 = vadd.f32 %v14750_v15, %v14480_v51  ;;  %v7461_v32 = vrot.slane %v14838_v39, %v16223_v28  ;;  %v16369_v59 = vld [vmem:[#allocation4_spill] sm:$0xff] }
 0x370   : > { %v8053_v23 = vmax.f32 %v7797_v60, %v7925_v21  ;;  %v6923_v19 = vcombine.high %v6921_v14, %v6921_v14  ;;  %v6937_v56 = vrot.slane %v6921_v14, %v16218_v24  ;;  %v7841_v5 = vmul.f32 0.2, %v7713_v16  ;;  %v16371_v14 = vld [vmem:[#allocation53_spill] sm:$0xff] }
 0x371   : > { %v6944_v46 = vrot.slane %v6922_v25, %v16218_v24  ;;  %v6952_v58 = vcombine.high %v6930_v35, %v6930_v35  ;;  %v7968_v55 = vmax.f32 %v16367_v42, %v7840_v29  ;;  %v7795_v12 = vadd.f32 %v7461_v32, %v6002_v11 }
 0x372   : > { %v14923_v47 = vpack.c.bf16 %v8053_v23, %v8052_v57  ;;  %v14926_v36 = vrot.slane %v6923_v19, %v16218_v24  ;;  %v7969_v51 = vmax.f32 %v7713_v16, %v7841_v5  ;;  %v16370_v39 = vrot.slane %v16369_v59, %v16223_v28  ;;  %v16374_v59 = vld [vmem:[#allocation13_spill] sm:$0xff] }
 0x373   : > { %v7923_v21 = vmul.f32 0.2, %v7795_v12  ;;  %v7842_v0 = vmul.f32 0.2, %v16371_v14  ;;  %v6023_v20 = vadd.f32 %v14750_v15, %v14520_v37  ;;  %v7481_v42 = vrot.slane %v6952_v58, %v16223_v28  ;;  %v16372_v58 = vld [vmem:[#allocation22_spill] sm:$0xff] }
 0x374   : > { %v7715_v60 = vadd.f32 %v16370_v39, %v16368_v13  ;;  %v8087_v29 = vpack.c.bf16 %v7969_v51, %v7968_v55  ;;  %v6015_v24 = vadd.f32 %v14750_v15, %v14529_v44  ;;  %v7473_v16 = vrot.slane %v6930_v35, %v16223_v28  ;;  %v16373_v55 = vld [vmem:[#allocation50_spill] sm:$0xff]  ;;  %v16375_v35 = vld [vmem:[#allocation55_spill] sm:$0xff] }
 0x375   : > { %v8051_v25 = vmax.f32 %v7795_v12, %v7923_v21  ;;  %v7970_v11 = vmax.f32 %v16371_v14, %v7842_v0  ;;  %v7800_v32 = vadd.f32 %v7481_v42, %v6023_v20  ;;  %v6026_v23 = vadd.f32 %v14750_v15, %v14535_v7 }
 0x376   : > { %v7843_v57 = vmul.f32 0.2, %v7715_v60  ;;  %11179 = vmatmul.mubr.msk.bf16.gmra.mrb[88].mxu1 %vm8181_vm1, %v8087_v29  ;;  %v7798_v37 = vadd.f32 %v7473_v16, %v6015_v24  ;;  %v6954_v5 = vcombine.high %v6944_v46, %v6944_v46  ;;  %v7716_v51 = vadd.f32 %v16373_v55, %v16372_v58  ;;  %v16376_v29 = vld [vmem:[#allocation67_spill] sm:$0xff]  ;;  %v16378_v58 = vld [vmem:[#allocation64_spill] sm:$0xff] }
 0x377   : > { %v14945_v13 = vpack.c.bf16 %v8051_v25, %v8050_v53  ;;  %v7928_v44 = vmul.f32 0.2, %v7800_v32  ;;  %v7717_v12 = vadd.f32 %v16375_v35, %v16374_v59  ;;  %v6018_v39 = vadd.f32 %v14750_v15, %v14541_v41  ;;  %v16377_v25 = vld [vmem:[#allocation71_spill] sm:$0xff] }
 0x378   : > { %v7971_v19 = vmax.f32 %v7715_v60, %v7843_v57  ;;  %v7926_v14 = vmul.f32 0.2, %v7798_v37  ;;  %v7485_v7 = vrot.slane %v6954_v5, %v16223_v28  ;;  %v7844_v0 = vmul.f32 0.2, %v7716_v51 }
 0x379   : > { %v8056_v60 = vmax.f32 %v7800_v32, %v7928_v44  ;;  %v7845_v20 = vmul.f32 0.2, %v7717_v12  ;;  %v7477_v42 = vrot.slane %v6944_v46, %v16223_v28  ;;  %v7847_v57 = vmul.f32 0.2, %v16376_v29 }
 0x37a   : > { %v8088_v21 = vpack.c.bf16 %v7971_v19, %v7970_v11  ;;  %v8054_v53 = vmax.f32 %v7798_v37, %v7926_v14  ;;  %v7801_v24 = vadd.f32 %v7485_v7, %v6026_v23  ;;  %v7972_v16 = vmax.f32 %v7716_v51, %v7844_v0  ;;  %v16379_v7 = vld [vmem:[#allocation25_spill] sm:$0xff] }
 0x37b   : > { %v7974_v55 = vmax.f32 %v16378_v58, %v16377_v25  ;;  %v7973_v41 = vmax.f32 %v7717_v12, %v7845_v20  ;;  %v7799_v11 = vadd.f32 %v7477_v42, %v6018_v39  ;;  %v7975_v19 = vmax.f32 %v16376_v29, %v7847_v57 }
 0x37c   : > { %11182 = vmatprep.mubr.msk.bf16.mxu1 %vm8181_vm1, %v8088_v21  ;;  %v6039_v32 = vadd.f32 %v14750_v15, %v14569_v3  ;;  %v7929_v5 = vmul.f32 0.2, %v7801_v24  ;;  %v6953_v44 = vcombine.high %v6937_v56, %v6937_v56  ;;  %v6031_v46 = vadd.f32 %v14750_v15, %v14581_v8  ;;  %v16380_v8 = vld [vmem:[#allocation65_spill] sm:$0xff] }
 0x37d   : > { %v7489_v59 = vrot.slane %v6937_v56, %v16223_v28  ;;  %v8089_v37 = vpack.c.bf16 %v7973_v41, %v7972_v16  ;;  %v7927_v23 = vmul.f32 0.2, %v7799_v11  ;;  %v8090_v51 = vpack.c.bf16 %v7975_v19, %v7974_v55  ;;  %v16381_v56 = vld [vmem:[#allocation70_spill] sm:$0xff] }
 0x37e   : > { %v6042_v35 = vadd.f32 %v14750_v15, %v14595_v48  ;;  %v8057_v12 = vmax.f32 %v7801_v24, %v7929_v5  ;;  %v7497_v39 = vrot.slane %v6953_v44, %v16223_v28  ;;  %v6955_v3 = vcombine.high %v14926_v36, %v14926_v36 }
 0x37f   : > { %v7802_v21 = vadd.f32 %v7489_v59, %v6031_v46  ;;  %11183 = vmatmul.mubr.msk.bf16.gmra.mrb[92].mxu1 %vm8181_vm1, %v8089_v37  ;;  %v8055_v14 = vmax.f32 %v7799_v11, %v7927_v23  ;;  %v7721_v0 = vadd.f32 %v16380_v8, %v16379_v7  ;;  %v7848_v20 = vmul.f32 0.2, %v16381_v56  ;;  %v16385_v59 = vld [vmem:[#allocation68_spill] sm:$0xff] }
 0x380   : > { %v6034_v42 = vadd.f32 %v14750_v15, %v14606_v49  ;;  %v14974_v29 = vpack.c.bf16 %v8057_v12, %v8056_v60  ;;  %11186 = vmatprep.mubr.msk.bf16.mxu1 %vm8181_vm1, %v8090_v51  ;;  %v7804_v48 = vadd.f32 %v7497_v39, %v6039_v32  ;;  %v7501_v24 = vrot.slane %v6955_v3, %v16223_v28  ;;  %v16382_v49 = vld [vmem:[#allocation18_spill] sm:$0xff]  ;;  %v16383_v60 = vld [vmem:[#allocation63_spill] sm:$0xff] }
 0x381   : > { %v7930_v57 = vmul.f32 0.2, %v7802_v21  ;;  %v14978_v16 = vpack.c.bf16 %v8055_v14, %v8054_v53  ;;  %v7849_v25 = vmul.f32 0.2, %v7721_v0  ;;  %v7976_v58 = vmax.f32 %v16381_v56, %v7848_v20  ;;  %v16387_v14 = vld [vmem:[#allocation58_spill] sm:$0xff] }
 0x382   : > { %v7493_v55 = vrot.slane %v14926_v36, %v16223_v28  ;;  %v7932_v41 = vmul.f32 0.2, %v7804_v48  ;;  %v7805_v19 = vadd.f32 %v7501_v24, %v6042_v35  ;;  %v16384_v5 = vrot.slane %v16383_v60, %v16223_v28  ;;  %v16389_v24 = vld [vmem:[#allocation27_spill] sm:$0xff] }
 0x383   : > { %v8058_v11 = vmax.f32 %v7802_v21, %v7930_v57  ;;  %v7977_v32 = vmax.f32 %v7721_v0, %v7849_v25  ;;  %v7850_v37 = vmul.f32 0.2, %v16385_v59  ;;  %v6055_v53 = vadd.f32 %v14750_v15, %v14643_v18  ;;  %v16390_v25 = vld [vmem:[#allocation66_spill] sm:$0xff] }
 0x384   : > { %v7723_v44 = vadd.f32 %v16384_v5, %v16382_v49  ;;  %v7803_v46 = vadd.f32 %v7493_v55, %v6034_v42  ;;  %v8060_v23 = vmax.f32 %v7804_v48, %v7932_v41  ;;  %v7933_v51 = vmul.f32 0.2, %v7805_v19  ;;  %v16388_v42 = vld [vmem:[#allocation61_spill] sm:$0xff]  ;;  %v16391_v5 = vld [vmem:[#allocation16_spill] sm:$0xff] }
 0x385   : > { %v16386_v36 = vcombine.high %v14788_v62, %v14788_v62  ;;  %v8091_v39 = vpack.c.bf16 %v7977_v32, %v7976_v58  ;;  %v7978_v3 = vmax.f32 %v16385_v59, %v7850_v37  ;;  %v6047_v7 = vadd.f32 %v14750_v15, %v16387_v14  ;;  %v16395_v14 = vld [vmem:[#allocation100_spill] sm:$0xff] }
 0x386   : > { %v7851_v12 = vmul.f32 0.2, %v7723_v44  ;;  %v7931_v21 = vmul.f32 0.2, %v7803_v46  ;;  %v8061_v8 = vmax.f32 %v7805_v19, %v7933_v51  ;;  %v7505_v18 = vrot.slane %v14788_v62, %v16223_v28 }
 0x387   : > { %v7513_v35 = vrot.slane %v16386_v36, %v16223_v28  ;;  %11187 = vmatmul.mubr.msk.bf16.gmra.mrb[96].mxu1 %vm8181_vm1, %v8091_v39  ;;  %v6058_v48 = vadd.f32 %v14750_v15, %v16388_v42  ;;  %v7003_v57 = vcombine.high %v14801_v31, %v14801_v31  ;;  %v7724_v58 = vadd.f32 %v16390_v25, %v16389_v24 }
 0x388   : > { %v7979_v0 = vmax.f32 %v7723_v44, %v7851_v12  ;;  %v8059_v20 = vmax.f32 %v7803_v46, %v7931_v21  ;;  %v15006_v55 = vpack.c.bf16 %v8061_v8, %v8060_v23  ;;  %v7806_v49 = vadd.f32 %v7505_v18, %v6047_v7  ;;  %v16392_v44 = vld [vmem:[#allocation69_spill] sm:$0xff] }
 0x389   : > { %v7808_v56 = vadd.f32 %v7513_v35, %v6055_v53  ;;  %v7517_v62 = vrot.slane %v7003_v57, %v16223_v28  ;;  %v7725_v32 = vadd.f32 %v16392_v44, %v16391_v5  ;;  %v7852_v46 = vmul.f32 0.2, %v7724_v58  ;;  %v16393_v53 = vld [vmem:[#allocation57_spill] sm:$0xff]  ;;  %v16394_v35 = vld [vmem:[#allocation96_spill] sm:$0xff] }
 0x38a   : > { %v8092_v41 = vpack.c.bf16 %v7979_v0, %v7978_v3  ;;  %v15008_v60 = vpack.c.bf16 %v8059_v20, %v8058_v11  ;;  %v7934_v37 = vmul.f32 0.2, %v7806_v49  ;;  %v6050_v51 = vadd.f32 %v14750_v15, %v16393_v53  ;;  %v16396_v7 = vld [vmem:[#allocation93_spill] sm:$0xff]  ;;  %v16397_v0 = vld [vmem:[#allocation8_spill] sm:$0xff]  ;;  %v16401_v53 = vld [vmem:[#allocation94_spill] sm:$0xff] }
 0x38b   : > { %v7936_v19 = vmul.f32 0.2, %v7808_v56  ;;  %v7509_v23 = vrot.slane %v14801_v31, %v16223_v28  ;;  %v7809_v12 = vadd.f32 %v7517_v62, %v6058_v48  ;;  %v7853_v36 = vmul.f32 0.2, %v7725_v32  ;;  %v16398_v57 = vld [vmem:[#allocation48_spill] sm:$0xff] }
 0x38c   : > { %11190 = vmatprep.mubr.msk.bf16.mxu1 %vm8181_vm1, %v8092_v41  ;;  %v7980_v11 = vmax.f32 %v7724_v58, %v7852_v46  ;;  %v7855_v39 = vmul.f32 0.2, %v16394_v35  ;;  %v8062_v21 = vmax.f32 %v7806_v49, %v7934_v37  ;;  %v7982_v8 = vmax.f32 %v16396_v7, %v16395_v14  ;;  %v16399_v58 = vld [vmem:[#allocation59_spill] sm:$0xff]  ;;  %v16400_v37 = vld [vmem:[#allocation29_spill] sm:$0xff] }
 0x38d   : > { %v8064_v59 = vmax.f32 %v7808_v56, %v7936_v19  ;;  %v7807_v3 = vadd.f32 %v7509_v23, %v6050_v51  ;;  %v6071_v56 = vadd.f32 %v14750_v15, %v16397_v0  ;;  %v7937_v18 = vmul.f32 0.2, %v7809_v12 }
 0x38e   : > { %v7981_v20 = vmax.f32 %v7725_v32, %v7853_v36  ;;  %v7983_v42 = vmax.f32 %v16394_v35, %v7855_v39  ;;  %v7002_v31 = vcombine.high %v14794_v6, %v14794_v6  ;;  %v6063_v24 = vadd.f32 %v14750_v15, %v16398_v57  ;;  %v16402_v36 = vld [vmem:[#allocation98_spill] sm:$0xff]  ;;  %v16407_v57 = vld [vmem:[#allocation99_spill] sm:$0xff] }
 0x38f   : > { %v7935_v48 = vmul.f32 0.2, %v7807_v3  ;;  %v7521_v25 = vrot.slane %v14794_v6, %v16223_v28  ;;  %v6074_v41 = vadd.f32 %v14750_v15, %v16399_v58  ;;  %v8065_v19 = vmax.f32 %v7809_v12, %v7937_v18  ;;  %v16403_v12 = vld [vmem:[#allocation134_spill] sm:$0xff]  ;;  %v16405_v18 = vld [vmem:[#allocation91_spill] sm:$0xff] }
 0x390   : > { %v8093_v49 = vpack.c.bf16 %v7981_v20, %v7980_v11  ;;  %v8094_v62 = vpack.c.bf16 %v7983_v42, %v7982_v8  ;;  %v7529_v5 = vrot.slane %v7002_v31, %v16223_v28  ;;  %v7004_v46 = vcombine.high %v14809_v10, %v14809_v10 }
 0x391   : > { %v8063_v44 = vmax.f32 %v7807_v3, %v7935_v48  ;;  %v7810_v32 = vadd.f32 %v7521_v25, %v6063_v24  ;;  %v7729_v51 = vadd.f32 %v16401_v53, %v16400_v37  ;;  %v15037_v23 = vpack.c.bf16 %v8065_v19, %v8064_v59 }
 0x392   : > { %11191 = vmatmul.mubr.msk.bf16.gmra.mrb[100].mxu1 %vm8181_vm1, %v8093_v49  ;;  %v7812_v6 = vadd.f32 %v7529_v5, %v6071_v56  ;;  %v7856_v35 = vmul.f32 0.2, %v16402_v36  ;;  %v6066_v11 = vadd.f32 %v14750_v15, %v16403_v12  ;;  %v7533_v14 = vrot.slane %v7004_v46, %v16223_v28  ;;  %v16404_v56 = vld [vmem:[#allocation20_spill] sm:$0xff]  ;;  %v16408_v12 = vld [vmem:[#allocation30_spill] sm:$0xff] }
 0x393   : > { %v15043_v39 = vpack.c.bf16 %v8063_v44, %v8062_v21  ;;  %11194 = vmatprep.mubr.msk.bf16.mxu1 %vm8181_vm1, %v8094_v62  ;;  %v7938_v3 = vmul.f32 0.2, %v7810_v32  ;;  %v7857_v7 = vmul.f32 0.2, %v7729_v51  ;;  %v7525_v0 = vrot.slane %v14809_v10, %v16223_v28 }
 0x394   : > { %v7940_v8 = vmul.f32 0.2, %v7812_v6  ;;  %v7984_v59 = vmax.f32 %v16402_v36, %v7856_v35  ;;  %v16406_v20 = vrot.slane %v16405_v18, %v16223_v28  ;;  %v7813_v21 = vadd.f32 %v7533_v14, %v6074_v41 }
 0x395   : > { %v8066_v31 = vmax.f32 %v7810_v32, %v7938_v3  ;;  %v7985_v48 = vmax.f32 %v7729_v51, %v7857_v7  ;;  %v7858_v24 = vmul.f32 0.2, %v16407_v57  ;;  %v7811_v58 = vadd.f32 %v7525_v0, %v6066_v11  ;;  %v16409_v11 = vld [vmem:[#allocation95_spill] sm:$0xff] }
 0x396   : > { %v7731_v42 = vadd.f32 %v16406_v20, %v16404_v56  ;;  %v8068_v25 = vmax.f32 %v7812_v6, %v7940_v8  ;;  %v6087_v49 = vadd.f32 %v14750_v15, %v14754_v38  ;;  %v7941_v62 = vmul.f32 0.2, %v7813_v21  ;;  %v16410_v7 = vld [vmem:[#allocation19_spill] sm:$0xff]  ;;  %v16411_v8 = vld [vmem:[#allocation97_spill] sm:$0xff] }
 0x397   : > { %v8095_v5 = vpack.c.bf16 %v7985_v48, %v7984_v59  ;;  %v7986_v10 = vmax.f32 %v16407_v57, %v7858_v24  ;;  %v7545_v44 = vrot.slane %v7050_v4, %v16223_v28  ;;  %v7939_v32 = vmul.f32 0.2, %v7811_v58 }
 0x398   : > { %v7859_v19 = vmul.f32 0.2, %v7731_v42  ;;  %v6079_v46 = vadd.f32 %v14750_v15, %v14758_v52  ;;  %v7537_v37 = vrot.slane %v14893_v63, %v16223_v28  ;;  %v8069_v53 = vmax.f32 %v7813_v21, %v7941_v62 }
 0x399   : > { %v7816_v51 = vadd.f32 %v7545_v44, %v6087_v49  ;;  %v6090_v38 = vadd.f32 %v14750_v15, %v14767_v1  ;;  %v7052_v6 = vcombine.high %v14900_v43, %v14900_v43  ;;  %v8067_v36 = vmax.f32 %v7811_v58, %v7939_v32 }
 0x39a   : > { %v7987_v41 = vmax.f32 %v7731_v42, %v7859_v19  ;;  %11195 = vmatmul.mubr.msk.bf16.gmra.mrb[104].mxu1 %vm8181_vm1, %v8095_v5  ;;  %v7814_v35 = vadd.f32 %v7537_v37, %v6079_v46  ;;  %v7732_v3 = vadd.f32 %v16409_v11, %v16408_v12  ;;  %v15073_v52 = vpack.c.bf16 %v8069_v53, %v8068_v25  ;;  %v16412_v25 = vld [vmem:[#allocation116_spill] sm:$0xff]  ;;  %v16413_v19 = vld [vmem:[#allocation119_spill] sm:$0xff]  ;;  %v16417_v11 = vld [vmem:[#allocation117_spill] sm:$0xff] }
 0x39b   : > { %v7944_v14 = vmul.f32 0.2, %v7816_v51  ;;  %v7549_v63 = vrot.slane %v7052_v6, %v16223_v28  ;;  %v7733_v59 = vadd.f32 %v16411_v8, %v16410_v7  ;;  %v15078_v1 = vpack.c.bf16 %v8067_v36, %v8066_v31  ;;  %v16414_v31 = vld [vmem:[#allocation112_spill] sm:$0xff] }
 0x39c   : > { %v8096_v4 = vpack.c.bf16 %v7987_v41, %v7986_v10  ;;  %v7942_v0 = vmul.f32 0.2, %v7814_v35  ;;  %v7860_v56 = vmul.f32 0.2, %v7732_v3  ;;  %v6082_v18 = vadd.f32 %v14750_v15, %v14771_v26 }
 0x39d   : > { %v8072_v20 = vmax.f32 %v7816_v51, %v7944_v14  ;;  %v7817_v42 = vadd.f32 %v7549_v63, %v6090_v38  ;;  %v7861_v21 = vmul.f32 0.2, %v7733_v59  ;;  %v7541_v48 = vrot.slane %v14900_v43, %v16223_v28 }
 0x39e   : > { %11198 = vmatprep.mubr.msk.bf16.mxu1 %vm8181_vm1, %v8096_v4  ;;  %v8070_v57 = vmax.f32 %v7814_v35, %v7942_v0  ;;  %v7988_v24 = vmax.f32 %v7732_v3, %v7860_v56  ;;  %v7863_v58 = vmul.f32 0.2, %v16412_v25  ;;  %v7990_v49 = vmax.f32 %v16414_v31, %v16413_v19  ;;  %v16415_v35 = vld [vmem:[#allocation32_spill] sm:$0xff]  ;;  %v16421_v31 = vld [vmem:[#allocation113_spill] sm:$0xff] }
 0x39f   : > { %v7945_v62 = vmul.f32 0.2, %v7817_v42  ;;  %v7989_v5 = vmax.f32 %v7733_v59, %v7861_v21  ;;  %v7815_v10 = vadd.f32 %v7541_v48, %v6082_v18  ;;  %v6103_v44 = vadd.f32 %v14750_v15, %v14796_v34  ;;  %v16418_v21 = vld [vmem:[#allocation37_spill] sm:$0xff]  ;;  %v16419_v48 = vld [vmem:[#allocation111_spill] sm:$0xff] }
 0x3a0   : > { %v7991_v26 = vmax.f32 %v16412_v25, %v7863_v58  ;;  %v7051_v32 = vcombine.high %v14897_v2, %v14897_v2  ;;  %v6095_v43 = vadd.f32 %v14750_v15, %v14806_v33  ;;  %v7553_v41 = vrot.slane %v14897_v2, %v16223_v28  ;;  %v16416_v2 = vld [vmem:[#allocation114_spill] sm:$0xff] }
 0x3a1   : > { %v8073_v46 = vmax.f32 %v7817_v42, %v7945_v62  ;;  %v8097_v37 = vpack.c.bf16 %v7989_v5, %v7988_v24  ;;  %v7943_v53 = vmul.f32 0.2, %v7815_v10  ;;  %v6106_v51 = vadd.f32 %v14750_v15, %v14813_v54 }
 0x3a2   : > { %v8098_v38 = vpack.c.bf16 %v7991_v26, %v7990_v49  ;;  %v7561_v34 = vrot.slane %v7051_v32, %v16223_v28  ;;  %v7818_v6 = vadd.f32 %v7553_v41, %v6095_v43  ;;  %v7053_v36 = vcombine.high %v14907_v30, %v14907_v30 }
 0x3a3   : > { %v15102_v4 = vpack.c.bf16 %v8073_v46, %v8072_v20  ;;  %11199 = vmatmul.mubr.msk.bf16.gmra.mrb[108].mxu1 %vm8181_vm1, %v8097_v37  ;;  %v8071_v33 = vmax.f32 %v7815_v10, %v7943_v53  ;;  %v7737_v12 = vadd.f32 %v16416_v2, %v16415_v35  ;;  %v7864_v3 = vmul.f32 0.2, %v16417_v11  ;;  %v16428_v35 = vld [vmem:[#allocation84_spill] sm:$0xff] }
 0x3a4   : > { %11202 = vmatprep.mubr.msk.bf16.mxu1 %vm8181_vm1, %v8098_v38  ;;  %v7820_v54 = vadd.f32 %v7561_v34, %v6103_v44  ;;  %v7946_v14 = vmul.f32 0.2, %v7818_v6  ;;  %v7565_v63 = vrot.slane %v7053_v36, %v16223_v28  ;;  %v6098_v7 = vadd.f32 %v14750_v15, %v14820_v22  ;;  %v16422_v22 = vld [vmem:[#allocation36_spill] sm:$0xff]  ;;  %v16424_v44 = vld [vmem:[#allocation26_spill] sm:$0xff] }
 0x3a5   : > { %v15112_v8 = vpack.c.bf16 %v8071_v33, %v8070_v57  ;;  %v7865_v59 = vmul.f32 0.2, %v7737_v12  ;;  %v7992_v0 = vmax.f32 %v16417_v11, %v7864_v3  ;;  %v7557_v56 = vrot.slane %v14907_v30, %v16223_v28  ;;  %v16423_v57 = vld [vmem:[#allocation115_spill] sm:$0xff]  ;;  %v16425_v30 = vld [vmem:[#allocation118_spill] sm:$0xff]  ;;  %v16426_v38 = vld [vmem:[#allocation88_spill] sm:$0xff] }
 0x3a6   : > { %v7948_v18 = vmul.f32 0.2, %v7820_v54  ;;  %v8074_v20 = vmax.f32 %v7818_v6, %v7946_v14  ;;  %v7821_v42 = vadd.f32 %v7565_v63, %v6106_v51  ;;  %v16420_v24 = vrot.slane %v16419_v48, %v16223_v28  ;;  %v16427_v33 = vld [vmem:[#allocation90_spill] sm:$0xff] }
 0x3a7   : > { %v7993_v58 = vmax.f32 %v7737_v12, %v7865_v59  ;;  %v7819_v19 = vadd.f32 %v7557_v56, %v6098_v7  ;;  %v7866_v15 = vmul.f32 0.2, %v16421_v31  ;;  %v7740_v49 = vadd.f32 %v16423_v57, %v16422_v22  ;;  %v16429_v12 = vld [vmem:[#allocation39_spill] sm:$0xff]  ;;  %v16430_v11 = vld [vmem:[#allocation86_spill] sm:$0xff] }
 0x3a8   : > { %v7739_v25 = vadd.f32 %v16420_v24, %v16418_v21  ;;  %v8076_v62 = vmax.f32 %v7820_v54, %v7948_v18  ;;  %v7949_v5 = vmul.f32 0.2, %v7821_v42  ;;  %v7741_v26 = vadd.f32 %v16425_v30, %v16424_v44  ;;  %v16433_v21 = vld [vmem:[#allocation83_spill] sm:$0xff] }
 0x3a9   : > { %v8099_v32 = vpack.c.bf16 %v7993_v58, %v7992_v0  ;;  %v7947_v43 = vmul.f32 0.2, %v7819_v19  ;;  %v7994_v41 = vmax.f32 %v16421_v31, %v7866_v15  ;;  %v7868_v46 = vmul.f32 0.2, %v7740_v49  ;;  %v16431_v0 = vld [vmem:[#allocation89_spill] sm:$0xff]  ;;  %v16436_v15 = vld [vmem:[#allocation11_spill] sm:$0xff] }
 0x3aa   : > { %v7867_v10 = vmul.f32 0.2, %v7739_v25  ;;  %v8077_v37 = vmax.f32 %v7821_v42, %v7949_v5  ;;  %v7869_v51 = vmul.f32 0.2, %v7741_v26  ;;  %v7871_v34 = vmul.f32 0.2, %v16426_v38 }
 0x3ab   : > { %11203 = vmatmul.mubr.msk.bf16.gmra.mrb[112].mxu1 %vm8181_vm1, %v8099_v32  ;;  %v8075_v6 = vmax.f32 %v7819_v19, %v7947_v43  ;;  %v7996_v36 = vmax.f32 %v7740_v49, %v7868_v46  ;;  %v7998_v2 = vmax.f32 %v16428_v35, %v16427_v33  ;;  %v7745_v3 = vadd.f32 %v16430_v11, %v16429_v12  ;;  %v16432_v42 = vld [vmem:[#allocation43_spill] sm:$0xff]  ;;  %v16435_v19 = vld [vmem:[#allocation85_spill] sm:$0xff]  ;;  %v16440_v32 = vld [vmem:[#allocation106_spill] sm:$0xff] }
 0x3ac   : > { %v7995_v53 = vmax.f32 %v7739_v25, %v7867_v10  ;;  %v15133_v54 = vpack.c.bf16 %v8077_v37, %v8076_v62  ;;  %v7997_v63 = vmax.f32 %v7741_v26, %v7869_v51  ;;  %v7999_v7 = vmax.f32 %v16426_v38, %v7871_v34  ;;  %v16437_v22 = vld [vmem:[#allocation87_spill] sm:$0xff]  ;;  %v16438_v5 = vld [vmem:[#allocation41_spill] sm:$0xff]  ;;  %v16439_v10 = vld [vmem:[#allocation92_spill] sm:$0xff] }
 0x3ad   : > { %v15136_v59 = vpack.c.bf16 %v8075_v6, %v8074_v20  ;;  %v7872_v56 = vmul.f32 0.2, %v16431_v0  ;;  %v7873_v18 = vmul.f32 0.2, %v7745_v3  ;;  %v16434_v48 = vrot.slane %v16433_v21, %v16223_v28  ;;  %v16442_v46 = vld [vmem:[#allocation104_spill] sm:$0xff]  ;;  %v16443_v34 = vld [vmem:[#allocation31_spill] sm:$0xff] }
 0x3ae   : > { %v8100_v14 = vpack.c.bf16 %v7995_v53, %v7994_v41  ;;  %v8101_v25 = vpack.c.bf16 %v7997_v63, %v7996_v36  ;;  %v8102_v58 = vpack.c.bf16 %v7999_v7, %v7998_v2  ;;  %v7874_v31 = vmul.f32 0.2, %v16435_v19  ;;  %v16441_v41 = vld [vmem:[#allocation110_spill] sm:$0xff]  ;;  %v16444_v6 = vld [vmem:[#allocation103_spill] sm:$0xff]  ;;  %v16445_v2 = vld [vmem:[#allocation109_spill] sm:$0xff] }
 0x3af   : > { %v7747_v24 = vadd.f32 %v16434_v48, %v16432_v42  ;;  %v7748_v57 = vadd.f32 %v16437_v22, %v16436_v15  ;;  %v8000_v20 = vmax.f32 %v16431_v0, %v7872_v56  ;;  %v8001_v49 = vmax.f32 %v7745_v3, %v7873_v18  ;;  %v16446_v11 = vld [vmem:[#allocation35_spill] sm:$0xff]  ;;  %v16447_v3 = vld [vmem:[#allocation101_spill] sm:$0xff] }
 0x3b0   : > { %11206 = vmatprep.mubr.msk.bf16.mxu1 %vm8181_vm1, %v8100_v14  ;;  %v7749_v44 = vadd.f32 %v16439_v10, %v16438_v5  ;;  %v8002_v30 = vmax.f32 %v16435_v19, %v7874_v31  ;;  %v7879_v43 = vmul.f32 0.2, %v16440_v32  ;;  %v8006_v37 = vmax.f32 %v16442_v46, %v16441_v41  ;;  %v16449_v18 = vld [vmem:[#allocation107_spill] sm:$0xff]  ;;  %v16451_v31 = vld [vmem:[#allocation105_spill] sm:$0xff] }
 0x3b1   : > { %v7875_v62 = vmul.f32 0.2, %v7747_v24  ;;  %v7876_v26 = vmul.f32 0.2, %v7748_v57  ;;  %v8103_v53 = vpack.c.bf16 %v8001_v49, %v8000_v20  ;;  %v7753_v36 = vadd.f32 %v16444_v6, %v16443_v34  ;;  %v16450_v19 = vld [vmem:[#allocation23_spill] sm:$0xff]  ;;  %v16453_v49 = vld [vmem:[#allocation108_spill] sm:$0xff] }
 0x3b2   : > { %v7877_v38 = vmul.f32 0.2, %v7749_v44  ;;  %v8007_v35 = vmax.f32 %v16440_v32, %v7879_v43  ;;  %v7880_v12 = vmul.f32 0.2, %v16445_v2  ;;  %v16448_v14 = vrot.slane %v16447_v3, %v16223_v28  ;;  %v16457_v46 = vld [vmem:[#allocation33_spill] sm:$0xff] }
 0x3b3   : > { %v8003_v51 = vmax.f32 %v7747_v24, %v7875_v62  ;;  %v8004_v33 = vmax.f32 %v7748_v57, %v7876_v26  ;;  %11207 = vmatmul.mubr.msk.bf16.gmra.mrb[116].mxu1 %vm8181_vm1, %v8101_v25  ;;  %v7881_v56 = vmul.f32 0.2, %v7753_v36  ;;  %v7882_v42 = vmul.f32 0.2, %v16449_v18  ;;  %v16452_v25 = vld [vmem:[#allocation24_spill] sm:$0xff]  ;;  %v16456_v26 = vld [vmem:[#allocation38_spill] sm:$0xff] }
 0x3b4   : > { %v7755_v63 = vadd.f32 %v16448_v14, %v16446_v11  ;;  %v8005_v0 = vmax.f32 %v7749_v44, %v7877_v38  ;;  %11210 = vmatprep.mubr.msk.bf16.mxu1 %vm8181_vm1, %v8102_v58  ;;  %v15165_v21 = vpack.c.bf16 %v8007_v35, %v8006_v37  ;;  %v8008_v48 = vmax.f32 %v16445_v2, %v7880_v12  ;;  %v16454_v44 = vld [vmem:[#allocation34_spill] sm:$0xff]  ;;  %v16458_v37 = vld [vmem:[#allocation125_spill] sm:$0xff]  ;;  %v16459_v38 = vld [vmem:[#allocation28_spill] sm:$0xff] }
 0x3b5   : > { %v8104_v7 = vpack.c.bf16 %v8003_v51, %v8002_v30  ;;  %v7756_v15 = vadd.f32 %v16451_v31, %v16450_v19  ;;  %v8009_v57 = vmax.f32 %v7753_v36, %v7881_v56  ;;  %v8010_v20 = vmax.f32 %v16449_v18, %v7882_v42  ;;  %v16455_v58 = vld [vmem:[#allocation62_spill] sm:$0xff]  ;;  %v16461_v2 = vld [vmem:[#allocation124_spill] sm:$0xff] }
 0x3b6   : > { %v7883_v24 = vmul.f32 0.2, %v7755_v63  ;;  %v8105_v22 = vpack.c.bf16 %v8005_v0, %v8004_v33  ;;  %v7757_v62 = vadd.f32 %v16453_v49, %v16452_v25  ;;  %v7887_v30 = vmul.f32 0.2, %v16454_v44  ;;  %v16460_v35 = vld [vmem:[#allocation2_spill] sm:$0xff]  ;;  %v16463_v0 = vld [vmem:[#allocation5_spill] sm:$0xff] }
 0x3b7   : > { %v7884_v10 = vmul.f32 0.2, %v7756_v15  ;;  %v8014_v32 = vmax.f32 %v16456_v26, %v16455_v58  ;;  %v15176_v43 = vpack.c.bf16 %v8009_v57, %v8008_v48  ;;  %v7761_v51 = vadd.f32 %v16458_v37, %v16457_v46  ;;  %v16464_v48 = vld [vmem:[#allocation40_spill] sm:$0xff]  ;;  %v16466_v31 = vld [vmem:[#allocation6_spill] sm:$0xff]  ;;  %v16470_v26 = vld [vmem:[#allocation3_spill] sm:$0xff] }
 0x3b8   : > { %v8011_v5 = vmax.f32 %v7755_v63, %v7883_v24  ;;  %v7885_v41 = vmul.f32 0.2, %v7757_v62  ;;  %v7888_v34 = vmul.f32 0.2, %v16459_v38  ;;  %v8015_v33 = vmax.f32 %v16454_v44, %v7887_v30  ;;  %v16465_v24 = vld [vmem:[#allocation126_spill] sm:$0xff]  ;;  %v16469_v58 = vld [vmem:[#allocation132_spill] sm:$0xff] }
 0x3b9   : > { %v8012_v36 = vmax.f32 %v7756_v15, %v7884_v10  ;;  %v16462_v12 = vrot.slane %v16461_v2, %v16223_v28  ;;  %v7889_v14 = vmul.f32 0.2, %v7761_v51  ;;  %v7890_v56 = vmul.f32 0.2, %v16463_v0  ;;  %v16467_v15 = vld [vmem:[#allocation127_spill] sm:$0xff]  ;;  %v16471_v37 = vld [vmem:[#allocation44_spill] sm:$0xff] }
 0x3ba   : > { %v8108_v6 = vpack.c.bf16 %v8011_v5, %v8010_v20  ;;  %v8013_v3 = vmax.f32 %v7757_v62, %v7885_v41  ;;  %v8016_v63 = vmax.f32 %v16459_v38, %v7888_v34  ;;  %v8110_v18 = vpack.c.bf16 %v8015_v33, %v8014_v32  ;;  %v16468_v62 = vld [vmem:[#allocation45_spill] sm:$0xff]  ;;  %v16472_v38 = vld [vmem:[#allocation131_spill] sm:$0xff]  ;;  %v16473_v34 = vld [vmem:[#allocation42_spill] sm:$0xff] }
 0x3bb   : > { %v7763_v11 = vadd.f32 %v16462_v12, %v16460_v35  ;;  %v7764_v19 = vadd.f32 %v16465_v24, %v16464_v48  ;;  %v7765_v57 = vadd.f32 %v16467_v15, %v16466_v31  ;;  %11211 = vmatmul.mubr.msk.bf16.gmra.mrb[120].mxu1 %vm8181_vm1, %v8103_v53  ;;  %v8017_v25 = vmax.f32 %v7761_v51, %v7889_v14  ;;  %v16474_v2 = vld [vmem:[#allocation77_spill] sm:$0xff]  ;;  %v16475_v12 = vld [vmem:[#allocation128_spill] sm:$0xff]  ;;  %v16479_v31 = vld [vmem:[#allocation46_spill] sm:$0xff] }
 0x3bc   : > { %v8109_v20 = vpack.c.bf16 %v8013_v3, %v8012_v36  ;;  %v8018_v49 = vmax.f32 %v16463_v0, %v7890_v56  ;;  %v7895_v5 = vmul.f32 0.2, %v16468_v62  ;;  %11214 = vmatprep.mubr.msk.bf16.mxu1 %vm8181_vm1, %v8104_v7  ;;  %v8022_v32 = vmax.f32 %v16470_v26, %v16469_v58  ;;  %v16477_v3 = vld [vmem:[#allocation120_spill] sm:$0xff]  ;;  %v16480_v15 = vld [vmem:[#allocation129_spill] sm:$0xff] }
 0x3bd   : > { %v7891_v42 = vmul.f32 0.2, %v7763_v11  ;;  %v7892_v44 = vmul.f32 0.2, %v7764_v19  ;;  %v7893_v30 = vmul.f32 0.2, %v7765_v57  ;;  %v8111_v41 = vpack.c.bf16 %v8017_v25, %v8016_v63 }
 0x3be   : > { %v8023_v46 = vmax.f32 %v16468_v62, %v7895_v5  ;;  %v7769_v53 = vadd.f32 %v16472_v38, %v16471_v37  ;;  %v7896_v51 = vmul.f32 0.2, %v16473_v34  ;;  %v16476_v7 = vrot.slane %v16475_v12, %v16223_v28  ;;  %v16478_v63 = vld [vmem:[#allocation130_spill] sm:$0xff]  ;;  %v16481_v62 = vld [vmem:[#allocation72_spill] sm:$0xff] }
 0x3bf   : > { %v8019_v10 = vmax.f32 %v7763_v11, %v7891_v42  ;;  %v8020_v33 = vmax.f32 %v7764_v19, %v7892_v44  ;;  %v8021_v35 = vmax.f32 %v7765_v57, %v7893_v30  ;;  %v7902_v14 = vmul.f32 0.2, %v16477_v3 }
 0x3c0   : > { %v7771_v11 = vadd.f32 %v16476_v7, %v16474_v2  ;;  %v8114_v0 = vpack.c.bf16 %v8023_v46, %v8022_v32  ;;  %v7897_v56 = vmul.f32 0.2, %v7769_v53  ;;  %v7898_v42 = vmul.f32 0.2, %v16478_v63  ;;  %v16484_v32 = vld [vmem:[#allocation102_spill] sm:$0xff]  ;;  %v16485_v46 = vld [vmem:[#allocation121_spill] sm:$0xff] }
 0x3c1   : > { %v8112_v36 = vpack.c.bf16 %v8019_v10, %v8018_v49  ;;  %v8113_v48 = vpack.c.bf16 %v8021_v35, %v8020_v33  ;;  %v7772_v25 = vadd.f32 %v16480_v15, %v16479_v31  ;;  %v16482_v49 = vld [vmem:[#allocation133_spill] sm:$0xff]  ;;  %v8024_v57 = vmax.f32 %v16473_v34, %v7896_v51  ;;  %v16483_v10 = vld [vmem:[#allocation122_spill] sm:$0xff]  ;;  %v16486_v2 = vld [vmem:[#allocation123_spill] sm:$0xff] }
 0x3c2   : > { %v7899_v24 = vmul.f32 0.2, %v7771_v11  ;;  %v7773_v19 = vadd.f32 %v16482_v49, %v16481_v62  ;;  %v8025_v5 = vmax.f32 %v7769_v53, %v7897_v56  ;;  %v8026_v28 = vmax.f32 %v16478_v63, %v7898_v42 }
 0x3c3   : > { %v7903_v44 = vmul.f32 0.2, %v16483_v10  ;;  %v7900_v58 = vmul.f32 0.2, %v7772_v25  ;;  %v7777_v37 = vadd.f32 %v16485_v46, %v16484_v32  ;;  %11215 = vmatmul.mubr.msk.bf16.gmra.mrb[124].mxu1 %vm8181_vm1, %v8105_v22  ;;  %v8030_v33 = vmax.f32 %v16477_v3, %v7902_v14 }
 0x3c4   : > { %v8027_v30 = vmax.f32 %v7771_v11, %v7899_v24  ;;  %v7901_v26 = vmul.f32 0.2, %v7773_v19  ;;  %v8115_v38 = vpack.c.bf16 %v8025_v5, %v8024_v57  ;;  %v7904_v34 = vmul.f32 0.2, %v16486_v2  ;;  %11218 = vmatprep.mubr.msk.bf16.mxu1 %vm8181_vm1, %v15165_v21  ;;  %v16487_v21 = vld [vmem:[#allocation12_spill] sm:$0xff] }
 0x3c5   : > { %v8031_v35 = vmax.f32 %v16483_v10, %v7903_v44  ;;  %v8028_v51 = vmax.f32 %v7772_v25, %v7900_v58  ;;  %v7905_v7 = vmul.f32 0.2, %v7777_v37 }
 0x3c6   : > { %v8116_v53 = vpack.c.bf16 %v8027_v30, %v8026_v28  ;;  %v8029_v12 = vmax.f32 %v7773_v19, %v7901_v26  ;;  %v8032_v63 = vmax.f32 %v16486_v2, %v7904_v34 }
 0x3c7   : > { %v8118_v11 = vpack.c.bf16 %v8031_v35, %v8030_v33  ;;  %v8033_v42 = vmax.f32 %v7777_v37, %v7905_v7 }
 0x3c8   : > { %v8117_v56 = vpack.c.bf16 %v8029_v12, %v8028_v51 }
 0x3c9   : > { %v8119_v22 = vpack.c.bf16 %v8033_v42, %v8032_v63 }
 0x3cb   : > { %11219 = vmatmul.mubr.msk.bf16.gmra.mrb[128].mxu1 %vm8181_vm1, %v15176_v43  ;;  %v15251_v43 = vld [vmem:[%s15980_s7] ss:$0 sm:$0xff] }
 0x3cc   : > { %11222 = vmatprep.mubr.msk.bf16.mxu1 %vm8181_vm1, %v8108_v6 }
 0x3d3   : > { %11223 = vmatmul.mubr.msk.bf16.gmra.mrb[132].mxu1 %vm8181_vm1, %v8109_v20 }
 0x3d4   : > { %11226 = vmatprep.mubr.msk.bf16.mxu1 %vm8181_vm1, %v8110_v18 }
 0x3db   : > { %11227 = vmatmul.mubr.msk.bf16.gmra.mrb[136].mxu1 %vm8181_vm1, %v8111_v41 }
 0x3dc   : > { %11230 = vmatprep.mubr.msk.bf16.mxu1 %vm8181_vm1, %v8112_v36 }
 0x3e3   : > { %11231 = vmatmul.mubr.msk.bf16.gmra.mrb[140].mxu1 %vm8181_vm1, %v8113_v48 }
 0x3e4   : > { %11234 = vmatprep.mubr.msk.bf16.mxu1 %vm8181_vm1, %v8114_v0 }
 0x3eb   : > { %11235 = vmatmul.mubr.msk.bf16.gmra.mrb[144].mxu1 %vm8181_vm1, %v8115_v38 }
 0x3ec   : > { %11238 = vmatprep.mubr.msk.bf16.mxu1 %vm8181_vm1, %v8116_v53 }
 0x3f3   : > { %11239 = vmatmul.mubr.msk.bf16.gmra.mrb[148].mxu1 %vm8181_vm1, %v8117_v56 }
 0x3f4   : > { %11242 = vmatprep.mubr.msk.bf16.mxu1 %vm8181_vm1, %v8118_v11 }
 0x3fb   : > { %11243 = vmatmul.mubr.msk.bf16.gmra.mrb[152].mxu1 %vm8181_vm1, %v8119_v22 }
 0x3fc   : > { %11246 = vmatprep.mubr.msk.bf16.mxu1 %vm8181_vm1, %v14744_v17 }
 0x403   : > { %11247 = vmatmul.mubr.msk.bf16.gmra.mrb[156].mxu1 %vm8181_vm1, %v14742_v40 }
 0x404   : > { %11250 = vmatprep.mubr.msk.bf16.mxu1 %vm8181_vm1, %v14798_v27 }
 0x40b   : > { %11251 = vmatmul.mubr.msk.bf16.gmra.mrb[160].mxu1 %vm8181_vm1, %v16487_v21 }
 0x40c   : > { %11254 = vmatprep.mubr.msk.bf16.mxu1 %vm8181_vm1, %v14853_v50 }
 0x412   : > { %v11164_v17 = vpop.f32.mrb[72].mxu1 }
 0x413   : > { %11255 = vmatmul.mubr.msk.bf16.gmra.mrb[164].mxu1 %vm8181_vm1, %v14841_v45  ;;  %v8417_v40 = vadd.f32 %v11164_v17, %v15251_v43  ;;  %v8408_v27 = vpop.f32.mrb[73].mxu1 }
 0x414   : > { %11258 = vmatprep.mubr.msk.bf16.mxu1 %vm8181_vm1, %v14890_v9  ;;  %v8409_v6 = vadd.f32 %v15251_v43, %v8408_v27  ;;  %v11165_v18 = vpop.f32.mrb[74].mxu1 }
 0x415   : > { %v8921_v20 = vmul.f32 0.2, %v8417_v40  ;;  %v8420_v50 = vadd.f32 %v11165_v18, %v15251_v43  ;;  %v8411_v41 = vpop.f32.mrb[75].mxu1 }
 0x416   : > { %v8919_v36 = vmul.f32 0.2, %v8409_v6  ;;  %v8412_v3 = vadd.f32 %v15251_v43, %v8411_v41 }
 0x417   : > { %v9049_v14 = vmax.f32 %v8417_v40, %v8921_v20  ;;  %v8922_v0 = vmul.f32 0.2, %v8420_v50 }
 0x418   : > { %v9047_v45 = vmax.f32 %v8409_v6, %v8919_v36  ;;  %v8920_v48 = vmul.f32 0.2, %v8412_v3 }
 0x419   : > { %v9189_v24 = vsel %vm8181_vm1, %v9049_v14, -inf  ;;  %v9050_v9 = vmax.f32 %v8420_v50, %v8922_v0 }
 0x41a   : > { %v9190_v31 = vrot.slane %v9189_v24, 4  ;;  %v9175_v15 = vsel %vm8181_vm1, %v9047_v45, -inf  ;;  %v9048_v25 = vmax.f32 %v8412_v3, %v8920_v48 }
 0x41b   : > { %11259 = vmatmul.mubr.msk.bf16.gmra.mrb[168].mxu1 %vm8181_vm1, %v14886_v61  ;;  %v9176_v62 = vrot.slane %v9175_v15, 4  ;;  %v9196_v49 = vsel %vm8181_vm1, %v9050_v9, -inf }
 0x41c   : > { %11262 = vmatprep.mubr.msk.bf16.mxu1 %vm8181_vm1, %v14945_v13  ;;  %v9191_v19 = vmax.f32 %v9189_v24, %v9190_v31  ;;  %v9197_v57 = vrot.slane %v9196_v49, 4  ;;  %v9182_v5 = vsel %vm8181_vm1, %v9048_v25, -inf }
 0x41d   : > { %v9177_v28 = vmax.f32 %v9175_v15, %v9176_v62  ;;  %v9183_v10 = vrot.slane %v9182_v5, 4 }
 0x41e   : > { %v9192_v44 = vrot.slane %v9191_v19, 2  ;;  %v9198_v30 = vmax.f32 %v9196_v49, %v9197_v57 }
 0x41f   : > { %v9178_v58 = vrot.slane %v9177_v28, 2  ;;  %v9184_v61 = vmax.f32 %v9182_v5, %v9183_v10 }
 0x420   : > { %v9193_v26 = vmax.f32 %v9191_v19, %v9192_v44  ;;  %v9199_v32 = vrot.slane %v9198_v30, 2 }
 0x421   : > { %v9179_v46 = vmax.f32 %v9177_v28, %v9178_v58  ;;  %v9185_v37 = vrot.slane %v9184_v61, 2 }
 0x422   : > { %v9200_v13 = vmax.f32 %v9198_v30, %v9199_v32  ;;  %v9194_v35 = vrot.slane %v9193_v26, 1 }
 0x423   : > { %11263 = vmatmul.mubr.msk.bf16.gmra.mrb[172].mxu1 %vm8181_vm1, %v14923_v47  ;;  %v9180_v38 = vrot.slane %v9179_v46, 1  ;;  %v9186_v33 = vmax.f32 %v9184_v61, %v9185_v37 }
 0x424   : > { %11266 = vmatprep.mubr.msk.bf16.mxu1 %vm8181_vm1, %v14978_v16  ;;  %v11168_v2 = vpop.f32.mrb[76].mxu1  ;;  %v9201_v34 = vrot.slane %v9200_v13, 1  ;;  %v9195_v22 = vmax.f32 %v9193_v26, %v9194_v35 }
 0x425   : > { %v9187_v53 = vrot.slane %v9186_v33, 1  ;;  %v8433_v51 = vadd.f32 %v11168_v2, %v15251_v43  ;;  %v8424_v12 = vpop.f32.mrb[77].mxu1  ;;  %v9181_v56 = vmax.f32 %v9179_v46, %v9180_v38 }
 0x426   : > { %v8425_v7 = vadd.f32 %v15251_v43, %v8424_v12  ;;  %v11169_v11 = vpop.f32.mrb[78].mxu1  ;;  %v9202_v40 = vmax.f32 %v9200_v13, %v9201_v34 }
 0x427   : > { %v9188_v47 = vmax.f32 %v9186_v33, %v9187_v53  ;;  %v8925_v63 = vmul.f32 0.2, %v8433_v51  ;;  %v8436_v42 = vadd.f32 %v11169_v11, %v15251_v43  ;;  %v8427_v16 = vpop.f32.mrb[79].mxu1 }
 0x428   : > { %v8923_v21 = vmul.f32 0.2, %v8425_v7  ;;  %v8428_v17 = vadd.f32 %v15251_v43, %v8427_v16 }
 0x429   : > { %v10200_v27 = vsel %vm10199_vm2, %v9188_v47, %v9181_v56  ;;  %v9053_v6 = vmax.f32 %v8433_v51, %v8925_v63  ;;  %v8926_v18 = vmul.f32 0.2, %v8436_v42 }
 0x42a   : > { %v10202_v20 = vsel %vm10201_vm3, %v9195_v22, %v10200_v27  ;;  %v9051_v50 = vmax.f32 %v8425_v7, %v8923_v21  ;;  %v8924_v41 = vmul.f32 0.2, %v8428_v17 }
 0x42b   : > { %11267 = vmatmul.mubr.msk.bf16.gmra.mrb[176].mxu1 %vm8181_vm1, %v14974_v29  ;;  %v9217_v36 = vsel %vm8181_vm1, %v9053_v6, -inf  ;;  %v10204_v3 = vsel %vm10203_vm4, %v9202_v40, %v10202_v20  ;;  %v9054_v14 = vmax.f32 %v8436_v42, %v8926_v18 }
 0x42c   : > { %11270 = vmatprep.mubr.msk.bf16.mxu1 %vm8181_vm1, %v15008_v60  ;;  %v9218_v0 = vrot.slane %v9217_v36, 4  ;;  %v9203_v45 = vsel %vm8181_vm1, %v9051_v50, -inf  ;;  %v9052_v48 = vmax.f32 %v8428_v17, %v8924_v41 }
 0x42d   : > { %v9204_v24 = vrot.slane %v9203_v45, 4  ;;  %v9224_v9 = vsel %vm8181_vm1, %v9054_v14, -inf }
 0x42e   : > { %v9219_v29 = vmax.f32 %v9217_v36, %v9218_v0  ;;  %v9225_v31 = vrot.slane %v9224_v9, 4  ;;  %v9210_v15 = vsel %vm8181_vm1, %v9052_v48, -inf }
 0x42f   : > { %v9205_v25 = vmax.f32 %v9203_v45, %v9204_v24  ;;  %v9211_v62 = vrot.slane %v9210_v15, 4 }
 0x430   : > { %v9220_v49 = vrot.slane %v9219_v29, 2  ;;  %v9226_v60 = vmax.f32 %v9224_v9, %v9225_v31 }
 0x431   : > { %v9206_v19 = vrot.slane %v9205_v25, 2  ;;  %v9212_v57 = vmax.f32 %v9210_v15, %v9211_v62 }
 0x432   : > { %v9221_v5 = vmax.f32 %v9219_v29, %v9220_v49  ;;  %v9227_v28 = vrot.slane %v9226_v60, 2  ;;  %v11172_v10 = vpop.f32.mrb[80].mxu1 }
 0x433   : > { %11271 = vmatmul.mubr.msk.bf16.gmra.mrb[180].mxu1 %vm8181_vm1, %v15006_v55  ;;  %v9207_v44 = vmax.f32 %v9205_v25, %v9206_v19  ;;  %v9213_v30 = vrot.slane %v9212_v57, 2  ;;  %v8449_v58 = vadd.f32 %v11172_v10, %v15251_v43  ;;  %v8440_v61 = vpop.f32.mrb[81].mxu1 }
 0x434   : > { %11274 = vmatprep.mubr.msk.bf16.mxu1 %vm8181_vm1, %v15043_v39  ;;  %v9228_v26 = vmax.f32 %v9226_v60, %v9227_v28  ;;  %v8441_v32 = vadd.f32 %v15251_v43, %v8440_v61  ;;  %v11173_v46 = vpop.f32.mrb[82].mxu1  ;;  %v9222_v35 = vrot.slane %v9221_v5, 1 }
 0x435   : > { %v9208_v37 = vrot.slane %v9207_v44, 1  ;;  %v9214_v13 = vmax.f32 %v9212_v57, %v9213_v30  ;;  %v8929_v55 = vmul.f32 0.2, %v8449_v58  ;;  %v8452_v38 = vadd.f32 %v11173_v46, %v15251_v43  ;;  %v8443_v33 = vpop.f32.mrb[83].mxu1 }
 0x436   : > { %v9229_v2 = vrot.slane %v9228_v26, 1  ;;  %v8927_v39 = vmul.f32 0.2, %v8441_v32  ;;  %v8444_v34 = vadd.f32 %v15251_v43, %v8443_v33  ;;  %v9223_v22 = vmax.f32 %v9221_v5, %v9222_v35 }
 0x437   : > { %v9209_v53 = vmax.f32 %v9207_v44, %v9208_v37  ;;  %v9215_v51 = vrot.slane %v9214_v13, 1  ;;  %v9057_v12 = vmax.f32 %v8449_v58, %v8929_v55  ;;  %v8930_v7 = vmul.f32 0.2, %v8452_v38 }
 0x438   : > { %v9055_v11 = vmax.f32 %v8441_v32, %v8927_v39  ;;  %v8928_v56 = vmul.f32 0.2, %v8444_v34  ;;  %v9230_v27 = vmax.f32 %v9228_v26, %v9229_v2 }
 0x439   : > { %v10206_v47 = vsel %vm10205_vm5, %v9209_v53, %v10204_v3  ;;  %v9216_v63 = vmax.f32 %v9214_v13, %v9215_v51  ;;  %v9245_v42 = vsel %vm8181_vm1, %v9057_v12, -inf  ;;  %v9058_v16 = vmax.f32 %v8452_v38, %v8930_v7 }
 0x43a   : > { %v9246_v21 = vrot.slane %v9245_v42, 4  ;;  %v9231_v17 = vsel %vm8181_vm1, %v9055_v11, -inf  ;;  %v9056_v40 = vmax.f32 %v8444_v34, %v8928_v56 }
 0x43b   : > { %11275 = vmatmul.mubr.msk.bf16.gmra.mrb[184].mxu1 %vm8181_vm1, %v15037_v23  ;;  %v10208_v6 = vsel %vm10207_vm6, %v9216_v63, %v10206_v47  ;;  %v9232_v18 = vrot.slane %v9231_v17, 4  ;;  %v9252_v23 = vsel %vm8181_vm1, %v9058_v16, -inf  ;;  %v11176_v20 = vpop.f32.mrb[84].mxu1 }
 0x43c   : > { %11278 = vmatprep.mubr.msk.bf16.mxu1 %vm8181_vm1, %v15078_v1  ;;  %v10210_v50 = vsel %vm10209_vm7, %v9223_v22, %v10208_v6  ;;  %v9247_v41 = vmax.f32 %v9245_v42, %v9246_v21  ;;  %v9253_v36 = vrot.slane %v9252_v23, 4  ;;  %v9238_v3 = vsel %vm8181_vm1, %v9056_v40, -inf  ;;  %v8456_v14 = vpop.f32.mrb[85].mxu1 }
 0x43d   : > { %v10212_v0 = vsel %vm10211_vm8, %v9230_v27, %v10210_v50  ;;  %v9233_v45 = vmax.f32 %v9231_v17, %v9232_v18  ;;  %v9239_v48 = vrot.slane %v9238_v3, 4  ;;  %v8465_v24 = vadd.f32 %v11176_v20, %v15251_v43  ;;  %v11177_v9 = vpop.f32.mrb[86].mxu1 }
 0x43e   : > { %10334 = vst.msk [vmem:[%s15306_s10] sm:$0xff] %vm8181_vm1, %v10212_v0  ;;  %v9248_v1 = vrot.slane %v9247_v41, 2  ;;  %v9254_v29 = vmax.f32 %v9252_v23, %v9253_v36  ;;  %v8457_v31 = vadd.f32 %v15251_v43, %v8456_v14  ;;  %v8468_v15 = vadd.f32 %v11177_v9, %v15251_v43  ;;  %v8459_v25 = vpop.f32.mrb[87].mxu1 }
 0x43f   : > { %v9234_v62 = vrot.slane %v9233_v45, 2  ;;  %v9240_v49 = vmax.f32 %v9238_v3, %v9239_v48  ;;  %v8933_v60 = vmul.f32 0.2, %v8465_v24  ;;  %v8460_v19 = vadd.f32 %v15251_v43, %v8459_v25 }
 0x440   : > { %v9249_v57 = vmax.f32 %v9247_v41, %v9248_v1  ;;  %v9255_v5 = vrot.slane %v9254_v29, 2  ;;  %v8931_v28 = vmul.f32 0.2, %v8457_v31  ;;  %v8934_v10 = vmul.f32 0.2, %v8468_v15 }
 0x441   : > { %v9235_v44 = vmax.f32 %v9233_v45, %v9234_v62  ;;  %v9241_v30 = vrot.slane %v9240_v49, 2  ;;  %v9061_v58 = vmax.f32 %v8465_v24, %v8933_v60  ;;  %v8932_v61 = vmul.f32 0.2, %v8460_v19 }
 0x442   : > { %v9256_v26 = vmax.f32 %v9254_v29, %v9255_v5  ;;  %v9059_v32 = vmax.f32 %v8457_v31, %v8931_v28  ;;  %v9062_v46 = vmax.f32 %v8468_v15, %v8934_v10  ;;  %v9250_v33 = vrot.slane %v9249_v57, 1 }
 0x443   : > { %11279 = vmatmul.mubr.msk.bf16.gmra.mrb[188].mxu1 %vm8181_vm1, %v15073_v52  ;;  %v9236_v37 = vrot.slane %v9235_v44, 1  ;;  %v9242_v13 = vmax.f32 %v9240_v49, %v9241_v30  ;;  %v9273_v55 = vsel %vm8181_vm1, %v9061_v58, -inf  ;;  %v9060_v38 = vmax.f32 %v8460_v19, %v8932_v61 }
 0x444   : > { %11282 = vmatprep.mubr.msk.bf16.mxu1 %vm8181_vm1, %v15112_v8  ;;  %v9274_v35 = vrot.slane %v9273_v55, 4  ;;  %v9259_v2 = vsel %vm8181_vm1, %v9059_v32, -inf  ;;  %v9257_v39 = vrot.slane %v9256_v26, 1  ;;  %v9280_v51 = vsel %vm8181_vm1, %v9062_v46, -inf }
 0x445   : > { %v9243_v34 = vrot.slane %v9242_v13, 1  ;;  %v9260_v53 = vrot.slane %v9259_v2, 4  ;;  %v9281_v12 = vrot.slane %v9280_v51, 4  ;;  %v9266_v7 = vsel %vm8181_vm1, %v9060_v38, -inf }
 0x446   : > { %v9275_v52 = vmax.f32 %v9273_v55, %v9274_v35  ;;  %v9237_v11 = vmax.f32 %v9235_v44, %v9236_v37  ;;  %v9267_v8 = vrot.slane %v9266_v7, 4  ;;  %v9251_v63 = vmax.f32 %v9249_v57, %v9250_v33 }
 0x447   : > { %v9244_v56 = vmax.f32 %v9242_v13, %v9243_v34  ;;  %v9261_v47 = vmax.f32 %v9259_v2, %v9260_v53  ;;  %v9282_v16 = vmax.f32 %v9280_v51, %v9281_v12  ;;  %v9258_v22 = vmax.f32 %v9256_v26, %v9257_v39 }
 0x448   : > { %v9276_v42 = vrot.slane %v9275_v52, 2  ;;  %v9268_v40 = vmax.f32 %v9266_v7, %v9267_v8 }
 0x449   : > { %v10213_v21 = vsel %vm10199_vm2, %v9244_v56, %v9237_v11  ;;  %v9262_v17 = vrot.slane %v9261_v47, 2  ;;  %v11180_v27 = vpop.f32.mrb[88].mxu1  ;;  %v9283_v23 = vrot.slane %v9282_v16, 2 }
 0x44a   : > { %v10214_v6 = vsel %vm10201_vm3, %v9251_v63, %v10213_v21  ;;  %v9277_v18 = vmax.f32 %v9275_v52, %v9276_v42  ;;  %v8481_v20 = vadd.f32 %v11180_v27, %v15251_v43  ;;  %v8472_v50 = vpop.f32.mrb[89].mxu1  ;;  %v9269_v3 = vrot.slane %v9268_v40, 2 }
 0x44b   : > { %11283 = vmatmul.mubr.msk.bf16.gmra.mrb[192].mxu1 %vm8181_vm1, %v15102_v4  ;;  %v9263_v41 = vmax.f32 %v9261_v47, %v9262_v17  ;;  %v10215_v36 = vsel %vm10203_vm4, %v9258_v22, %v10214_v6  ;;  %v8473_v14 = vadd.f32 %v15251_v43, %v8472_v50  ;;  %v11181_v0 = vpop.f32.mrb[90].mxu1  ;;  %v9284_v48 = vmax.f32 %v9282_v16, %v9283_v23 }
 0x44c   : > { %11286 = vmatprep.mubr.msk.bf16.mxu1 %vm8181_vm1, %v15136_v59  ;;  %v9278_v45 = vrot.slane %v9277_v18, 1  ;;  %v8937_v24 = vmul.f32 0.2, %v8481_v20  ;;  %v8484_v9 = vadd.f32 %v11181_v0, %v15251_v43  ;;  %v8475_v1 = vpop.f32.mrb[91].mxu1  ;;  %v9270_v29 = vmax.f32 %v9268_v40, %v9269_v3 }
 0x44d   : > { %v9264_v4 = vrot.slane %v9263_v41, 1  ;;  %v8935_v31 = vmul.f32 0.2, %v8473_v14  ;;  %v8476_v15 = vadd.f32 %v15251_v43, %v8475_v1  ;;  %v9285_v25 = vrot.slane %v9284_v48, 1 }
 0x44e   : > { %v9065_v62 = vmax.f32 %v8481_v20, %v8937_v24  ;;  %v8938_v49 = vmul.f32 0.2, %v8484_v9  ;;  %v9271_v19 = vrot.slane %v9270_v29, 1  ;;  %v9279_v5 = vmax.f32 %v9277_v18, %v9278_v45 }
 0x44f   : > { %v9265_v60 = vmax.f32 %v9263_v41, %v9264_v4  ;;  %v9063_v59 = vmax.f32 %v8473_v14, %v8935_v31  ;;  %v8936_v57 = vmul.f32 0.2, %v8476_v15  ;;  %v9286_v26 = vmax.f32 %v9284_v48, %v9285_v25 }
 0x450   : > { %v9301_v28 = vsel %vm8181_vm1, %v9065_v62, -inf  ;;  %v9066_v10 = vmax.f32 %v8484_v9, %v8938_v49  ;;  %v9272_v30 = vmax.f32 %v9270_v29, %v9271_v19 }
 0x451   : > { %v10216_v44 = vsel %vm10205_vm5, %v9265_v60, %v10215_v36  ;;  %v9302_v58 = vrot.slane %v9301_v28, 4  ;;  %v9287_v61 = vsel %vm8181_vm1, %v9063_v59, -inf  ;;  %v9064_v37 = vmax.f32 %v8476_v15, %v8936_v57 }
 0x452   : > { %v9288_v32 = vrot.slane %v9287_v61, 4  ;;  %v9308_v46 = vsel %vm8181_vm1, %v9066_v10, -inf  ;;  %v11184_v13 = vpop.f32.mrb[92].mxu1  ;;  %v10217_v55 = vsel %vm10207_vm6, %v9272_v30, %v10216_v44 }
 0x453   : > { %11287 = vmatmul.mubr.msk.bf16.gmra.mrb[196].mxu1 %vm8181_vm1, %v15133_v54  ;;  %v9303_v38 = vmax.f32 %v9301_v28, %v9302_v58  ;;  %v9309_v33 = vrot.slane %v9308_v46, 4  ;;  %v8497_v35 = vadd.f32 %v11184_v13, %v15251_v43  ;;  %v8488_v2 = vpop.f32.mrb[93].mxu1  ;;  %v10218_v39 = vsel %vm10209_vm7, %v9279_v5, %v10217_v55 }
 0x454   : > { %v9289_v34 = vmax.f32 %v9287_v61, %v9288_v32  ;;  %v9294_v53 = vsel %vm8181_vm1, %v9064_v37, -inf  ;;  %v8489_v51 = vadd.f32 %v15251_v43, %v8488_v2  ;;  %v11185_v52 = vpop.f32.mrb[94].mxu1  ;;  %v10219_v12 = vsel %vm10211_vm8, %v9286_v26, %v10218_v39 }
 0x455   : > { %v9304_v54 = vrot.slane %v9303_v38, 2  ;;  %v9310_v7 = vmax.f32 %v9308_v46, %v9309_v33  ;;  %v9295_v11 = vrot.slane %v9294_v53, 4  ;;  %v8491_v56 = vpop.f32.mrb[95].mxu1  ;;  %10335 = vst.msk [vmem:[%s15306_s10 + $0x8] sm:$0xff] %vm8181_vm1, %v10219_v12  ;;  %v8941_v8 = vmul.f32 0.2, %v8497_v35 }
 0x456   : > { %v9290_v47 = vrot.slane %v9289_v34, 2  ;;  %v8939_v63 = vmul.f32 0.2, %v8489_v51  ;;  %v8500_v42 = vadd.f32 %v11185_v52, %v15251_v43  ;;  %v8492_v17 = vadd.f32 %v15251_v43, %v8491_v56 }
 0x457   : > { %v9305_v16 = vmax.f32 %v9303_v38, %v9304_v54  ;;  %v9311_v22 = vrot.slane %v9310_v7, 2  ;;  %v9296_v21 = vmax.f32 %v9294_v53, %v9295_v11  ;;  %v9069_v27 = vmax.f32 %v8497_v35, %v8941_v8 }
 0x458   : > { %v9291_v40 = vmax.f32 %v9289_v34, %v9290_v47  ;;  %v9067_v6 = vmax.f32 %v8489_v51, %v8939_v63  ;;  %v8942_v18 = vmul.f32 0.2, %v8500_v42  ;;  %v8940_v41 = vmul.f32 0.2, %v8492_v17 }
 0x459   : > { %v9306_v23 = vrot.slane %v9305_v16, 1  ;;  %v9312_v20 = vmax.f32 %v9310_v7, %v9311_v22  ;;  %v9297_v50 = vrot.slane %v9296_v21, 2  ;;  %v9329_v3 = vsel %vm8181_vm1, %v9069_v27, -inf }
 0x45a   : > { %v9292_v36 = vrot.slane %v9291_v40, 1  ;;  %v9315_v14 = vsel %vm8181_vm1, %v9067_v6, -inf  ;;  %v9070_v0 = vmax.f32 %v8500_v42, %v8942_v18  ;;  %v11188_v45 = vpop.f32.mrb[96].mxu1  ;;  %v9330_v1 = vrot.slane %v9329_v3, 4 }
 0x45b   : > { %v9307_v48 = vmax.f32 %v9305_v16, %v9306_v23  ;;  %v9313_v24 = vrot.slane %v9312_v20, 1  ;;  %v9298_v9 = vmax.f32 %v9296_v21, %v9297_v50  ;;  %v8504_v4 = vpop.f32.mrb[97].mxu1  ;;  %v9316_v31 = vrot.slane %v9315_v14, 4 }
 0x45c   : > { %v9293_v29 = vmax.f32 %v9291_v40, %v9292_v36  ;;  %v9336_v15 = vsel %vm8181_vm1, %v9070_v0, -inf  ;;  %v9068_v25 = vmax.f32 %v8492_v17, %v8940_v41  ;;  %v11189_v62 = vpop.f32.mrb[98].mxu1  ;;  %v9331_v19 = vmax.f32 %v9329_v3, %v9330_v1 }
 0x45d   : > { %v9314_v49 = vmax.f32 %v9312_v20, %v9313_v24  ;;  %v9299_v60 = vrot.slane %v9298_v9, 1  ;;  %v9337_v59 = vrot.slane %v9336_v15, 4  ;;  %v8507_v57 = vpop.f32.mrb[99].mxu1  ;;  %v9317_v5 = vmax.f32 %v9315_v14, %v9316_v31 }
 0x45e   : > { %v9322_v28 = vsel %vm8181_vm1, %v9068_v25, -inf  ;;  %v8513_v10 = vadd.f32 %v11188_v45, %v15251_v43  ;;  %v8505_v44 = vadd.f32 %v15251_v43, %v8504_v4  ;;  %v9332_v58 = vrot.slane %v9331_v19, 2 }
 0x45f   : > { %v9300_v30 = vmax.f32 %v9298_v9, %v9299_v60  ;;  %v9338_v61 = vmax.f32 %v9336_v15, %v9337_v59  ;;  %v9323_v26 = vrot.slane %v9322_v28, 4  ;;  %v9318_v32 = vrot.slane %v9317_v5, 2 }
 0x460   : > { %v8945_v46 = vmul.f32 0.2, %v8513_v10  ;;  %v8943_v37 = vmul.f32 0.2, %v8505_v44  ;;  %v8516_v13 = vadd.f32 %v11189_v62, %v15251_v43  ;;  %v9333_v38 = vmax.f32 %v9331_v19, %v9332_v58 }
 0x461   : > { %v10220_v55 = vsel %vm10199_vm2, %v9300_v30, %v9293_v29  ;;  %v9339_v33 = vrot.slane %v9338_v61, 2  ;;  %v9324_v35 = vmax.f32 %v9322_v28, %v9323_v26  ;;  %v9319_v39 = vmax.f32 %v9317_v5, %v9318_v32 }
 0x462   : > { %v10221_v2 = vsel %vm10201_vm3, %v9307_v48, %v10220_v55  ;;  %v9073_v34 = vmax.f32 %v8513_v10, %v8945_v46  ;;  %v9071_v53 = vmax.f32 %v8505_v44, %v8943_v37  ;;  %v9334_v51 = vrot.slane %v9333_v38, 1 }
 0x463   : > { %v10222_v52 = vsel %vm10203_vm4, %v9314_v49, %v10221_v2  ;;  %v9340_v12 = vmax.f32 %v9338_v61, %v9339_v33  ;;  %v9325_v54 = vrot.slane %v9324_v35, 2  ;;  %v9320_v7 = vrot.slane %v9319_v39, 1 }
 0x464   : > { %v9357_v11 = vsel %vm8181_vm1, %v9073_v34, -inf  ;;  %v9343_v56 = vsel %vm8181_vm1, %v9071_v53, -inf  ;;  %v8946_v47 = vmul.f32 0.2, %v8516_v13  ;;  %v9335_v63 = vmax.f32 %v9333_v38, %v9334_v51 }
 0x465   : > { %v11192_v8 = vpop.f32.mrb[100].mxu1  ;;  %v9341_v42 = vrot.slane %v9340_v12, 1  ;;  %v9326_v16 = vmax.f32 %v9324_v35, %v9325_v54  ;;  %v9358_v22 = vrot.slane %v9357_v11, 4  ;;  %v9321_v17 = vmax.f32 %v9319_v39, %v9320_v7 }
 0x466   : > { %v8520_v21 = vpop.f32.mrb[101].mxu1  ;;  %v9344_v40 = vrot.slane %v9343_v56, 4  ;;  %v9074_v27 = vmax.f32 %v8516_v13, %v8946_v47  ;;  %v8508_v6 = vadd.f32 %v15251_v43, %v8507_v57  ;;  %v8529_v41 = vadd.f32 %v11192_v8, %v15251_v43 }
 0x467   : > { %v11193_v18 = vpop.f32.mrb[102].mxu1  ;;  %v9342_v23 = vmax.f32 %v9340_v12, %v9341_v42  ;;  %v9327_v20 = vrot.slane %v9326_v16, 1  ;;  %v9359_v50 = vmax.f32 %v9357_v11, %v9358_v22  ;;  %v10223_v3 = vsel %vm10205_vm5, %v9321_v17, %v10222_v52 }
 0x468   : > { %v8523_v36 = vpop.f32.mrb[103].mxu1  ;;  %v9345_v14 = vmax.f32 %v9343_v56, %v9344_v40  ;;  %v9364_v0 = vsel %vm8181_vm1, %v9074_v27, -inf  ;;  %v8944_v45 = vmul.f32 0.2, %v8508_v6  ;;  %v8949_v1 = vmul.f32 0.2, %v8529_v41 }
 0x469   : > { %v9328_v48 = vmax.f32 %v9326_v16, %v9327_v20  ;;  %v9360_v24 = vrot.slane %v9359_v50, 2  ;;  %v9365_v9 = vrot.slane %v9364_v0, 4  ;;  %v8521_v31 = vadd.f32 %v15251_v43, %v8520_v21 }
 0x46a   : > { %v9346_v4 = vrot.slane %v9345_v14, 2  ;;  %v9072_v29 = vmax.f32 %v8508_v6, %v8944_v45  ;;  %v8532_v15 = vadd.f32 %v11193_v18, %v15251_v43  ;;  %v9077_v60 = vmax.f32 %v8529_v41, %v8949_v1 }
 0x46b   : > { %v10224_v25 = vsel %vm10207_vm6, %v9328_v48, %v10223_v3  ;;  %v9361_v62 = vmax.f32 %v9359_v50, %v9360_v24  ;;  %v9366_v49 = vmax.f32 %v9364_v0, %v9365_v9  ;;  %v8947_v5 = vmul.f32 0.2, %v8521_v31 }
 0x46c   : > { %v10225_v19 = vsel %vm10209_vm7, %v9335_v63, %v10224_v25  ;;  %v9347_v59 = vmax.f32 %v9345_v14, %v9346_v4  ;;  %v9350_v57 = vsel %vm8181_vm1, %v9072_v29, -inf  ;;  %v9385_v32 = vsel %vm8181_vm1, %v9077_v60, -inf }
 0x46d   : > { %v11196_v28 = vpop.f32.mrb[104].mxu1  ;;  %v10226_v10 = vsel %vm10211_vm8, %v9342_v23, %v10225_v19  ;;  %v9362_v44 = vrot.slane %v9361_v62, 1  ;;  %v9367_v30 = vrot.slane %v9366_v49, 2  ;;  %v9351_v58 = vrot.slane %v9350_v57, 4 }
 0x46e   : > { %v8536_v61 = vpop.f32.mrb[105].mxu1  ;;  %10336 = vst.msk [vmem:[%s15306_s10 + $0x10] sm:$0xff] %vm8181_vm1, %v10226_v10  ;;  %v9348_v26 = vrot.slane %v9347_v59, 1  ;;  %v9075_v46 = vmax.f32 %v8521_v31, %v8947_v5  ;;  %v8950_v37 = vmul.f32 0.2, %v8532_v15  ;;  %v9386_v35 = vrot.slane %v9385_v32, 4 }
 0x46f   : > { %v11197_v13 = vpop.f32.mrb[106].mxu1  ;;  %v9363_v55 = vmax.f32 %v9361_v62, %v9362_v44  ;;  %v9368_v38 = vmax.f32 %v9366_v49, %v9367_v30  ;;  %v9352_v33 = vmax.f32 %v9350_v57, %v9351_v58  ;;  %v8524_v51 = vadd.f32 %v15251_v43, %v8523_v36 }
 0x470   : > { %v8539_v2 = vpop.f32.mrb[107].mxu1  ;;  %v9349_v39 = vmax.f32 %v9347_v59, %v9348_v26  ;;  %v9371_v34 = vsel %vm8181_vm1, %v9075_v46, -inf  ;;  %v9078_v53 = vmax.f32 %v8532_v15, %v8950_v37  ;;  %v9387_v54 = vmax.f32 %v9385_v32, %v9386_v35 }
 0x471   : > { %v9369_v52 = vrot.slane %v9368_v38, 1  ;;  %v9353_v12 = vrot.slane %v9352_v33, 2  ;;  %v9372_v7 = vrot.slane %v9371_v34, 4  ;;  %v8948_v56 = vmul.f32 0.2, %v8524_v51 }
 0x472   : > { %v9392_v11 = vsel %vm8181_vm1, %v9078_v53, -inf  ;;  %v8545_v47 = vadd.f32 %v11196_v28, %v15251_v43  ;;  %v8537_v8 = vadd.f32 %v15251_v43, %v8536_v61  ;;  %v9388_v16 = vrot.slane %v9387_v54, 2 }
 0x473   : > { %v9370_v63 = vmax.f32 %v9368_v38, %v9369_v52  ;;  %v9354_v42 = vmax.f32 %v9352_v33, %v9353_v12  ;;  %v9373_v22 = vmax.f32 %v9371_v34, %v9372_v7  ;;  %v9393_v21 = vrot.slane %v9392_v11, 4 }
 0x474   : > { %v9076_v17 = vmax.f32 %v8524_v51, %v8948_v56  ;;  %v8953_v40 = vmul.f32 0.2, %v8545_v47  ;;  %v8951_v27 = vmul.f32 0.2, %v8537_v8  ;;  %v9389_v18 = vmax.f32 %v9387_v54, %v9388_v16 }
 0x475   : > { %v9355_v6 = vrot.slane %v9354_v42, 1  ;;  %v9374_v23 = vrot.slane %v9373_v22, 2  ;;  %v8548_v20 = vadd.f32 %v11197_v13, %v15251_v43  ;;  %v9394_v41 = vmax.f32 %v9392_v11, %v9393_v21 }
 0x476   : > { %v11200_v50 = vpop.f32.mrb[108].mxu1  ;;  %v9378_v36 = vsel %vm8181_vm1, %v9076_v17, -inf  ;;  %v9081_v3 = vmax.f32 %v8545_v47, %v8953_v40  ;;  %v9079_v14 = vmax.f32 %v8537_v8, %v8951_v27  ;;  %v9390_v48 = vrot.slane %v9389_v18, 1 }
 0x477   : > { %v8552_v0 = vpop.f32.mrb[109].mxu1  ;;  %v9356_v45 = vmax.f32 %v9354_v42, %v9355_v6  ;;  %v9375_v24 = vmax.f32 %v9373_v22, %v9374_v23  ;;  %v9379_v9 = vrot.slane %v9378_v36, 4  ;;  %v9395_v4 = vrot.slane %v9394_v41, 2 }
 0x478   : > { %v11201_v1 = vpop.f32.mrb[110].mxu1  ;;  %v9413_v29 = vsel %vm8181_vm1, %v9081_v3, -inf  ;;  %v9399_v31 = vsel %vm8181_vm1, %v9079_v14, -inf  ;;  %v8954_v15 = vmul.f32 0.2, %v8548_v20  ;;  %v9391_v49 = vmax.f32 %v9389_v18, %v9390_v48 }
 0x479   : > { %v8555_v25 = vpop.f32.mrb[111].mxu1  ;;  %v10227_v62 = vsel %vm10199_vm2, %v9356_v45, %v9349_v39  ;;  %v9376_v60 = vrot.slane %v9375_v24, 1  ;;  %v9380_v19 = vmax.f32 %v9378_v36, %v9379_v9  ;;  %v9396_v57 = vmax.f32 %v9394_v41, %v9395_v4 }
 0x47a   : > { %v10228_v59 = vsel %vm10201_vm3, %v9363_v55, %v10227_v62  ;;  %v9414_v5 = vrot.slane %v9413_v29, 4  ;;  %v9400_v28 = vrot.slane %v9399_v31, 4  ;;  %v9082_v58 = vmax.f32 %v8548_v20, %v8954_v15 }
 0x47b   : > { %v9377_v10 = vmax.f32 %v9375_v24, %v9376_v60  ;;  %v10229_v44 = vsel %vm10203_vm4, %v9370_v63, %v10228_v59  ;;  %v9381_v30 = vrot.slane %v9380_v19, 2  ;;  %v9397_v61 = vrot.slane %v9396_v57, 1 }
 0x47c   : > { %v9415_v26 = vmax.f32 %v9413_v29, %v9414_v5  ;;  %v9401_v32 = vmax.f32 %v9399_v31, %v9400_v28  ;;  %v8540_v46 = vadd.f32 %v15251_v43, %v8539_v2  ;;  %v9420_v38 = vsel %vm8181_vm1, %v9082_v58, -inf }
 0x47d   : > { %v10230_v37 = vsel %vm10205_vm5, %v9377_v10, %v10229_v44  ;;  %v9382_v13 = vmax.f32 %v9380_v19, %v9381_v30  ;;  %v8561_v55 = vadd.f32 %v11200_v50, %v15251_v43  ;;  %v9398_v35 = vmax.f32 %v9396_v57, %v9397_v61 }
 0x47e   : > { %v11204_v33 = vpop.f32.mrb[112].mxu1  ;;  %v9416_v39 = vrot.slane %v9415_v26, 2  ;;  %v9402_v34 = vrot.slane %v9401_v32, 2  ;;  %v9421_v53 = vrot.slane %v9420_v38, 4  ;;  %v8952_v12 = vmul.f32 0.2, %v8540_v46 }
 0x47f   : > { %v8568_v51 = vpop.f32.mrb[113].mxu1  ;;  %v9383_v52 = vrot.slane %v9382_v13, 1  ;;  %v8957_v54 = vmul.f32 0.2, %v8561_v55  ;;  %v8553_v7 = vadd.f32 %v15251_v43, %v8552_v0  ;;  %v8564_v8 = vadd.f32 %v11201_v1, %v15251_v43 }
 0x480   : > { %v11205_v11 = vpop.f32.mrb[114].mxu1  ;;  %v9417_v2 = vmax.f32 %v9415_v26, %v9416_v39  ;;  %v9403_v56 = vmax.f32 %v9401_v32, %v9402_v34  ;;  %v9422_v47 = vmax.f32 %v9420_v38, %v9421_v53  ;;  %v9080_v16 = vmax.f32 %v8540_v46, %v8952_v12 }
 0x481   : > { %v15399_v63 = vpop.f32.mrb[115].mxu1  ;;  %v9384_v42 = vmax.f32 %v9382_v13, %v9383_v52  ;;  %v9085_v22 = vmax.f32 %v8561_v55, %v8957_v54  ;;  %v8955_v21 = vmul.f32 0.2, %v8553_v7  ;;  %v8958_v6 = vmul.f32 0.2, %v8564_v8 }
 0x482   : > { %v9418_v17 = vrot.slane %v9417_v2, 1  ;;  %v9404_v40 = vrot.slane %v9403_v56, 1  ;;  %v9423_v27 = vrot.slane %v9422_v47, 2  ;;  %v9406_v23 = vsel %vm8181_vm1, %v9080_v16, -inf }
 0x483   : > { %v10231_v18 = vsel %vm10207_vm6, %v9384_v42, %v10230_v37  ;;  %v9441_v20 = vsel %vm8181_vm1, %v9085_v22, -inf  ;;  %v9083_v50 = vmax.f32 %v8553_v7, %v8955_v21  ;;  %v9407_v45 = vrot.slane %v9406_v23, 4 }
 0x484   : > { %v10232_v41 = vsel %vm10209_vm7, %v9391_v49, %v10231_v18  ;;  %v15405_v36 = vmax.f32 %v9417_v2, %v9418_v17  ;;  %v9405_v3 = vmax.f32 %v9403_v56, %v9404_v40  ;;  %v9424_v14 = vmax.f32 %v9422_v47, %v9423_v27 }
 0x485   : > { %v10233_v0 = vsel %vm10211_vm8, %v9398_v35, %v10232_v41  ;;  %v9442_v48 = vrot.slane %v9441_v20, 4  ;;  %v9427_v24 = vsel %vm8181_vm1, %v9083_v50, -inf  ;;  %v9086_v29 = vmax.f32 %v8564_v8, %v8958_v6 }
 0x486   : > { %v15409_v9 = vpop.f32.mrb[116].mxu1  ;;  %10337 = vst.msk [vmem:[%s15306_s10 + $0x18] sm:$0xff] %vm8181_vm1, %v10233_v0  ;;  %v9425_v1 = vrot.slane %v9424_v14, 1  ;;  %v9428_v4 = vrot.slane %v9427_v24, 4  ;;  %v8556_v31 = vadd.f32 %v15251_v43, %v8555_v25  ;;  %v9408_v62 = vmax.f32 %v9406_v23, %v9407_v45 }
 0x487   : > { %v15414_v15 = vpop.f32.mrb[117].mxu1  ;;  %v9443_v49 = vmax.f32 %v9441_v20, %v9442_v48  ;;  %v8577_v60 = vadd.f32 %v11204_v33, %v15251_v43  ;;  %v8569_v19 = vadd.f32 %v15251_v43, %v8568_v51  ;;  %v9448_v28 = vsel %vm8181_vm1, %v9086_v29, -inf  ;;  %v15442_v48 = vld [vmem:[%s15980_s7] ss:$0 sm:$0xff] }
 0x488   : > { %v15418_v59 = vpop.f32.mrb[118].mxu1  ;;  %v9426_v57 = vmax.f32 %v9424_v14, %v9425_v1  ;;  %v9429_v5 = vmax.f32 %v9427_v24, %v9428_v4  ;;  %v8956_v10 = vmul.f32 0.2, %v8556_v31  ;;  %v9409_v30 = vrot.slane %v9408_v62, 2 }
 0x489   : > { %v15421_v44 = vpop.f32.mrb[119].mxu1  ;;  %v9444_v58 = vrot.slane %v9443_v49, 2  ;;  %v9449_v25 = vrot.slane %v9448_v28, 4  ;;  %v8961_v61 = vmul.f32 0.2, %v8577_v60  ;;  %v8580_v37 = vadd.f32 %v11205_v11, %v15251_v43 }
 0x48a   : > { %v9430_v26 = vrot.slane %v9429_v5, 2  ;;  %v9084_v32 = vmax.f32 %v8556_v31, %v8956_v10  ;;  %v8959_v46 = vmul.f32 0.2, %v8569_v19  ;;  %v9410_v13 = vmax.f32 %v9408_v62, %v9409_v30 }
 0x48b   : > { %v9445_v38 = vmax.f32 %v9443_v49, %v9444_v58  ;;  %v9450_v55 = vmax.f32 %v9448_v28, %v9449_v25  ;;  %v9089_v33 = vmax.f32 %v8577_v60, %v8961_v61  ;;  %v8962_v53 = vmul.f32 0.2, %v8580_v37 }
 0x48c   : > { %v9431_v35 = vmax.f32 %v9429_v5, %v9430_v26  ;;  %v9434_v39 = vsel %vm8181_vm1, %v9084_v32, -inf  ;;  %v9087_v34 = vmax.f32 %v8569_v19, %v8959_v46  ;;  %v9411_v51 = vrot.slane %v9410_v13, 1 }
 0x48d   : > { %v9446_v52 = vrot.slane %v9445_v38, 1  ;;  %v9451_v12 = vrot.slane %v9450_v55, 2  ;;  %v9435_v54 = vrot.slane %v9434_v39, 4  ;;  %v9469_v56 = vsel %vm8181_vm1, %v9089_v33, -inf }
 0x48e   : > { %v15425_v7 = vpop.f32.mrb[120].mxu1  ;;  %v9432_v2 = vrot.slane %v9431_v35, 1  ;;  %v9455_v43 = vsel %vm8181_vm1, %v9087_v34, -inf  ;;  %v9090_v11 = vmax.f32 %v8580_v37, %v8962_v53  ;;  %v9412_v8 = vmax.f32 %v9410_v13, %v9411_v51 }
 0x48f   : > { %v15429_v47 = vpop.f32.mrb[121].mxu1  ;;  %v9447_v42 = vmax.f32 %v9445_v38, %v9446_v52  ;;  %v9452_v16 = vmax.f32 %v9450_v55, %v9451_v12  ;;  %v9436_v22 = vmax.f32 %v9434_v39, %v9435_v54  ;;  %v9470_v40 = vrot.slane %v9469_v56, 4 }
 0x490   : > { %v15431_v21 = vpop.f32.mrb[122].mxu1  ;;  %v9433_v17 = vmax.f32 %v9431_v35, %v9432_v2  ;;  %v9456_v27 = vrot.slane %v9455_v43, 4  ;;  %v9476_v6 = vsel %vm8181_vm1, %v9090_v11, -inf  ;;  %v10234_v23 = vsel %vm10199_vm2, %v9412_v8, %v9405_v3 }
 0x491   : > { %v15434_v18 = vpop.f32.mrb[123].mxu1  ;;  %v9453_v20 = vrot.slane %v9452_v16, 1  ;;  %v9437_v50 = vrot.slane %v9436_v22, 2  ;;  %v9477_v41 = vrot.slane %v9476_v6, 4  ;;  %v10235_v14 = vsel %vm10201_vm3, %v15405_v36, %v10234_v23 }
 0x492   : > { %v9471_v0 = vmax.f32 %v9469_v56, %v9470_v40  ;;  %v9457_v45 = vmax.f32 %v9455_v43, %v9456_v27  ;;  %v8572_v24 = vadd.f32 %v15442_v48, %v15399_v63  ;;  %v10236_v1 = vsel %vm10203_vm4, %v9426_v57, %v10235_v14 }
 0x493   : > { %v9454_v4 = vmax.f32 %v9452_v16, %v9453_v20  ;;  %v9438_v3 = vmax.f32 %v9436_v22, %v9437_v50  ;;  %v9478_v29 = vmax.f32 %v9476_v6, %v9477_v41  ;;  %v10237_v31 = vsel %vm10205_vm5, %v9433_v17, %v10236_v1 }
 0x494   : > { %v9472_v62 = vrot.slane %v9471_v0, 2  ;;  %v9458_v49 = vrot.slane %v9457_v45, 2  ;;  %v8960_v36 = vmul.f32 0.2, %v8572_v24  ;;  %v8593_v5 = vadd.f32 %v15442_v48, %v15409_v9 }
 0x495   : > { %v9439_v60 = vrot.slane %v9438_v3, 1  ;;  %v9479_v19 = vrot.slane %v9478_v29, 2  ;;  %v8585_v28 = vadd.f32 %v15442_v48, %v15414_v15  ;;  %v8596_v58 = vadd.f32 %v15442_v48, %v15418_v59 }
 0x496   : > { %v15452_v10 = vpop.f32.mrb[124].mxu1  ;;  %v9473_v63 = vmax.f32 %v9471_v0, %v9472_v62  ;;  %v9459_v57 = vmax.f32 %v9457_v45, %v9458_v49  ;;  %v9088_v30 = vmax.f32 %v8572_v24, %v8960_v36  ;;  %v8965_v32 = vmul.f32 0.2, %v8593_v5 }
 0x497   : > { %v15456_v25 = vpop.f32.mrb[125].mxu1  ;;  %v9440_v61 = vmax.f32 %v9438_v3, %v9439_v60  ;;  %v9480_v26 = vmax.f32 %v9478_v29, %v9479_v19  ;;  %v8963_v46 = vmul.f32 0.2, %v8585_v28  ;;  %v8966_v38 = vmul.f32 0.2, %v8596_v58 }
 0x498   : > { %v15458_v37 = vpop.f32.mrb[126].mxu1  ;;  %v9474_v9 = vrot.slane %v9473_v63, 1  ;;  %v9460_v13 = vrot.slane %v9459_v57, 1  ;;  %v9462_v15 = vsel %vm8181_vm1, %v9088_v30, -inf  ;;  %v9093_v39 = vmax.f32 %v8593_v5, %v8965_v32 }
 0x499   : > { %v15461_v55 = vpop.f32.mrb[127].mxu1  ;;  %v10238_v33 = vsel %vm10207_vm6, %v9440_v61, %v10237_v31  ;;  %v9481_v35 = vrot.slane %v9480_v26, 1  ;;  %v9463_v59 = vrot.slane %v9462_v15, 4  ;;  %v9091_v52 = vmax.f32 %v8585_v28, %v8963_v46 }
 0x49a   : > { %v10239_v34 = vsel %vm10209_vm7, %v9447_v42, %v10238_v33  ;;  %v9475_v53 = vmax.f32 %v9473_v63, %v9474_v9  ;;  %v9461_v51 = vmax.f32 %v9459_v57, %v9460_v13  ;;  %v9497_v56 = vsel %vm8181_vm1, %v9093_v39, -inf }
 0x49b   : > { %v10240_v12 = vsel %vm10211_vm8, %v9454_v4, %v10239_v34  ;;  %v9482_v54 = vmax.f32 %v9480_v26, %v9481_v35  ;;  %v9464_v2 = vmax.f32 %v9462_v15, %v9463_v59  ;;  %v9498_v43 = vrot.slane %v9497_v56, 4 }
 0x49c   : > { %10338 = vst.msk [vmem:[%s15306_s10 + $0x20] sm:$0xff] %vm8181_vm1, %v10240_v12  ;;  %v9483_v11 = vsel %vm8181_vm1, %v9091_v52, -inf  ;;  %v9094_v8 = vmax.f32 %v8596_v58, %v8966_v38  ;;  %v8588_v16 = vadd.f32 %v15442_v48, %v15421_v44  ;;  %v8609_v17 = vadd.f32 %v15442_v48, %v15425_v7 }
 0x49d   : > { %v9465_v22 = vrot.slane %v9464_v2, 2  ;;  %v9484_v42 = vrot.slane %v9483_v11, 4  ;;  %v8601_v40 = vadd.f32 %v15442_v48, %v15429_v47  ;;  %v9499_v6 = vmax.f32 %v9497_v56, %v9498_v43 }
 0x49e   : > { %v15476_v27 = vpop.f32.mrb[128].mxu1  ;;  %v9504_v23 = vsel %vm8181_vm1, %v9094_v8, -inf  ;;  %v8964_v20 = vmul.f32 0.2, %v8588_v16  ;;  %v8612_v50 = vadd.f32 %v15442_v48, %v15431_v21  ;;  %v8969_v45 = vmul.f32 0.2, %v8609_v17 }
 0x49f   : > { %v15481_v41 = vpop.f32.mrb[129].mxu1  ;;  %v9466_v44 = vmax.f32 %v9464_v2, %v9465_v22  ;;  %v9485_v14 = vmax.f32 %v9483_v11, %v9484_v42  ;;  %v9505_v0 = vrot.slane %v9504_v23, 4  ;;  %v9500_v7 = vrot.slane %v9499_v6, 2 }
 0x4a0   : > { %v15483_v24 = vpop.f32.mrb[130].mxu1  ;;  %v9092_v1 = vmax.f32 %v8588_v16, %v8964_v20  ;;  %v8967_v47 = vmul.f32 0.2, %v8601_v40  ;;  %v8970_v4 = vmul.f32 0.2, %v8612_v50  ;;  %v9097_v49 = vmax.f32 %v8609_v17, %v8969_v45 }
 0x4a1   : > { %v15485_v3 = vpop.f32.mrb[131].mxu1  ;;  %v9467_v29 = vrot.slane %v9466_v44, 1  ;;  %v9486_v31 = vrot.slane %v9485_v14, 2  ;;  %v9506_v62 = vmax.f32 %v9504_v23, %v9505_v0  ;;  %v9501_v36 = vmax.f32 %v9499_v6, %v9500_v7 }
 0x4a2   : > { %v9490_v21 = vsel %vm8181_vm1, %v9092_v1, -inf  ;;  %v9095_v60 = vmax.f32 %v8601_v40, %v8967_v47  ;;  %v9098_v19 = vmax.f32 %v8612_v50, %v8970_v4  ;;  %v9525_v58 = vsel %vm8181_vm1, %v9097_v49, -inf }
 0x4a3   : > { %v9468_v5 = vmax.f32 %v9466_v44, %v9467_v29  ;;  %v9487_v28 = vmax.f32 %v9485_v14, %v9486_v31  ;;  %v9507_v63 = vrot.slane %v9506_v62, 2  ;;  %v9491_v57 = vrot.slane %v9490_v21, 4 }
 0x4a4   : > { %v9502_v30 = vrot.slane %v9501_v36, 1  ;;  %v9511_v61 = vsel %vm8181_vm1, %v9095_v60, -inf  ;;  %v9532_v26 = vsel %vm8181_vm1, %v9098_v19, -inf  ;;  %v9526_v33 = vrot.slane %v9525_v58, 4 }
 0x4a5   : > { %v10241_v32 = vsel %vm10199_vm2, %v9468_v5, %v9461_v51  ;;  %v9488_v46 = vrot.slane %v9487_v28, 1  ;;  %v9508_v9 = vmax.f32 %v9506_v62, %v9507_v63  ;;  %v9492_v13 = vmax.f32 %v9490_v21, %v9491_v57 }
 0x4a6   : > { %v15492_v15 = vpop.f32.mrb[132].mxu1  ;;  %v10242_v38 = vsel %vm10201_vm3, %v9475_v53, %v10241_v32  ;;  %v9512_v35 = vrot.slane %v9511_v61, 4  ;;  %v9503_v39 = vmax.f32 %v9501_v36, %v9502_v30  ;;  %v9527_v56 = vmax.f32 %v9525_v58, %v9526_v33 }
 0x4a7   : > { %v15495_v59 = vpop.f32.mrb[133].mxu1  ;;  %v9489_v34 = vmax.f32 %v9487_v28, %v9488_v46  ;;  %v10243_v52 = vsel %vm10203_vm4, %v9482_v54, %v10242_v38  ;;  %v9493_v12 = vrot.slane %v9492_v13, 2  ;;  %v9533_v43 = vrot.slane %v9532_v26, 4 }
 0x4a8   : > { %v15498_v2 = vpop.f32.mrb[134].mxu1  ;;  %v9513_v51 = vmax.f32 %v9511_v61, %v9512_v35  ;;  %v8604_v11 = vadd.f32 %v15442_v48, %v15434_v18  ;;  %v9509_v16 = vrot.slane %v9508_v9, 1  ;;  %v8625_v42 = vadd.f32 %v15442_v48, %v15452_v10 }
 0x4a9   : > { %v15502_v8 = vpop.f32.mrb[135].mxu1  ;;  %v10244_v53 = vsel %vm10205_vm5, %v9489_v34, %v10243_v52  ;;  %v9494_v22 = vmax.f32 %v9492_v13, %v9493_v12  ;;  %v9528_v17 = vrot.slane %v9527_v56, 2  ;;  %v9534_v40 = vmax.f32 %v9532_v26, %v9533_v43 }
 0x4aa   : > { %v9514_v54 = vrot.slane %v9513_v51, 2  ;;  %v8968_v6 = vmul.f32 0.2, %v8604_v11  ;;  %v8973_v20 = vmul.f32 0.2, %v8625_v42  ;;  %v8617_v50 = vadd.f32 %v15442_v48, %v15456_v25 }
 0x4ab   : > { %v9495_v23 = vrot.slane %v9494_v22, 1  ;;  %v8628_v18 = vadd.f32 %v15442_v48, %v15458_v37  ;;  %v9529_v44 = vmax.f32 %v9527_v56, %v9528_v17  ;;  %v9535_v0 = vrot.slane %v9534_v40, 2 }
 0x4ac   : > { %v9515_v14 = vmax.f32 %v9513_v51, %v9514_v54  ;;  %v9096_v45 = vmax.f32 %v8604_v11, %v8968_v6  ;;  %v9510_v7 = vmax.f32 %v9508_v9, %v9509_v16  ;;  %v9101_v47 = vmax.f32 %v8625_v42, %v8973_v20 }
 0x4ad   : > { %v9496_v1 = vmax.f32 %v9494_v22, %v9495_v23  ;;  %v8971_v10 = vmul.f32 0.2, %v8617_v50  ;;  %v9530_v29 = vrot.slane %v9529_v44, 1  ;;  %v8974_v49 = vmul.f32 0.2, %v8628_v18 }
 0x4ae   : > { %v15511_v4 = vpop.f32.mrb[136].mxu1  ;;  %v9516_v31 = vrot.slane %v9515_v14, 1  ;;  %v9518_v62 = vsel %vm8181_vm1, %v9096_v45, -inf  ;;  %v9553_v21 = vsel %vm8181_vm1, %v9101_v47, -inf  ;;  %v9536_v63 = vmax.f32 %v9534_v40, %v9535_v0 }
 0x4af   : > { %v15514_v25 = vpop.f32.mrb[137].mxu1  ;;  %v10245_v37 = vsel %vm10207_vm6, %v9496_v1, %v10244_v53  ;;  %v9519_v36 = vrot.slane %v9518_v62, 4  ;;  %v9099_v60 = vmax.f32 %v8617_v50, %v8971_v10  ;;  %v9531_v28 = vmax.f32 %v9529_v44, %v9530_v29 }
 0x4b0   : > { %v15518_v19 = vpop.f32.mrb[138].mxu1  ;;  %v10246_v5 = vsel %vm10209_vm7, %v9503_v39, %v10245_v37  ;;  %v9554_v61 = vrot.slane %v9553_v21, 4  ;;  %v9517_v32 = vmax.f32 %v9515_v14, %v9516_v31  ;;  %v9102_v9 = vmax.f32 %v8628_v18, %v8974_v49 }
 0x4b1   : > { %v15521_v57 = vpop.f32.mrb[139].mxu1  ;;  %v10247_v30 = vsel %vm10211_vm8, %v9510_v7, %v10246_v5  ;;  %v9520_v58 = vmax.f32 %v9518_v62, %v9519_v36  ;;  %v9539_v26 = vsel %vm8181_vm1, %v9099_v60, -inf  ;;  %v8620_v13 = vadd.f32 %v15442_v48, %v15461_v55 }
 0x4b2   : > { %10339 = vst.msk [vmem:[%s15306_s10 + $0x28] sm:$0xff] %vm8181_vm1, %v10247_v30  ;;  %v9540_v46 = vrot.slane %v9539_v26, 4  ;;  %v9555_v33 = vmax.f32 %v9553_v21, %v9554_v61  ;;  %v8641_v35 = vadd.f32 %v15442_v48, %v15476_v27  ;;  %v8633_v39 = vadd.f32 %v15442_v48, %v15481_v41 }
 0x4b3   : > { %v9521_v38 = vrot.slane %v9520_v58, 2  ;;  %v9560_v52 = vsel %vm8181_vm1, %v9102_v9, -inf  ;;  %v8972_v12 = vmul.f32 0.2, %v8620_v13  ;;  %v8644_v56 = vadd.f32 %v15442_v48, %v15483_v24 }
 0x4b4   : > { %v9541_v34 = vmax.f32 %v9539_v26, %v9540_v46  ;;  %v9556_v43 = vrot.slane %v9555_v33, 2  ;;  %v9561_v11 = vrot.slane %v9560_v52, 4  ;;  %v8977_v53 = vmul.f32 0.2, %v8641_v35 }
 0x4b5   : > { %v9522_v51 = vmax.f32 %v9520_v58, %v9521_v38  ;;  %v9100_v22 = vmax.f32 %v8620_v13, %v8972_v12  ;;  %v8975_v42 = vmul.f32 0.2, %v8633_v39  ;;  %v8978_v27 = vmul.f32 0.2, %v8644_v56 }
 0x4b6   : > { %v15536_v55 = vpop.f32.mrb[140].mxu1  ;;  %v9542_v16 = vrot.slane %v9541_v34, 2  ;;  %v9537_v41 = vrot.slane %v9536_v63, 1  ;;  %v9562_v40 = vmax.f32 %v9560_v52, %v9561_v11  ;;  %v9105_v6 = vmax.f32 %v8641_v35, %v8977_v53 }
 0x4b7   : > { %v15538_v17 = vpop.f32.mrb[141].mxu1  ;;  %v9523_v54 = vrot.slane %v9522_v51, 1  ;;  %v9546_v24 = vsel %vm8181_vm1, %v9100_v22, -inf  ;;  %v9103_v50 = vmax.f32 %v8633_v39, %v8975_v42  ;;  %v9106_v18 = vmax.f32 %v8644_v56, %v8978_v27 }
 0x4b8   : > { %v15540_v23 = vpop.f32.mrb[142].mxu1  ;;  %v9543_v20 = vmax.f32 %v9541_v34, %v9542_v16  ;;  %v9557_v0 = vmax.f32 %v9555_v33, %v9556_v43  ;;  %v9563_v45 = vrot.slane %v9562_v40, 2  ;;  %v9547_v7 = vrot.slane %v9546_v24, 4 }
 0x4b9   : > { %v15543_v44 = vpop.f32.mrb[143].mxu1  ;;  %v9524_v14 = vmax.f32 %v9522_v51, %v9523_v54  ;;  %v9581_v47 = vsel %vm8181_vm1, %v9105_v6, -inf  ;;  %v9567_v10 = vsel %vm8181_vm1, %v9103_v50, -inf  ;;  %v9588_v29 = vsel %vm8181_vm1, %v9106_v18, -inf }
 0x4ba   : > { %v9544_v1 = vrot.slane %v9543_v20, 1  ;;  %v9538_v31 = vmax.f32 %v9536_v63, %v9537_v41  ;;  %v9564_v49 = vmax.f32 %v9562_v40, %v9563_v45  ;;  %v9548_v37 = vmax.f32 %v9546_v24, %v9547_v7 }
 0x4bb   : > { %v10248_v62 = vsel %vm10199_vm2, %v9524_v14, %v9517_v32  ;;  %v9582_v60 = vrot.slane %v9581_v47, 4  ;;  %v9568_v5 = vrot.slane %v9567_v10, 4  ;;  %v9558_v30 = vrot.slane %v9557_v0, 1 }
 0x4bc   : > { %v10249_v36 = vsel %vm10201_vm3, %v9531_v28, %v10248_v62  ;;  %v9545_v21 = vmax.f32 %v9543_v20, %v9544_v1  ;;  %v9549_v61 = vrot.slane %v9548_v37, 2  ;;  %v9589_v26 = vrot.slane %v9588_v29, 4 }
 0x4bd   : > { %v10250_v58 = vsel %vm10203_vm4, %v9538_v31, %v10249_v36  ;;  %v9583_v13 = vmax.f32 %v9581_v47, %v9582_v60  ;;  %v9569_v63 = vmax.f32 %v9567_v10, %v9568_v5  ;;  %v8636_v32 = vadd.f32 %v15442_v48, %v15485_v3 }
 0x4be   : > { %v15551_v46 = vpop.f32.mrb[144].mxu1  ;;  %v10251_v9 = vsel %vm10205_vm5, %v9545_v21, %v10250_v58  ;;  %v9565_v28 = vrot.slane %v9564_v49, 1  ;;  %v9550_v33 = vmax.f32 %v9548_v37, %v9549_v61  ;;  %v9590_v35 = vmax.f32 %v9588_v29, %v9589_v26 }
 0x4bf   : > { %v15556_v38 = vpop.f32.mrb[145].mxu1  ;;  %v8657_v39 = vadd.f32 %v15442_v48, %v15492_v15  ;;  %v9584_v52 = vrot.slane %v9583_v13, 2  ;;  %v9570_v12 = vrot.slane %v9569_v63, 2  ;;  %v8976_v56 = vmul.f32 0.2, %v8636_v32 }
 0x4c0   : > { %v15560_v34 = vpop.f32.mrb[146].mxu1  ;;  %v8649_v51 = vadd.f32 %v15442_v48, %v15495_v59  ;;  %v9551_v11 = vrot.slane %v9550_v33, 1  ;;  %v9591_v3 = vrot.slane %v9590_v35, 2  ;;  %v8660_v16 = vadd.f32 %v15442_v48, %v15498_v2 }
 0x4c1   : > { %v15564_v43 = vpop.f32.mrb[147].mxu1  ;;  %v8981_v53 = vmul.f32 0.2, %v8657_v39  ;;  %v9585_v22 = vmax.f32 %v9583_v13, %v9584_v52  ;;  %v9571_v42 = vmax.f32 %v9569_v63, %v9570_v12  ;;  %v9104_v27 = vmax.f32 %v8636_v32, %v8976_v56 }
 0x4c2   : > { %v8979_v15 = vmul.f32 0.2, %v8649_v51  ;;  %v9559_v41 = vmax.f32 %v9557_v0, %v9558_v30  ;;  %v9552_v54 = vmax.f32 %v9550_v33, %v9551_v11  ;;  %v9592_v40 = vmax.f32 %v9590_v35, %v9591_v3 }
 0x4c3   : > { %v9109_v6 = vmax.f32 %v8657_v39, %v8981_v53  ;;  %v9586_v20 = vrot.slane %v9585_v22, 1  ;;  %v9574_v24 = vsel %vm8181_vm1, %v9104_v27, -inf  ;;  %v8982_v50 = vmul.f32 0.2, %v8660_v16 }
 0x4c4   : > { %v9107_v59 = vmax.f32 %v8649_v51, %v8979_v15  ;;  %v9566_v18 = vmax.f32 %v9564_v49, %v9565_v28  ;;  %v10252_v14 = vsel %vm10207_vm6, %v9552_v54, %v10251_v9  ;;  %v9575_v45 = vrot.slane %v9574_v24, 4 }
 0x4c5   : > { %v9609_v2 = vsel %vm8181_vm1, %v9109_v6, -inf  ;;  %v10253_v1 = vsel %vm10209_vm7, %v9559_v41, %v10252_v14  ;;  %v9572_v0 = vrot.slane %v9571_v42, 1  ;;  %v9593_v47 = vrot.slane %v9592_v40, 1 }
 0x4c6   : > { %v15571_v7 = vpop.f32.mrb[148].mxu1  ;;  %v9610_v10 = vrot.slane %v9609_v2, 4  ;;  %v10254_v31 = vsel %vm10211_vm8, %v9566_v18, %v10253_v1  ;;  %v9587_v62 = vmax.f32 %v9585_v22, %v9586_v20  ;;  %v9576_v37 = vmax.f32 %v9574_v24, %v9575_v45 }
 0x4c7   : > { %v15574_v29 = vpop.f32.mrb[149].mxu1  ;;  %v9595_v49 = vsel %vm8181_vm1, %v9107_v59, -inf  ;;  %10340 = vst.msk [vmem:[%s15306_s10 + $0x30] sm:$0xff] %vm8181_vm1, %v10254_v31  ;;  %v9110_v5 = vmax.f32 %v8660_v16, %v8982_v50  ;;  %v8652_v30 = vadd.f32 %v15442_v48, %v15502_v8  ;;  %v8673_v26 = vadd.f32 %v15442_v48, %v15511_v4 }
 0x4c8   : > { %v15578_v36 = vpop.f32.mrb[150].mxu1  ;;  %v9611_v21 = vmax.f32 %v9609_v2, %v9610_v10  ;;  %v9596_v60 = vrot.slane %v9595_v49, 4  ;;  %v9577_v61 = vrot.slane %v9576_v37, 2  ;;  %v8665_v9 = vadd.f32 %v15442_v48, %v15514_v25 }
 0x4c9   : > { %v15584_v58 = vpop.f32.mrb[151].mxu1  ;;  %v8676_v13 = vadd.f32 %v15442_v48, %v15518_v19  ;;  %v9616_v28 = vsel %vm8181_vm1, %v9110_v5, -inf  ;;  %v8980_v33 = vmul.f32 0.2, %v8652_v30  ;;  %v8985_v8 = vmul.f32 0.2, %v8673_v26 }
 0x4ca   : > { %v9612_v63 = vrot.slane %v9611_v21, 2  ;;  %v9597_v32 = vmax.f32 %v9595_v49, %v9596_v60  ;;  %v9578_v35 = vmax.f32 %v9576_v37, %v9577_v61  ;;  %v9617_v39 = vrot.slane %v9616_v28, 4 }
 0x4cb   : > { %v8983_v52 = vmul.f32 0.2, %v8665_v9  ;;  %v9573_v12 = vmax.f32 %v9571_v42, %v9572_v0  ;;  %v9108_v51 = vmax.f32 %v8652_v30, %v8980_v33  ;;  %v8986_v11 = vmul.f32 0.2, %v8676_v13 }
 0x4cc   : > { %v9598_v56 = vrot.slane %v9597_v32, 2  ;;  %v9579_v4 = vrot.slane %v9578_v35, 1  ;;  %v9618_v3 = vmax.f32 %v9616_v28, %v9617_v39  ;;  %v9113_v53 = vmax.f32 %v8673_v26, %v8985_v8 }
 0x4cd   : > { %v9111_v25 = vmax.f32 %v8665_v9, %v8983_v52  ;;  %v9613_v19 = vmax.f32 %v9611_v21, %v9612_v63  ;;  %v9602_v27 = vsel %vm8181_vm1, %v9108_v51, -inf  ;;  %v9114_v15 = vmax.f32 %v8676_v13, %v8986_v11 }
 0x4ce   : > { %v15593_v16 = vpop.f32.mrb[152].mxu1  ;;  %v9599_v22 = vmax.f32 %v9597_v32, %v9598_v56  ;;  %v9580_v54 = vmax.f32 %v9578_v35, %v9579_v4  ;;  %v9619_v6 = vrot.slane %v9618_v3, 2  ;;  %v9603_v20 = vrot.slane %v9602_v27, 4 }
 0x4cf   : > { %v15596_v41 = vpop.f32.mrb[153].mxu1  ;;  %v9637_v42 = vsel %vm8181_vm1, %v9113_v53, -inf  ;;  %v9594_v59 = vmax.f32 %v9592_v40, %v9593_v47  ;;  %v9623_v14 = vsel %vm8181_vm1, %v9111_v25, -inf  ;;  %v9644_v21 = vsel %vm8181_vm1, %v9114_v15, -inf }
 0x4d0   : > { %v15599_v24 = vpop.f32.mrb[154].mxu1  ;;  %v9600_v50 = vrot.slane %v9599_v22, 1  ;;  %v9638_v18 = vrot.slane %v9637_v42, 4  ;;  %v10255_v2 = vsel %vm10199_vm2, %v9580_v54, %v9573_v12  ;;  %v9620_v1 = vmax.f32 %v9618_v3, %v9619_v6 }
 0x4d1   : > { %v15602_v45 = vpop.f32.mrb[155].mxu1  ;;  %v9604_v0 = vmax.f32 %v9602_v27, %v9603_v20  ;;  %v9624_v10 = vrot.slane %v9623_v14, 4  ;;  %v10256_v31 = vsel %vm10201_vm3, %v9587_v62, %v10255_v2  ;;  %v9614_v60 = vrot.slane %v9613_v19, 1 }
 0x4d2   : > { %v9601_v37 = vmax.f32 %v9599_v22, %v9600_v50  ;;  %v9639_v49 = vmax.f32 %v9637_v42, %v9638_v18  ;;  %v10257_v40 = vsel %vm10203_vm4, %v9594_v59, %v10256_v31  ;;  %v9645_v26 = vrot.slane %v9644_v21, 4 }
 0x4d3   : > { %v9605_v47 = vrot.slane %v9604_v0, 2  ;;  %v9625_v5 = vmax.f32 %v9623_v14, %v9624_v10  ;;  %v8668_v9 = vadd.f32 %v15442_v48, %v15521_v57  ;;  %v9621_v13 = vrot.slane %v9620_v1, 1 }
 0x4d4   : > { %v10258_v30 = vsel %vm10205_vm5, %v9601_v37, %v10257_v40  ;;  %v9640_v61 = vrot.slane %v9639_v49, 2  ;;  %v8689_v62 = vadd.f32 %v15442_v48, %v15536_v55  ;;  %v9646_v35 = vmax.f32 %v9644_v21, %v9645_v26 }
 0x4d5   : > { %v9606_v63 = vmax.f32 %v9604_v0, %v9605_v47  ;;  %v9626_v32 = vrot.slane %v9625_v5, 2  ;;  %v8984_v39 = vmul.f32 0.2, %v8668_v9  ;;  %v8681_v8 = vadd.f32 %v15442_v48, %v15538_v17 }
 0x4d6   : > { %v15613_v28 = vpop.f32.mrb[156].mxu1  ;;  %v9641_v33 = vmax.f32 %v9639_v49, %v9640_v61  ;;  %v8989_v51 = vmul.f32 0.2, %v8689_v62  ;;  %v8692_v57 = vadd.f32 %v15442_v48, %v15540_v23  ;;  %v9647_v55 = vrot.slane %v9646_v35, 2 }
 0x4d7   : > { %v15617_v52 = vpop.f32.mrb[157].mxu1  ;;  %v9607_v12 = vrot.slane %v9606_v63, 1  ;;  %v9627_v56 = vmax.f32 %v9625_v5, %v9626_v32  ;;  %v9112_v3 = vmax.f32 %v8668_v9, %v8984_v39  ;;  %v8987_v53 = vmul.f32 0.2, %v8681_v8 }
 0x4d8   : > { %v15621_v11 = vpop.f32.mrb[158].mxu1  ;;  %v9642_v4 = vrot.slane %v9641_v33, 1  ;;  %v9615_v22 = vmax.f32 %v9613_v19, %v9614_v60  ;;  %v9117_v15 = vmax.f32 %v8689_v62, %v8989_v51  ;;  %v8990_v17 = vmul.f32 0.2, %v8692_v57 }
 0x4d9   : > { %v15623_v25 = vpop.f32.mrb[159].mxu1  ;;  %v9608_v27 = vmax.f32 %v9606_v63, %v9607_v12  ;;  %v9622_v54 = vmax.f32 %v9620_v1, %v9621_v13  ;;  %v9628_v6 = vrot.slane %v9627_v56, 1  ;;  %v9630_v20 = vsel %vm8181_vm1, %v9112_v3, -inf }
 0x4da   : > { %v9115_v42 = vmax.f32 %v8681_v8, %v8987_v53  ;;  %v9643_v59 = vmax.f32 %v9641_v33, %v9642_v4  ;;  %v9631_v50 = vrot.slane %v9630_v20, 4  ;;  %v9665_v18 = vsel %vm8181_vm1, %v9117_v15, -inf }
 0x4db   : > { %v10259_v23 = vsel %vm10207_vm6, %v9608_v27, %v10258_v30  ;;  %v9648_v2 = vmax.f32 %v9646_v35, %v9647_v55  ;;  %v9666_v0 = vrot.slane %v9665_v18, 4  ;;  %v9118_v37 = vmax.f32 %v8692_v57, %v8990_v17 }
 0x4dc   : > { %v10260_v14 = vsel %vm10209_vm7, %v9615_v22, %v10259_v23  ;;  %v9651_v19 = vsel %vm8181_vm1, %v9115_v42, -inf  ;;  %v9632_v1 = vmax.f32 %v9630_v20, %v9631_v50  ;;  %v9629_v21 = vmax.f32 %v9627_v56, %v9628_v6 }
 0x4dd   : > { %v10261_v10 = vsel %vm10211_vm8, %v9622_v54, %v10260_v14  ;;  %v9652_v31 = vrot.slane %v9651_v19, 4  ;;  %v9667_v60 = vmax.f32 %v9665_v18, %v9666_v0  ;;  %v8684_v40 = vadd.f32 %v15442_v48, %v15543_v44 }
 0x4de   : > { %v15631_v49 = vpop.f32.mrb[160].mxu1  ;;  %10341 = vst.msk [vmem:[%s15306_s10 + $0x38] sm:$0xff] %vm8181_vm1, %v10261_v10  ;;  %v8705_v47 = vadd.f32 %v15442_v48, %v15551_v46  ;;  %v9633_v30 = vrot.slane %v9632_v1, 2  ;;  %v9672_v26 = vsel %vm8181_vm1, %v9118_v37, -inf  ;;  %v8697_v9 = vadd.f32 %v15442_v48, %v15556_v38 }
 0x4df   : > { %v15639_v5 = vpop.f32.mrb[161].mxu1  ;;  %v9653_v61 = vmax.f32 %v9651_v19, %v9652_v31  ;;  %v9668_v63 = vrot.slane %v9667_v60, 2  ;;  %v9673_v32 = vrot.slane %v9672_v26, 4  ;;  %v8988_v62 = vmul.f32 0.2, %v8684_v40 }
 0x4e0   : > { %v15644_v13 = vpop.f32.mrb[162].mxu1  ;;  %v8993_v33 = vmul.f32 0.2, %v8705_v47  ;;  %v9634_v35 = vmax.f32 %v9632_v1, %v9633_v30  ;;  %v8991_v39 = vmul.f32 0.2, %v8697_v9  ;;  %v8708_v46 = vadd.f32 %v15442_v48, %v15560_v34 }
 0x4e1   : > { %v9654_v44 = vrot.slane %v9653_v61, 2  ;;  %v15648_v8 = vpop.f32.mrb[163].mxu1  ;;  %v9649_v12 = vrot.slane %v9648_v2, 1  ;;  %v9674_v56 = vmax.f32 %v9672_v26, %v9673_v32  ;;  %v9116_v51 = vmax.f32 %v8684_v40, %v8988_v62 }
 0x4e2   : > { %v9121_v57 = vmax.f32 %v8705_v47, %v8993_v33  ;;  %v9635_v4 = vrot.slane %v9634_v35, 1  ;;  %v9119_v55 = vmax.f32 %v8697_v9, %v8991_v39  ;;  %v8994_v3 = vmul.f32 0.2, %v8708_v46 }
 0x4e3   : > { %v9655_v38 = vmax.f32 %v9653_v61, %v9654_v44  ;;  %v9669_v53 = vmax.f32 %v9667_v60, %v9668_v63  ;;  %v9675_v22 = vrot.slane %v9674_v56, 2  ;;  %v9658_v27 = vsel %vm8181_vm1, %v9116_v51, -inf }
 0x4e4   : > { %v9693_v15 = vsel %vm8181_vm1, %v9121_v57, -inf  ;;  %v9636_v17 = vmax.f32 %v9634_v35, %v9635_v4  ;;  %v9659_v6 = vrot.slane %v9658_v27, 4  ;;  %v9650_v42 = vmax.f32 %v9648_v2, %v9649_v12 }
 0x4e5   : > { %v9656_v54 = vrot.slane %v9655_v38, 1  ;;  %v9694_v34 = vrot.slane %v9693_v15, 4  ;;  %v9676_v23 = vmax.f32 %v9674_v56, %v9675_v22  ;;  %v9679_v50 = vsel %vm8181_vm1, %v9119_v55, -inf }
 0x4e6   : > { %v15652_v20 = vpop.f32.mrb[164].mxu1  ;;  %v9122_v18 = vmax.f32 %v8708_v46, %v8994_v3  ;;  %v10262_v0 = vsel %vm10199_vm2, %v9636_v17, %v9629_v21  ;;  %v9660_v10 = vmax.f32 %v9658_v27, %v9659_v6  ;;  %v9670_v60 = vrot.slane %v9669_v53, 1 }
 0x4e7   : > { %v15655_v14 = vpop.f32.mrb[165].mxu1  ;;  %v9657_v19 = vmax.f32 %v9655_v38, %v9656_v54  ;;  %v9695_v1 = vmax.f32 %v9693_v15, %v9694_v34  ;;  %v10263_v37 = vsel %vm10201_vm3, %v9643_v59, %v10262_v0  ;;  %v9680_v40 = vrot.slane %v9679_v50, 4 }
 0x4e8   : > { %v15658_v31 = vpop.f32.mrb[166].mxu1  ;;  %v9700_v47 = vsel %vm8181_vm1, %v9122_v18, -inf  ;;  %v10264_v30 = vsel %vm10203_vm4, %v9650_v42, %v10263_v37  ;;  %v9661_v61 = vrot.slane %v9660_v10, 2  ;;  %v9677_v63 = vrot.slane %v9676_v23, 1 }
 0x4e9   : > { %v15662_v2 = vpop.f32.mrb[167].mxu1  ;;  %v9696_v26 = vrot.slane %v9695_v1, 2  ;;  %v9701_v9 = vrot.slane %v9700_v47, 4  ;;  %v10265_v21 = vsel %vm10205_vm5, %v9657_v19, %v10264_v30  ;;  %v9681_v32 = vmax.f32 %v9679_v50, %v9680_v40 }
 0x4ea   : > { %v8700_v62 = vadd.f32 %v15442_v48, %v15564_v43  ;;  %v9662_v33 = vmax.f32 %v9660_v10, %v9661_v61  ;;  %v8721_v44 = vadd.f32 %v15442_v48, %v15571_v7  ;;  %v8713_v12 = vadd.f32 %v15442_v48, %v15574_v29 }
 0x4eb   : > { %v9697_v59 = vmax.f32 %v9695_v1, %v9696_v26  ;;  %v9702_v35 = vmax.f32 %v9700_v47, %v9701_v9  ;;  %v9682_v39 = vrot.slane %v9681_v32, 2  ;;  %v8724_v56 = vadd.f32 %v15442_v48, %v15578_v36 }
 0x4ec   : > { %v8992_v46 = vmul.f32 0.2, %v8700_v62  ;;  %v9663_v51 = vrot.slane %v9662_v33, 1  ;;  %v8997_v38 = vmul.f32 0.2, %v8721_v44  ;;  %v9671_v7 = vmax.f32 %v9669_v53, %v9670_v60 }
 0x4ed   : > { %v9698_v57 = vrot.slane %v9697_v59, 1  ;;  %v9703_v4 = vrot.slane %v9702_v35, 2  ;;  %v9683_v43 = vmax.f32 %v9681_v32, %v9682_v39  ;;  %v8995_v22 = vmul.f32 0.2, %v8713_v12 }
 0x4ee   : > { %v15674_v55 = vpop.f32.mrb[168].mxu1  ;;  %v9120_v3 = vmax.f32 %v8700_v62, %v8992_v46  ;;  %v8998_v27 = vmul.f32 0.2, %v8724_v56  ;;  %v9664_v17 = vmax.f32 %v9662_v33, %v9663_v51  ;;  %v9125_v6 = vmax.f32 %v8721_v44, %v8997_v38 }
 0x4ef   : > { %v15676_v15 = vpop.f32.mrb[169].mxu1  ;;  %v9704_v54 = vmax.f32 %v9702_v35, %v9703_v4  ;;  %v9678_v34 = vmax.f32 %v9676_v23, %v9677_v63  ;;  %v9123_v42 = vmax.f32 %v8713_v12, %v8995_v22  ;;  %v9699_v19 = vmax.f32 %v9697_v59, %v9698_v57 }
 0x4f0   : > { %v15678_v29 = vpop.f32.mrb[170].mxu1  ;;  %v9686_v36 = vsel %vm8181_vm1, %v9120_v3, -inf  ;;  %v9126_v50 = vmax.f32 %v8724_v56, %v8998_v27  ;;  %v10266_v0 = vsel %vm10207_vm6, %v9664_v17, %v10265_v21  ;;  %v9721_v1 = vsel %vm8181_vm1, %v9125_v6, -inf }
 0x4f1   : > { %v15681_v18 = vpop.f32.mrb[171].mxu1  ;;  %v9687_v10 = vrot.slane %v9686_v36, 4  ;;  %v10267_v53 = vsel %vm10209_vm7, %v9671_v7, %v10266_v0  ;;  %v9684_v37 = vrot.slane %v9683_v43, 1  ;;  %v9722_v60 = vrot.slane %v9721_v1, 4 }
 0x4f2   : > { %v9707_v40 = vsel %vm8181_vm1, %v9123_v42, -inf  ;;  %v10268_v23 = vsel %vm10211_vm8, %v9678_v34, %v10267_v53  ;;  %v9705_v47 = vrot.slane %v9704_v54, 1  ;;  %v9728_v9 = vsel %vm8181_vm1, %v9126_v50, -inf }
 0x4f3   : > { %v9688_v30 = vmax.f32 %v9686_v36, %v9687_v10  ;;  %v9708_v61 = vrot.slane %v9707_v40, 4  ;;  %10342 = vst.msk [vmem:[%s15306_s10 + $0x40] sm:$0xff] %vm8181_vm1, %v10268_v23  ;;  %v9723_v26 = vmax.f32 %v9721_v1, %v9722_v60  ;;  %v8716_v21 = vadd.f32 %v15442_v48, %v15584_v58 }
 0x4f4   : > { %v8737_v63 = vadd.f32 %v15442_v48, %v15593_v16  ;;  %v9729_v33 = vrot.slane %v9728_v9, 4  ;;  %v8729_v59 = vadd.f32 %v15442_v48, %v15596_v41  ;;  %v8740_v12 = vadd.f32 %v15442_v48, %v15599_v24 }
 0x4f5   : > { %v9689_v32 = vrot.slane %v9688_v30, 2  ;;  %v9709_v62 = vmax.f32 %v9707_v40, %v9708_v61  ;;  %v9724_v44 = vrot.slane %v9723_v26, 2  ;;  %v8996_v39 = vmul.f32 0.2, %v8716_v21 }
 0x4f6   : > { %v15697_v35 = vpop.f32.mrb[172].mxu1  ;;  %v9001_v46 = vmul.f32 0.2, %v8737_v63  ;;  %v9730_v57 = vmax.f32 %v9728_v9, %v9729_v33  ;;  %v8999_v16 = vmul.f32 0.2, %v8729_v59  ;;  %v9685_v36 = vmax.f32 %v9683_v43, %v9684_v37 }
 0x4f7   : > { %v15701_v56 = vpop.f32.mrb[173].mxu1  ;;  %v9690_v58 = vmax.f32 %v9688_v30, %v9689_v32  ;;  %v9710_v51 = vrot.slane %v9709_v62, 2  ;;  %v9725_v38 = vmax.f32 %v9723_v26, %v9724_v44  ;;  %v9124_v3 = vmax.f32 %v8716_v21, %v8996_v39 }
 0x4f8   : > { %v15703_v4 = vpop.f32.mrb[174].mxu1  ;;  %v9129_v22 = vmax.f32 %v8737_v63, %v9001_v46  ;;  %v9002_v41 = vmul.f32 0.2, %v8740_v12  ;;  %v9731_v6 = vrot.slane %v9730_v57, 2  ;;  %v9127_v34 = vmax.f32 %v8729_v59, %v8999_v16 }
 0x4f9   : > { %v15705_v27 = vpop.f32.mrb[175].mxu1  ;;  %v9691_v7 = vrot.slane %v9690_v58, 1  ;;  %v9711_v17 = vmax.f32 %v9709_v62, %v9710_v51  ;;  %v9714_v24 = vsel %vm8181_vm1, %v9124_v3, -inf  ;;  %v9706_v60 = vmax.f32 %v9704_v54, %v9705_v47 }
 0x4fa   : > { %v9749_v42 = vsel %vm8181_vm1, %v9129_v22, -inf  ;;  %v9130_v50 = vmax.f32 %v8740_v12, %v9002_v41  ;;  %v9732_v1 = vmax.f32 %v9730_v57, %v9731_v6  ;;  %v9715_v53 = vrot.slane %v9714_v24, 4 }
 0x4fb   : > { %v9692_v0 = vmax.f32 %v9690_v58, %v9691_v7  ;;  %v9712_v10 = vrot.slane %v9711_v17, 1  ;;  %v9750_v40 = vrot.slane %v9749_v42, 4  ;;  %v9735_v23 = vsel %vm8181_vm1, %v9127_v34, -inf }
 0x4fc   : > { %v9756_v30 = vsel %vm8181_vm1, %v9130_v50, -inf  ;;  %v9726_v26 = vrot.slane %v9725_v38, 1  ;;  %v9716_v43 = vmax.f32 %v9714_v24, %v9715_v53  ;;  %v9736_v32 = vrot.slane %v9735_v23, 4 }
 0x4fd   : > { %v10269_v61 = vsel %vm10199_vm2, %v9692_v0, %v9685_v36  ;;  %v9713_v9 = vmax.f32 %v9711_v17, %v9712_v10  ;;  %v9751_v63 = vmax.f32 %v9749_v42, %v9750_v40  ;;  %v9757_v62 = vrot.slane %v9756_v30, 4 }
 0x4fe   : > { %v15712_v37 = vpop.f32.mrb[176].mxu1  ;;  %v10270_v21 = vsel %vm10201_vm3, %v9699_v19, %v10269_v61  ;;  %v9733_v47 = vrot.slane %v9732_v1, 1  ;;  %v9717_v59 = vrot.slane %v9716_v43, 2  ;;  %v8732_v44 = vadd.f32 %v15442_v48, %v15602_v45 }
 0x4ff   : > { %v15715_v33 = vpop.f32.mrb[177].mxu1  ;;  %v10271_v54 = vsel %vm10203_vm4, %v9706_v60, %v10270_v21  ;;  %v9752_v12 = vrot.slane %v9751_v63, 2  ;;  %v9737_v58 = vmax.f32 %v9735_v23, %v9736_v32  ;;  %v9758_v51 = vmax.f32 %v9756_v30, %v9757_v62 }
 0x500   : > { %v15720_v39 = vpop.f32.mrb[178].mxu1  ;;  %v10272_v46 = vsel %vm10205_vm5, %v9713_v9, %v10271_v54  ;;  %v9718_v57 = vmax.f32 %v9716_v43, %v9717_v59  ;;  %v9000_v16 = vmul.f32 0.2, %v8732_v44  ;;  %v8753_v3 = vadd.f32 %v15442_v48, %v15613_v28 }
 0x501   : > { %v15723_v19 = vpop.f32.mrb[179].mxu1  ;;  %v8745_v22 = vadd.f32 %v15442_v48, %v15617_v52  ;;  %v15729_v41 = vmax.f32 %v9751_v63, %v9752_v12  ;;  %v9738_v45 = vrot.slane %v9737_v58, 2  ;;  %v9759_v7 = vrot.slane %v9758_v51, 2 }
 0x502   : > { %v8756_v17 = vadd.f32 %v15442_v48, %v15621_v11  ;;  %v9719_v6 = vrot.slane %v9718_v57, 1  ;;  %v9128_v34 = vmax.f32 %v8732_v44, %v9000_v16  ;;  %v9005_v36 = vmul.f32 0.2, %v8753_v3 }
 0x503   : > { %v9003_v24 = vmul.f32 0.2, %v8745_v22  ;;  %v9727_v42 = vmax.f32 %v9725_v38, %v9726_v26  ;;  %v9739_v50 = vmax.f32 %v9737_v58, %v9738_v45  ;;  %v15733_v0 = vmax.f32 %v9758_v51, %v9759_v7  ;;  %v15757_v51 = vld [vmem:[%s15980_s7] ss:$0 sm:$0xff] }
 0x504   : > { %v9006_v10 = vmul.f32 0.2, %v8756_v17  ;;  %v9720_v28 = vmax.f32 %v9718_v57, %v9719_v6  ;;  %v9742_v53 = vsel %vm8181_vm1, %v9128_v34, -inf  ;;  %v9133_v52 = vmax.f32 %v8753_v3, %v9005_v36 }
 0x505   : > { %v9131_v60 = vmax.f32 %v8745_v22, %v9003_v24  ;;  %v9734_v23 = vmax.f32 %v9732_v1, %v9733_v47  ;;  %v9754_v30 = vrot.slane %v15729_v41, 1  ;;  %v9740_v48 = vrot.slane %v9739_v50, 1 }
 0x506   : > { %v15736_v40 = vpop.f32.mrb[180].mxu1  ;;  %v9743_v11 = vrot.slane %v9742_v53, 4  ;;  %v10273_v38 = vsel %vm10207_vm6, %v9720_v28, %v10272_v46  ;;  %v9777_v26 = vsel %vm8181_vm1, %v9133_v52, -inf  ;;  %v9134_v43 = vmax.f32 %v8756_v17, %v9006_v10 }
 0x507   : > { %v15739_v61 = vpop.f32.mrb[181].mxu1  ;;  %v9763_v9 = vsel %vm8181_vm1, %v9131_v60, -inf  ;;  %v10274_v63 = vsel %vm10209_vm7, %v9727_v42, %v10273_v38  ;;  %v9741_v32 = vmax.f32 %v9739_v50, %v9740_v48  ;;  %v9761_v1 = vrot.slane %v15733_v0, 1 }
 0x508   : > { %v15744_v21 = vpop.f32.mrb[182].mxu1  ;;  %v9744_v62 = vmax.f32 %v9742_v53, %v9743_v11  ;;  %v10275_v47 = vsel %vm10211_vm8, %v9734_v23, %v10274_v63  ;;  %v9778_v59 = vrot.slane %v9777_v26, 4  ;;  %v9764_v44 = vrot.slane %v9763_v9, 4 }
 0x509   : > { %v15748_v54 = vpop.f32.mrb[183].mxu1  ;;  %v9784_v46 = vsel %vm8181_vm1, %v9134_v43, -inf  ;;  %10343 = vst.msk [vmem:[%s15306_s10 + $0x48] sm:$0xff] %vm8181_vm1, %v10275_v47  ;;  %v8748_v57 = vadd.f32 %v15757_v51, %v15623_v25  ;;  %v8769_v16 = vadd.f32 %v15757_v51, %v15631_v49  ;;  %v8761_v45 = vadd.f32 %v15757_v51, %v15639_v5 }
 0x50a   : > { %v9745_v12 = vrot.slane %v9744_v62, 2  ;;  %v9785_v58 = vrot.slane %v9784_v46, 4  ;;  %v9779_v3 = vmax.f32 %v9777_v26, %v9778_v59  ;;  %v9765_v22 = vmax.f32 %v9763_v9, %v9764_v44 }
 0x50b   : > { %v8772_v7 = vadd.f32 %v15757_v51, %v15644_v13  ;;  %v9004_v34 = vmul.f32 0.2, %v8748_v57  ;;  %v9009_v36 = vmul.f32 0.2, %v8769_v16  ;;  %v9007_v50 = vmul.f32 0.2, %v8761_v45 }
 0x50c   : > { %v9746_v17 = vmax.f32 %v9744_v62, %v9745_v12  ;;  %v9786_v6 = vmax.f32 %v9784_v46, %v9785_v58  ;;  %v9780_v24 = vrot.slane %v9779_v3, 2  ;;  %v9766_v42 = vrot.slane %v9765_v22, 2 }
 0x50d   : > { %v9010_v10 = vmul.f32 0.2, %v8772_v7  ;;  %v9132_v53 = vmax.f32 %v8748_v57, %v9004_v34  ;;  %v9137_v49 = vmax.f32 %v8769_v16, %v9009_v36  ;;  %v9135_v5 = vmax.f32 %v8761_v45, %v9007_v50 }
 0x50e   : > { %v9747_v25 = vrot.slane %v9746_v17, 1  ;;  %v9787_v28 = vrot.slane %v9786_v6, 2  ;;  %v15767_v52 = vpop.f32.mrb[184].mxu1  ;;  %v9781_v60 = vmax.f32 %v9779_v3, %v9780_v24  ;;  %v9767_v23 = vmax.f32 %v9765_v22, %v9766_v42 }
 0x50f   : > { %v9138_v48 = vmax.f32 %v8772_v7, %v9010_v10  ;;  %v15769_v11 = vpop.f32.mrb[185].mxu1  ;;  %v9770_v26 = vsel %vm8181_vm1, %v9132_v53, -inf  ;;  %v9805_v9 = vsel %vm8181_vm1, %v9137_v49, -inf  ;;  %v9755_v63 = vmax.f32 %v15729_v41, %v9754_v30 }
 0x510   : > { %v9748_v13 = vmax.f32 %v9746_v17, %v9747_v25  ;;  %v9788_v38 = vmax.f32 %v9786_v6, %v9787_v28  ;;  %v15773_v43 = vpop.f32.mrb[186].mxu1  ;;  %v9768_v62 = vrot.slane %v9767_v23, 1  ;;  %v9771_v47 = vrot.slane %v9770_v26, 4 }
 0x511   : > { %v9806_v59 = vrot.slane %v9805_v9, 4  ;;  %v15776_v44 = vpop.f32.mrb[187].mxu1  ;;  %v9762_v46 = vmax.f32 %v15733_v0, %v9761_v1  ;;  %v9791_v58 = vsel %vm8181_vm1, %v9135_v5, -inf  ;;  %v9812_v57 = vsel %vm8181_vm1, %v9138_v48, -inf }
 0x512   : > { %v10276_v12 = vsel %vm10199_vm2, %v9748_v13, %v9741_v32  ;;  %v9782_v3 = vrot.slane %v9781_v60, 1  ;;  %v9769_v22 = vmax.f32 %v9767_v23, %v9768_v62  ;;  %v9772_v45 = vmax.f32 %v9770_v26, %v9771_v47 }
 0x513   : > { %v10277_v16 = vsel %vm10201_vm3, %v9755_v63, %v10276_v12  ;;  %v9789_v30 = vrot.slane %v9788_v38, 1  ;;  %v9807_v7 = vmax.f32 %v9805_v9, %v9806_v59  ;;  %v9792_v17 = vrot.slane %v9791_v58, 4 }
 0x514   : > { %v10278_v41 = vsel %vm10203_vm4, %v9762_v46, %v10277_v16  ;;  %v9773_v34 = vrot.slane %v9772_v45, 2  ;;  %v9813_v0 = vrot.slane %v9812_v57, 4  ;;  %v8764_v32 = vadd.f32 %v15757_v51, %v15648_v8 }
 0x515   : > { %v10279_v6 = vsel %vm10205_vm5, %v9769_v22, %v10278_v41  ;;  %v9808_v36 = vrot.slane %v9807_v7, 2  ;;  %v9793_v24 = vmax.f32 %v9791_v58, %v9792_v17  ;;  %v8785_v42 = vadd.f32 %v15757_v51, %v15652_v20 }
 0x516   : > { %v15787_v1 = vpop.f32.mrb[188].mxu1  ;;  %v8777_v50 = vadd.f32 %v15757_v51, %v15655_v14  ;;  %v9774_v25 = vmax.f32 %v9772_v45, %v9773_v34  ;;  %v9814_v28 = vmax.f32 %v9812_v57, %v9813_v0  ;;  %v9008_v53 = vmul.f32 0.2, %v8764_v32 }
 0x517   : > { %v15793_v10 = vpop.f32.mrb[189].mxu1  ;;  %v8788_v49 = vadd.f32 %v15757_v51, %v15658_v31  ;;  %v9809_v8 = vmax.f32 %v9807_v7, %v9808_v36  ;;  %v9794_v5 = vrot.slane %v9793_v24, 2  ;;  %v9013_v48 = vmul.f32 0.2, %v8785_v42 }
 0x518   : > { %v15797_v23 = vpop.f32.mrb[190].mxu1  ;;  %v9011_v13 = vmul.f32 0.2, %v8777_v50  ;;  %v9775_v20 = vrot.slane %v9774_v25, 1  ;;  %v9815_v9 = vrot.slane %v9814_v28, 2  ;;  %v9136_v63 = vmax.f32 %v8764_v32, %v9008_v53 }
 0x519   : > { %v15799_v26 = vpop.f32.mrb[191].mxu1  ;;  %v9014_v14 = vmul.f32 0.2, %v8788_v49  ;;  %v9810_v62 = vrot.slane %v9809_v8, 1  ;;  %v9795_v47 = vmax.f32 %v9793_v24, %v9794_v5  ;;  %v9141_v59 = vmax.f32 %v8785_v42, %v9013_v48 }
 0x51a   : > { %v9139_v46 = vmax.f32 %v8777_v50, %v9011_v13  ;;  %v9776_v12 = vmax.f32 %v9774_v25, %v9775_v20  ;;  %v9816_v58 = vmax.f32 %v9814_v28, %v9815_v9  ;;  %v9798_v31 = vsel %vm8181_vm1, %v9136_v63, -inf }
 0x51b   : > { %v9142_v57 = vmax.f32 %v8788_v49, %v9014_v14  ;;  %v9783_v16 = vmax.f32 %v9781_v60, %v9782_v3  ;;  %v9790_v22 = vmax.f32 %v9788_v38, %v9789_v30  ;;  %v9799_v45 = vrot.slane %v9798_v31, 4 }
 0x51c   : > { %v9833_v41 = vsel %vm8181_vm1, %v9141_v59, -inf  ;;  %v10280_v7 = vsel %vm10207_vm6, %v9776_v12, %v10279_v6  ;;  %v9811_v17 = vmax.f32 %v9809_v8, %v9810_v62  ;;  %v9819_v0 = vsel %vm8181_vm1, %v9139_v46, -inf }
 0x51d   : > { %v9834_v34 = vrot.slane %v9833_v41, 4  ;;  %v10281_v36 = vsel %vm10209_vm7, %v9783_v16, %v10280_v7  ;;  %v9796_v24 = vrot.slane %v9795_v47, 1  ;;  %v9800_v42 = vmax.f32 %v9798_v31, %v9799_v45 }
 0x51e   : > { %v15805_v32 = vpop.f32.mrb[192].mxu1  ;;  %v9820_v50 = vrot.slane %v9819_v0, 4  ;;  %v10282_v60 = vsel %vm10211_vm8, %v9790_v22, %v10281_v36  ;;  %v9817_v38 = vrot.slane %v9816_v58, 1  ;;  %v9840_v30 = vsel %vm8181_vm1, %v9142_v57, -inf }
 0x51f   : > { %v15808_v25 = vpop.f32.mrb[193].mxu1  ;;  %v9835_v3 = vmax.f32 %v9833_v41, %v9834_v34  ;;  %10344 = vst.msk [vmem:[%s15306_s10 + $0x50] sm:$0xff] %vm8181_vm1, %v10282_v60  ;;  %v9801_v28 = vrot.slane %v9800_v42, 2  ;;  %v9841_v49 = vrot.slane %v9840_v30, 4  ;;  %v8780_v8 = vadd.f32 %v15757_v51, %v15662_v2 }
 0x520   : > { %v15812_v6 = vpop.f32.mrb[194].mxu1  ;;  %v9821_v53 = vmax.f32 %v9819_v0, %v9820_v50  ;;  %v8801_v13 = vadd.f32 %v15757_v51, %v15674_v55  ;;  %v8793_v20 = vadd.f32 %v15757_v51, %v15676_v15  ;;  %v8804_v9 = vadd.f32 %v15757_v51, %v15678_v29 }
 0x521   : > { %v15818_v5 = vpop.f32.mrb[195].mxu1  ;;  %v9836_v48 = vrot.slane %v9835_v3, 2  ;;  %v9802_v63 = vmax.f32 %v9800_v42, %v9801_v28  ;;  %v9842_v62 = vmax.f32 %v9840_v30, %v9841_v49  ;;  %v9012_v59 = vmul.f32 0.2, %v8780_v8 }
 0x522   : > { %v9822_v14 = vrot.slane %v9821_v53, 2  ;;  %v9017_v12 = vmul.f32 0.2, %v8801_v13  ;;  %v9015_v31 = vmul.f32 0.2, %v8793_v20  ;;  %v9797_v41 = vmax.f32 %v9795_v47, %v9796_v24 }
 0x523   : > { %v9837_v46 = vmax.f32 %v9835_v3, %v9836_v48  ;;  %v9018_v2 = vmul.f32 0.2, %v8804_v9  ;;  %v9803_v57 = vrot.slane %v9802_v63, 1  ;;  %v9843_v22 = vrot.slane %v9842_v62, 2 }
 0x524   : > { %v9823_v16 = vmax.f32 %v9821_v53, %v9822_v14  ;;  %v9140_v45 = vmax.f32 %v8780_v8, %v9012_v59  ;;  %v9145_v55 = vmax.f32 %v8801_v13, %v9017_v12  ;;  %v9143_v7 = vmax.f32 %v8793_v20, %v9015_v31 }
 0x525   : > { %v9146_v34 = vmax.f32 %v8804_v9, %v9018_v2  ;;  %v9804_v0 = vmax.f32 %v9802_v63, %v9803_v57  ;;  %v9844_v36 = vmax.f32 %v9842_v62, %v9843_v22  ;;  %v9818_v60 = vmax.f32 %v9816_v58, %v9817_v38 }
 0x526   : > { %v15826_v15 = vpop.f32.mrb[196].mxu1  ;;  %v9824_v29 = vrot.slane %v9823_v16, 1  ;;  %v9826_v42 = vsel %vm8181_vm1, %v9140_v45, -inf  ;;  %v9861_v30 = vsel %vm8181_vm1, %v9145_v55, -inf  ;;  %v9847_v28 = vsel %vm8181_vm1, %v9143_v7, -inf }
 0x527   : > { %v15829_v50 = vpop.f32.mrb[197].mxu1  ;;  %v9827_v3 = vrot.slane %v9826_v42, 4  ;;  %v10283_v47 = vsel %vm10199_vm2, %v9804_v0, %v9797_v41  ;;  %v9838_v24 = vrot.slane %v9837_v46, 1  ;;  %v9862_v8 = vrot.slane %v9861_v30, 4 }
 0x528   : > { %v15833_v53 = vpop.f32.mrb[198].mxu1  ;;  %v9825_v49 = vmax.f32 %v9823_v16, %v9824_v29  ;;  %v10284_v13 = vsel %vm10201_vm3, %v9811_v17, %v10283_v47  ;;  %v9848_v9 = vrot.slane %v9847_v28, 4  ;;  %v9868_v58 = vsel %vm8181_vm1, %v9146_v34, -inf }
 0x529   : > { %v15836_v48 = vpop.f32.mrb[199].mxu1  ;;  %v9828_v20 = vmax.f32 %v9826_v42, %v9827_v3  ;;  %v10285_v38 = vsel %vm10203_vm4, %v9818_v60, %v10284_v13  ;;  %v9845_v63 = vrot.slane %v9844_v36, 1  ;;  %v9863_v14 = vmax.f32 %v9861_v30, %v9862_v8 }
 0x52a   : > { %v9869_v62 = vrot.slane %v9868_v58, 4  ;;  %v10286_v59 = vsel %vm10205_vm5, %v9825_v49, %v10285_v38  ;;  %v9849_v31 = vmax.f32 %v9847_v28, %v9848_v9  ;;  %v8796_v2 = vadd.f32 %v15757_v51, %v15681_v18 }
 0x52b   : > { %v9829_v12 = vrot.slane %v9828_v20, 2  ;;  %v9864_v57 = vrot.slane %v9863_v14, 2  ;;  %v8817_v17 = vadd.f32 %v15757_v51, %v15697_v35  ;;  %v8809_v22 = vadd.f32 %v15757_v51, %v15701_v56 }
 0x52c   : > { %v9870_v16 = vmax.f32 %v9868_v58, %v9869_v62  ;;  %v9850_v41 = vrot.slane %v9849_v31, 2  ;;  %v9016_v55 = vmul.f32 0.2, %v8796_v2  ;;  %v8820_v7 = vadd.f32 %v15757_v51, %v15703_v4 }
 0x52d   : > { %v9830_v45 = vmax.f32 %v9828_v20, %v9829_v12  ;;  %v9865_v34 = vmax.f32 %v9863_v14, %v9864_v57  ;;  %v9021_v29 = vmul.f32 0.2, %v8817_v17  ;;  %v9019_v42 = vmul.f32 0.2, %v8809_v22 }
 0x52e   : > { %v9871_v0 = vrot.slane %v9870_v16, 2  ;;  %v9851_v18 = vmax.f32 %v9849_v31, %v9850_v41  ;;  %v9144_v3 = vmax.f32 %v8796_v2, %v9016_v55  ;;  %v9022_v30 = vmul.f32 0.2, %v8820_v7 }
 0x52f   : > { %v9831_v60 = vrot.slane %v9830_v45, 1  ;;  %v9866_v28 = vrot.slane %v9865_v34, 1  ;;  %v9149_v35 = vmax.f32 %v8817_v17, %v9021_v29  ;;  %v9147_v49 = vmax.f32 %v8809_v22, %v9019_v42 }
 0x530   : > { %v9872_v47 = vmax.f32 %v9870_v16, %v9871_v0  ;;  %v9839_v8 = vmax.f32 %v9837_v46, %v9838_v24  ;;  %v9854_v13 = vsel %vm8181_vm1, %v9144_v3, -inf  ;;  %v9150_v20 = vmax.f32 %v8820_v7, %v9022_v30 }
 0x531   : > { %v9832_v56 = vmax.f32 %v9830_v45, %v9831_v60  ;;  %v9846_v9 = vmax.f32 %v9844_v36, %v9845_v63  ;;  %v9852_v4 = vrot.slane %v9851_v18, 1  ;;  %v9855_v58 = vrot.slane %v9854_v13, 4 }
 0x532   : > { %v9889_v38 = vsel %vm8181_vm1, %v9149_v35, -inf  ;;  %v9867_v62 = vmax.f32 %v9865_v34, %v9866_v28  ;;  %v9875_v31 = vsel %vm8181_vm1, %v9147_v49, -inf  ;;  %v9873_v57 = vrot.slane %v9872_v47, 1 }
 0x533   : > { %v10287_v14 = vsel %vm10207_vm6, %v9832_v56, %v10286_v59  ;;  %v9890_v12 = vrot.slane %v9889_v38, 4  ;;  %v9856_v46 = vmax.f32 %v9854_v13, %v9855_v58  ;;  %v9876_v24 = vrot.slane %v9875_v31, 4 }
 0x534   : > { %v10288_v2 = vsel %vm10209_vm7, %v9839_v8, %v10287_v14  ;;  %v9896_v36 = vsel %vm8181_vm1, %v9150_v20, -inf  ;;  %v8812_v63 = vadd.f32 %v15757_v51, %v15705_v27  ;;  %v8833_v41 = vadd.f32 %v15757_v51, %v15712_v37 }
 0x535   : > { %v10289_v16 = vsel %vm10211_vm8, %v9846_v9, %v10288_v2  ;;  %v9891_v17 = vmax.f32 %v9889_v38, %v9890_v12  ;;  %v9857_v59 = vrot.slane %v9856_v46, 2  ;;  %v9877_v22 = vmax.f32 %v9875_v31, %v9876_v24 }
 0x536   : > { %10345 = vst.msk [vmem:[%s15306_s10 + $0x58] sm:$0xff] %vm8181_vm1, %v10289_v16  ;;  %v9897_v45 = vrot.slane %v9896_v36, 4  ;;  %v9020_v7 = vmul.f32 0.2, %v8812_v63  ;;  %v8825_v34 = vadd.f32 %v15757_v51, %v15715_v33  ;;  %v8836_v0 = vadd.f32 %v15757_v51, %v15720_v39 }
 0x537   : > { %v9892_v55 = vrot.slane %v9891_v17, 2  ;;  %v9858_v29 = vmax.f32 %v9856_v46, %v9857_v59  ;;  %v9878_v42 = vrot.slane %v9877_v22, 2  ;;  %v9025_v27 = vmul.f32 0.2, %v8833_v41 }
 0x538   : > { %v9898_v60 = vmax.f32 %v9896_v36, %v9897_v45  ;;  %v9148_v30 = vmax.f32 %v8812_v63, %v9020_v7  ;;  %v9023_v28 = vmul.f32 0.2, %v8825_v34  ;;  %v9026_v35 = vmul.f32 0.2, %v8836_v0 }
 0x539   : > { %v9893_v3 = vmax.f32 %v9891_v17, %v9892_v55  ;;  %v9859_v49 = vrot.slane %v9858_v29, 1  ;;  %v9879_v8 = vmax.f32 %v9877_v22, %v9878_v42  ;;  %v9153_v37 = vmax.f32 %v8833_v41, %v9025_v27 }
 0x53a   : > { %v9899_v56 = vrot.slane %v9898_v60, 2  ;;  %v9853_v13 = vmax.f32 %v9851_v18, %v9852_v4  ;;  %v9882_v20 = vsel %vm8181_vm1, %v9148_v30, -inf  ;;  %v9151_v9 = vmax.f32 %v8825_v34, %v9023_v28 }
 0x53b   : > { %v9154_v33 = vmax.f32 %v8836_v0, %v9026_v35  ;;  %v9860_v58 = vmax.f32 %v9858_v29, %v9859_v49  ;;  %v9880_v38 = vrot.slane %v9879_v8, 1  ;;  %v9883_v14 = vrot.slane %v9882_v20, 4 }
 0x53c   : > { %v9900_v39 = vmax.f32 %v9898_v60, %v9899_v56  ;;  %v9874_v12 = vmax.f32 %v9872_v47, %v9873_v57  ;;  %v9917_v31 = vsel %vm8181_vm1, %v9153_v37, -inf  ;;  %v9903_v2 = vsel %vm8181_vm1, %v9151_v9, -inf }
 0x53d   : > { %v9924_v46 = vsel %vm8181_vm1, %v9154_v33, -inf  ;;  %v10290_v24 = vsel %vm10199_vm2, %v9860_v58, %v9853_v13  ;;  %v9894_v16 = vrot.slane %v9893_v3, 1  ;;  %v9881_v17 = vmax.f32 %v9879_v8, %v9880_v38 }
 0x53e   : > { %v9884_v18 = vmax.f32 %v9882_v20, %v9883_v14  ;;  %v10291_v4 = vsel %vm10201_vm3, %v9867_v62, %v10290_v24  ;;  %v9918_v36 = vrot.slane %v9917_v31, 4  ;;  %v9904_v63 = vrot.slane %v9903_v2, 4 }
 0x53f   : > { %v9925_v59 = vrot.slane %v9924_v46, 4  ;;  %v10292_v22 = vsel %vm10203_vm4, %v9874_v12, %v10291_v4  ;;  %v9901_v45 = vrot.slane %v9900_v39, 1  ;;  %v8828_v57 = vadd.f32 %v15757_v51, %v15723_v19 }
 0x540   : > { %v9885_v47 = vrot.slane %v9884_v18, 2  ;;  %v10293_v41 = vsel %vm10205_vm5, %v9881_v17, %v10292_v22  ;;  %v9919_v55 = vmax.f32 %v9917_v31, %v9918_v36  ;;  %v9905_v7 = vmax.f32 %v9903_v2, %v9904_v63 }
 0x541   : > { %v9926_v34 = vmax.f32 %v9924_v46, %v9925_v59  ;;  %v9024_v29 = vmul.f32 0.2, %v8828_v57  ;;  %v8849_v62 = vadd.f32 %v15757_v51, %v15736_v40  ;;  %v8841_v42 = vadd.f32 %v15757_v51, %v15739_v61 }
 0x542   : > { %v9886_v0 = vmax.f32 %v9884_v18, %v9885_v47  ;;  %v9920_v60 = vrot.slane %v9919_v55, 2  ;;  %v9906_v27 = vrot.slane %v9905_v7, 2  ;;  %v8852_v28 = vadd.f32 %v15757_v51, %v15744_v21 }
 0x543   : > { %v9927_v30 = vrot.slane %v9926_v34, 2  ;;  %v9152_v35 = vmax.f32 %v8828_v57, %v9024_v29  ;;  %v9029_v49 = vmul.f32 0.2, %v8849_v62  ;;  %v9027_v8 = vmul.f32 0.2, %v8841_v42 }
 0x544   : > { %v9887_v19 = vrot.slane %v9886_v0, 1  ;;  %v9921_v56 = vmax.f32 %v9919_v55, %v9920_v60  ;;  %v9907_v37 = vmax.f32 %v9905_v7, %v9906_v27  ;;  %v9030_v20 = vmul.f32 0.2, %v8852_v28 }
 0x545   : > { %v9928_v13 = vmax.f32 %v9926_v34, %v9927_v30  ;;  %v9910_v40 = vsel %vm8181_vm1, %v9152_v35, -inf  ;;  %v9157_v33 = vmax.f32 %v8849_v62, %v9029_v49  ;;  %v9155_v58 = vmax.f32 %v8841_v42, %v9027_v8 }
 0x546   : > { %v9888_v9 = vmax.f32 %v9886_v0, %v9887_v19  ;;  %v9895_v61 = vmax.f32 %v9893_v3, %v9894_v16  ;;  %v9902_v38 = vmax.f32 %v9900_v39, %v9901_v45  ;;  %v9922_v14 = vrot.slane %v9921_v56, 1 }
 0x547   : > { %v9911_v12 = vrot.slane %v9910_v40, 4  ;;  %v9945_v31 = vsel %vm8181_vm1, %v9157_v33, -inf  ;;  %v9931_v2 = vsel %vm8181_vm1, %v9155_v58, -inf  ;;  %v9158_v46 = vmax.f32 %v8852_v28, %v9030_v20 }
 0x548   : > { %v10294_v21 = vsel %vm10207_vm6, %v9888_v9, %v10293_v41  ;;  %v9923_v17 = vmax.f32 %v9921_v56, %v9922_v14  ;;  %v9908_v18 = vrot.slane %v9907_v37, 1  ;;  %v9929_v4 = vrot.slane %v9928_v13, 1 }
 0x549   : > { %v10295_v24 = vsel %vm10209_vm7, %v9895_v61, %v10294_v21  ;;  %v9912_v63 = vmax.f32 %v9910_v40, %v9911_v12  ;;  %v9946_v3 = vrot.slane %v9945_v31, 4  ;;  %v9932_v16 = vrot.slane %v9931_v2, 4 }
 0x54a   : > { %v10296_v36 = vsel %vm10211_vm8, %v9902_v38, %v10295_v24  ;;  %v9952_v39 = vsel %vm8181_vm1, %v9158_v46, -inf  ;;  %v8844_v59 = vadd.f32 %v15757_v51, %v15748_v54  ;;  %v8865_v22 = vadd.f32 %v15757_v51, %v15767_v52 }
 0x54b   : > { %10346 = vst.msk [vmem:[%s15306_s10 + $0x60] sm:$0xff] %vm8181_vm1, %v10296_v36  ;;  %v8857_v45 = vadd.f32 %v15757_v51, %v15769_v11  ;;  %v9913_v47 = vrot.slane %v9912_v63, 2  ;;  %v9947_v57 = vmax.f32 %v9945_v31, %v9946_v3  ;;  %v9933_v41 = vmax.f32 %v9931_v2, %v9932_v16 }
 0x54c   : > { %v9953_v55 = vrot.slane %v9952_v39, 4  ;;  %v9028_v7 = vmul.f32 0.2, %v8844_v59  ;;  %v9033_v34 = vmul.f32 0.2, %v8865_v22  ;;  %v8868_v29 = vadd.f32 %v15757_v51, %v15773_v43 }
 0x54d   : > { %v9031_v0 = vmul.f32 0.2, %v8857_v45  ;;  %v9914_v62 = vmax.f32 %v9912_v63, %v9913_v47  ;;  %v9948_v42 = vrot.slane %v9947_v57, 2  ;;  %v9934_v60 = vrot.slane %v9933_v41, 2 }
 0x54e   : > { %v9954_v54 = vmax.f32 %v9952_v39, %v9953_v55  ;;  %v9156_v27 = vmax.f32 %v8844_v59, %v9028_v7  ;;  %v9161_v30 = vmax.f32 %v8865_v22, %v9033_v34  ;;  %v9034_v28 = vmul.f32 0.2, %v8868_v29 }
 0x54f   : > { %v9159_v52 = vmax.f32 %v8857_v45, %v9031_v0  ;;  %v9915_v19 = vrot.slane %v9914_v62, 1  ;;  %v9949_v11 = vmax.f32 %v9947_v57, %v9948_v42  ;;  %v9935_v35 = vmax.f32 %v9933_v41, %v9934_v60 }
 0x550   : > { %v9955_v49 = vrot.slane %v9954_v54, 2  ;;  %v9938_v8 = vsel %vm8181_vm1, %v9156_v27, -inf  ;;  %v9973_v56 = vsel %vm8181_vm1, %v9161_v30, -inf  ;;  %v9162_v9 = vmax.f32 %v8868_v29, %v9034_v28 }
 0x551   : > { %v9959_v20 = vsel %vm8181_vm1, %v9159_v52, -inf  ;;  %v9909_v43 = vmax.f32 %v9907_v37, %v9908_v18  ;;  %v9916_v40 = vmax.f32 %v9914_v62, %v9915_v19  ;;  %v9936_v33 = vrot.slane %v9935_v35, 1 }
 0x552   : > { %v9956_v58 = vmax.f32 %v9954_v54, %v9955_v49  ;;  %v9939_v61 = vrot.slane %v9938_v8, 4  ;;  %v9974_v38 = vrot.slane %v9973_v56, 4  ;;  %v9960_v14 = vrot.slane %v9959_v20, 4 }
 0x553   : > { %v9980_v12 = vsel %vm8181_vm1, %v9162_v9, -inf  ;;  %v9930_v21 = vmax.f32 %v9928_v13, %v9929_v4  ;;  %v10297_v31 = vsel %vm10199_vm2, %v9916_v40, %v9909_v43  ;;  %v9950_v2 = vrot.slane %v9949_v11, 1 }
 0x554   : > { %v9937_v46 = vmax.f32 %v9935_v35, %v9936_v33  ;;  %v10298_v24 = vsel %vm10201_vm3, %v9923_v17, %v10297_v31  ;;  %v9940_v36 = vmax.f32 %v9938_v8, %v9939_v61  ;;  %v9975_v63 = vmax.f32 %v9973_v56, %v9974_v38 }
 0x555   : > { %v9961_v3 = vmax.f32 %v9959_v20, %v9960_v14  ;;  %v10299_v37 = vsel %vm10203_vm4, %v9930_v21, %v10298_v24  ;;  %v9957_v18 = vrot.slane %v9956_v58, 1  ;;  %v9981_v16 = vrot.slane %v9980_v12, 4 }
 0x556   : > { %v8860_v39 = vadd.f32 %v15757_v51, %v15776_v44  ;;  %v10300_v59 = vsel %vm10205_vm5, %v9937_v46, %v10299_v37  ;;  %v9941_v22 = vrot.slane %v9940_v36, 2  ;;  %v9976_v13 = vrot.slane %v9975_v63, 2 }
 0x557   : > { %v9962_v4 = vrot.slane %v9961_v3, 2  ;;  %v9982_v45 = vmax.f32 %v9980_v12, %v9981_v16  ;;  %v8881_v17 = vadd.f32 %v15757_v51, %v15787_v1  ;;  %v8873_v57 = vadd.f32 %v15757_v51, %v15793_v10 }
 0x558   : > { %v9032_v47 = vmul.f32 0.2, %v8860_v39  ;;  %v9942_v41 = vmax.f32 %v9940_v36, %v9941_v22  ;;  %v9977_v55 = vmax.f32 %v9975_v63, %v9976_v13  ;;  %v8884_v34 = vadd.f32 %v15757_v51, %v15797_v23 }
 0x559   : > { %v9963_v7 = vmax.f32 %v9961_v3, %v9962_v4  ;;  %v9983_v44 = vrot.slane %v9982_v45, 2  ;;  %v9037_v29 = vmul.f32 0.2, %v8881_v17  ;;  %v9035_v62 = vmul.f32 0.2, %v8873_v57 }
 0x55a   : > { %v9160_v0 = vmax.f32 %v8860_v39, %v9032_v47  ;;  %v9951_v42 = vmax.f32 %v9949_v11, %v9950_v2  ;;  %v9943_v60 = vrot.slane %v9942_v41, 1  ;;  %v9038_v54 = vmul.f32 0.2, %v8884_v34 }
 0x55b   : > { %v9978_v27 = vrot.slane %v9977_v55, 1  ;;  %v9165_v1 = vmax.f32 %v8881_v17, %v9037_v29  ;;  %v9163_v52 = vmax.f32 %v8873_v57, %v9035_v62  ;;  %v9958_v28 = vmax.f32 %v9956_v58, %v9957_v18 }
 0x55c   : > { %v9966_v30 = vsel %vm8181_vm1, %v9160_v0, -inf  ;;  %v9944_v10 = vmax.f32 %v9942_v41, %v9943_v60  ;;  %v9964_v19 = vrot.slane %v9963_v7, 1  ;;  %v9984_v49 = vmax.f32 %v9982_v45, %v9983_v44 }
 0x55d   : > { %v9967_v35 = vrot.slane %v9966_v30, 4  ;;  %v10001_v23 = vsel %vm8181_vm1, %v9165_v1, -inf  ;;  %v9987_v8 = vsel %vm8181_vm1, %v9163_v52, -inf  ;;  %v9166_v56 = vmax.f32 %v8884_v34, %v9038_v54 }
 0x55e   : > { %v10301_v11 = vsel %vm10207_vm6, %v9944_v10, %v10300_v59  ;;  %v10002_v9 = vrot.slane %v10001_v23, 4  ;;  %v9988_v43 = vrot.slane %v9987_v8, 4  ;;  %v9979_v33 = vmax.f32 %v9977_v55, %v9978_v27 }
 0x55f   : > { %v9968_v20 = vmax.f32 %v9966_v30, %v9967_v35  ;;  %v10302_v40 = vsel %vm10209_vm7, %v9951_v42, %v10301_v11  ;;  %v10008_v58 = vsel %vm8181_vm1, %v9166_v56, -inf  ;;  %v8876_v61 = vadd.f32 %v15757_v51, %v15799_v26 }
 0x560   : > { %v10303_v38 = vsel %vm10211_vm8, %v9958_v28, %v10302_v40  ;;  %v10003_v12 = vmax.f32 %v10001_v23, %v10002_v9  ;;  %v9989_v21 = vmax.f32 %v9987_v8, %v9988_v43  ;;  %v10009_v31 = vrot.slane %v10008_v58, 4 }
 0x561   : > { %v9969_v14 = vrot.slane %v9968_v20, 2  ;;  %10347 = vst.msk [vmem:[%s15306_s10 + $0x68] sm:$0xff] %vm8181_vm1, %v10303_v38  ;;  %v9036_v2 = vmul.f32 0.2, %v8876_v61  ;;  %v8897_v46 = vadd.f32 %v15757_v51, %v15805_v32  ;;  %v8889_v24 = vadd.f32 %v15757_v51, %v15808_v25 }
 0x562   : > { %v10004_v63 = vrot.slane %v10003_v12, 2  ;;  %v9990_v3 = vrot.slane %v9989_v21, 2  ;;  %v8900_v26 = vadd.f32 %v15757_v51, %v15812_v6  ;;  %v10010_v37 = vmax.f32 %v10008_v58, %v10009_v31 }
 0x563   : > { %v9970_v36 = vmax.f32 %v9968_v20, %v9969_v14  ;;  %v9164_v18 = vmax.f32 %v8876_v61, %v9036_v2  ;;  %v9041_v16 = vmul.f32 0.2, %v8897_v46  ;;  %v9039_v39 = vmul.f32 0.2, %v8889_v24 }
 0x564   : > { %v9985_v59 = vrot.slane %v9984_v49, 1  ;;  %v9991_v13 = vmax.f32 %v9989_v21, %v9990_v3  ;;  %v9042_v4 = vmul.f32 0.2, %v8900_v26  ;;  %v10011_v45 = vrot.slane %v10010_v37, 2 }
 0x565   : > { %v9971_v22 = vrot.slane %v9970_v36, 1  ;;  %v9994_v32 = vsel %vm8181_vm1, %v9164_v18, -inf  ;;  %v9169_v47 = vmax.f32 %v8897_v46, %v9041_v16  ;;  %v9167_v17 = vmax.f32 %v8889_v24, %v9039_v39 }
 0x566   : > { %v9965_v25 = vmax.f32 %v9963_v7, %v9964_v19  ;;  %v9992_v41 = vrot.slane %v9991_v13, 1  ;;  %v9995_v55 = vrot.slane %v9994_v32, 4  ;;  %v10005_v34 = vmax.f32 %v10003_v12, %v10004_v63 }
 0x567   : > { %v9972_v57 = vmax.f32 %v9970_v36, %v9971_v22  ;;  %v10029_v6 = vsel %vm8181_vm1, %v9169_v47, -inf  ;;  %v10015_v44 = vsel %vm8181_vm1, %v9167_v17, -inf  ;;  %v9170_v0 = vmax.f32 %v8900_v26, %v9042_v4 }
 0x568   : > { %v9986_v29 = vmax.f32 %v9984_v49, %v9985_v59  ;;  %v9993_v42 = vmax.f32 %v9991_v13, %v9992_v41  ;;  %v9996_v60 = vmax.f32 %v9994_v32, %v9995_v55  ;;  %v10012_v27 = vmax.f32 %v10010_v37, %v10011_v45 }
 0x569   : > { %v10304_v62 = vsel %vm10199_vm2, %v9972_v57, %v9965_v25  ;;  %v10030_v30 = vrot.slane %v10029_v6, 4  ;;  %v10016_v1 = vrot.slane %v10015_v44, 4  ;;  %v10036_v28 = vsel %vm8181_vm1, %v9170_v0, -inf }
 0x56a   : > { %v10305_v54 = vsel %vm10201_vm3, %v9979_v33, %v10304_v62  ;;  %v9997_v52 = vrot.slane %v9996_v60, 2  ;;  %v8892_v10 = vadd.f32 %v15757_v51, %v15818_v5  ;;  %v10006_v19 = vrot.slane %v10005_v34, 1 }
 0x56b   : > { %v10306_v7 = vsel %vm10203_vm4, %v9986_v29, %v10305_v54  ;;  %v10031_v49 = vmax.f32 %v10029_v6, %v10030_v30  ;;  %v10017_v23 = vmax.f32 %v10015_v44, %v10016_v1  ;;  %v10037_v56 = vrot.slane %v10036_v28, 4 }
 0x56c   : > { %v10307_v35 = vsel %vm10205_vm5, %v9993_v42, %v10306_v7  ;;  %v9998_v8 = vmax.f32 %v9996_v60, %v9997_v52  ;;  %v9040_v11 = vmul.f32 0.2, %v8892_v10  ;;  %v8913_v20 = vadd.f32 %v15757_v51, %v15826_v15 }
 0x56d   : > { %v10013_v9 = vrot.slane %v10012_v27, 1  ;;  %v10018_v43 = vrot.slane %v10017_v23, 2  ;;  %v8905_v40 = vadd.f32 %v15757_v51, %v15829_v50  ;;  %v8916_v33 = vadd.f32 %v15757_v51, %v15833_v53 }
 0x56e   : > { %v9999_v5 = vrot.slane %v9998_v8, 1  ;;  %v10038_v58 = vmax.f32 %v10036_v28, %v10037_v56  ;;  %v9168_v61 = vmax.f32 %v8892_v10, %v9040_v11  ;;  %v9045_v38 = vmul.f32 0.2, %v8913_v20 }
 0x56f   : > { %v10032_v14 = vrot.slane %v10031_v49, 2  ;;  %v9043_v12 = vmul.f32 0.2, %v8905_v40  ;;  %v9046_v21 = vmul.f32 0.2, %v8916_v33  ;;  %v10007_v24 = vmax.f32 %v10005_v34, %v10006_v19 }
 0x570   : > { %v10000_v31 = vmax.f32 %v9998_v8, %v9999_v5  ;;  %v10039_v2 = vrot.slane %v10038_v58, 2  ;;  %v10022_v46 = vsel %vm8181_vm1, %v9168_v61, -inf  ;;  %v9173_v15 = vmax.f32 %v8913_v20, %v9045_v38 }
 0x571   : > { %v10014_v36 = vmax.f32 %v10012_v27, %v10013_v9  ;;  %v10023_v63 = vrot.slane %v10022_v46, 4  ;;  %v9171_v50 = vmax.f32 %v8905_v40, %v9043_v12  ;;  %v10019_v53 = vmax.f32 %v10017_v23, %v10018_v43 }
 0x572   : > { %v10308_v3 = vsel %vm10207_vm6, %v10000_v31, %v10307_v35  ;;  %v10057_v26 = vsel %vm8181_vm1, %v9173_v15, -inf  ;;  %v9174_v37 = vmax.f32 %v8916_v33, %v9046_v21  ;;  %v10033_v16 = vmax.f32 %v10031_v49, %v10032_v14 }
 0x573   : > { %v10309_v18 = vsel %vm10209_vm7, %v10007_v24, %v10308_v3  ;;  %v10024_v39 = vmax.f32 %v10022_v46, %v10023_v63  ;;  %v10040_v22 = vmax.f32 %v10038_v58, %v10039_v2  ;;  %v10058_v13 = vrot.slane %v10057_v26, 4 }
 0x574   : > { %v10310_v59 = vsel %vm10211_vm8, %v10014_v36, %v10309_v18  ;;  %v10043_v4 = vsel %vm8181_vm1, %v9171_v50, -inf  ;;  %v10064_v47 = vsel %vm8181_vm1, %v9174_v37, -inf  ;;  %v8908_v17 = vadd.f32 %v15757_v51, %v15836_v48 }
 0x575   : > { %10348 = vst.msk [vmem:[%s15306_s10 + $0x70] sm:$0xff] %vm8181_vm1, %v10310_v59  ;;  %v10025_v45 = vrot.slane %v10024_v39, 2  ;;  %v10044_v32 = vrot.slane %v10043_v4, 4  ;;  %v10020_v25 = vrot.slane %v10019_v53, 1  ;;  %v10065_v57 = vrot.slane %v10064_v47, 4 }
 0x576   : > { %v10059_v55 = vmax.f32 %v10057_v26, %v10058_v13  ;;  %v9044_v6 = vmul.f32 0.2, %v8908_v17  ;;  %v10034_v44 = vrot.slane %v10033_v16, 1  ;;  %v10041_v29 = vrot.slane %v10040_v22, 1 }
 0x577   : > { %v10026_v41 = vmax.f32 %v10024_v39, %v10025_v45  ;;  %v10045_v34 = vmax.f32 %v10043_v4, %v10044_v32  ;;  %v10066_v0 = vmax.f32 %v10064_v47, %v10065_v57  ;;  %v10021_v54 = vmax.f32 %v10019_v53, %v10020_v25 }
 0x578   : > { %v9172_v60 = vmax.f32 %v8908_v17, %v9044_v6  ;;  %v10060_v30 = vrot.slane %v10059_v55, 2  ;;  %v10035_v52 = vmax.f32 %v10033_v16, %v10034_v44  ;;  %v10042_v28 = vmax.f32 %v10040_v22, %v10041_v29 }
 0x579   : > { %v10027_v62 = vrot.slane %v10026_v41, 1  ;;  %v10046_v42 = vrot.slane %v10045_v34, 2  ;;  %v10067_v51 = vrot.slane %v10066_v0, 2 }
 0x57a   : > { %v10050_v7 = vsel %vm8181_vm1, %v9172_v60, -inf  ;;  %v10061_v23 = vmax.f32 %v10059_v55, %v10060_v30 }
 0x57b   : > { %v10028_v27 = vmax.f32 %v10026_v41, %v10027_v62  ;;  %v10047_v1 = vmax.f32 %v10045_v34, %v10046_v42  ;;  %v10051_v48 = vrot.slane %v10050_v7, 4  ;;  %v10068_v11 = vmax.f32 %v10066_v0, %v10067_v51 }
 0x57c   : > { %v10062_v40 = vrot.slane %v10061_v23, 1 }
 0x57d   : > { %v10311_v10 = vsel %vm10199_vm2, %v10028_v27, %v10021_v54  ;;  %v10048_v19 = vrot.slane %v10047_v1, 1  ;;  %v10052_v49 = vmax.f32 %v10050_v7, %v10051_v48  ;;  %v10069_v33 = vrot.slane %v10068_v11, 1 }
 0x57e   : > { %v10312_v35 = vsel %vm10201_vm3, %v10035_v52, %v10311_v10  ;;  %v10063_v61 = vmax.f32 %v10061_v23, %v10062_v40 }
 0x57f   : > { %v10049_v8 = vmax.f32 %v10047_v1, %v10048_v19  ;;  %v10313_v56 = vsel %vm10203_vm4, %v10042_v28, %v10312_v35  ;;  %v10053_v20 = vrot.slane %v10052_v49, 2  ;;  %v10070_v38 = vmax.f32 %v10068_v11, %v10069_v33 }
 0x581   : > { %v10314_v9 = vsel %vm10205_vm5, %v10049_v8, %v10313_v56  ;;  %v10054_v43 = vmax.f32 %v10052_v49, %v10053_v20 }
 0x583   : > { %v10055_v5 = vrot.slane %v10054_v43, 1 }
 0x585   : > { %v10056_v58 = vmax.f32 %v10054_v43, %v10055_v5 }
 0x587   : > { %v10315_v14 = vsel %vm10207_vm6, %v10056_v58, %v10314_v9 }
 0x588   : > { %v10316_v12 = vsel %vm10209_vm7, %v10063_v61, %v10315_v14 }
 0x589   : > { %v10317_v21 = vsel %vm10211_vm8, %v10070_v38, %v10316_v12 }
 0x58a   : > { %10349 = vst.msk [vmem:[%s15306_s10 + $0x78] sm:$0xff] %vm8181_vm1, %v10317_v21 }
 0x58b PF: > { %s18_s27 = sadd.s32 1, %s11379_s27  }
 0x58c   : > { %p15_p5 = scmp.ge.s32.totalorder %s18_s27, 4  }
 0x58e   :  { %17 = sbr.rel (!%p15_p5) target bundleno = 1 (0x1), region = 88 }

</bundles_post_ra>
